<compile_context>
chip_gen: v7x
topology: tpu7x:2x2x1
jax: 0.10.0
libtpu: 0.0.40
codegen_flags: <defaults>
</compile_context>

<pallas_src>
import math

import jax
import jax.numpy as jnp
from jax.experimental import pallas as pl
from jax.experimental.pallas import tpu as pltpu


# ----------------------------------------------------------------------------
# Config (consistent with ModelConfig(encoder_layer, input_size, window_size))
# ----------------------------------------------------------------------------
INPUT_SIZE = 32       # H = W = 32
IN_CHANNELS = 3       # RGB pixel values
PATCH = 4             # window_size -> used as patch size
EMBED_DIM = 128       # Swin embed dim
FFN_DIM = 256
TGT_LEN = 8           # NAT decoder target length (fixed learned queries)
VOCAB = 128           # synthetic dictionary size (dict file not loadable here)

N_SIDE = INPUT_SIZE // PATCH              # 8
N_TOK = N_SIDE * N_SIDE                   # 64
PATCH_DIM = IN_CHANNELS * PATCH * PATCH   # 48
PATCH_PAD = 128                           # lane-dense padded patch dim
ATTN_SCALE = 1.0 / math.sqrt(EMBED_DIM)
MAX_BBLK = 16                             # images per grid step ceiling

# Rows of the packed (16, 128) f32 vector bank.
(R_B_PATCH, R_G0, R_B0, R_G1, R_B1, R_B_FF2, R_G2, R_B2,
 R_GD0, R_BD0, R_B_DFF2, R_GD1, R_BD1, R_B_VOC) = range(14)

PARAM_NAMES = (
    "w_patch", "w_qkv", "w_o", "w_ff1", "w_ff2",
    "q_embed", "w_dq", "w_ekv", "w_do", "w_dff1", "w_dff2", "w_vocab",
    "vec_d", "vec_f",
)


# ----------------------------------------------------------------------------
# In-kernel helpers (values already in VMEM / vregs)
# ----------------------------------------------------------------------------
def _ln(x_f32, g, b):
    """Layer-norm in f32; g/b are (1, D) f32 values."""
    mu = jnp.mean(x_f32, axis=-1, keepdims=True)
    xc = x_f32 - mu
    var = jnp.mean(xc * xc, axis=-1, keepdims=True)
    return xc * jax.lax.rsqrt(var + 1e-5) * g + b


def _softmax_attn(q_bf16, k_bf16, v_bf16):
    """softmax(Q K^T) V per image.  Scale is pre-folded into the Q projection.

    q/k/v: (Bblk, Lq/Lk, D) bf16.  Scores + softmax stats in f32, GEMMs on
    bf16 operands with f32 accumulation.  Returns f32 (Bblk, Lq, D).
    """
    s = jnp.einsum("bqd,bkd->bqk", q_bf16, k_bf16,
                   preferred_element_type=jnp.float32)
    m = jnp.max(s, axis=-1, keepdims=True)
    p = jnp.exp(s - m)
    l = jnp.sum(p, axis=-1, keepdims=True)
    o = jnp.einsum("bqk,bkd->bqd", p.astype(jnp.bfloat16), v_bf16,
                   preferred_element_type=jnp.float32)
    return o * pl.reciprocal(l, approx=True)


# ----------------------------------------------------------------------------
# Fused whole-forward kernel (one grid step = Bblk batch elements)
# ----------------------------------------------------------------------------
def _fused_forward_kernel(x_ref,
                          wpe, wqkv, wo, wff1, wff2,
                          qemb, wdq, wekv, wdo, wdff1, wdff2, wvoc,
                          vec_d_ref, vec_f_ref,
                          o_ref):
    D = EMBED_DIM
    Bblk = x_ref.shape[0]
    Mt = Bblk * N_TOK          # token rows for encoder GEMMs
    Md = Bblk * TGT_LEN        # query rows for decoder GEMMs

    vec_d = vec_d_ref[...]     # (16, 128) f32 packed gammas/betas/biases
    vec_f = vec_f_ref[...]     # (2, 256)  f32 packed FFN biases

    def vD(r):
        return vec_d[r:r + 1, :]

    def vF(r):
        return vec_f[r:r + 1, :]

    # ---- encoder (SwinEncoder, simplified) ----------------------------------
    x = x_ref[...].reshape(Mt, PATCH_PAD)                       # bf16, lane-dense
    tok = jnp.dot(x, wpe[...], preferred_element_type=jnp.float32) + vD(R_B_PATCH)
    tok = _ln(tok, vD(R_G0), vD(R_B0))                          # f32 residual stream

    qkv = jnp.dot(tok.astype(jnp.bfloat16), wqkv[...],
                  preferred_element_type=jnp.float32).astype(jnp.bfloat16)
    qkv = qkv.reshape(Bblk, N_TOK, 3 * D)
    q = qkv[:, :, :D]                                           # scale pre-folded
    k = qkv[:, :, D:2 * D]
    v = qkv[:, :, 2 * D:]
    attn = _softmax_attn(q, k, v).astype(jnp.bfloat16).reshape(Mt, D)
    tok = tok + jnp.dot(attn, wo[...], preferred_element_type=jnp.float32)
    tok = _ln(tok, vD(R_G1), vD(R_B1))

    h = jnp.dot(tok.astype(jnp.bfloat16), wff1[...],
                preferred_element_type=jnp.float32) + vF(0)
    h = jax.nn.gelu(h, approximate=True).astype(jnp.bfloat16)
    ffn = jnp.dot(h, wff2[...], preferred_element_type=jnp.float32) + vD(R_B_FF2)
    enc = _ln(tok + ffn, vD(R_G2), vD(R_B2))                    # encoder_out (Mt, D)

    # ---- decoder (NATransformerDecoder, simplified non-autoregressive) ------
    dq0 = qemb[...]                                             # (TGT_LEN, D) f32
    dq = jnp.dot(dq0.astype(jnp.bfloat16), wdq[...],            # scale pre-folded
                 preferred_element_type=jnp.float32).astype(jnp.bfloat16)
    dq_b = jnp.broadcast_to(dq[None, :, :], (Bblk, TGT_LEN, D))

    ekv = jnp.dot(enc.astype(jnp.bfloat16), wekv[...],
                  preferred_element_type=jnp.float32).astype(jnp.bfloat16)
    ekv = ekv.reshape(Bblk, N_TOK, 2 * D)
    ek = ekv[:, :, :D]
    ev = ekv[:, :, D:]

    cross = _softmax_attn(dq_b, ek, ev).astype(jnp.bfloat16).reshape(Md, D)
    dq0_b = jnp.broadcast_to(dq0[None, :, :], (Bblk, TGT_LEN, D)).reshape(Md, D)
    dec = dq0_b + jnp.dot(cross, wdo[...], preferred_element_type=jnp.float32)
    dec = _ln(dec, vD(R_GD0), vD(R_BD0))

    h2 = jnp.dot(dec.astype(jnp.bfloat16), wdff1[...],
                 preferred_element_type=jnp.float32) + vF(1)
    h2 = jax.nn.gelu(h2, approximate=True).astype(jnp.bfloat16)
    dffn = jnp.dot(h2, wdff2[...], preferred_element_type=jnp.float32) + vD(R_B_DFF2)
    dec = _ln(dec + dffn, vD(R_GD1), vD(R_BD1))

    logits = jnp.dot(dec.astype(jnp.bfloat16), wvoc[...],
                     preferred_element_type=jnp.float32) + vD(R_B_VOC)
    o_ref[...] = logits.reshape(Bblk, TGT_LEN, VOCAB).astype(o_ref.dtype)


# ----------------------------------------------------------------------------
# Parameters + forward wrapper
# ----------------------------------------------------------------------------
def init_params(key):
    ks = jax.random.split(key, 16)
    D, F = EMBED_DIM, FFN_DIM

    def w(k, shape, std=0.02):
        return jax.random.normal(k, shape, jnp.float32) * std

    # Patch-embed weight zero-padded on the input side (PATCH_DIM -> PATCH_PAD)
    # so the padded x lanes contribute exactly zero.
    w_patch = jnp.zeros((PATCH_PAD, D), jnp.float32)
    w_patch = w_patch.at[:PATCH_DIM, :].set(w(ks[0], (PATCH_DIM, D)))

    # Fused QKV with the attention scale folded into the Q columns.
    w_qkv = w(ks[1], (D, 3 * D))
    w_qkv = w_qkv.at[:, :D].multiply(ATTN_SCALE)

    # Decoder query projection with the cross-attention scale folded in.
    w_dq = w(ks[6], (D, D)) * ATTN_SCALE

    # Packed gamma/beta/bias banks.
    vec_d = jnp.zeros((16, D), jnp.float32)
    for r in (R_G0, R_G1, R_G2, R_GD0, R_GD1):      # layer-norm gammas = 1
        vec_d = vec_d.at[r].set(1.0)
    vec_f = jnp.zeros((2, F), jnp.float32)          # b_ff1, b_dff1 = 0

    return {
        "w_patch": w_patch.astype(jnp.bfloat16),
        "w_qkv": w_qkv.astype(jnp.bfloat16),
        "w_o": w(ks[2], (D, D)).astype(jnp.bfloat16),
        "w_ff1": w(ks[3], (D, F)).astype(jnp.bfloat16),
        "w_ff2": w(ks[4], (F, D)).astype(jnp.bfloat16),
        "q_embed": w(ks[5], (TGT_LEN, D)),           # f32 learned NAT queries
        "w_dq": w_dq.astype(jnp.bfloat16),
        "w_ekv": w(ks[7], (D, 2 * D)).astype(jnp.bfloat16),
        "w_do": w(ks[8], (D, D)).astype(jnp.bfloat16),
        "w_dff1": w(ks[9], (D, F)).astype(jnp.bfloat16),
        "w_dff2": w(ks[10], (F, D)).astype(jnp.bfloat16),
        "w_vocab": w(ks[11], (D, VOCAB)).astype(jnp.bfloat16),
        "vec_d": vec_d,
        "vec_f": vec_f,
    }


def _pick_block_batch(B, max_bblk=MAX_BBLK):
    """Largest divisor of B <= max_bblk that keeps grid length >= 2 when
    possible (so v7x's two TensorCores both get work)."""
    best = 1
    for d in range(1, min(B, max_bblk) + 1):
        if B % d == 0 and (B // d >= 2 or B == 1):
            best = d
    return best


def forward(params, pixel_values):
    """pixel_values: (B, C, H, W) NCHW float32 -> logits (B, TGT_LEN, VOCAB)."""
    B, C, H, W = pixel_values.shape
    bblk = _pick_block_batch(B)

    # ---- glue: patchify NCHW -> (B, N_TOK, PATCH_PAD) bf16, lane-dense ------
    x = pixel_values.reshape(B, C, N_SIDE, PATCH, N_SIDE, PATCH)
    x = x.transpose(0, 2, 4, 1, 3, 5).reshape(B, N_TOK, PATCH_DIM)
    x = jnp.pad(x, ((0, 0), (0, 0), (0, PATCH_PAD - PATCH_DIM)))
    x = x.astype(jnp.bfloat16)

    param_list = [params[n] for n in PARAM_NAMES]

    # Weights: full-array VMEM blocks with a constant index_map -> resident
    # across the (parallel) batch-block grid.
    in_specs = [pl.BlockSpec((bblk, N_TOK, PATCH_PAD), lambda b: (b, 0, 0))]
    in_specs += [
        pl.BlockSpec(p.shape, lambda b, nd=p.ndim: (0,) * nd)
        for p in param_list
    ]

    logits = pl.pallas_call(
        _fused_forward_kernel,
        out_shape=jax.ShapeDtypeStruct((B, TGT_LEN, VOCAB), jnp.float32),
        grid_spec=pltpu.PrefetchScalarGridSpec(
            num_scalar_prefetch=0,
            grid=(B // bblk,),
            in_specs=in_specs,
            out_specs=pl.BlockSpec((bblk, TGT_LEN, VOCAB), lambda b: (b, 0, 0)),
        ),
        compiler_params=pltpu.CompilerParams(
            dimension_semantics=("parallel",)),   # shard batch blocks across TCs
    )(x, *param_list)
    return logits


# ----------------------------------------------------------------------------
if __name__ == "__main__":
    key = jax.random.PRNGKey(0)
    kp, kx = jax.random.split(key)
    params = init_params(kp)

    B = 8   # -> Bblk=4, grid=(2,): batched MXU rows + both v7x TCs busy
    pixel_values = jax.random.normal(
        kx, (B, IN_CHANNELS, INPUT_SIZE, INPUT_SIZE), jnp.float32)

    out = jax.jit(forward)(params, pixel_values)
    out = jax.block_until_ready(out)
    assert out.shape == (B, TGT_LEN, VOCAB)
    assert bool(jnp.all(jnp.isfinite(out)))
    print("KERNEL_OK")
</pallas_src>

<mosaic_0001>
module attributes {stable_mosaic.version = 11 : i64} {
  func.func @_fused_forward_kernel(%arg0: i32, %arg1: memref<4x64x128xbf16, #tpu.memory_space<vmem>>, %arg2: memref<128x128xbf16, #tpu.memory_space<vmem>>, %arg3: memref<128x384xbf16, #tpu.memory_space<vmem>>, %arg4: memref<128x128xbf16, #tpu.memory_space<vmem>>, %arg5: memref<128x256xbf16, #tpu.memory_space<vmem>>, %arg6: memref<256x128xbf16, #tpu.memory_space<vmem>>, %arg7: memref<8x128xf32, #tpu.memory_space<vmem>>, %arg8: memref<128x128xbf16, #tpu.memory_space<vmem>>, %arg9: memref<128x256xbf16, #tpu.memory_space<vmem>>, %arg10: memref<128x128xbf16, #tpu.memory_space<vmem>>, %arg11: memref<128x256xbf16, #tpu.memory_space<vmem>>, %arg12: memref<256x128xbf16, #tpu.memory_space<vmem>>, %arg13: memref<128x128xbf16, #tpu.memory_space<vmem>>, %arg14: memref<16x128xf32, #tpu.memory_space<vmem>>, %arg15: memref<2x256xf32, #tpu.memory_space<vmem>>, %arg16: memref<4x8x128xf32, #tpu.memory_space<vmem>>) attributes {dimension_semantics = [#tpu.dimension_semantics<parallel>], iteration_bounds = array<i64: 2>, scalar_prefetch = 0 : i64, scratch_operands = 0 : i64, tpu.core_type = #tpu.core_type<tc>, window_params = [{transform_indices = @transform_0, window_bounds = array<i64: 4, 64, 128>}, {pipeline_mode = #tpu.pipeline_mode<synchronous>, transform_indices = @transform_1, window_bounds = array<i64: 128, 128>}, {pipeline_mode = #tpu.pipeline_mode<synchronous>, transform_indices = @transform_2, window_bounds = array<i64: 128, 384>}, {pipeline_mode = #tpu.pipeline_mode<synchronous>, transform_indices = @transform_3, window_bounds = array<i64: 128, 128>}, {pipeline_mode = #tpu.pipeline_mode<synchronous>, transform_indices = @transform_4, window_bounds = array<i64: 128, 256>}, {pipeline_mode = #tpu.pipeline_mode<synchronous>, transform_indices = @transform_5, window_bounds = array<i64: 256, 128>}, {pipeline_mode = #tpu.pipeline_mode<synchronous>, transform_indices = @transform_6, window_bounds = array<i64: 8, 128>}, {pipeline_mode = #tpu.pipeline_mode<synchronous>, transform_indices = @transform_7, window_bounds = array<i64: 128, 128>}, {pipeline_mode = #tpu.pipeline_mode<synchronous>, transform_indices = @transform_8, window_bounds = array<i64: 128, 256>}, {pipeline_mode = #tpu.pipeline_mode<synchronous>, transform_indices = @transform_9, window_bounds = array<i64: 128, 128>}, {pipeline_mode = #tpu.pipeline_mode<synchronous>, transform_indices = @transform_10, window_bounds = array<i64: 128, 256>}, {pipeline_mode = #tpu.pipeline_mode<synchronous>, transform_indices = @transform_11, window_bounds = array<i64: 256, 128>}, {pipeline_mode = #tpu.pipeline_mode<synchronous>, transform_indices = @transform_12, window_bounds = array<i64: 128, 128>}, {pipeline_mode = #tpu.pipeline_mode<synchronous>, transform_indices = @transform_13, window_bounds = array<i64: 16, 128>}, {pipeline_mode = #tpu.pipeline_mode<synchronous>, transform_indices = @transform_14, window_bounds = array<i64: 2, 256>}, {transform_indices = @transform_15, window_bounds = array<i64: 4, 8, 128>}]} {
    %c0 = arith.constant 0 : index
    %c0_0 = arith.constant 0 : index
    %0 = vector.load %arg14[%c0, %c0_0] : memref<16x128xf32, #tpu.memory_space<vmem>>, vector<16x128xf32>
    %c0_1 = arith.constant 0 : index
    %c0_2 = arith.constant 0 : index
    %1 = vector.load %arg15[%c0_1, %c0_2] : memref<2x256xf32, #tpu.memory_space<vmem>>, vector<2x256xf32>
    %c0_3 = arith.constant 0 : index
    %c0_4 = arith.constant 0 : index
    %c0_5 = arith.constant 0 : index
    %2 = vector.load %arg1[%c0_3, %c0_4, %c0_5] : memref<4x64x128xbf16, #tpu.memory_space<vmem>>, vector<4x64x128xbf16>
    %3 = vector.shape_cast %2 : vector<4x64x128xbf16> to vector<256x128xbf16>
    %c0_6 = arith.constant 0 : index
    %c0_7 = arith.constant 0 : index
    %4 = vector.load %arg2[%c0_6, %c0_7] : memref<128x128xbf16, #tpu.memory_space<vmem>>, vector<128x128xbf16>
    %cst = arith.constant dense<0.000000e+00> : vector<256x128xf32>
    %5 = tpu.matmul %3, %4, %cst {dimension_numbers = #tpu.dot_dimension_numbers<[1], [0], [0], [1], [0, 0, 1, 1], [], []>} : vector<256x128xbf16>, vector<128x128xbf16>, vector<256x128xf32> -> vector<256x128xf32>
    %6 = vector.extract_strided_slice %0 {offsets = [0, 0], sizes = [1, 128], strides = [1, 1]} : vector<16x128xf32> to vector<1x128xf32>
    %7 = vector.broadcast %6 : vector<1x128xf32> to vector<256x128xf32>
    %8 = arith.addf %5, %7 : vector<256x128xf32>
    %9 = vector.extract_strided_slice %0 {offsets = [1, 0], sizes = [1, 128], strides = [1, 1]} : vector<16x128xf32> to vector<1x128xf32>
    %10 = vector.extract_strided_slice %0 {offsets = [2, 0], sizes = [1, 128], strides = [1, 1]} : vector<16x128xf32> to vector<1x128xf32>
    %cst_8 = arith.constant dense<0.000000e+00> : vector<256xf32>
    %11 = vector.multi_reduction <add>, %8, %cst_8 [1] : vector<256x128xf32> to vector<256xf32>
    %12 = vector.shape_cast %11 : vector<256xf32> to vector<256x1xf32>
    %cst_9 = arith.constant 1.280000e+02 : f32
    %13 = vector.broadcast %cst_9 : f32 to vector<256x1xf32>
    %14 = arith.divf %12, %13 : vector<256x1xf32>
    %15 = vector.broadcast %14 : vector<256x1xf32> to vector<256x128xf32>
    %16 = arith.subf %8, %15 : vector<256x128xf32>
    %17 = arith.mulf %16, %16 : vector<256x128xf32>
    %cst_10 = arith.constant dense<0.000000e+00> : vector<256xf32>
    %18 = vector.multi_reduction <add>, %17, %cst_10 [1] : vector<256x128xf32> to vector<256xf32>
    %19 = vector.shape_cast %18 : vector<256xf32> to vector<256x1xf32>
    %cst_11 = arith.constant 1.280000e+02 : f32
    %20 = vector.broadcast %cst_11 : f32 to vector<256x1xf32>
    %21 = arith.divf %19, %20 : vector<256x1xf32>
    %cst_12 = arith.constant 9.99999974E-6 : f32
    %22 = vector.broadcast %cst_12 : f32 to vector<256x1xf32>
    %23 = arith.addf %21, %22 : vector<256x1xf32>
    %24 = math.rsqrt %23 : vector<256x1xf32>
    %25 = vector.broadcast %24 : vector<256x1xf32> to vector<256x128xf32>
    %26 = arith.mulf %16, %25 : vector<256x128xf32>
    %27 = vector.broadcast %9 : vector<1x128xf32> to vector<256x128xf32>
    %28 = arith.mulf %26, %27 : vector<256x128xf32>
    %29 = vector.broadcast %10 : vector<1x128xf32> to vector<256x128xf32>
    %30 = arith.addf %28, %29 : vector<256x128xf32>
    %31 = arith.truncf %30 : vector<256x128xf32> to vector<256x128xbf16>
    %c0_13 = arith.constant 0 : index
    %c0_14 = arith.constant 0 : index
    %32 = vector.load %arg3[%c0_13, %c0_14] : memref<128x384xbf16, #tpu.memory_space<vmem>>, vector<128x384xbf16>
    %cst_15 = arith.constant dense<0.000000e+00> : vector<256x384xf32>
    %33 = tpu.matmul %31, %32, %cst_15 {dimension_numbers = #tpu.dot_dimension_numbers<[1], [0], [0], [1], [0, 0, 1, 1], [], []>} : vector<256x128xbf16>, vector<128x384xbf16>, vector<256x384xf32> -> vector<256x384xf32>
    %34 = arith.truncf %33 : vector<256x384xf32> to vector<256x384xbf16>
    %35 = vector.shape_cast %34 : vector<256x384xbf16> to vector<4x64x384xbf16>
    %36 = vector.extract_strided_slice %35 {offsets = [0, 0, 0], sizes = [4, 64, 128], strides = [1, 1, 1]} : vector<4x64x384xbf16> to vector<4x64x128xbf16>
    %37 = vector.extract_strided_slice %35 {offsets = [0, 0, 128], sizes = [4, 64, 128], strides = [1, 1, 1]} : vector<4x64x384xbf16> to vector<4x64x128xbf16>
    %38 = vector.extract_strided_slice %35 {offsets = [0, 0, 256], sizes = [4, 64, 128], strides = [1, 1, 1]} : vector<4x64x384xbf16> to vector<4x64x128xbf16>
    "tpu.trace_start"() <{level = 10 : i32, message = "bqd,bkd->bqk"}> : () -> ()
    %cst_16 = arith.constant dense<0.000000e+00> : vector<4x64x64xf32>
    %39 = tpu.matmul %36, %37, %cst_16 {dimension_numbers = #tpu.dot_dimension_numbers<[2], [2], [1], [1], [0, 0, 0, 1, 1, 1], [0], [0]>} : vector<4x64x128xbf16>, vector<4x64x128xbf16>, vector<4x64x64xf32> -> vector<4x64x64xf32>
    "tpu.trace_stop"() : () -> ()
    %cst_17 = arith.constant dense<0xFF800000> : vector<4x64xf32>
    %40 = vector.multi_reduction <maximumf>, %39, %cst_17 [2] : vector<4x64x64xf32> to vector<4x64xf32>
    %41 = vector.shape_cast %40 : vector<4x64xf32> to vector<4x64x1xf32>
    %42 = vector.broadcast %41 : vector<4x64x1xf32> to vector<4x64x64xf32>
    %43 = arith.subf %39, %42 : vector<4x64x64xf32>
    %44 = math.exp %43 : vector<4x64x64xf32>
    %cst_18 = arith.constant dense<0.000000e+00> : vector<4x64xf32>
    %45 = vector.multi_reduction <add>, %44, %cst_18 [2] : vector<4x64x64xf32> to vector<4x64xf32>
    %46 = vector.shape_cast %45 : vector<4x64xf32> to vector<4x64x1xf32>
    %47 = arith.truncf %44 : vector<4x64x64xf32> to vector<4x64x64xbf16>
    "tpu.trace_start"() <{level = 10 : i32, message = "bqk,bkd->bqd"}> : () -> ()
    %cst_19 = arith.constant dense<0.000000e+00> : vector<4x64x128xf32>
    %48 = tpu.matmul %47, %38, %cst_19 {dimension_numbers = #tpu.dot_dimension_numbers<[2], [1], [1], [2], [0, 0, 0, 1, 1, 2], [0], [0]>} : vector<4x64x64xbf16>, vector<4x64x128xbf16>, vector<4x64x128xf32> -> vector<4x64x128xf32>
    "tpu.trace_stop"() : () -> ()
    %49 = tpu.reciprocal %46 {approx = true} : vector<4x64x1xf32> -> vector<4x64x1xf32>
    %50 = vector.broadcast %49 : vector<4x64x1xf32> to vector<4x64x128xf32>
    %51 = arith.mulf %48, %50 : vector<4x64x128xf32>
    %52 = arith.truncf %51 : vector<4x64x128xf32> to vector<4x64x128xbf16>
    %53 = vector.shape_cast %52 : vector<4x64x128xbf16> to vector<256x128xbf16>
    %c0_20 = arith.constant 0 : index
    %c0_21 = arith.constant 0 : index
    %54 = vector.load %arg4[%c0_20, %c0_21] : memref<128x128xbf16, #tpu.memory_space<vmem>>, vector<128x128xbf16>
    %cst_22 = arith.constant dense<0.000000e+00> : vector<256x128xf32>
    %55 = tpu.matmul %53, %54, %cst_22 {dimension_numbers = #tpu.dot_dimension_numbers<[1], [0], [0], [1], [0, 0, 1, 1], [], []>} : vector<256x128xbf16>, vector<128x128xbf16>, vector<256x128xf32> -> vector<256x128xf32>
    %56 = arith.addf %30, %55 : vector<256x128xf32>
    %57 = vector.extract_strided_slice %0 {offsets = [3, 0], sizes = [1, 128], strides = [1, 1]} : vector<16x128xf32> to vector<1x128xf32>
    %58 = vector.extract_strided_slice %0 {offsets = [4, 0], sizes = [1, 128], strides = [1, 1]} : vector<16x128xf32> to vector<1x128xf32>
    %cst_23 = arith.constant dense<0.000000e+00> : vector<256xf32>
    %59 = vector.multi_reduction <add>, %56, %cst_23 [1] : vector<256x128xf32> to vector<256xf32>
    %60 = vector.shape_cast %59 : vector<256xf32> to vector<256x1xf32>
    %cst_24 = arith.constant 1.280000e+02 : f32
    %61 = vector.broadcast %cst_24 : f32 to vector<256x1xf32>
    %62 = arith.divf %60, %61 : vector<256x1xf32>
    %63 = vector.broadcast %62 : vector<256x1xf32> to vector<256x128xf32>
    %64 = arith.subf %56, %63 : vector<256x128xf32>
    %65 = arith.mulf %64, %64 : vector<256x128xf32>
    %cst_25 = arith.constant dense<0.000000e+00> : vector<256xf32>
    %66 = vector.multi_reduction <add>, %65, %cst_25 [1] : vector<256x128xf32> to vector<256xf32>
    %67 = vector.shape_cast %66 : vector<256xf32> to vector<256x1xf32>
    %cst_26 = arith.constant 1.280000e+02 : f32
    %68 = vector.broadcast %cst_26 : f32 to vector<256x1xf32>
    %69 = arith.divf %67, %68 : vector<256x1xf32>
    %cst_27 = arith.constant 9.99999974E-6 : f32
    %70 = vector.broadcast %cst_27 : f32 to vector<256x1xf32>
    %71 = arith.addf %69, %70 : vector<256x1xf32>
    %72 = math.rsqrt %71 : vector<256x1xf32>
    %73 = vector.broadcast %72 : vector<256x1xf32> to vector<256x128xf32>
    %74 = arith.mulf %64, %73 : vector<256x128xf32>
    %75 = vector.broadcast %57 : vector<1x128xf32> to vector<256x128xf32>
    %76 = arith.mulf %74, %75 : vector<256x128xf32>
    %77 = vector.broadcast %58 : vector<1x128xf32> to vector<256x128xf32>
    %78 = arith.addf %76, %77 : vector<256x128xf32>
    %79 = arith.truncf %78 : vector<256x128xf32> to vector<256x128xbf16>
    %c0_28 = arith.constant 0 : index
    %c0_29 = arith.constant 0 : index
    %80 = vector.load %arg5[%c0_28, %c0_29] : memref<128x256xbf16, #tpu.memory_space<vmem>>, vector<128x256xbf16>
    %cst_30 = arith.constant dense<0.000000e+00> : vector<256x256xf32>
    %81 = tpu.matmul %79, %80, %cst_30 {dimension_numbers = #tpu.dot_dimension_numbers<[1], [0], [0], [1], [0, 0, 1, 1], [], []>} : vector<256x128xbf16>, vector<128x256xbf16>, vector<256x256xf32> -> vector<256x256xf32>
    %82 = vector.extract_strided_slice %1 {offsets = [0, 0], sizes = [1, 256], strides = [1, 1]} : vector<2x256xf32> to vector<1x256xf32>
    %83 = vector.broadcast %82 : vector<1x256xf32> to vector<256x256xf32>
    %84 = arith.addf %81, %83 : vector<256x256xf32>
    %85 = arith.mulf %84, %84 : vector<256x256xf32>
    %86 = arith.mulf %84, %85 : vector<256x256xf32>
    %cst_31 = arith.constant 4.471500e-02 : f32
    %87 = vector.broadcast %cst_31 : f32 to vector<256x256xf32>
    %88 = arith.mulf %87, %86 : vector<256x256xf32>
    %89 = arith.addf %84, %88 : vector<256x256xf32>
    %cst_32 = arith.constant 0.797884583 : f32
    %90 = vector.broadcast %cst_32 : f32 to vector<256x256xf32>
    %91 = arith.mulf %90, %89 : vector<256x256xf32>
    %92 = math.tanh %91 : vector<256x256xf32>
    %cst_33 = arith.constant 1.000000e+00 : f32
    %93 = vector.broadcast %cst_33 : f32 to vector<256x256xf32>
    %94 = arith.addf %93, %92 : vector<256x256xf32>
    %cst_34 = arith.constant 5.000000e-01 : f32
    %95 = vector.broadcast %cst_34 : f32 to vector<256x256xf32>
    %96 = arith.mulf %95, %94 : vector<256x256xf32>
    %97 = arith.mulf %84, %96 : vector<256x256xf32>
    %98 = arith.truncf %97 : vector<256x256xf32> to vector<256x256xbf16>
    %c0_35 = arith.constant 0 : index
    %c0_36 = arith.constant 0 : index
    %99 = vector.load %arg6[%c0_35, %c0_36] : memref<256x128xbf16, #tpu.memory_space<vmem>>, vector<256x128xbf16>
    %cst_37 = arith.constant dense<0.000000e+00> : vector<256x128xf32>
    %100 = tpu.matmul %98, %99, %cst_37 {dimension_numbers = #tpu.dot_dimension_numbers<[1], [0], [0], [1], [0, 0, 1, 1], [], []>} : vector<256x256xbf16>, vector<256x128xbf16>, vector<256x128xf32> -> vector<256x128xf32>
    %101 = vector.extract_strided_slice %0 {offsets = [5, 0], sizes = [1, 128], strides = [1, 1]} : vector<16x128xf32> to vector<1x128xf32>
    %102 = vector.broadcast %101 : vector<1x128xf32> to vector<256x128xf32>
    %103 = arith.addf %100, %102 : vector<256x128xf32>
    %104 = arith.addf %78, %103 : vector<256x128xf32>
    %105 = vector.extract_strided_slice %0 {offsets = [6, 0], sizes = [1, 128], strides = [1, 1]} : vector<16x128xf32> to vector<1x128xf32>
    %106 = vector.extract_strided_slice %0 {offsets = [7, 0], sizes = [1, 128], strides = [1, 1]} : vector<16x128xf32> to vector<1x128xf32>
    %cst_38 = arith.constant dense<0.000000e+00> : vector<256xf32>
    %107 = vector.multi_reduction <add>, %104, %cst_38 [1] : vector<256x128xf32> to vector<256xf32>
    %108 = vector.shape_cast %107 : vector<256xf32> to vector<256x1xf32>
    %cst_39 = arith.constant 1.280000e+02 : f32
    %109 = vector.broadcast %cst_39 : f32 to vector<256x1xf32>
    %110 = arith.divf %108, %109 : vector<256x1xf32>
    %111 = vector.broadcast %110 : vector<256x1xf32> to vector<256x128xf32>
    %112 = arith.subf %104, %111 : vector<256x128xf32>
    %113 = arith.mulf %112, %112 : vector<256x128xf32>
    %cst_40 = arith.constant dense<0.000000e+00> : vector<256xf32>
    %114 = vector.multi_reduction <add>, %113, %cst_40 [1] : vector<256x128xf32> to vector<256xf32>
    %115 = vector.shape_cast %114 : vector<256xf32> to vector<256x1xf32>
    %cst_41 = arith.constant 1.280000e+02 : f32
    %116 = vector.broadcast %cst_41 : f32 to vector<256x1xf32>
    %117 = arith.divf %115, %116 : vector<256x1xf32>
    %cst_42 = arith.constant 9.99999974E-6 : f32
    %118 = vector.broadcast %cst_42 : f32 to vector<256x1xf32>
    %119 = arith.addf %117, %118 : vector<256x1xf32>
    %120 = math.rsqrt %119 : vector<256x1xf32>
    %121 = vector.broadcast %120 : vector<256x1xf32> to vector<256x128xf32>
    %122 = arith.mulf %112, %121 : vector<256x128xf32>
    %123 = vector.broadcast %105 : vector<1x128xf32> to vector<256x128xf32>
    %124 = arith.mulf %122, %123 : vector<256x128xf32>
    %125 = vector.broadcast %106 : vector<1x128xf32> to vector<256x128xf32>
    %126 = arith.addf %124, %125 : vector<256x128xf32>
    %c0_43 = arith.constant 0 : index
    %c0_44 = arith.constant 0 : index
    %127 = vector.load %arg7[%c0_43, %c0_44] : memref<8x128xf32, #tpu.memory_space<vmem>>, vector<8x128xf32>
    %128 = arith.truncf %127 : vector<8x128xf32> to vector<8x128xbf16>
    %c0_45 = arith.constant 0 : index
    %c0_46 = arith.constant 0 : index
    %129 = vector.load %arg8[%c0_45, %c0_46] : memref<128x128xbf16, #tpu.memory_space<vmem>>, vector<128x128xbf16>
    %cst_47 = arith.constant dense<0.000000e+00> : vector<8x128xf32>
    %130 = tpu.matmul %128, %129, %cst_47 {dimension_numbers = #tpu.dot_dimension_numbers<[1], [0], [0], [1], [0, 0, 1, 1], [], []>} : vector<8x128xbf16>, vector<128x128xbf16>, vector<8x128xf32> -> vector<8x128xf32>
    %131 = arith.truncf %130 : vector<8x128xf32> to vector<8x128xbf16>
    %132 = vector.shape_cast %131 : vector<8x128xbf16> to vector<1x8x128xbf16>
    %133 = vector.shape_cast %132 : vector<1x8x128xbf16> to vector<1x8x128xbf16>
    %134 = vector.broadcast %133 : vector<1x8x128xbf16> to vector<4x8x128xbf16>
    %135 = arith.truncf %126 : vector<256x128xf32> to vector<256x128xbf16>
    %c0_48 = arith.constant 0 : index
    %c0_49 = arith.constant 0 : index
    %136 = vector.load %arg9[%c0_48, %c0_49] : memref<128x256xbf16, #tpu.memory_space<vmem>>, vector<128x256xbf16>
    %cst_50 = arith.constant dense<0.000000e+00> : vector<256x256xf32>
    %137 = tpu.matmul %135, %136, %cst_50 {dimension_numbers = #tpu.dot_dimension_numbers<[1], [0], [0], [1], [0, 0, 1, 1], [], []>} : vector<256x128xbf16>, vector<128x256xbf16>, vector<256x256xf32> -> vector<256x256xf32>
    %138 = arith.truncf %137 : vector<256x256xf32> to vector<256x256xbf16>
    %139 = vector.shape_cast %138 : vector<256x256xbf16> to vector<4x64x256xbf16>
    %140 = vector.extract_strided_slice %139 {offsets = [0, 0, 0], sizes = [4, 64, 128], strides = [1, 1, 1]} : vector<4x64x256xbf16> to vector<4x64x128xbf16>
    %141 = vector.extract_strided_slice %139 {offsets = [0, 0, 128], sizes = [4, 64, 128], strides = [1, 1, 1]} : vector<4x64x256xbf16> to vector<4x64x128xbf16>
    "tpu.trace_start"() <{level = 10 : i32, message = "bqd,bkd->bqk"}> : () -> ()
    %cst_51 = arith.constant dense<0.000000e+00> : vector<4x8x64xf32>
    %142 = tpu.matmul %134, %140, %cst_51 {dimension_numbers = #tpu.dot_dimension_numbers<[2], [2], [1], [1], [0, 0, 0, 1, 1, 1], [0], [0]>} : vector<4x8x128xbf16>, vector<4x64x128xbf16>, vector<4x8x64xf32> -> vector<4x8x64xf32>
    "tpu.trace_stop"() : () -> ()
    %cst_52 = arith.constant dense<0xFF800000> : vector<4x8xf32>
    %143 = vector.multi_reduction <maximumf>, %142, %cst_52 [2] : vector<4x8x64xf32> to vector<4x8xf32>
    %144 = vector.shape_cast %143 : vector<4x8xf32> to vector<4x8x1xf32>
    %145 = vector.broadcast %144 : vector<4x8x1xf32> to vector<4x8x64xf32>
    %146 = arith.subf %142, %145 : vector<4x8x64xf32>
    %147 = math.exp %146 : vector<4x8x64xf32>
    %cst_53 = arith.constant dense<0.000000e+00> : vector<4x8xf32>
    %148 = vector.multi_reduction <add>, %147, %cst_53 [2] : vector<4x8x64xf32> to vector<4x8xf32>
    %149 = vector.shape_cast %148 : vector<4x8xf32> to vector<4x8x1xf32>
    %150 = arith.truncf %147 : vector<4x8x64xf32> to vector<4x8x64xbf16>
    "tpu.trace_start"() <{level = 10 : i32, message = "bqk,bkd->bqd"}> : () -> ()
    %cst_54 = arith.constant dense<0.000000e+00> : vector<4x8x128xf32>
    %151 = tpu.matmul %150, %141, %cst_54 {dimension_numbers = #tpu.dot_dimension_numbers<[2], [1], [1], [2], [0, 0, 0, 1, 1, 2], [0], [0]>} : vector<4x8x64xbf16>, vector<4x64x128xbf16>, vector<4x8x128xf32> -> vector<4x8x128xf32>
    "tpu.trace_stop"() : () -> ()
    %152 = tpu.reciprocal %149 {approx = true} : vector<4x8x1xf32> -> vector<4x8x1xf32>
    %153 = vector.broadcast %152 : vector<4x8x1xf32> to vector<4x8x128xf32>
    %154 = arith.mulf %151, %153 : vector<4x8x128xf32>
    %155 = arith.truncf %154 : vector<4x8x128xf32> to vector<4x8x128xbf16>
    %156 = vector.shape_cast %155 : vector<4x8x128xbf16> to vector<32x128xbf16>
    %157 = vector.shape_cast %127 : vector<8x128xf32> to vector<1x8x128xf32>
    %158 = vector.shape_cast %157 : vector<1x8x128xf32> to vector<1x8x128xf32>
    %159 = vector.broadcast %158 : vector<1x8x128xf32> to vector<4x8x128xf32>
    %160 = vector.shape_cast %159 : vector<4x8x128xf32> to vector<32x128xf32>
    %c0_55 = arith.constant 0 : index
    %c0_56 = arith.constant 0 : index
    %161 = vector.load %arg10[%c0_55, %c0_56] : memref<128x128xbf16, #tpu.memory_space<vmem>>, vector<128x128xbf16>
    %cst_57 = arith.constant dense<0.000000e+00> : vector<32x128xf32>
    %162 = tpu.matmul %156, %161, %cst_57 {dimension_numbers = #tpu.dot_dimension_numbers<[1], [0], [0], [1], [0, 0, 1, 1], [], []>} : vector<32x128xbf16>, vector<128x128xbf16>, vector<32x128xf32> -> vector<32x128xf32>
    %163 = arith.addf %160, %162 : vector<32x128xf32>
    %164 = vector.extract_strided_slice %0 {offsets = [8, 0], sizes = [1, 128], strides = [1, 1]} : vector<16x128xf32> to vector<1x128xf32>
    %165 = vector.extract_strided_slice %0 {offsets = [9, 0], sizes = [1, 128], strides = [1, 1]} : vector<16x128xf32> to vector<1x128xf32>
    %cst_58 = arith.constant dense<0.000000e+00> : vector<32xf32>
    %166 = vector.multi_reduction <add>, %163, %cst_58 [1] : vector<32x128xf32> to vector<32xf32>
    %167 = vector.shape_cast %166 : vector<32xf32> to vector<32x1xf32>
    %cst_59 = arith.constant 1.280000e+02 : f32
    %168 = vector.broadcast %cst_59 : f32 to vector<32x1xf32>
    %169 = arith.divf %167, %168 : vector<32x1xf32>
    %170 = vector.broadcast %169 : vector<32x1xf32> to vector<32x128xf32>
    %171 = arith.subf %163, %170 : vector<32x128xf32>
    %172 = arith.mulf %171, %171 : vector<32x128xf32>
    %cst_60 = arith.constant dense<0.000000e+00> : vector<32xf32>
    %173 = vector.multi_reduction <add>, %172, %cst_60 [1] : vector<32x128xf32> to vector<32xf32>
    %174 = vector.shape_cast %173 : vector<32xf32> to vector<32x1xf32>
    %cst_61 = arith.constant 1.280000e+02 : f32
    %175 = vector.broadcast %cst_61 : f32 to vector<32x1xf32>
    %176 = arith.divf %174, %175 : vector<32x1xf32>
    %cst_62 = arith.constant 9.99999974E-6 : f32
    %177 = vector.broadcast %cst_62 : f32 to vector<32x1xf32>
    %178 = arith.addf %176, %177 : vector<32x1xf32>
    %179 = math.rsqrt %178 : vector<32x1xf32>
    %180 = vector.broadcast %179 : vector<32x1xf32> to vector<32x128xf32>
    %181 = arith.mulf %171, %180 : vector<32x128xf32>
    %182 = vector.broadcast %164 : vector<1x128xf32> to vector<32x128xf32>
    %183 = arith.mulf %181, %182 : vector<32x128xf32>
    %184 = vector.broadcast %165 : vector<1x128xf32> to vector<32x128xf32>
    %185 = arith.addf %183, %184 : vector<32x128xf32>
    %186 = arith.truncf %185 : vector<32x128xf32> to vector<32x128xbf16>
    %c0_63 = arith.constant 0 : index
    %c0_64 = arith.constant 0 : index
    %187 = vector.load %arg11[%c0_63, %c0_64] : memref<128x256xbf16, #tpu.memory_space<vmem>>, vector<128x256xbf16>
    %cst_65 = arith.constant dense<0.000000e+00> : vector<32x256xf32>
    %188 = tpu.matmul %186, %187, %cst_65 {dimension_numbers = #tpu.dot_dimension_numbers<[1], [0], [0], [1], [0, 0, 1, 1], [], []>} : vector<32x128xbf16>, vector<128x256xbf16>, vector<32x256xf32> -> vector<32x256xf32>
    %189 = vector.extract_strided_slice %1 {offsets = [1, 0], sizes = [1, 256], strides = [1, 1]} : vector<2x256xf32> to vector<1x256xf32>
    %190 = vector.broadcast %189 : vector<1x256xf32> to vector<32x256xf32>
    %191 = arith.addf %188, %190 : vector<32x256xf32>
    %192 = arith.mulf %191, %191 : vector<32x256xf32>
    %193 = arith.mulf %191, %192 : vector<32x256xf32>
    %cst_66 = arith.constant 4.471500e-02 : f32
    %194 = vector.broadcast %cst_66 : f32 to vector<32x256xf32>
    %195 = arith.mulf %194, %193 : vector<32x256xf32>
    %196 = arith.addf %191, %195 : vector<32x256xf32>
    %cst_67 = arith.constant 0.797884583 : f32
    %197 = vector.broadcast %cst_67 : f32 to vector<32x256xf32>
    %198 = arith.mulf %197, %196 : vector<32x256xf32>
    %199 = math.tanh %198 : vector<32x256xf32>
    %cst_68 = arith.constant 1.000000e+00 : f32
    %200 = vector.broadcast %cst_68 : f32 to vector<32x256xf32>
    %201 = arith.addf %200, %199 : vector<32x256xf32>
    %cst_69 = arith.constant 5.000000e-01 : f32
    %202 = vector.broadcast %cst_69 : f32 to vector<32x256xf32>
    %203 = arith.mulf %202, %201 : vector<32x256xf32>
    %204 = arith.mulf %191, %203 : vector<32x256xf32>
    %205 = arith.truncf %204 : vector<32x256xf32> to vector<32x256xbf16>
    %c0_70 = arith.constant 0 : index
    %c0_71 = arith.constant 0 : index
    %206 = vector.load %arg12[%c0_70, %c0_71] : memref<256x128xbf16, #tpu.memory_space<vmem>>, vector<256x128xbf16>
    %cst_72 = arith.constant dense<0.000000e+00> : vector<32x128xf32>
    %207 = tpu.matmul %205, %206, %cst_72 {dimension_numbers = #tpu.dot_dimension_numbers<[1], [0], [0], [1], [0, 0, 1, 1], [], []>} : vector<32x256xbf16>, vector<256x128xbf16>, vector<32x128xf32> -> vector<32x128xf32>
    %208 = vector.extract_strided_slice %0 {offsets = [10, 0], sizes = [1, 128], strides = [1, 1]} : vector<16x128xf32> to vector<1x128xf32>
    %209 = vector.broadcast %208 : vector<1x128xf32> to vector<32x128xf32>
    %210 = arith.addf %207, %209 : vector<32x128xf32>
    %211 = arith.addf %185, %210 : vector<32x128xf32>
    %212 = vector.extract_strided_slice %0 {offsets = [11, 0], sizes = [1, 128], strides = [1, 1]} : vector<16x128xf32> to vector<1x128xf32>
    %213 = vector.extract_strided_slice %0 {offsets = [12, 0], sizes = [1, 128], strides = [1, 1]} : vector<16x128xf32> to vector<1x128xf32>
    %cst_73 = arith.constant dense<0.000000e+00> : vector<32xf32>
    %214 = vector.multi_reduction <add>, %211, %cst_73 [1] : vector<32x128xf32> to vector<32xf32>
    %215 = vector.shape_cast %214 : vector<32xf32> to vector<32x1xf32>
    %cst_74 = arith.constant 1.280000e+02 : f32
    %216 = vector.broadcast %cst_74 : f32 to vector<32x1xf32>
    %217 = arith.divf %215, %216 : vector<32x1xf32>
    %218 = vector.broadcast %217 : vector<32x1xf32> to vector<32x128xf32>
    %219 = arith.subf %211, %218 : vector<32x128xf32>
    %220 = arith.mulf %219, %219 : vector<32x128xf32>
    %cst_75 = arith.constant dense<0.000000e+00> : vector<32xf32>
    %221 = vector.multi_reduction <add>, %220, %cst_75 [1] : vector<32x128xf32> to vector<32xf32>
    %222 = vector.shape_cast %221 : vector<32xf32> to vector<32x1xf32>
    %cst_76 = arith.constant 1.280000e+02 : f32
    %223 = vector.broadcast %cst_76 : f32 to vector<32x1xf32>
    %224 = arith.divf %222, %223 : vector<32x1xf32>
    %cst_77 = arith.constant 9.99999974E-6 : f32
    %225 = vector.broadcast %cst_77 : f32 to vector<32x1xf32>
    %226 = arith.addf %224, %225 : vector<32x1xf32>
    %227 = math.rsqrt %226 : vector<32x1xf32>
    %228 = vector.broadcast %227 : vector<32x1xf32> to vector<32x128xf32>
    %229 = arith.mulf %219, %228 : vector<32x128xf32>
    %230 = vector.broadcast %212 : vector<1x128xf32> to vector<32x128xf32>
    %231 = arith.mulf %229, %230 : vector<32x128xf32>
    %232 = vector.broadcast %213 : vector<1x128xf32> to vector<32x128xf32>
    %233 = arith.addf %231, %232 : vector<32x128xf32>
    %234 = arith.truncf %233 : vector<32x128xf32> to vector<32x128xbf16>
    %c0_78 = arith.constant 0 : index
    %c0_79 = arith.constant 0 : index
    %235 = vector.load %arg13[%c0_78, %c0_79] : memref<128x128xbf16, #tpu.memory_space<vmem>>, vector<128x128xbf16>
    %cst_80 = arith.constant dense<0.000000e+00> : vector<32x128xf32>
    %236 = tpu.matmul %234, %235, %cst_80 {dimension_numbers = #tpu.dot_dimension_numbers<[1], [0], [0], [1], [0, 0, 1, 1], [], []>} : vector<32x128xbf16>, vector<128x128xbf16>, vector<32x128xf32> -> vector<32x128xf32>
    %237 = vector.extract_strided_slice %0 {offsets = [13, 0], sizes = [1, 128], strides = [1, 1]} : vector<16x128xf32> to vector<1x128xf32>
    %238 = vector.broadcast %237 : vector<1x128xf32> to vector<32x128xf32>
    %239 = arith.addf %236, %238 : vector<32x128xf32>
    %240 = vector.shape_cast %239 : vector<32x128xf32> to vector<4x8x128xf32>
    %c0_81 = arith.constant 0 : index
    %c0_82 = arith.constant 0 : index
    %c0_83 = arith.constant 0 : index
    %241 = vector.load %arg16[%c0_81, %c0_82, %c0_83] : memref<4x8x128xf32, #tpu.memory_space<vmem>>, vector<4x8x128xf32>
    tpu.vector_store %arg16[%c0_81, %c0_82, %c0_83], %240 {strides = array<i32>} : memref<4x8x128xf32, #tpu.memory_space<vmem>>, vector<4x8x128xf32>,
    return
  }
  func.func @transform_0(%arg0: i32) -> (i32, i32, i32) {
    %c0_i32 = arith.constant 0 : i32
    %c0_i32_0 = arith.constant 0 : i32
    %c0_i32_1 = arith.constant 0 : i32
    return %arg0, %c0_i32, %c0_i32_0 : i32, i32, i32
  }
  func.func @transform_1(%arg0: i32) -> (i32, i32) {
    %c0_i32 = arith.constant 0 : i32
    %c0_i32_0 = arith.constant 0 : i32
    %c0_i32_1 = arith.constant 0 : i32
    return %c0_i32, %c0_i32_0 : i32, i32
  }
  func.func @transform_2(%arg0: i32) -> (i32, i32) {
    %c0_i32 = arith.constant 0 : i32
    %c0_i32_0 = arith.constant 0 : i32
    %c0_i32_1 = arith.constant 0 : i32
    return %c0_i32, %c0_i32_0 : i32, i32
  }
  func.func @transform_3(%arg0: i32) -> (i32, i32) {
    %c0_i32 = arith.constant 0 : i32
    %c0_i32_0 = arith.constant 0 : i32
    %c0_i32_1 = arith.constant 0 : i32
    return %c0_i32, %c0_i32_0 : i32, i32
  }
  func.func @transform_4(%arg0: i32) -> (i32, i32) {
    %c0_i32 = arith.constant 0 : i32
    %c0_i32_0 = arith.constant 0 : i32
    %c0_i32_1 = arith.constant 0 : i32
    return %c0_i32, %c0_i32_0 : i32, i32
  }
  func.func @transform_5(%arg0: i32) -> (i32, i32) {
    %c0_i32 = arith.constant 0 : i32
    %c0_i32_0 = arith.constant 0 : i32
    %c0_i32_1 = arith.constant 0 : i32
    return %c0_i32, %c0_i32_0 : i32, i32
  }
  func.func @transform_6(%arg0: i32) -> (i32, i32) {
    %c0_i32 = arith.constant 0 : i32
    %c0_i32_0 = arith.constant 0 : i32
    %c0_i32_1 = arith.constant 0 : i32
    return %c0_i32, %c0_i32_0 : i32, i32
  }
  func.func @transform_7(%arg0: i32) -> (i32, i32) {
    %c0_i32 = arith.constant 0 : i32
    %c0_i32_0 = arith.constant 0 : i32
    %c0_i32_1 = arith.constant 0 : i32
    return %c0_i32, %c0_i32_0 : i32, i32
  }
  func.func @transform_8(%arg0: i32) -> (i32, i32) {
    %c0_i32 = arith.constant 0 : i32
    %c0_i32_0 = arith.constant 0 : i32
    %c0_i32_1 = arith.constant 0 : i32
    return %c0_i32, %c0_i32_0 : i32, i32
  }
  func.func @transform_9(%arg0: i32) -> (i32, i32) {
    %c0_i32 = arith.constant 0 : i32
    %c0_i32_0 = arith.constant 0 : i32
    %c0_i32_1 = arith.constant 0 : i32
    return %c0_i32, %c0_i32_0 : i32, i32
  }
  func.func @transform_10(%arg0: i32) -> (i32, i32) {
    %c0_i32 = arith.constant 0 : i32
    %c0_i32_0 = arith.constant 0 : i32
    %c0_i32_1 = arith.constant 0 : i32
    return %c0_i32, %c0_i32_0 : i32, i32
  }
  func.func @transform_11(%arg0: i32) -> (i32, i32) {
    %c0_i32 = arith.constant 0 : i32
    %c0_i32_0 = arith.constant 0 : i32
    %c0_i32_1 = arith.constant 0 : i32
    return %c0_i32, %c0_i32_0 : i32, i32
  }
  func.func @transform_12(%arg0: i32) -> (i32, i32) {
    %c0_i32 = arith.constant 0 : i32
    %c0_i32_0 = arith.constant 0 : i32
    %c0_i32_1 = arith.constant 0 : i32
    return %c0_i32, %c0_i32_0 : i32, i32
  }
  func.func @transform_13(%arg0: i32) -> (i32, i32) {
    %c0_i32 = arith.constant 0 : i32
    %c0_i32_0 = arith.constant 0 : i32
    %c0_i32_1 = arith.constant 0 : i32
    return %c0_i32, %c0_i32_0 : i32, i32
  }
  func.func @transform_14(%arg0: i32) -> (i32, i32) {
    %c0_i32 = arith.constant 0 : i32
    %c0_i32_0 = arith.constant 0 : i32
    %c0_i32_1 = arith.constant 0 : i32
    return %c0_i32, %c0_i32_0 : i32, i32
  }
  func.func @transform_15(%arg0: i32) -> (i32, i32, i32) {
    %c0_i32 = arith.constant 0 : i32
    %c0_i32_0 = arith.constant 0 : i32
    %c0_i32_1 = arith.constant 0 : i32
    return %arg0, %c0_i32, %c0_i32_0 : i32, i32, i32
  }
}

</mosaic_0001>

<bundles_post_ra>
// kernel: forward.1
= control target key start
LH: loop header
LB: loop body
LE: loop exit
PB: predicated region body
PF: predicated region fallthrough
CT: control target
= control target key end

     0   :  { %s12034_s0 = inlined_call_operand.vmem [shape: bf16[8,64,128], index: 0, kind: input, shape index: {}]   ;;  %s12035_s1 = inlined_call_operand.vmem [shape: bf16[128,128], index: 1, kind: input, shape index: {}]   ;;  %s12036_s2 = inlined_call_operand.vmem [shape: bf16[128,384], index: 2, kind: input, shape index: {}]   ;;  %s12037_s3 = inlined_call_operand.vmem [shape: bf16[128,128], index: 3, kind: input, shape index: {}]   ;;  %s12038_s4 = inlined_call_operand.vmem [shape: bf16[128,256], index: 4, kind: input, shape index: {}]   ;;  %s12039_s5 = inlined_call_operand.vmem [shape: bf16[256,128], index: 5, kind: input, shape index: {}]   ;;  %s12040_s6 = inlined_call_operand.vmem [shape: f32[8,128], index: 6, kind: input, shape index: {}]   ;;  %s12041_s7 = inlined_call_operand.vmem [shape: bf16[128,128], index: 7, kind: input, shape index: {}]   ;;  %s12042_s8 = inlined_call_operand.vmem [shape: bf16[128,256], index: 8, kind: input, shape index: {}]   ;;  %s12043_s9 = inlined_call_operand.vmem [shape: bf16[128,128], index: 9, kind: input, shape index: {}]   ;;  %s12044_s10 = inlined_call_operand.vmem [shape: bf16[128,256], index: 10, kind: input, shape index: {}]   ;;  %s12045_s11 = inlined_call_operand.vmem [shape: bf16[256,128], index: 11, kind: input, shape index: {}]   ;;  %s12046_s12 = inlined_call_operand.vmem [shape: bf16[128,128], index: 12, kind: input, shape index: {}]   ;;  %s12047_s13 = inlined_call_operand.vmem [shape: f32[16,128], index: 13, kind: input, shape index: {}]   ;;  %s12048_s14 = inlined_call_operand.vmem [shape: f32[2,256], index: 14, kind: input, shape index: {}]   ;;  %s12049_s15 = inlined_call_operand.hbm [shape: f32[8,8,128], index: 15, kind: output, shape index: {}]  }
   0x1   :  { %12109 = sst [smem:[#allocation38_spill]] %s12034_s0 }
   0x2   :  { %20 = vsyncpa [#allocation3], 0 }
   0x3   :  { %22 = vsyncpa [#allocation3 + $0x1], 0  ;;  %s8742_s18 = smov 0   ;;  %s8744_s19 = smov 0  }
   0x4   :  { %s8746_s20 = smov 0   ;;  %s8748_s21 = smov 0  }
   0x5 LB: > { %12110 = sst [smem:[#allocation5_spill]] %s8650_s20  ;;  %s8763_s22 = sadd.s32 4294967295, %s8654_s21   ;;  %s8654_s21 = sphi %s8748_s21, %s12214_s21   ;;  %s8650_s20 = sphi %s8746_s20, %s12216_s20   ;;  %s8646_s19 = sphi %s8744_s19, %s12218_s19   ;;  %s8642_s18 = sphi %s8742_s18, %s12217_s18  }
   0x6   : > { %s6884_s23 = sadd.s32 4294967294, %s8654_s21   ;;  %s8767_s24 = sadd.s32 1, %s8654_s21  }
   0x7   : > { %12111 = sst [smem:[#allocation6_spill]] %s8767_s24  ;;  %s355_s25 = sadd.s32 1, %s8650_s20 }
   0x8   : > { %s352_s26 = ssub.s32 %s8654_s21, %s8767_s24  ;;  %p365_p0 = scmp.ne.s32.totalorder %s8650_s20, %s8646_s19 }
   0x9   : > { %p353_p1 = scmp.eq.s32.totalorder %s352_s26, 0  ;;  %p366_p2 = scmp.eq.s32.totalorder %s8763_s22, 1 }
   0xa   : > { %p371_p3 = scmp.ne.s32.totalorder %s8646_s19, %s8642_s18  ;;  %p372_p4 = scmp.eq.s32.totalorder %s6884_s23, 1 }
   0xb   : > { %s8778_s27 = scalar_select %p353_p1, %s8650_s20, %s355_s25  }
   0xc   : > { %p8780_p5 = por %p366_p2, %p365_p0  ;;  %p8784_p6 = por %p372_p4, %p371_p3 }
   0xd   : > { %12112 = sst [smem:[#allocation7_spill]] %s8778_s27  ;;  %p6887_p7 = scmp.ge.s32.totalorder %s8654_s21, 1 }
   0xe   : > { %s12114_s29 = scalar_select %p8784_p6, 1, 0 }
   0xf   : > { %p442_p8 = scmp.lt.s32.totalorder %s8654_s21, 3 }
  0x10   : > { %12115 = sst [smem:[#allocation8_spill]] %s12114_s29 }
  0x11   : > { %p443_p9 = pnand %p6887_p7, %p442_p8 }
  0x13   : > { %446 = sbr.rel (%p443_p9) target bundleno = 5324 (0x14cc), region = 80 }
  0x1a   : > { %v7900_v0 = vld [vmem:[%s12035_s1] sm:$0xff]   ;;  %s6889_s17 = sshll.u32 %s8763_s22, 2  ;;  %v7901_v1 = vld [vmem:[%s12035_s1 + $0x8] sm:$0xff]   ;;  %v7902_v2 = vld [vmem:[%s12035_s1 + $0x10] sm:$0xff]   ;;  %s12116_s0 = sld [smem:[#allocation38_spill]]  ;;  %v551_v24 = vlaneseq  ;;  %vm2123_vm0 = vcmask 523264  }
  0x1b   : > { %p492_p10 = scmp.lt.s32.totalorder %s6889_s17, 7  ;;  %7428 = vmatprep.subr.bf16.mxu0 %v7900_v0  ;;  %v7903_v3 = vld [vmem:[%s12035_s1 + $0x18] sm:$0xff]   ;;  %v7904_v5 = vld [vmem:[%s12035_s1 + $0x20] sm:$0xff]   ;;  %v7905_v6 = vld [vmem:[%s12035_s1 + $0x28] sm:$0xff]   ;;  %vm8658_vm1 = vmmov 0   ;;  %s488_s26 = sand.u32 1, %s8646_s19  }
  0x1c   : > { %7429 = vmatpush3.bf16.msra.mxu0 %v7900_v0  ;;  %v7906_v7 = vld [vmem:[%s12035_s1 + $0x30] sm:$0xff]   ;;  %v7907_v8 = vld [vmem:[%s12035_s1 + $0x38] sm:$0xff]   ;;  %v8836_v25 = vshrl.u32 %v551_v24, 7  ;;  %v8844_v27 = vld [vmem:[%s12047_s13] sm:$0xff]  ;;  %s6888_s16 = sshll.u32 %s488_s26, 5  ;;  %s8659_s25 = smov [#allocation2]  }
  0x1d   : > { %s12220_s17 = smov (!%p492_p10, %s6889_s17), 7  ;;  %7430 = vmatprep.subr.bf16.mxu0 %v7901_v1  ;;  %s490_s23 = scalar_lea.vmem [#allocation2], %s6888_s16 }
  0x1e   : > { %s7079_s20 = sshll.u32 %s12220_s17, 5  ;;  %12117 = vst [vmem:[#allocation9_spill] sm:$0xff] %v8836_v25  ;;  %v8839_v26 = vsub.s32 0, %v8836_v25  ;;  %s6822_s27 = sshll.u32 %s490_s23, 4  ;;  %s11986_s27 = int_to_ptr.vmem [resolvable:$true] %s6822_s27 }
  0x1f   : > { %s8592_s29 = scalar_lea.vmem %s11986_s27, 512  ;;  %s8596_s16 = sshll.u32 %s8659_s25, 4  ;;  %s8597_s16 = int_to_ptr.vmem [resolvable:$false] %s8596_s16 }
  0x20   : > { %s8803_s30 = scalar_lea.vmem %s12116_s0, %s7079_s20  ;;  %7431 = vmatpush3.bf16.msra.mxu0 %v7901_v1  ;;  %12118 = vst [vmem:[#allocation10_spill] sm:$0xff] %v8839_v26  ;;  %v8848_v28 = vrot.slane %v8844_v27, %v8839_v26  ;;  %p8593_p11 = scmp.ne.s32.totalorder %s11986_s27, %s8592_s29 }
  0x21   : > { %7432 = vmatprep.subr.bf16.mxu0 %v7902_v2  ;;  %v7908_v4 = vld [vmem:[%s8803_s30] sm:$0xff]   ;;  %v7909_v9 = vld [vmem:[%s8803_s30 + $0x8] sm:$0xff]   ;;  %v7910_v10 = vld [vmem:[%s8803_s30 + $0x10] sm:$0xff]   ;;  %s8598_s0 = scalar_lea.vmem %s8597_s16, 1024  ;;  %p8599_p0 = scmp.lt.s32.totalorder %s11986_s27, %s8597_s16 }
  0x22   : > { %7444 = vmatprep.mubr.bf16.mxu0 %v7908_v4  ;;  %v7911_v11 = vld [vmem:[%s8803_s30 + $0x18] sm:$0xff]   ;;  %v7912_v12 = vld [vmem:[%s8803_s30 + $0x20] sm:$0xff]   ;;  %v7913_v13 = vld [vmem:[%s8803_s30 + $0x28] sm:$0xff]   ;;  %p8594_p12 = pnand %p8593_p11, %p8780_p5  ;;  %p8600_p1 = scmp.lt.s32.totalorder %s8598_s0, %s8592_s29 }
  0x23   : > { %v7914_v14 = vld [vmem:[%s8803_s30 + $0x30] sm:$0xff]   ;;  %v7915_v15 = vld [vmem:[%s8803_s30 + $0x38] sm:$0xff]   ;;  %v7916_v16 = vld [vmem:[%s8803_s30 + $0x40] sm:$0xff]  }
  0x24   : > { %7433 = vmatpush3.bf16.msra.mxu0 %v7902_v2  ;;  %v7917_v17 = vld [vmem:[%s8803_s30 + $0x48] sm:$0xff]   ;;  %v7918_v18 = vld [vmem:[%s8803_s30 + $0x50] sm:$0xff]   ;;  %v7919_v19 = vld [vmem:[%s8803_s30 + $0x58] sm:$0xff]   ;;  %p8595_p13 = pneg %p8594_p12  ;;  %p8601_p2 = por %p8600_p1, %p8599_p0 }
  0x25   : > { %7434 = vmatprep.subr.bf16.mxu0 %v7903_v3  ;;  %v7920_v20 = vld [vmem:[%s8803_s30 + $0x60] sm:$0xff]   ;;  %v7921_v21 = vld [vmem:[%s8803_s30 + $0x68] sm:$0xff]   ;;  %v7922_v22 = vld [vmem:[%s8803_s30 + $0x70] sm:$0xff]  }
  0x26   : > { %v7923_v23 = vld [vmem:[%s8803_s30 + $0x78] sm:$0xff]   ;;  %s7082_s30 = sshll.u32 %s8763_s22, 9  ;;  %s11993_s22 = scalar_lea.sflag [#allocation3], %s488_s26 }
  0x27   : > { %s11991_s24 = scalar_lea.hbm %s12049_s15, %s7082_s30  ;;  %p8602_p3 = pnand %p8601_p2, %p8595_p13 }
  0x28   : > { %7435 = vmatpush3.bf16.msra.mxu0 %v7903_v3 }
  0x29   : > { %7436 = vmatprep.subr.bf16.mxu0 %v7904_v5 }
  0x2c   : > { %7437 = vmatpush3.bf16.msra.mxu0 %v7904_v5 }
  0x2d   : > { %7438 = vmatprep.subr.bf16.mxu0 %v7905_v6 }
  0x30   : > { %7439 = vmatpush3.bf16.msra.mxu0 %v7905_v6 }
  0x31   : > { %7440 = vmatprep.subr.bf16.mxu0 %v7906_v7 }
  0x34   : > { %7441 = vmatpush3.bf16.msra.mxu0 %v7906_v7 }
  0x35   : > { %7442 = vmatprep.subr.bf16.mxu0 %v7907_v8 }
  0x38   : > { %7443 = vmatpush3.bf16.msra.mxu0 %v7907_v8 }
  0x3b   : > { %7445 = vmatmul.mubr.bf16.vlgmr.msra.gmra.mrb[0].mxu0 %v7909_v9 }
  0x3c   : > { %7448 = vmatprep.mubr.bf16.mxu0 %v7910_v10 }
  0x43   : > { %7449 = vmatmul.mubr.bf16.gmra.mrb[4].mxu0 %v7911_v11 }
  0x44   : > { %7452 = vmatprep.mubr.bf16.mxu0 %v7912_v12 }
  0x4b   : > { %7453 = vmatmul.mubr.bf16.gmra.mrb[8].mxu0 %v7913_v13 }
  0x4c   : > { %7456 = vmatprep.mubr.bf16.mxu0 %v7914_v14 }
  0x53   : > { %7457 = vmatmul.mubr.bf16.gmra.mrb[12].mxu0 %v7915_v15 }
  0x54   : > { %7460 = vmatprep.mubr.bf16.mxu0 %v7916_v16 }
  0x5b   : > { %7461 = vmatmul.mubr.bf16.gmra.mrb[16].mxu0 %v7917_v17 }
  0x5c   : > { %7464 = vmatprep.mubr.bf16.mxu0 %v7918_v18 }
  0x63   : > { %7465 = vmatmul.mubr.bf16.gmra.mrb[20].mxu0 %v7919_v19 }
  0x64   : > { %7468 = vmatprep.mubr.bf16.mxu0 %v7920_v20 }
  0x6b   : > { %7469 = vmatmul.mubr.bf16.gmra.mrb[24].mxu0 %v7921_v21 }
  0x6c   : > { %7472 = vmatprep.mubr.bf16.mxu0 %v7922_v22 }
  0x73   : > { %7473 = vmatmul.mubr.bf16.gmra.mrb[28].mxu0 %v7923_v23 }
 0x10e   : > { %v7446_v29 = vpop.f32.mrb[0].mxu0 }
 0x10f   : > { %v8851_v30 = vadd.f32 %v7446_v29, %v8848_v28  ;;  %v733_v31 = vpop.f32.mrb[1].mxu0 }
 0x110   : > { %v8854_v32 = vadd.f32 %v733_v31, %v8848_v28  ;;  %v7447_v33 = vpop.f32.mrb[2].mxu0 }
 0x111   : > { %864 = vadd.xlane.f32.xlu1 %v8851_v30  ;;  %v736_v34 = vpop.f32.mrb[3].mxu0  ;;  %v8859_v35 = vadd.f32 %v7447_v33, %v8848_v28 }
 0x112   : > { %860 = vadd.xlane.f32.xlu0 %v8854_v32  ;;  %v8862_v36 = vadd.f32 %v736_v34, %v8848_v28 }
 0x115   : > { %866 = vadd.xlane.f32.xlu1 %v8859_v35 }
 0x116   : > { %v7450_v37 = vpop.f32.mrb[4].mxu0  ;;  %862 = vadd.xlane.f32.xlu0 %v8862_v36 }
 0x117   : > { %v749_v38 = vpop.f32.mrb[5].mxu0  ;;  %v8870_v42 = vadd.f32 %v7450_v37, %v8848_v28  ;;  %v7924_v37 = vld [vmem:[%s12036_s2 + $0x4] ss:$12 sps:$4 sm:$0xff]  }
 0x118   : > { %v8867_v39 = vadd.f32 %v749_v38, %v8848_v28  ;;  %v7451_v40 = vpop.f32.mrb[6].mxu0  ;;  %v7926_v38 = vld [vmem:[%s12036_s2] ss:$12 sps:$4 sm:$0xff]   ;;  %1461 = vmatprep.subr.bf16.mxu1 %v7924_v37 }
 0x119   : > { %v752_v41 = vpop.f32.mrb[7].mxu0  ;;  %v8877_v44 = vadd.f32 %v7451_v40, %v8848_v28  ;;  %v7927_v40 = vld [vmem:[%s12036_s2 + $0x1c] ss:$12 sps:$4 sm:$0xff]   ;;  %1462 = vmatpush1.bf16.msra.mxu1 %v7926_v38 }
 0x11a   : > { %v8873_v43 = vadd.f32 %v752_v41, %v8848_v28  ;;  %868 = vadd.xlane.f32.xlu0 %v8867_v39  ;;  %1463 = vmatprep.subr.bf16.mxu1 %v7927_v40  ;;  %v7934_v40 = vld [vmem:[%s12036_s2 + $0x4c] ss:$12 sps:$4 sm:$0xff]  }
 0x11c   : > { %870 = vadd.xlane.f32.xlu1 %v8873_v43 }
 0x11e   : > { %v7454_v45 = vpop.f32.mrb[8].mxu0  ;;  %872 = vadd.xlane.f32.xlu0 %v8870_v42 }
 0x11f   : > { %v765_v46 = vpop.f32.mrb[9].mxu0  ;;  %v8886_v50 = vadd.f32 %v7454_v45, %v8848_v28 }
 0x120   : > { %v8882_v47 = vadd.f32 %v765_v46, %v8848_v28  ;;  %v7455_v48 = vpop.f32.mrb[10].mxu0  ;;  %874 = vadd.xlane.f32.xlu1 %v8877_v44 }
 0x121   : > { %v768_v49 = vpop.f32.mrb[11].mxu0  ;;  %v8893_v52 = vadd.f32 %v7455_v48, %v8848_v28 }
 0x122   : > { %v8889_v51 = vadd.f32 %v768_v49, %v8848_v28  ;;  %876 = vadd.xlane.f32.xlu0 %v8882_v47 }
 0x124   : > { %878 = vadd.xlane.f32.xlu1 %v8889_v51 }
 0x126   : > { %v7458_v53 = vpop.f32.mrb[12].mxu0  ;;  %880 = vadd.xlane.f32.xlu0 %v8886_v50 }
 0x127   : > { %v781_v54 = vpop.f32.mrb[13].mxu0  ;;  %v8902_v58 = vadd.f32 %v7458_v53, %v8848_v28 }
 0x128   : > { %v8898_v55 = vadd.f32 %v781_v54, %v8848_v28  ;;  %v7459_v56 = vpop.f32.mrb[14].mxu0  ;;  %882 = vadd.xlane.f32.xlu1 %v8893_v52 }
 0x129   : > { %v784_v57 = vpop.f32.mrb[15].mxu0  ;;  %v8909_v60 = vadd.f32 %v7459_v56, %v8848_v28 }
 0x12a   : > { %v8905_v59 = vadd.f32 %v784_v57, %v8848_v28  ;;  %884 = vadd.xlane.f32.xlu0 %v8898_v55 }
 0x12c   : > { %886 = vadd.xlane.f32.xlu1 %v8905_v59 }
 0x12e   : > { %v7462_v61 = vpop.f32.mrb[16].mxu0  ;;  %888 = vadd.xlane.f32.xlu0 %v8902_v58 }
 0x12f   : > { %v797_v62 = vpop.f32.mrb[17].mxu0  ;;  %v8918_v2 = vadd.f32 %v7462_v61, %v8848_v28 }
 0x130   : > { %v8914_v63 = vadd.f32 %v797_v62, %v8848_v28  ;;  %v7463_v0 = vpop.f32.mrb[18].mxu0  ;;  %890 = vadd.xlane.f32.xlu1 %v8909_v60 }
 0x131   : > { %v800_v1 = vpop.f32.mrb[19].mxu0  ;;  %v8925_v4 = vadd.f32 %v7463_v0, %v8848_v28 }
 0x132   : > { %v8921_v3 = vadd.f32 %v800_v1, %v8848_v28  ;;  %892 = vadd.xlane.f32.xlu0 %v8914_v63 }
 0x134   : > { %894 = vadd.xlane.f32.xlu1 %v8921_v3 }
 0x136   : > { %896 = vadd.xlane.f32.xlu0 %v8918_v2  ;;  %v7466_v5 = vpop.f32.mrb[20].mxu0 }
 0x137   : > { %v8930_v6 = vadd.f32 %v7466_v5, %v8848_v28  ;;  %v813_v7 = vpop.f32.mrb[21].mxu0 }
 0x138   : > { %898 = vadd.xlane.f32.xlu1 %v8925_v4  ;;  %v8934_v8 = vadd.f32 %v813_v7, %v8848_v28  ;;  %v7467_v9 = vpop.f32.mrb[22].mxu0 }
 0x139   : > { %v8937_v10 = vadd.f32 %v7467_v9, %v8848_v28  ;;  %v816_v11 = vpop.f32.mrb[23].mxu0 }
 0x13a   : > { %v8940_v12 = vadd.f32 %v816_v11, %v8848_v28 }
 0x13e   : > { %v7470_v13 = vpop.f32.mrb[24].mxu0 }
 0x13f   : > { %v8943_v14 = vadd.f32 %v7470_v13, %v8848_v28  ;;  %v829_v15 = vpop.f32.mrb[25].mxu0 }
 0x140   : > { %v8946_v16 = vadd.f32 %v829_v15, %v8848_v28  ;;  %v7471_v17 = vpop.f32.mrb[26].mxu0 }
 0x141   : > { %v8949_v18 = vadd.f32 %v7471_v17, %v8848_v28  ;;  %v832_v19 = vpop.f32.mrb[27].mxu0 }
 0x142   : > { %v8952_v20 = vadd.f32 %v832_v19, %v8848_v28 }
 0x146   : > { %v7474_v21 = vpop.f32.mrb[28].mxu0 }
 0x147   : > { %v8955_v22 = vadd.f32 %v7474_v21, %v8848_v28  ;;  %v845_v23 = vpop.f32.mrb[29].mxu0 }
 0x148   : > { %v8958_v24 = vadd.f32 %v845_v23, %v8848_v28  ;;  %v7475_v29 = vpop.f32.mrb[30].mxu0  ;;  %v7932_v23 = vld [vmem:[%s12036_s2 + $0x8] ss:$12 sps:$4 sm:$0xff]  }
 0x149   : > { %v8961_v31 = vadd.f32 %v7475_v29, %v8848_v28  ;;  %v848_v33 = vpop.f32.mrb[31].mxu0  ;;  %v7933_v29 = vld [vmem:[%s12036_s2 + $0x30] ss:$12 sps:$4 sm:$0xff]   ;;  %7476 = vmatprep.subr.bf16.mxu0 %v7932_v23 }
 0x14a   : > { %v8964_v34 = vadd.f32 %v848_v33, %v8848_v28  ;;  %7477 = vmatpush3.bf16.msra.mxu0 %v7932_v23 }
 0x19e   : > { %v865_v41 = vpop.xlane.xlu1 %864 }
 0x19f   : > { %v861_v45 = vpop.xlane.xlu0 %860  ;;  %v927_v49 = vmul.f32 0.0078125, %v865_v41  ;;  %v7936_v41 = vld [vmem:[%s12036_s2 + $0x20] ss:$12 sps:$4 sm:$0xff]  }
 0x1a0   : > { %v925_v46 = vmul.f32 0.0078125, %v861_v45  ;;  %v7937_v45 = vld [vmem:[%s12036_s2 + $0x48] ss:$12 sps:$4 sm:$0xff]   ;;  %7478 = vmatprep.subr.bf16.mxu0 %v7936_v41 }
 0x1a1   : > { %v8986_v0 = vsub.f32 %v8851_v30, %v927_v49  ;;  %7479 = vmatpush3.bf16.msra.mxu0 %v7936_v41 }
 0x1a2   : > { %v8976_v28 = vsub.f32 %v8854_v32, %v925_v46  ;;  %v867_v56 = vpop.xlane.xlu1 %866 }
 0x1a3   : > { %v863_v48 = vpop.xlane.xlu0 %862  ;;  %v928_v61 = vmul.f32 0.0078125, %v867_v56  ;;  %v991_v5 = vmul.f32 %v8986_v0, %v8986_v0  ;;  %v7940_v56 = vld [vmem:[%s12036_s2 + $0x38] ss:$12 sps:$4 sm:$0xff]  }
 0x1a4   : > { %v926_v53 = vmul.f32 0.0078125, %v863_v48  ;;  %v989_v54 = vmul.f32 %v8976_v28, %v8976_v28  ;;  %7480 = vmatprep.subr.bf16.mxu0 %v7940_v56 }
 0x1a5   : > { %v8992_v7 = vsub.f32 %v8859_v35, %v928_v61  ;;  %v7929_v35 = vld [vmem:[%s12036_s2 + $0x18] ss:$12 sps:$4 sm:$0xff]   ;;  %v7941_v61 = vld [vmem:[%s12036_s2 + $0x60] ss:$12 sps:$4 sm:$0xff]   ;;  %7481 = vmatpush3.bf16.msra.mxu0 %v7940_v56 }
 0x1a6   : > { %1021 = vadd.xlane.f32.xlu0 %v989_v54  ;;  %v8981_v57 = vsub.f32 %v8862_v36, %v926_v53  ;;  %1464 = vmatpush1.bf16.msra.mxu1 %v7929_v35  ;;  %v7938_v54 = vld [vmem:[%s12036_s2 + $0x64] ss:$12 sps:$4 sm:$0xff]  }
 0x1a7   : > { %v869_v32 = vpop.xlane.xlu0 %868  ;;  %v992_v30 = vmul.f32 %v8992_v7, %v8992_v7 }
 0x1a8   : > { %v990_v62 = vmul.f32 %v8981_v57, %v8981_v57  ;;  %v929_v1 = vmul.f32 0.0078125, %v869_v32 }
 0x1a9   : > { %v871_v36 = vpop.xlane.xlu1 %870 }
 0x1aa   : > { %900 = vadd.xlane.f32.xlu0 %v8934_v8  ;;  %1023 = vadd.xlane.f32.xlu1 %v990_v62  ;;  %v930_v9 = vmul.f32 0.0078125, %v871_v36  ;;  %v8998_v11 = vsub.f32 %v8867_v39, %v929_v1  ;;  %v7930_v39 = vld [vmem:[%s12036_s2 + $0x34] ss:$12 sps:$4 sm:$0xff]   ;;  %v7944_v36 = vld [vmem:[%s12036_s2 + $0x50] ss:$12 sps:$4 sm:$0xff]  }
 0x1ab   : > { %v873_v13 = vpop.xlane.xlu0 %872  ;;  %1465 = vmatprep.subr.bf16.mxu1 %v7930_v39  ;;  %7482 = vmatprep.subr.bf16.mxu0 %v7944_v36 }
 0x1ac   : > { %v931_v15 = vmul.f32 0.0078125, %v873_v13  ;;  %v993_v17 = vmul.f32 %v8998_v11, %v8998_v11  ;;  %v9007_v19 = vsub.f32 %v8873_v43, %v930_v9  ;;  %1466 = vmatpush1.bf16.msra.mxu1 %v7933_v29  ;;  %v7945_v9 = vld [vmem:[%s12036_s2 + $0x78] ss:$12 sps:$4 sm:$0xff]   ;;  %7483 = vmatpush3.bf16.msra.mxu0 %v7944_v36 }
 0x1ad   : > { %v875_v21 = vpop.xlane.xlu1 %874  ;;  %1467 = vmatprep.subr.bf16.mxu1 %v7934_v40  ;;  %v7953_v40 = vld [vmem:[%s12036_s2 + $0xa8] ss:$12 sps:$4 sm:$0xff]  }
 0x1ae   : > { %1025 = vadd.xlane.f32.xlu0 %v991_v5  ;;  %902 = vadd.xlane.f32.xlu1 %v8940_v12  ;;  %v932_v43 = vmul.f32 0.0078125, %v875_v21  ;;  %v994_v37 = vmul.f32 %v9007_v19, %v9007_v19  ;;  %v9022_v38 = vsub.f32 %v8870_v42, %v931_v15  ;;  %v7942_v5 = vld [vmem:[%s12036_s2 + $0x7c] ss:$12 sps:$4 sm:$0xff]   ;;  %v7946_v15 = vld [vmem:[%s12036_s2 + $0x94] ss:$12 sps:$4 sm:$0xff]  }
 0x1af   : > { %v877_v33 = vpop.xlane.xlu0 %876  ;;  %v7949_v21 = vld [vmem:[%s12036_s2 + $0x90] ss:$12 sps:$4 sm:$0xff]  }
 0x1b0   : > { %v933_v42 = vmul.f32 0.0078125, %v877_v33  ;;  %v995_v48 = vmul.f32 %v9022_v38, %v9022_v38  ;;  %v9037_v49 = vsub.f32 %v8877_v44, %v932_v43  ;;  %1468 = vmatpush1.bf16.msra.mxu1 %v7937_v45  ;;  %v7950_v43 = vld [vmem:[%s12036_s2 + $0xac] ss:$12 sps:$4 sm:$0xff]  }
 0x1b1   : > { %v879_v46 = vpop.xlane.xlu1 %878  ;;  %1469 = vmatprep.subr.bf16.mxu1 %v7938_v54  ;;  %v12054_v54 = vmov 0  }
 0x1b2   : > { %904 = vadd.xlane.f32.xlu0 %v8930_v6  ;;  %1027 = vadd.xlane.f32.xlu1 %v992_v30  ;;  %v934_v44 = vmul.f32 0.0078125, %v879_v46  ;;  %v996_v62 = vmul.f32 %v9037_v49, %v9037_v49  ;;  %v9052_v32 = vsub.f32 %v8882_v47, %v933_v42  ;;  %v7954_v42 = vld [vmem:[%s12036_s2 + $0x98] ss:$12 sps:$4 sm:$0xff]  }
 0x1b3   : > { %v881_v53 = vpop.xlane.xlu0 %880  ;;  %1493 = vmatprep.mubr.bf16.mxu1 %v12054_v54 }
 0x1b4   : > { %1470 = vmatpush1.bf16.msra.mxu1 %v7941_v61  ;;  %v935_v30 = vmul.f32 0.0078125, %v881_v53  ;;  %v997_v13 = vmul.f32 %v9052_v32, %v9052_v32  ;;  %v9067_v35 = vsub.f32 %v8889_v51, %v934_v44  ;;  %v7955_v44 = vld [vmem:[%s12036_s2 + $0xb0] ss:$12 sps:$4 sm:$0xff]  }
 0x1b5   : > { %v883_v1 = vpop.xlane.xlu1 %882  ;;  %1471 = vmatprep.subr.bf16.mxu1 %v7942_v5 }
 0x1b6   : > { %906 = vadd.xlane.f32.xlu1 %v8937_v10  ;;  %1029 = vadd.xlane.f32.xlu0 %v993_v17  ;;  %v7948_v17 = vld [vmem:[%s12036_s2 + $0x68] ss:$12 sps:$4 sm:$0xff]   ;;  %v936_v51 = vmul.f32 0.0078125, %v883_v1  ;;  %v998_v23 = vmul.f32 %v9067_v35, %v9067_v35  ;;  %v9082_v29 = vsub.f32 %v8886_v50, %v935_v30 }
 0x1b7   : > { %v885_v47 = vpop.xlane.xlu0 %884  ;;  %7484 = vmatprep.subr.bf16.mxu0 %v7948_v17 }
 0x1b8   : > { %1472 = vmatpush1.bf16.msra.mxu1 %v7945_v9  ;;  %7485 = vmatpush3.bf16.msra.mxu0 %v7948_v17  ;;  %v937_v50 = vmul.f32 0.0078125, %v885_v47  ;;  %v999_v41 = vmul.f32 %v9082_v29, %v9082_v29  ;;  %v9097_v45 = vsub.f32 %v8893_v52, %v936_v51 }
 0x1b9   : > { %v887_v39 = vpop.xlane.xlu1 %886  ;;  %1473 = vmatprep.subr.bf16.mxu1 %v7946_v15 }
 0x1ba   : > { %1031 = vadd.xlane.f32.xlu1 %v994_v37  ;;  %908 = vadd.xlane.f32.xlu0 %v8946_v16  ;;  %v7952_v37 = vld [vmem:[%s12036_s2 + $0x80] ss:$12 sps:$4 sm:$0xff]   ;;  %v1000_v52 = vmul.f32 %v9097_v45, %v9097_v45  ;;  %v9107_v61 = vsub.f32 %v8898_v55, %v937_v50 }
 0x1bb   : > { %v889_v33 = vpop.xlane.xlu0 %888  ;;  %7486 = vmatprep.subr.bf16.mxu0 %v7952_v37 }
 0x1bc   : > { %1474 = vmatpush1.bf16.msra.mxu1 %v7949_v21  ;;  %7487 = vmatpush3.bf16.msra.mxu0 %v7952_v37  ;;  %v939_v56 = vmul.f32 0.0078125, %v889_v33  ;;  %v1001_v9 = vmul.f32 %v9107_v61, %v9107_v61 }
 0x1bd   : > { %1475 = vmatprep.subr.bf16.mxu1 %v7950_v43  ;;  %v891_v46 = vpop.xlane.xlu1 %890  ;;  %7488 = vmatprep.subr.bf16.mxu0 %v7954_v42 }
 0x1be   : > { %910 = vadd.xlane.f32.xlu1 %v8952_v20  ;;  %1033 = vadd.xlane.f32.xlu0 %v995_v48  ;;  %v938_v48 = vmul.f32 0.0078125, %v887_v39  ;;  %v9119_v55 = vsub.f32 %v8902_v58, %v939_v56 }
 0x1bf   : > { %v893_v53 = vpop.xlane.xlu0 %892 }
 0x1c0   : > { %1476 = vmatpush1.bf16.msra.mxu1 %v7953_v40  ;;  %7489 = vmatpush3.bf16.msra.mxu0 %v7954_v42  ;;  %v9114_v5 = vsub.f32 %v8905_v59, %v938_v48  ;;  %v941_v36 = vmul.f32 0.0078125, %v893_v53  ;;  %v1003_v17 = vmul.f32 %v9119_v55, %v9119_v55 }
 0x1c1   : > { %v895_v1 = vpop.xlane.xlu1 %894  ;;  %7490 = vmatprep.subr.bf16.mxu0 %v7955_v44 }
 0x1c2   : > { %1035 = vadd.xlane.f32.xlu1 %v996_v62  ;;  %912 = vadd.xlane.f32.xlu0 %v8943_v14  ;;  %v940_v62 = vmul.f32 0.0078125, %v891_v46  ;;  %v1002_v30 = vmul.f32 %v9114_v5, %v9114_v5  ;;  %v942_v59 = vmul.f32 0.0078125, %v895_v1  ;;  %v9130_v21 = vsub.f32 %v8914_v63, %v941_v36 }
 0x1c3   : > { %v897_v47 = vpop.xlane.xlu0 %896 }
 0x1c4   : > { %7491 = vmatpush3.bf16.msra.mxu0 %v7955_v44  ;;  %v943_v15 = vmul.f32 0.0078125, %v897_v47 }
 0x1c5   : > { %v899_v58 = vpop.xlane.xlu1 %898 }
 0x1c6   : > { %914 = vadd.xlane.f32.xlu1 %v8949_v18  ;;  %1037 = vadd.xlane.f32.xlu0 %v997_v13  ;;  %v9125_v13 = vsub.f32 %v8909_v60, %v940_v62  ;;  %v944_v51 = vmul.f32 0.0078125, %v899_v58  ;;  %v9137_v60 = vsub.f32 %v8921_v3, %v942_v59  ;;  %v9140_v33 = vsub.f32 %v8918_v2, %v943_v15 }
 0x1c7   : > { %v9160_v59 = vsub.s32 1, %v8836_v25 }
 0x1c8   : > { %v1004_v39 = vmul.f32 %v9125_v13, %v9125_v13  ;;  %v1006_v63 = vmul.f32 %v9137_v60, %v9137_v60  ;;  %v1007_v43 = vmul.f32 %v9140_v33, %v9140_v33  ;;  %v9147_v37 = vsub.f32 %v8925_v4, %v944_v51 }
 0x1c9   : > { %12119 = vst [vmem:[#allocation11_spill] sm:$0xff] %v9160_v59 }
 0x1ca   : > { %1039 = vadd.xlane.f32.xlu1 %v998_v23  ;;  %916 = vadd.xlane.f32.xlu0 %v8958_v24  ;;  %v1005_v23 = vmul.f32 %v9130_v21, %v9130_v21  ;;  %v1008_v3 = vmul.f32 %v9147_v37, %v9147_v37 }
 0x1ce   : > { %918 = vadd.xlane.f32.xlu1 %v8964_v34  ;;  %1041 = vadd.xlane.f32.xlu0 %v999_v41 }
 0x1d2   : > { %1043 = vadd.xlane.f32.xlu1 %v1000_v52  ;;  %920 = vadd.xlane.f32.xlu0 %v8955_v22 }
 0x1d6   : > { %922 = vadd.xlane.f32.xlu1 %v8961_v31  ;;  %1045 = vadd.xlane.f32.xlu0 %v1001_v9 }
 0x1da   : > { %1047 = vadd.xlane.f32.xlu1 %v1002_v30  ;;  %1049 = vadd.xlane.f32.xlu0 %v1003_v17 }
 0x1de   : > { %1051 = vadd.xlane.f32.xlu1 %v1004_v39  ;;  %1053 = vadd.xlane.f32.xlu0 %v1005_v23 }
 0x1e2   : > { %1055 = vadd.xlane.f32.xlu1 %v1006_v63  ;;  %1057 = vadd.xlane.f32.xlu0 %v1007_v43  ;;  %v9170_v43 = vrot.slane %v8844_v27, %v9160_v59 }
 0x1e6   : > { %1059 = vadd.xlane.f32.xlu1 %v1008_v3  ;;  %v9173_v3 = vsub.s32 2, %v8836_v25 }
 0x1e8   : > { %12120 = vst [vmem:[#allocation12_spill] sm:$0xff] %v9173_v3 }
 0x233   : > { %v1022_v40 = vpop.xlane.xlu0 %1021 }
 0x234   : > { %v1085_v2 = vmul.f32 0.0078125, %v1022_v40 }
 0x236   : > { %v1117_v50 = vadd.f32 1e-05, %v1085_v2 }
 0x237   : > { %v1024_v41 = vpop.xlane.xlu1 %1023  ;;  %v901_v46 = vpop.xlane.xlu0 %900 }
 0x238   : > { %8092 = vrsqrt.f32 %v1117_v50  ;;  %v1086_v42 = vmul.f32 0.0078125, %v1024_v41  ;;  %v945_v48 = vmul.f32 0.0078125, %v901_v46 }
 0x23a   : > { %v1118_v53 = vadd.f32 1e-05, %v1086_v42  ;;  %v9152_v56 = vsub.f32 %v8934_v8, %v945_v48 }
 0x23b   : > { %v903_v4 = vpop.xlane.xlu1 %902  ;;  %v1026_v52 = vpop.xlane.xlu0 %1025 }
 0x23c   : > { %8094 = vrsqrt.f32 %v1118_v53  ;;  %v946_v44 = vmul.f32 0.0078125, %v903_v4  ;;  %v1087_v62 = vmul.f32 0.0078125, %v1026_v52  ;;  %v1009_v1 = vmul.f32 %v9152_v56, %v9152_v56 }
 0x23d   : > { %v9184_v4 = vrot.slane %v8844_v27, %v9173_v3 }
 0x23e   : > { %v1119_v36 = vadd.f32 1e-05, %v1087_v62  ;;  %1061 = vadd.xlane.f32.xlu0 %v1009_v1  ;;  %v9157_v9 = vsub.f32 %v8940_v12, %v946_v44 }
 0x23f   : > { %v1028_v47 = vpop.xlane.xlu1 %1027  ;;  %v905_v30 = vpop.xlane.xlu0 %904 }
 0x240   : > { %8096 = vrsqrt.f32 %v1119_v36  ;;  %v1088_v8 = vmul.f32 0.0078125, %v1028_v47  ;;  %v947_v15 = vmul.f32 0.0078125, %v905_v30  ;;  %v1010_v17 = vmul.f32 %v9157_v9, %v9157_v9 }
 0x242   : > { %v8093_v58 = vpop.eup %8092  ;;  %v1120_v39 = vadd.f32 1e-05, %v1088_v8  ;;  %1063 = vadd.xlane.f32.xlu1 %v1010_v17  ;;  %v9165_v51 = vsub.f32 %v8930_v6, %v947_v15 }
 0x243   : > { %v907_v23 = vpop.xlane.xlu1 %906  ;;  %v1030_v12 = vpop.xlane.xlu0 %1029  ;;  %v1181_v63 = vmul.f32 %v8093_v58, %v8976_v28 }
 0x244   : > { %8098 = vrsqrt.f32 %v1120_v39  ;;  %v948_v40 = vmul.f32 0.0078125, %v907_v23  ;;  %v1089_v2 = vmul.f32 0.0078125, %v1030_v12  ;;  %v1011_v50 = vmul.f32 %v9165_v51, %v9165_v51 }
 0x245   : > { %v1217_v53 = vmul.f32 %v9170_v43, %v1181_v63 }
 0x246   : > { %v8095_v41 = vpop.eup %8094  ;;  %v1121_v6 = vadd.f32 1e-05, %v1089_v2  ;;  %1065 = vadd.xlane.f32.xlu0 %v1011_v50  ;;  %v9178_v46 = vsub.f32 %v8937_v10, %v948_v40 }
 0x247   : > { %v1032_v28 = vpop.xlane.xlu1 %1031  ;;  %v909_v42 = vpop.xlane.xlu0 %908  ;;  %v1182_v48 = vmul.f32 %v8095_v41, %v8981_v57  ;;  %v9193_v8 = vadd.f32 %v9184_v4, %v1217_v53 }
 0x248   : > { %8100 = vrsqrt.f32 %v1121_v6  ;;  %v1090_v52 = vmul.f32 0.0078125, %v1032_v28  ;;  %v949_v44 = vmul.f32 0.0078125, %v909_v42  ;;  %v1012_v62 = vmul.f32 %v9178_v46, %v9178_v46 }
 0x249   : > { %v1218_v1 = vmul.f32 %v9170_v43, %v1182_v48 }
 0x24a   : > { %v8097_v10 = vpop.eup %8096  ;;  %v1122_v36 = vadd.f32 1e-05, %v1090_v52  ;;  %1067 = vadd.xlane.f32.xlu1 %v1012_v62  ;;  %v9190_v47 = vsub.f32 %v8946_v16, %v949_v44 }
 0x24b   : > { %v911_v57 = vpop.xlane.xlu1 %910  ;;  %v1034_v30 = vpop.xlane.xlu0 %1033  ;;  %v9196_v27 = vadd.f32 %v9184_v4, %v1218_v1  ;;  %v1183_v15 = vmul.f32 %v8097_v10, %v8986_v0 }
 0x24c   : > { %8102 = vrsqrt.f32 %v1122_v36  ;;  %v950_v17 = vmul.f32 0.0078125, %v911_v57  ;;  %v1091_v58 = vmul.f32 0.0078125, %v1034_v30  ;;  %v1013_v39 = vmul.f32 %v9190_v47, %v9190_v47 }
 0x24d   : > { %v1285_v16 = vpack.c.bf16 %v9196_v27, %v9193_v8  ;;  %v1219_v50 = vmul.f32 %v9170_v43, %v1183_v15 }
 0x24e   : > { %v8099_v23 = vpop.eup %8098  ;;  %v1123_v12 = vadd.f32 1e-05, %v1091_v58  ;;  %1069 = vadd.xlane.f32.xlu0 %v1013_v39  ;;  %v9204_v63 = vsub.f32 %v8952_v20, %v950_v17 }
 0x24f   : > { %v1036_v40 = vpop.xlane.xlu1 %1035  ;;  %1494 = vmatmul.mubr.bf16.vlgmr.msra.gmra.mrb[0].mxu1 %v1285_v16  ;;  %7492 = vmatprep.mubr.bf16.mxu0 %v1285_v16  ;;  %v913_v2 = vpop.xlane.xlu0 %912  ;;  %v1184_v0 = vmul.f32 %v8099_v23, %v8992_v7  ;;  %v9216_v44 = vadd.f32 %v9184_v4, %v1219_v50 }
 0x250   : > { %8104 = vrsqrt.f32 %v1123_v12  ;;  %v1092_v41 = vmul.f32 0.0078125, %v1036_v40  ;;  %v951_v6 = vmul.f32 0.0078125, %v913_v2  ;;  %v1014_v28 = vmul.f32 %v9204_v63, %v9204_v63  ;;  %1503 = vmatprep.mubr.bf16.mxu1 %v12054_v54 }
 0x251   : > { %v1220_v42 = vmul.f32 %v9170_v43, %v1184_v0 }
 0x252   : > { %v8101_v20 = vpop.eup %8100  ;;  %v1124_v48 = vadd.f32 1e-05, %v1092_v41  ;;  %1071 = vadd.xlane.f32.xlu1 %v1014_v28  ;;  %v9213_v53 = vsub.f32 %v8943_v14, %v951_v6 }
 0x253   : > { %v915_v52 = vpop.xlane.xlu1 %914  ;;  %v1038_v7 = vpop.xlane.xlu0 %1037  ;;  %v9219_v62 = vadd.f32 %v9184_v4, %v1220_v42  ;;  %v1185_v1 = vmul.f32 %v8101_v20, %v8998_v11 }
 0x254   : > { %8106 = vrsqrt.f32 %v1124_v48  ;;  %v952_v10 = vmul.f32 0.0078125, %v915_v52  ;;  %v1093_v36 = vmul.f32 0.0078125, %v1038_v7  ;;  %v1015_v57 = vmul.f32 %v9213_v53, %v9213_v53 }
 0x255   : > { %v1286_v14 = vpack.c.bf16 %v9219_v62, %v9216_v44  ;;  %v1221_v16 = vmul.f32 %v9170_v43, %v1185_v1 }
 0x256   : > { %v8103_v30 = vpop.eup %8102  ;;  %v1125_v15 = vadd.f32 1e-05, %v1093_v36  ;;  %1073 = vadd.xlane.f32.xlu0 %v1015_v57  ;;  %v9227_v17 = vsub.f32 %v8949_v18, %v952_v10 }
 0x257   : > { %v1040_v58 = vpop.xlane.xlu1 %1039  ;;  %1504 = vmatmul.mubr.bf16.gmra.mrb[4].mxu1 %v1286_v14  ;;  %7493 = vmatmul.mubr.bf16.vlgmr.msra.gmra.mrb[32].mxu0 %v1286_v14  ;;  %v917_v39 = vpop.xlane.xlu0 %916  ;;  %v1186_v11 = vmul.f32 %v8103_v30, %v9007_v19  ;;  %v9239_v6 = vadd.f32 %v9184_v4, %v1221_v16 }
 0x258   : > { %8108 = vrsqrt.f32 %v1125_v15  ;;  %v1094_v23 = vmul.f32 0.0078125, %v1040_v58  ;;  %v953_v12 = vmul.f32 0.0078125, %v917_v39  ;;  %v1016_v40 = vmul.f32 %v9227_v17, %v9227_v17  ;;  %1513 = vmatprep.mubr.bf16.mxu1 %v12054_v54 }
 0x259   : > { %v1222_v2 = vmul.f32 %v9170_v43, %v1186_v11 }
 0x25a   : > { %v8105_v18 = vpop.eup %8104  ;;  %v1126_v0 = vadd.f32 1e-05, %v1094_v23  ;;  %1075 = vadd.xlane.f32.xlu1 %v1016_v40  ;;  %v9236_v50 = vsub.f32 %v8958_v24, %v953_v12 }
 0x25b   : > { %v919_v41 = vpop.xlane.xlu1 %918  ;;  %v1042_v19 = vpop.xlane.xlu0 %1041  ;;  %v9242_v28 = vadd.f32 %v9184_v4, %v1222_v2  ;;  %v1187_v42 = vmul.f32 %v8105_v18, %v9022_v38 }
 0x25c   : > { %8110 = vrsqrt.f32 %v1126_v0  ;;  %v954_v20 = vmul.f32 0.0078125, %v919_v41  ;;  %v1095_v48 = vmul.f32 0.0078125, %v1042_v19  ;;  %v1017_v52 = vmul.f32 %v9236_v50, %v9236_v50 }
 0x25d   : > { %v1287_v24 = vpack.c.bf16 %v9242_v28, %v9239_v6  ;;  %v1223_v14 = vmul.f32 %v9170_v43, %v1187_v42 }
 0x25e   : > { %v8107_v7 = vpop.eup %8106  ;;  %v1127_v1 = vadd.f32 1e-05, %v1095_v48  ;;  %1077 = vadd.xlane.f32.xlu0 %v1017_v52  ;;  %v9250_v10 = vsub.f32 %v8964_v34, %v954_v20 }
 0x25f   : > { %v1044_v36 = vpop.xlane.xlu1 %1043  ;;  %1514 = vmatmul.mubr.bf16.gmra.mrb[8].mxu1 %v1287_v24  ;;  %7496 = vmatprep.mubr.bf16.mxu0 %v1287_v24  ;;  %v921_v57 = vpop.xlane.xlu0 %920  ;;  %v1188_v38 = vmul.f32 %v8107_v7, %v9037_v49  ;;  %v9262_v12 = vadd.f32 %v9184_v4, %v1223_v14 }
 0x260   : > { %8112 = vrsqrt.f32 %v1127_v1  ;;  %v1096_v30 = vmul.f32 0.0078125, %v1044_v36  ;;  %v955_v15 = vmul.f32 0.0078125, %v921_v57  ;;  %v1018_v58 = vmul.f32 %v9250_v10, %v9250_v10  ;;  %1523 = vmatprep.mubr.bf16.mxu1 %v12054_v54 }
 0x261   : > { %v1224_v39 = vmul.f32 %v9170_v43, %v1188_v38 }
 0x262   : > { %v8109_v34 = vpop.eup %8108  ;;  %v1128_v11 = vadd.f32 1e-05, %v1096_v30  ;;  %1079 = vadd.xlane.f32.xlu1 %v1018_v58  ;;  %v9259_v16 = vsub.f32 %v8955_v22, %v955_v15 }
 0x263   : > { %v923_v23 = vpop.xlane.xlu1 %922  ;;  %v1046_v49 = vpop.xlane.xlu0 %1045  ;;  %v9265_v40 = vadd.f32 %v9184_v4, %v1224_v39  ;;  %v1189_v2 = vmul.f32 %v8109_v34, %v9052_v32 }
 0x264   : > { %8114 = vrsqrt.f32 %v1128_v11  ;;  %v956_v18 = vmul.f32 0.0078125, %v923_v23  ;;  %v1097_v0 = vmul.f32 0.0078125, %v1046_v49  ;;  %v1019_v41 = vmul.f32 %v9259_v16, %v9259_v16 }
 0x265   : > { %v1288_v22 = vpack.c.bf16 %v9265_v40, %v9262_v12  ;;  %v1225_v24 = vmul.f32 %v9170_v43, %v1189_v2 }
 0x266   : > { %v8111_v19 = vpop.eup %8110  ;;  %v1129_v42 = vadd.f32 1e-05, %v1097_v0  ;;  %1081 = vadd.xlane.f32.xlu0 %v1019_v41  ;;  %v9273_v20 = vsub.f32 %v8961_v31, %v956_v18 }
 0x267   : > { %v1048_v48 = vpop.xlane.xlu1 %1047  ;;  %1524 = vmatmul.mubr.bf16.gmra.mrb[12].mxu1 %v1288_v22  ;;  %7497 = vmatmul.mubr.bf16.gmra.mrb[36].mxu0 %v1288_v22  ;;  %v1050_v52 = vpop.xlane.xlu0 %1049  ;;  %v1190_v32 = vmul.f32 %v8111_v19, %v9067_v35  ;;  %v9282_v35 = vadd.f32 %v9184_v4, %v1225_v24 }
 0x268   : > { %8116 = vrsqrt.f32 %v1129_v42  ;;  %v1098_v7 = vmul.f32 0.0078125, %v1048_v48  ;;  %v1099_v1 = vmul.f32 0.0078125, %v1050_v52  ;;  %v1020_v36 = vmul.f32 %v9273_v20, %v9273_v20  ;;  %1533 = vmatprep.mubr.bf16.mxu1 %v12054_v54 }
 0x269   : > { %v1226_v57 = vmul.f32 %v9170_v43, %v1190_v32 }
 0x26a   : > { %v8113_v31 = vpop.eup %8112  ;;  %v1130_v38 = vadd.f32 1e-05, %v1098_v7  ;;  %v1131_v14 = vadd.f32 1e-05, %v1099_v1  ;;  %1083 = vadd.xlane.f32.xlu1 %v1020_v36 }
 0x26b   : > { %v1052_v30 = vpop.xlane.xlu1 %1051  ;;  %v1054_v15 = vpop.xlane.xlu0 %1053  ;;  %v9285_v58 = vadd.f32 %v9184_v4, %v1226_v57  ;;  %v1191_v39 = vmul.f32 %v8113_v31, %v9082_v29 }
 0x26c   : > { %8118 = vrsqrt.f32 %v1130_v38  ;;  %v1100_v34 = vmul.f32 0.0078125, %v1052_v30  ;;  %v1101_v11 = vmul.f32 0.0078125, %v1054_v15 }
 0x26d   : > { %8120 = vrsqrt.f32 %v1131_v14  ;;  %v1289_v23 = vpack.c.bf16 %v9285_v58, %v9282_v35  ;;  %v1227_v19 = vmul.f32 %v9170_v43, %v1191_v39 }
 0x26e   : > { %v8115_v49 = vpop.eup %8114  ;;  %v1132_v2 = vadd.f32 1e-05, %v1100_v34  ;;  %v1133_v18 = vadd.f32 1e-05, %v1101_v11 }
 0x26f   : > { %v1056_v0 = vpop.xlane.xlu1 %1055  ;;  %1534 = vmatmul.mubr.bf16.gmra.mrb[16].mxu1 %v1289_v23  ;;  %7500 = vmatprep.mubr.bf16.mxu0 %v1289_v23  ;;  %v1058_v41 = vpop.xlane.xlu0 %1057  ;;  %v1192_v22 = vmul.f32 %v8115_v49, %v9097_v45  ;;  %v9295_v1 = vadd.f32 %v9184_v4, %v1227_v19 }
 0x270   : > { %8122 = vrsqrt.f32 %v1132_v2  ;;  %v1102_v29 = vmul.f32 0.0078125, %v1056_v0  ;;  %v1103_v42 = vmul.f32 0.0078125, %v1058_v41  ;;  %1543 = vmatprep.mubr.bf16.mxu1 %v12054_v54 }
 0x271   : > { %8124 = vrsqrt.f32 %v1133_v18  ;;  %v1228_v48 = vmul.f32 %v9170_v43, %v1192_v22 }
 0x272   : > { %v8117_v52 = vpop.eup %8116  ;;  %v1134_v32 = vadd.f32 1e-05, %v1102_v29  ;;  %v1135_v24 = vadd.f32 1e-05, %v1103_v42 }
 0x273   : > { %v1060_v7 = vpop.xlane.xlu1 %1059  ;;  %v9298_v36 = vadd.f32 %v9184_v4, %v1228_v48  ;;  %v1193_v45 = vmul.f32 %v8117_v52, %v9107_v61 }
 0x274   : > { %8126 = vrsqrt.f32 %v1134_v32  ;;  %v1104_v57 = vmul.f32 0.0078125, %v1060_v7 }
 0x275   : > { %8128 = vrsqrt.f32 %v1135_v24  ;;  %v1290_v31 = vpack.c.bf16 %v9298_v36, %v9295_v1  ;;  %v1229_v39 = vmul.f32 %v9170_v43, %v1193_v45 }
 0x276   : > { %v8119_v38 = vpop.eup %8118  ;;  %v1136_v14 = vadd.f32 1e-05, %v1104_v57 }
 0x277   : > { %v8121_v30 = vpop.eup %8120  ;;  %1544 = vmatmul.mubr.bf16.gmra.mrb[20].mxu1 %v1290_v31  ;;  %7501 = vmatmul.mubr.bf16.gmra.mrb[40].mxu0 %v1290_v31  ;;  %v1194_v15 = vmul.f32 %v8119_v38, %v9114_v5  ;;  %v9310_v2 = vadd.f32 %v9184_v4, %v1229_v39 }
 0x278   : > { %8130 = vrsqrt.f32 %v1136_v14  ;;  %1553 = vmatprep.mubr.bf16.mxu1 %v12054_v54  ;;  %v1195_v61 = vmul.f32 %v8121_v30, %v9119_v55 }
 0x279   : > { %v1230_v34 = vmul.f32 %v9170_v43, %v1194_v15 }
 0x27a   : > { %v8123_v11 = vpop.eup %8122  ;;  %v1231_v23 = vmul.f32 %v9170_v43, %v1195_v61 }
 0x27b   : > { %v8125_v49 = vpop.eup %8124  ;;  %v9313_v18 = vadd.f32 %v9184_v4, %v1230_v34  ;;  %v1196_v5 = vmul.f32 %v8123_v11, %v9125_v13 }
 0x27c   : > { %v1197_v0 = vmul.f32 %v8125_v49, %v9130_v21  ;;  %v9321_v19 = vadd.f32 %v9184_v4, %v1231_v23 }
 0x27d   : > { %v1291_v41 = vpack.c.bf16 %v9313_v18, %v9310_v2  ;;  %v1232_v55 = vmul.f32 %v9170_v43, %v1196_v5 }
 0x27e   : > { %v8127_v22 = vpop.eup %8126  ;;  %v1233_v13 = vmul.f32 %v9170_v43, %v1197_v0 }
 0x27f   : > { %v8129_v29 = vpop.eup %8128  ;;  %1554 = vmatmul.mubr.bf16.gmra.mrb[24].mxu1 %v1291_v41  ;;  %7504 = vmatprep.mubr.bf16.mxu0 %v1291_v41  ;;  %v9324_v42 = vadd.f32 %v9184_v4, %v1232_v55  ;;  %v1198_v48 = vmul.f32 %v8127_v22, %v9137_v60 }
 0x280   : > { %1563 = vmatprep.mubr.bf16.mxu1 %v12054_v54  ;;  %v1199_v21 = vmul.f32 %v8129_v29, %v9140_v33  ;;  %v9334_v7 = vadd.f32 %v9184_v4, %v1233_v13 }
 0x281   : > { %v1292_v52 = vpack.c.bf16 %v9324_v42, %v9321_v19  ;;  %v1234_v32 = vmul.f32 %v9170_v43, %v1198_v48 }
 0x282   : > { %v8131_v24 = vpop.eup %8130  ;;  %v1235_v57 = vmul.f32 %v9170_v43, %v1199_v21 }
 0x283   : > { %7505 = vmatmul.mubr.bf16.gmra.mrb[44].mxu0 %v1292_v52  ;;  %v9337_v45 = vadd.f32 %v9184_v4, %v1234_v32  ;;  %v1200_v60 = vmul.f32 %v8131_v24, %v9147_v37 }
 0x284   : > { %v9345_v38 = vadd.f32 %v9184_v4, %v1235_v57 }
 0x285   : > { %12121 = vst [vmem:[#allocation13_spill] sm:$0xff] %v9337_v45  ;;  %v1293_v33 = vpack.c.bf16 %v9337_v45, %v9334_v7  ;;  %v1236_v31 = vmul.f32 %v9170_v43, %v1200_v60 }
 0x286   : > { %12122 = vst [vmem:[#allocation14_spill] sm:$0xff] %v9345_v38 }
 0x287   : > { %1564 = vmatmul.mubr.bf16.gmra.mrb[28].mxu1 %v1292_v52  ;;  %7508 = vmatprep.mubr.bf16.mxu0 %v1293_v33  ;;  %v9348_v14 = vadd.f32 %v9184_v4, %v1236_v31 }
 0x288   : > { %1573 = vmatprep.mubr.bf16.mxu1 %v12054_v54 }
 0x289   : > { %12123 = vst [vmem:[#allocation15_spill] sm:$0xff] %v9348_v14  ;;  %v1294_v37 = vpack.c.bf16 %v9348_v14, %v9345_v38 }
 0x28b   : > { %7509 = vmatmul.mubr.bf16.gmra.mrb[48].mxu0 %v1294_v37 }
 0x28f   : > { %1574 = vmatmul.mubr.bf16.gmra.mrb[32].mxu1 %v1293_v33 }
 0x290   : > { %1583 = vmatprep.mubr.bf16.mxu1 %v12054_v54 }
 0x297   : > { %1584 = vmatmul.mubr.bf16.gmra.mrb[36].mxu1 %v1294_v37 }
 0x298   : > { %1593 = vmatprep.mubr.bf16.mxu1 %v12054_v54 }
 0x2cb   : > { %v1062_v30 = vpop.xlane.xlu0 %1061 }
 0x2cc   : > { %v1105_v15 = vmul.f32 0.0078125, %v1062_v30 }
 0x2ce   : > { %v1137_v39 = vadd.f32 1e-05, %v1105_v15 }
 0x2cf   : > { %v1064_v61 = vpop.xlane.xlu1 %1063 }
 0x2d0   : > { %8132 = vrsqrt.f32 %v1137_v39  ;;  %v1106_v34 = vmul.f32 0.0078125, %v1064_v61 }
 0x2d2   : > { %v1138_v11 = vadd.f32 1e-05, %v1106_v34 }
 0x2d3   : > { %v1066_v23 = vpop.xlane.xlu0 %1065 }
 0x2d4   : > { %8134 = vrsqrt.f32 %v1138_v11  ;;  %v1107_v49 = vmul.f32 0.0078125, %v1066_v23 }
 0x2d6   : > { %v1139_v5 = vadd.f32 1e-05, %v1107_v49 }
 0x2d7   : > { %v1068_v0 = vpop.xlane.xlu1 %1067 }
 0x2d8   : > { %8136 = vrsqrt.f32 %v1139_v5  ;;  %v1108_v41 = vmul.f32 0.0078125, %v1068_v0 }
 0x2da   : > { %v8133_v55 = vpop.eup %8132  ;;  %v1140_v22 = vadd.f32 1e-05, %v1108_v41 }
 0x2db   : > { %v1070_v29 = vpop.xlane.xlu0 %1069  ;;  %v1201_v48 = vmul.f32 %v8133_v55, %v9152_v56 }
 0x2dc   : > { %8138 = vrsqrt.f32 %v1140_v22  ;;  %v1109_v13 = vmul.f32 0.0078125, %v1070_v29 }
 0x2dd   : > { %v1237_v60 = vmul.f32 %v9170_v43, %v1201_v48 }
 0x2de   : > { %v8135_v21 = vpop.eup %8134  ;;  %v1141_v52 = vadd.f32 1e-05, %v1109_v13 }
 0x2df   : > { %v1072_v32 = vpop.xlane.xlu1 %1071  ;;  %v1202_v24 = vmul.f32 %v8135_v21, %v9157_v9  ;;  %v9360_v15 = vadd.f32 %v9184_v4, %v1237_v60 }
 0x2e0   : > { %8140 = vrsqrt.f32 %v1141_v52  ;;  %v1110_v57 = vmul.f32 0.0078125, %v1072_v32 }
 0x2e1   : > { %v1238_v33 = vmul.f32 %v9170_v43, %v1202_v24  ;;  %12124 = vst [vmem:[#allocation16_spill] sm:$0xff] %v9360_v15 }
 0x2e2   : > { %v8137_v31 = vpop.eup %8136  ;;  %v1142_v37 = vadd.f32 1e-05, %v1110_v57 }
 0x2e3   : > { %v1074_v30 = vpop.xlane.xlu0 %1073  ;;  %v9363_v56 = vadd.f32 %v9184_v4, %v1238_v33  ;;  %v1203_v39 = vmul.f32 %v8137_v31, %v9165_v51 }
 0x2e4   : > { %8142 = vrsqrt.f32 %v1142_v37  ;;  %v1111_v61 = vmul.f32 0.0078125, %v1074_v30 }
 0x2e5   : > { %12125 = vst [vmem:[#allocation17_spill] sm:$0xff] %v9363_v56  ;;  %v1295_v9 = vpack.c.bf16 %v9363_v56, %v9360_v15  ;;  %v1239_v5 = vmul.f32 %v9170_v43, %v1203_v39 }
 0x2e6   : > { %v8139_v34 = vpop.eup %8138  ;;  %v1143_v11 = vadd.f32 1e-05, %v1111_v61 }
 0x2e7   : > { %v1076_v23 = vpop.xlane.xlu1 %1075  ;;  %1594 = vmatmul.mubr.bf16.gmra.mrb[40].mxu1 %v1295_v9  ;;  %7512 = vmatprep.mubr.bf16.mxu0 %v1295_v9  ;;  %v1204_v49 = vmul.f32 %v8139_v34, %v9178_v46  ;;  %v9373_v29 = vadd.f32 %v9184_v4, %v1239_v5 }
 0x2e8   : > { %8144 = vrsqrt.f32 %v1143_v11  ;;  %v1112_v0 = vmul.f32 0.0078125, %v1076_v23  ;;  %1603 = vmatprep.mubr.bf16.mxu1 %v12054_v54 }
 0x2e9   : > { %v1240_v51 = vmul.f32 %v9170_v43, %v1204_v49  ;;  %12126 = vst [vmem:[#allocation18_spill] sm:$0xff] %v9373_v29 }
 0x2ea   : > { %v8141_v41 = vpop.eup %8140  ;;  %v1144_v55 = vadd.f32 1e-05, %v1112_v0 }
 0x2eb   : > { %v1078_v22 = vpop.xlane.xlu0 %1077  ;;  %v9376_v48 = vadd.f32 %v9184_v4, %v1240_v51  ;;  %v1205_v13 = vmul.f32 %v8141_v41, %v9190_v47 }
 0x2ec   : > { %8146 = vrsqrt.f32 %v1144_v55  ;;  %v1113_v46 = vmul.f32 0.0078125, %v1078_v22 }
 0x2ed   : > { %12127 = vst [vmem:[#allocation19_spill] sm:$0xff] %v9376_v48  ;;  %v1296_v21 = vpack.c.bf16 %v9376_v48, %v9373_v29  ;;  %v1241_v57 = vmul.f32 %v9170_v43, %v1205_v13 }
 0x2ee   : > { %v8143_v52 = vpop.eup %8142  ;;  %v1145_v32 = vadd.f32 1e-05, %v1113_v46 }
 0x2ef   : > { %v1080_v24 = vpop.xlane.xlu1 %1079  ;;  %1604 = vmatmul.mubr.bf16.gmra.mrb[44].mxu1 %v1296_v21  ;;  %7513 = vmatmul.mubr.bf16.gmra.mrb[52].mxu0 %v1296_v21  ;;  %v1206_v60 = vmul.f32 %v8143_v52, %v9204_v63  ;;  %v9386_v39 = vadd.f32 %v9184_v4, %v1241_v57 }
 0x2f0   : > { %8148 = vrsqrt.f32 %v1145_v32  ;;  %v1114_v33 = vmul.f32 0.0078125, %v1080_v24  ;;  %1613 = vmatprep.mubr.bf16.mxu1 %v12054_v54 }
 0x2f1   : > { %v1242_v47 = vmul.f32 %v9170_v43, %v1206_v60  ;;  %12128 = vst [vmem:[#allocation20_spill] sm:$0xff] %v9386_v39 }
 0x2f2   : > { %v8145_v31 = vpop.eup %8144  ;;  %v1146_v37 = vadd.f32 1e-05, %v1114_v33 }
 0x2f3   : > { %v1082_v30 = vpop.xlane.xlu0 %1081  ;;  %v9389_v61 = vadd.f32 %v9184_v4, %v1242_v47  ;;  %v1207_v9 = vmul.f32 %v8145_v31, %v9213_v53 }
 0x2f4   : > { %8150 = vrsqrt.f32 %v1146_v37  ;;  %v1115_v63 = vmul.f32 0.0078125, %v1082_v30 }
 0x2f5   : > { %12129 = vst [vmem:[#allocation21_spill] sm:$0xff] %v9389_v61  ;;  %v1297_v34 = vpack.c.bf16 %v9389_v61, %v9386_v39  ;;  %v1243_v0 = vmul.f32 %v9170_v43, %v1207_v9 }
 0x2f6   : > { %v8147_v11 = vpop.eup %8146  ;;  %v1147_v23 = vadd.f32 1e-05, %v1115_v63 }
 0x2f7   : > { %v1084_v49 = vpop.xlane.xlu1 %1083  ;;  %1614 = vmatmul.mubr.bf16.gmra.mrb[48].mxu1 %v1297_v34  ;;  %7516 = vmatprep.mubr.bf16.mxu0 %v1297_v34  ;;  %v1208_v5 = vmul.f32 %v8147_v11, %v9227_v17  ;;  %v9399_v22 = vadd.f32 %v9184_v4, %v1243_v0 }
 0x2f8   : > { %8152 = vrsqrt.f32 %v1147_v23  ;;  %v1116_v51 = vmul.f32 0.0078125, %v1084_v49  ;;  %1623 = vmatprep.mubr.bf16.mxu1 %v12054_v54 }
 0x2f9   : > { %v1244_v53 = vmul.f32 %v9170_v43, %v1208_v5  ;;  %12130 = vst [vmem:[#allocation22_spill] sm:$0xff] %v9399_v22 }
 0x2fa   : > { %v8149_v41 = vpop.eup %8148  ;;  %v1148_v55 = vadd.f32 1e-05, %v1116_v51 }
 0x2fb   : > { %v9402_v13 = vadd.f32 %v9184_v4, %v1244_v53  ;;  %v1209_v46 = vmul.f32 %v8149_v41, %v9236_v50 }
 0x2fc   : > { %8154 = vrsqrt.f32 %v1148_v55 }
 0x2fd   : > { %12131 = vst [vmem:[#allocation23_spill] sm:$0xff] %v9402_v13  ;;  %v1298_v17 = vpack.c.bf16 %v9402_v13, %v9399_v22  ;;  %v1245_v32 = vmul.f32 %v9170_v43, %v1209_v46 }
 0x2fe   : > { %v8151_v21 = vpop.eup %8150 }
 0x2ff   : > { %1624 = vmatmul.mubr.bf16.gmra.mrb[52].mxu1 %v1298_v17  ;;  %7517 = vmatmul.mubr.bf16.gmra.mrb[56].mxu0 %v1298_v17  ;;  %v1210_v52 = vmul.f32 %v8151_v21, %v9250_v10  ;;  %v9412_v57 = vadd.f32 %v9184_v4, %v1245_v32 }
 0x300   : > { %1633 = vmatprep.mubr.bf16.mxu1 %v12054_v54 }
 0x301   : > { %v1246_v24 = vmul.f32 %v9170_v43, %v1210_v52  ;;  %12132 = vst [vmem:[#allocation24_spill] sm:$0xff] %v9412_v57 }
 0x302   : > { %v8153_v60 = vpop.eup %8152 }
 0x303   : > { %v9415_v50 = vadd.f32 %v9184_v4, %v1246_v24  ;;  %v1211_v33 = vmul.f32 %v8153_v60, %v9259_v16 }
 0x305   : > { %12133 = vst [vmem:[#allocation25_spill] sm:$0xff] %v9415_v50  ;;  %v1299_v47 = vpack.c.bf16 %v9415_v50, %v9412_v57  ;;  %v1247_v37 = vmul.f32 %v9170_v43, %v1211_v33 }
 0x306   : > { %v8155_v31 = vpop.eup %8154 }
 0x307   : > { %1634 = vmatmul.mubr.bf16.gmra.mrb[56].mxu1 %v1299_v47  ;;  %7520 = vmatprep.mubr.bf16.mxu0 %v1299_v47  ;;  %v1212_v10 = vmul.f32 %v8155_v31, %v9273_v20  ;;  %v9425_v9 = vadd.f32 %v9184_v4, %v1247_v37 }
 0x308   : > { %1643 = vmatprep.mubr.bf16.mxu1 %v12054_v54 }
 0x309   : > { %v1248_v30 = vmul.f32 %v9170_v43, %v1212_v10  ;;  %12134 = vst [vmem:[#allocation26_spill] sm:$0xff] %v9425_v9 }
 0x30b   : > { %v9428_v63 = vadd.f32 %v9184_v4, %v1248_v30 }
 0x30d   : > { %12135 = vst [vmem:[#allocation27_spill] sm:$0xff] %v9428_v63  ;;  %v1300_v16 = vpack.c.bf16 %v9428_v63, %v9425_v9 }
 0x30f   : > { %1644 = vmatmul.mubr.bf16.gmra.mrb[60].mxu1 %v1300_v16  ;;  %7521 = vmatmul.mubr.bf16.gmra.mrb[60].mxu0 %v1300_v16 }
 0x322   : > { %v1495_v34 = vpop.f32.mrb[0].mxu1 }
 0x323   : > { %v1497_v11 = vpop.f32.mrb[1].mxu1 }
 0x324   : > { %v1499_v20 = vpop.f32.mrb[2].mxu1 }
 0x325   : > { %v1815_v23 = vpack.c.bf16 %v1499_v20, %v1495_v34  ;;  %v1501_v49 = vpop.f32.mrb[3].mxu1 }
 0x326   : > { %v1816_v5 = vpack.c.bf16 %v1501_v49, %v1497_v11 }
 0x327   : > { %7532 = vmatprep.mubr.bf16.mxu0 %v1815_v23 }
 0x328   : > { %7524 = vmatprep.subr.bf16.mxu0 %v1816_v5 }
 0x329   : > { %7525 = vmatpush3.bf16.xpose.msra.mxu0 %v1816_v5 }
 0x32a   : > { %v1505_v43 = vpop.f32.mrb[4].mxu1  ;;  %v7494_v0 = vpop.f32.mrb[32].mxu0 }
 0x32b   : > { %v1507_v51 = vpop.f32.mrb[5].mxu1  ;;  %v1688_v53 = vpop.f32.mrb[33].mxu0 }
 0x32c   : > { %v1509_v4 = vpop.f32.mrb[6].mxu1  ;;  %v7495_v41 = vpop.f32.mrb[34].mxu0 }
 0x32d   : > { %v1818_v55 = vpack.c.bf16 %v1509_v4, %v1505_v43  ;;  %v9432_v46 = vpack.c.bf16 %v7495_v41, %v7494_v0  ;;  %v1511_v17 = vpop.f32.mrb[7].mxu1  ;;  %v1691_v21 = vpop.f32.mrb[35].mxu0 }
 0x32e   : > { %v1819_v52 = vpack.c.bf16 %v1511_v17, %v1507_v51  ;;  %v9434_v32 = vpack.c.bf16 %v1691_v21, %v1688_v53 }
 0x330   : > { %7526 = vmatprep.subr.bf16.mxu0 %v1819_v52 }
 0x331   : > { %7527 = vmatpush3.bf16.xpose.msra.mxu0 %v1819_v52 }
 0x332   : > { %v1515_v24 = vpop.f32.mrb[8].mxu1 }
 0x333   : > { %v1517_v60 = vpop.f32.mrb[9].mxu1 }
 0x334   : > { %v1519_v33 = vpop.f32.mrb[10].mxu1 }
 0x335   : > { %v1821_v47 = vpack.c.bf16 %v1519_v33, %v1515_v24  ;;  %v1521_v31 = vpop.f32.mrb[11].mxu1 }
 0x336   : > { %v1822_v10 = vpack.c.bf16 %v1521_v31, %v1517_v60 }
 0x338   : > { %7528 = vmatprep.subr.bf16.mxu0 %v1822_v10 }
 0x339   : > { %7529 = vmatpush3.bf16.xpose.msra.mxu0 %v1822_v10 }
 0x33a   : > { %v1525_v37 = vpop.f32.mrb[12].mxu1  ;;  %v7498_v30 = vpop.f32.mrb[36].mxu0 }
 0x33b   : > { %v1527_v16 = vpop.f32.mrb[13].mxu1  ;;  %v1704_v34 = vpop.f32.mrb[37].mxu0 }
 0x33c   : > { %v1529_v11 = vpop.f32.mrb[14].mxu1  ;;  %v7499_v20 = vpop.f32.mrb[38].mxu0 }
 0x33d   : > { %v1824_v23 = vpack.c.bf16 %v1529_v11, %v1525_v37  ;;  %v9436_v49 = vpack.c.bf16 %v7499_v20, %v7498_v30  ;;  %v1531_v5 = vpop.f32.mrb[15].mxu1  ;;  %v1707_v43 = vpop.f32.mrb[39].mxu0 }
 0x33e   : > { %v1825_v0 = vpack.c.bf16 %v1531_v5, %v1527_v16  ;;  %v9438_v51 = vpack.c.bf16 %v1707_v43, %v1704_v34 }
 0x340   : > { %7530 = vmatprep.subr.bf16.mxu0 %v1825_v0 }
 0x341   : > { %7531 = vmatpush3.bf16.xpose.msra.mxu0 %v1825_v0 }
 0x342   : > { %v1535_v53 = vpop.f32.mrb[16].mxu1 }
 0x343   : > { %v1537_v4 = vpop.f32.mrb[17].mxu1 }
 0x344   : > { %v1539_v41 = vpop.f32.mrb[18].mxu1 }
 0x345   : > { %v1827_v17 = vpack.c.bf16 %v1539_v41, %v1535_v53  ;;  %v1541_v21 = vpop.f32.mrb[19].mxu1 }
 0x346   : > { %v1828_v52 = vpack.c.bf16 %v1541_v21, %v1537_v4 }
 0x347   : > { %7548 = vmatprep.mubr.bf16.mxu1 %v1827_v17 }
 0x348   : > { %7533 = vmatmul.mubr.bf16.vlgmr.msra.gmra.mrb[64].mxu0 %v1818_v55  ;;  %7540 = vmatprep.subr.bf16.mxu1 %v1828_v52 }
 0x349   : > { %7536 = vmatprep.mubr.bf16.mxu0 %v1821_v47  ;;  %7541 = vmatpush3.bf16.xpose.msra.mxu1 %v1828_v52 }
 0x34a   : > { %v1545_v24 = vpop.f32.mrb[20].mxu1  ;;  %v7502_v60 = vpop.f32.mrb[40].mxu0 }
 0x34b   : > { %v1547_v33 = vpop.f32.mrb[21].mxu1  ;;  %v1720_v31 = vpop.f32.mrb[41].mxu0 }
 0x34c   : > { %v1549_v10 = vpop.f32.mrb[22].mxu1  ;;  %v7503_v37 = vpop.f32.mrb[42].mxu0 }
 0x34d   : > { %v1830_v30 = vpack.c.bf16 %v1549_v10, %v1545_v24  ;;  %v9440_v16 = vpack.c.bf16 %v7503_v37, %v7502_v60  ;;  %v1551_v34 = vpop.f32.mrb[23].mxu1  ;;  %v1723_v11 = vpop.f32.mrb[43].mxu0 }
 0x34e   : > { %v1831_v20 = vpack.c.bf16 %v1551_v34, %v1547_v33  ;;  %v9442_v5 = vpack.c.bf16 %v1723_v11, %v1720_v31 }
 0x350   : > { %7537 = vmatmul.mubr.bf16.gmra.mrb[68].mxu0 %v1824_v23  ;;  %7542 = vmatprep.subr.bf16.mxu1 %v1831_v20 }
 0x351   : > { %7543 = vmatpush3.bf16.xpose.msra.mxu1 %v1831_v20 }
 0x352   : > { %v1555_v55 = vpop.f32.mrb[24].mxu1 }
 0x353   : > { %v1557_v47 = vpop.f32.mrb[25].mxu1 }
 0x354   : > { %v1559_v43 = vpop.f32.mrb[26].mxu1 }
 0x355   : > { %v1833_v0 = vpack.c.bf16 %v1559_v43, %v1555_v55  ;;  %v1561_v53 = vpop.f32.mrb[27].mxu1 }
 0x356   : > { %v1834_v4 = vpack.c.bf16 %v1561_v53, %v1557_v47  ;;  %v7506_v41 = vpop.f32.mrb[44].mxu0 }
 0x357   : > { %v1736_v17 = vpop.f32.mrb[45].mxu0 }
 0x358   : > { %v7507_v21 = vpop.f32.mrb[46].mxu0  ;;  %7544 = vmatprep.subr.bf16.mxu1 %v1834_v4 }
 0x359   : > { %v9444_v52 = vpack.c.bf16 %v7507_v21, %v7506_v41  ;;  %v1739_v24 = vpop.f32.mrb[47].mxu0  ;;  %7545 = vmatpush3.bf16.xpose.msra.mxu1 %v1834_v4 }
 0x35a   : > { %v9446_v60 = vpack.c.bf16 %v1739_v24, %v1736_v17  ;;  %v1565_v33 = vpop.f32.mrb[28].mxu1 }
 0x35b   : > { %v1567_v23 = vpop.f32.mrb[29].mxu1 }
 0x35c   : > { %v1569_v31 = vpop.f32.mrb[30].mxu1 }
 0x35d   : > { %v1836_v10 = vpack.c.bf16 %v1569_v31, %v1565_v33  ;;  %v1571_v37 = vpop.f32.mrb[31].mxu1 }
 0x35e   : > { %v1837_v34 = vpack.c.bf16 %v1571_v37, %v1567_v23  ;;  %v7510_v11 = vpop.f32.mrb[48].mxu0 }
 0x35f   : > { %v1752_v20 = vpop.f32.mrb[49].mxu0 }
 0x360   : > { %v7511_v55 = vpop.f32.mrb[50].mxu0  ;;  %7546 = vmatprep.subr.bf16.mxu1 %v1837_v34 }
 0x361   : > { %v9448_v47 = vpack.c.bf16 %v7511_v55, %v7510_v11  ;;  %v1755_v43 = vpop.f32.mrb[51].mxu0  ;;  %7547 = vmatpush3.bf16.xpose.msra.mxu1 %v1837_v34 }
 0x362   : > { %v9450_v53 = vpack.c.bf16 %v1755_v43, %v1752_v20  ;;  %v1575_v41 = vpop.f32.mrb[32].mxu1 }
 0x363   : > { %v1577_v4 = vpop.f32.mrb[33].mxu1 }
 0x364   : > { %v1579_v17 = vpop.f32.mrb[34].mxu1 }
 0x365   : > { %v1839_v21 = vpack.c.bf16 %v1579_v17, %v1575_v41  ;;  %v1581_v24 = vpop.f32.mrb[35].mxu1 }
 0x366   : > { %v1840_v54 = vpack.c.bf16 %v1581_v24, %v1577_v4 }
 0x367   : > { %7564 = vmatprep.mubr.bf16.mxu0 %v1839_v21 }
 0x368   : > { %7549 = vmatmul.mubr.bf16.vlgmr.msra.gmra.mrb[64].mxu1 %v1830_v30  ;;  %7556 = vmatprep.subr.bf16.mxu0 %v1840_v54 }
 0x369   : > { %7552 = vmatprep.mubr.bf16.mxu1 %v1833_v0  ;;  %7557 = vmatpush3.bf16.xpose.msra.mxu0 %v1840_v54 }
 0x36a   : > { %v1585_v33 = vpop.f32.mrb[36].mxu1 }
 0x36b   : > { %v1587_v23 = vpop.f32.mrb[37].mxu1 }
 0x36c   : > { %v1589_v31 = vpop.f32.mrb[38].mxu1 }
 0x36d   : > { %v1842_v37 = vpack.c.bf16 %v1589_v31, %v1585_v33  ;;  %v1591_v11 = vpop.f32.mrb[39].mxu1 }
 0x36e   : > { %v1843_v55 = vpack.c.bf16 %v1591_v11, %v1587_v23 }
 0x370   : > { %7553 = vmatmul.mubr.bf16.gmra.mrb[68].mxu1 %v1836_v10  ;;  %7558 = vmatprep.subr.bf16.mxu0 %v1843_v55 }
 0x371   : > { %7559 = vmatpush3.bf16.xpose.msra.mxu0 %v1843_v55 }
 0x3ba   : > { %v1595_v34 = vpop.f32.mrb[40].mxu1 }
 0x3bb   : > { %v1597_v20 = vpop.f32.mrb[41].mxu1 }
 0x3bc   : > { %v1599_v43 = vpop.f32.mrb[42].mxu1 }
 0x3bd   : > { %v1845_v41 = vpack.c.bf16 %v1599_v43, %v1595_v34  ;;  %v1601_v17 = vpop.f32.mrb[43].mxu1 }
 0x3be   : > { %v1846_v4 = vpack.c.bf16 %v1601_v17, %v1597_v20 }
 0x3c0   : > { %7560 = vmatprep.subr.bf16.mxu0 %v1846_v4 }
 0x3c1   : > { %7561 = vmatpush3.bf16.xpose.msra.mxu0 %v1846_v4 }
 0x3c2   : > { %v1605_v30 = vpop.f32.mrb[44].mxu1  ;;  %v7514_v0 = vpop.f32.mrb[52].mxu0 }
 0x3c3   : > { %v1607_v54 = vpop.f32.mrb[45].mxu1  ;;  %v1768_v21 = vpop.f32.mrb[53].mxu0 }
 0x3c4   : > { %v1609_v24 = vpop.f32.mrb[46].mxu1  ;;  %v7515_v59 = vpop.f32.mrb[54].mxu0 }
 0x3c5   : > { %v1848_v33 = vpack.c.bf16 %v1609_v24, %v1605_v30  ;;  %v9452_v31 = vpack.c.bf16 %v7515_v59, %v7514_v0  ;;  %v1611_v10 = vpop.f32.mrb[47].mxu1  ;;  %v1771_v23 = vpop.f32.mrb[55].mxu0 }
 0x3c6   : > { %v1849_v11 = vpack.c.bf16 %v1611_v10, %v1607_v54  ;;  %v9454_v55 = vpack.c.bf16 %v1771_v23, %v1768_v21 }
 0x3c8   : > { %7562 = vmatprep.subr.bf16.mxu0 %v1849_v11 }
 0x3c9   : > { %7563 = vmatpush3.bf16.xpose.msra.mxu0 %v1849_v11 }
 0x3ca   : > { %v1615_v34 = vpop.f32.mrb[48].mxu1  ;;  %7588 = vmatprep.subr.bf16.mxu0 %v9434_v32 }
 0x3cb   : > { %v1617_v20 = vpop.f32.mrb[49].mxu1 }
 0x3cc   : > { %v1619_v43 = vpop.f32.mrb[50].mxu1 }
 0x3cd   : > { %v1851_v17 = vpack.c.bf16 %v1619_v43, %v1615_v34  ;;  %v1621_v4 = vpop.f32.mrb[51].mxu1 }
 0x3ce   : > { %v1852_v3 = vpack.c.bf16 %v1621_v4, %v1617_v20 }
 0x3cf   : > { %7580 = vmatprep.mubr.bf16.mxu1 %v1851_v17 }
 0x3d0   : > { %7565 = vmatmul.mubr.bf16.vlgmr.msra.gmra.mrb[72].mxu0 %v1842_v37  ;;  %7572 = vmatprep.subr.bf16.mxu1 %v1852_v3 }
 0x3d1   : > { %7568 = vmatprep.mubr.bf16.mxu0 %v1845_v41  ;;  %7573 = vmatpush3.bf16.xpose.msra.mxu1 %v1852_v3 }
 0x3d2   : > { %7589 = vmatpush3.bf16.msra.mxu0 %v9434_v32  ;;  %v1625_v59 = vpop.f32.mrb[52].mxu1  ;;  %v7518_v30 = vpop.f32.mrb[56].mxu0 }
 0x3d3   : > { %7590 = vmatprep.subr.bf16.mxu0 %v9432_v46  ;;  %v1627_v0 = vpop.f32.mrb[53].mxu1  ;;  %v1784_v54 = vpop.f32.mrb[57].mxu0 }
 0x3d4   : > { %v1629_v21 = vpop.f32.mrb[54].mxu1  ;;  %v7519_v24 = vpop.f32.mrb[58].mxu0 }
 0x3d5   : > { %v1854_v10 = vpack.c.bf16 %v1629_v21, %v1625_v59  ;;  %v9459_v23 = vpack.c.bf16 %v7519_v24, %v7518_v30  ;;  %v1631_v11 = vpop.f32.mrb[55].mxu1  ;;  %v1787_v34 = vpop.f32.mrb[59].mxu0 }
 0x3d6   : > { %v1855_v20 = vpack.c.bf16 %v1631_v11, %v1627_v0  ;;  %v9461_v37 = vpack.c.bf16 %v1787_v34, %v1784_v54  ;;  %7591 = vmatpush3.bf16.msra.mxu0 %v9432_v46 }
 0x3d7   : > { %7592 = vmatprep.subr.bf16.mxu0 %v9438_v51 }
 0x3d8   : > { %7569 = vmatmul.mubr.bf16.gmra.mrb[76].mxu0 %v1848_v33  ;;  %7574 = vmatprep.subr.bf16.mxu1 %v1855_v20 }
 0x3d9   : > { %7575 = vmatpush3.bf16.xpose.msra.mxu1 %v1855_v20 }
 0x3da   : > { %7593 = vmatpush3.bf16.msra.mxu0 %v9438_v51  ;;  %v1635_v3 = vpop.f32.mrb[56].mxu1 }
 0x3db   : > { %7594 = vmatprep.subr.bf16.mxu0 %v9436_v49  ;;  %v1637_v32 = vpop.f32.mrb[57].mxu1 }
 0x3dc   : > { %v1639_v41 = vpop.f32.mrb[58].mxu1 }
 0x3dd   : > { %v1857_v43 = vpack.c.bf16 %v1639_v41, %v1635_v3  ;;  %v1641_v17 = vpop.f32.mrb[59].mxu1 }
 0x3de   : > { %v1858_v4 = vpack.c.bf16 %v1641_v17, %v1637_v32  ;;  %7595 = vmatpush3.bf16.msra.mxu0 %v9436_v49 }
 0x3df   : > { %7620 = vmatprep.subr.bf16.mxu0 %v9450_v53 }
 0x3e0   : > { %7576 = vmatprep.subr.bf16.mxu1 %v1858_v4 }
 0x3e1   : > { %7577 = vmatpush3.bf16.xpose.msra.mxu1 %v1858_v4 }
 0x3e2   : > { %v1645_v46 = vpop.f32.mrb[60].mxu1  ;;  %v7522_v33 = vpop.f32.mrb[60].mxu0 }
 0x3e3   : > { %v1647_v59 = vpop.f32.mrb[61].mxu1  ;;  %v1800_v30 = vpop.f32.mrb[61].mxu0 }
 0x3e4   : > { %v1649_v0 = vpop.f32.mrb[62].mxu1  ;;  %v7523_v51 = vpop.f32.mrb[62].mxu0 }
 0x3e5   : > { %v1860_v54 = vpack.c.bf16 %v1649_v0, %v1645_v46  ;;  %v9469_v21 = vpack.c.bf16 %v7523_v51, %v7522_v33  ;;  %v1651_v24 = vpop.f32.mrb[63].mxu1  ;;  %v1803_v11 = vpop.f32.mrb[63].mxu0 }
 0x3e6   : > { %v1861_v34 = vpack.c.bf16 %v1651_v24, %v1647_v59  ;;  %v9471_v20 = vpack.c.bf16 %v1803_v11, %v1800_v30 }
 0x3e8   : > { %7578 = vmatprep.subr.bf16.mxu1 %v1861_v34 }
 0x3e9   : > { %7579 = vmatpush3.bf16.xpose.msra.mxu1 %v1861_v34 }
 0x3ea   : > { %7604 = vmatprep.subr.bf16.mxu1 %v9442_v5 }
 0x3f0   : > { %7581 = vmatmul.mubr.bf16.vlgmr.msra.gmra.mrb[72].mxu1 %v1854_v10 }
 0x3f1   : > { %7584 = vmatprep.mubr.bf16.mxu1 %v1857_v43  ;;  %7605 = vmatpush3.bf16.msra.mxu1 %v9442_v5 }
 0x3f2   : > { %7606 = vmatprep.subr.bf16.mxu1 %v9440_v16 }
 0x3f5   : > { %7607 = vmatpush3.bf16.msra.mxu1 %v9440_v16 }
 0x3f6   : > { %7608 = vmatprep.subr.bf16.mxu1 %v9446_v60 }
 0x3f8   : > { %7585 = vmatmul.mubr.bf16.gmra.mrb[76].mxu1 %v1860_v54 }
 0x3f9   : > { %7609 = vmatpush3.bf16.msra.mxu1 %v9446_v60 }
 0x3fa   : > { %7610 = vmatprep.subr.bf16.mxu1 %v9444_v52 }
 0x3fd   : > { %7611 = vmatpush3.bf16.msra.mxu1 %v9444_v52 }
 0x3fe   : > { %7636 = vmatprep.subr.bf16.mxu1 %v9461_v37 }
 0x41b   : > { %v9482_v49 = vpop.f32.mrb[64].mxu0 }
 0x41c   : > { %v9484_v10 = vpop.f32.mrb[65].mxu0  ;;  %v2130_v52 = vsel %vm2123_vm0, %v9482_v49, -inf }
 0x41d   : > { %v9486_v5 = vpop.f32.mrb[66].mxu0  ;;  %v2124_v16 = vsel %vm2123_vm0, %v9484_v10, -inf }
 0x41e   : > { %2125 = vmax.xlane.f32.xlu0 %v2124_v16  ;;  %v9490_v3 = vpop.f32.mrb[67].mxu0  ;;  %v2133_v41 = vsel %vm2123_vm0, %v9486_v5, -inf }
 0x41f   : > { %v2127_v60 = vsel %vm2123_vm0, %v9490_v3, -inf }
 0x420   : > { %2128 = vmax.xlane.f32.xlu1 %v2127_v60 }
 0x422   : > { %2131 = vmax.xlane.f32.xlu0 %v2130_v52 }
 0x423   : > { %v9496_v32 = vpop.f32.mrb[68].mxu0 }
 0x424   : > { %2134 = vmax.xlane.f32.xlu1 %v2133_v41  ;;  %v9500_v43 = vpop.f32.mrb[69].mxu0  ;;  %v2142_v59 = vsel %vm2123_vm0, %v9496_v32, -inf }
 0x425   : > { %v9502_v17 = vpop.f32.mrb[70].mxu0  ;;  %v2136_v4 = vsel %vm2123_vm0, %v9500_v43, -inf }
 0x426   : > { %2137 = vmax.xlane.f32.xlu0 %v2136_v4  ;;  %v9506_v46 = vpop.f32.mrb[71].mxu0  ;;  %v2145_v30 = vsel %vm2123_vm0, %v9502_v17, -inf }
 0x427   : > { %v2139_v33 = vsel %vm2123_vm0, %v9506_v46, -inf }
 0x428   : > { %2140 = vmax.xlane.f32.xlu1 %v2139_v33 }
 0x42a   : > { %2143 = vmax.xlane.f32.xlu0 %v2142_v59 }
 0x42c   : > { %2146 = vmax.xlane.f32.xlu1 %v2145_v30 }
 0x43b   : > { %v9514_v0 = vpop.f32.mrb[64].mxu1 }
 0x43c   : > { %v9516_v51 = vpop.f32.mrb[65].mxu1  ;;  %v2154_v16 = vsel %vm2123_vm0, %v9514_v0, -inf }
 0x43d   : > { %v9518_v54 = vpop.f32.mrb[66].mxu1  ;;  %v2148_v24 = vsel %vm2123_vm0, %v9516_v51, -inf }
 0x43e   : > { %2149 = vmax.xlane.f32.xlu0 %v2148_v24  ;;  %v9522_v11 = vpop.f32.mrb[67].mxu1  ;;  %v2157_v52 = vsel %vm2123_vm0, %v9518_v54, -inf }
 0x43f   : > { %v2151_v34 = vsel %vm2123_vm0, %v9522_v11, -inf }
 0x440   : > { %2152 = vmax.xlane.f32.xlu1 %v2151_v34 }
 0x442   : > { %2155 = vmax.xlane.f32.xlu0 %v2154_v16 }
 0x443   : > { %v9528_v60 = vpop.f32.mrb[68].mxu1 }
 0x444   : > { %2158 = vmax.xlane.f32.xlu1 %v2157_v52  ;;  %v9532_v41 = vpop.f32.mrb[69].mxu1  ;;  %v2166_v24 = vsel %vm2123_vm0, %v9528_v60, -inf }
 0x445   : > { %v9534_v4 = vpop.f32.mrb[70].mxu1  ;;  %v2160_v33 = vsel %vm2123_vm0, %v9532_v41, -inf }
 0x446   : > { %2161 = vmax.xlane.f32.xlu0 %v2160_v33  ;;  %v9538_v59 = vpop.f32.mrb[71].mxu1  ;;  %v2169_v34 = vsel %vm2123_vm0, %v9534_v4, -inf }
 0x447   : > { %v2163_v30 = vsel %vm2123_vm0, %v9538_v59, -inf }
 0x448   : > { %2164 = vmax.xlane.f32.xlu1 %v2163_v30 }
 0x44a   : > { %2167 = vmax.xlane.f32.xlu0 %v2166_v24 }
 0x44c   : > { %2170 = vmax.xlane.f32.xlu1 %v2169_v34 }
 0x4a3   : > { %v9546_v16 = vpop.f32.mrb[72].mxu0 }
 0x4a4   : > { %v9548_v52 = vpop.f32.mrb[73].mxu0  ;;  %v2178_v24 = vsel %vm2123_vm0, %v9546_v16, -inf }
 0x4a5   : > { %v9550_v26 = vpop.f32.mrb[74].mxu0  ;;  %v2172_v33 = vsel %vm2123_vm0, %v9548_v52, -inf }
 0x4a6   : > { %v9554_v25 = vpop.f32.mrb[75].mxu0  ;;  %2173 = vmax.xlane.f32.xlu0 %v2172_v33  ;;  %v2181_v9 = vsel %vm2123_vm0, %v9550_v26, -inf }
 0x4a7   : > { %v2175_v30 = vsel %vm2123_vm0, %v9554_v25, -inf }
 0x4a8   : > { %2176 = vmax.xlane.f32.xlu1 %v2175_v30 }
 0x4aa   : > { %2179 = vmax.xlane.f32.xlu0 %v2178_v24 }
 0x4ab   : > { %v2126_v34 = vpop.xlane.xlu0 %2125  ;;  %v9560_v63 = vpop.f32.mrb[76].mxu0 }
 0x4ac   : > { %v2220_v50 = vsub.f32 %v9484_v10, %v2126_v34  ;;  %v9565_v57 = vpop.f32.mrb[77].mxu0  ;;  %2182 = vmax.xlane.f32.xlu1 %v2181_v9  ;;  %v2190_v29 = vsel %vm2123_vm0, %v9560_v63, -inf }
 0x4ad   : > { %v2129_v33 = vpop.xlane.xlu1 %2128  ;;  %v9567_v13 = vpop.f32.mrb[78].mxu0  ;;  %v2184_v30 = vsel %vm2123_vm0, %v9565_v57, -inf }
 0x4ae   : > { %v2252_v22 = vmul.f32 1.442695, %v2220_v50  ;;  %v2221_v24 = vsub.f32 %v9490_v3, %v2129_v33  ;;  %v9572_v61 = vpop.f32.mrb[79].mxu0  ;;  %2185 = vmax.xlane.f32.xlu0 %v2184_v30  ;;  %v2193_v30 = vsel %vm2123_vm0, %v9567_v13, -inf }
 0x4af   : > { %v2132_v39 = vpop.xlane.xlu0 %2131  ;;  %v2187_v48 = vsel %vm2123_vm0, %v9572_v61, -inf }
 0x4b0   : > { %v2254_v10 = vmul.f32 1.442695, %v2221_v24  ;;  %v2222_v34 = vsub.f32 %v9482_v49, %v2132_v39  ;;  %2188 = vmax.xlane.f32.xlu1 %v2187_v48  ;;  %8156 = vpow2.f32 %v2252_v22 }
 0x4b1   : > { %v2135_v9 = vpop.xlane.xlu1 %2134 }
 0x4b2   : > { %8158 = vpow2.f32 %v2254_v10  ;;  %v2256_v50 = vmul.f32 1.442695, %v2222_v34  ;;  %v2223_v3 = vsub.f32 %v9486_v5, %v2135_v9  ;;  %2191 = vmax.xlane.f32.xlu0 %v2190_v29 }
 0x4b3   : > { %v2138_v33 = vpop.xlane.xlu0 %2137 }
 0x4b4   : > { %v2258_v56 = vmul.f32 1.442695, %v2223_v3  ;;  %v2224_v24 = vsub.f32 %v9500_v43, %v2138_v33  ;;  %2194 = vmax.xlane.f32.xlu1 %v2193_v30  ;;  %8160 = vpow2.f32 %v2256_v50 }
 0x4b5   : > { %v2141_v48 = vpop.xlane.xlu1 %2140 }
 0x4b6   : > { %8162 = vpow2.f32 %v2258_v56  ;;  %v2260_v39 = vmul.f32 1.442695, %v2224_v24  ;;  %v2225_v22 = vsub.f32 %v9506_v46, %v2141_v48 }
 0x4b7   : > { %v2144_v49 = vpop.xlane.xlu0 %2143 }
 0x4b8   : > { %v2262_v10 = vmul.f32 1.442695, %v2225_v22  ;;  %v2226_v34 = vsub.f32 %v9496_v32, %v2144_v49  ;;  %8164 = vpow2.f32 %v2260_v39 }
 0x4b9   : > { %v2147_v29 = vpop.xlane.xlu1 %2146 }
 0x4ba   : > { %8166 = vpow2.f32 %v2262_v10  ;;  %v2264_v5 = vmul.f32 1.442695, %v2226_v34  ;;  %v2227_v9 = vsub.f32 %v9502_v17, %v2147_v29  ;;  %v9586_v3 = vpop.eup %8156 }
 0x4bc   : > { %v9588_v43 = vpop.eup %8158  ;;  %v2266_v50 = vmul.f32 1.442695, %v2227_v9  ;;  %8168 = vpow2.f32 %v2264_v5 }
 0x4bd   : > { %v2412_v56 = vpack.c.bf16 %v9588_v43, %v9586_v3 }
 0x4be   : > { %8170 = vpow2.f32 %v2266_v50  ;;  %v9592_v46 = vpop.eup %8160 }
 0x4bf   : > { %7596 = vmatprep.mubr.msk.bf16.mxu0 %vm2123_vm0, %v2412_v56 }
 0x4c0   : > { %v9595_v32 = vpop.eup %8162 }
 0x4c1   : > { %v2413_v33 = vpack.c.bf16 %v9595_v32, %v9592_v46 }
 0x4c2   : > { %v9599_v17 = vpop.eup %8164 }
 0x4c3   : > { %v9601_v30 = vpop.f32.mrb[72].mxu1  ;;  %7597 = vmatmul.mubr.msk.bf16.vlgmr.msra.gmra.mrb[80].mxu0 %vm2123_vm0, %v2413_v33 }
 0x4c4   : > { %v9604_v24 = vpop.eup %8166  ;;  %7621 = vmatpush3.bf16.msra.mxu0 %v9450_v53  ;;  %v9607_v48 = vpop.f32.mrb[73].mxu1  ;;  %v2202_v5 = vsel %vm2123_vm0, %v9601_v30, -inf }
 0x4c5   : > { %7622 = vmatprep.subr.bf16.mxu0 %v9448_v47  ;;  %v9610_v39 = vpop.f32.mrb[74].mxu1  ;;  %v2196_v22 = vsel %vm2123_vm0, %v9607_v48, -inf  ;;  %v2414_v49 = vpack.c.bf16 %v9604_v24, %v9599_v17 }
 0x4c6   : > { %2197 = vmax.xlane.f32.xlu0 %v2196_v22  ;;  %v9616_v10 = vpop.f32.mrb[75].mxu1  ;;  %v9618_v34 = vpop.eup %8168  ;;  %v2205_v33 = vsel %vm2123_vm0, %v9610_v39, -inf }
 0x4c7   : > { %7600 = vmatprep.mubr.msk.bf16.mxu0 %vm2123_vm0, %v2414_v49  ;;  %v2199_v53 = vsel %vm2123_vm0, %v9616_v10, -inf }
 0x4c8   : > { %v9623_v29 = vpop.eup %8170  ;;  %7623 = vmatpush3.bf16.msra.mxu0 %v9448_v47  ;;  %2200 = vmax.xlane.f32.xlu1 %v2199_v53 }
 0x4c9   : > { %7624 = vmatprep.subr.bf16.mxu0 %v9454_v55  ;;  %v2415_v9 = vpack.c.bf16 %v9623_v29, %v9618_v34 }
 0x4ca   : > { %2203 = vmax.xlane.f32.xlu0 %v2202_v5 }
 0x4cb   : > { %7601 = vmatmul.mubr.msk.bf16.gmra.mrb[84].mxu0 %vm2123_vm0, %v2415_v9  ;;  %v2150_v50 = vpop.xlane.xlu0 %2149  ;;  %v9632_v56 = vpop.f32.mrb[76].mxu1 }
 0x4cc   : > { %7625 = vmatpush3.bf16.msra.mxu0 %v9454_v55  ;;  %v2228_v47 = vsub.f32 %v9516_v51, %v2150_v50  ;;  %2206 = vmax.xlane.f32.xlu1 %v2205_v33  ;;  %v9638_v22 = vpop.f32.mrb[77].mxu1 }
 0x4cd   : > { %7626 = vmatprep.subr.bf16.mxu0 %v9452_v31  ;;  %v2153_v49 = vpop.xlane.xlu1 %2152  ;;  %v9641_v53 = vpop.f32.mrb[78].mxu1  ;;  %v2208_v5 = vsel %vm2123_vm0, %v9638_v22, -inf }
 0x4ce   : > { %v2268_v9 = vmul.f32 1.442695, %v2228_v47  ;;  %v2229_v15 = vsub.f32 %v9522_v11, %v2153_v49  ;;  %2209 = vmax.xlane.f32.xlu0 %v2208_v5  ;;  %v9646_v14 = vpop.f32.mrb[79].mxu1  ;;  %v2214_v47 = vsel %vm2123_vm0, %v9632_v56, -inf  ;;  %v2217_v45 = vsel %vm2123_vm0, %v9641_v53, -inf }
 0x4cf   : > { %v2156_v55 = vpop.xlane.xlu0 %2155  ;;  %v2211_v51 = vsel %vm2123_vm0, %v9646_v14, -inf }
 0x4d0   : > { %v2270_v50 = vmul.f32 1.442695, %v2229_v15  ;;  %7627 = vmatpush3.bf16.msra.mxu0 %v9452_v31  ;;  %v2230_v33 = vsub.f32 %v9514_v0, %v2156_v55  ;;  %2212 = vmax.xlane.f32.xlu1 %v2211_v51  ;;  %8172 = vpow2.f32 %v2268_v9  ;;  %v2316_v9 = vsel %vm2123_vm0, %v9586_v3, 0.0 }
 0x4d1   : > { %v2159_v38 = vpop.xlane.xlu1 %2158 }
 0x4d2   : > { %8174 = vpow2.f32 %v2270_v50  ;;  %v2272_v11 = vmul.f32 1.442695, %v2230_v33  ;;  %v2231_v49 = vsub.f32 %v9518_v54, %v2159_v38  ;;  %2215 = vmax.xlane.f32.xlu0 %v2214_v47  ;;  %v2319_v54 = vsel %vm2123_vm0, %v9588_v43, 0.0 }
 0x4d3   : > { %v2162_v5 = vpop.xlane.xlu0 %2161 }
 0x4d4   : > { %v2274_v15 = vmul.f32 1.442695, %v2231_v49  ;;  %v2232_v31 = vsub.f32 %v9532_v41, %v2162_v5  ;;  %2218 = vmax.xlane.f32.xlu1 %v2217_v45  ;;  %8176 = vpow2.f32 %v2272_v11  ;;  %v2322_v41 = vsel %vm2123_vm0, %v9592_v46, 0.0 }
 0x4d5   : > { %v2165_v0 = vpop.xlane.xlu1 %2164  ;;  %v2325_v11 = vsel %vm2123_vm0, %v9595_v32, 0.0  ;;  %v2334_v32 = vsel %vm2123_vm0, %v9618_v34, 0.0 }
 0x4d6   : > { %8178 = vpow2.f32 %v2274_v15  ;;  %v2276_v55 = vmul.f32 1.442695, %v2232_v31  ;;  %v2233_v51 = vsub.f32 %v9538_v59, %v2165_v0  ;;  %2317 = vadd.xlane.f32.xlu0 %v2316_v9 }
 0x4d7   : > { %v2168_v38 = vpop.xlane.xlu0 %2167 }
 0x4d8   : > { %v2278_v50 = vmul.f32 1.442695, %v2233_v51  ;;  %v2234_v33 = vsub.f32 %v9528_v60, %v2168_v38  ;;  %2320 = vadd.xlane.f32.xlu1 %v2319_v54  ;;  %8180 = vpow2.f32 %v2276_v55  ;;  %v2328_v60 = vsel %vm2123_vm0, %v9599_v17, 0.0 }
 0x4d9   : > { %v2171_v45 = vpop.xlane.xlu1 %2170  ;;  %v2337_v17 = vsel %vm2123_vm0, %v9623_v29, 0.0 }
 0x4da   : > { %8182 = vpow2.f32 %v2278_v50  ;;  %v2280_v3 = vmul.f32 1.442695, %v2234_v33  ;;  %v2235_v47 = vsub.f32 %v9534_v4, %v2171_v45  ;;  %2323 = vadd.xlane.f32.xlu0 %v2322_v41  ;;  %v8173_v59 = vpop.eup %8172  ;;  %v2331_v4 = vsel %vm2123_vm0, %v9604_v24, 0.0 }
 0x4db   : > { %v2340_v24 = vsel %vm2123_vm0, %v8173_v59, 0.0 }
 0x4dc   : > { %v8175_v49 = vpop.eup %8174  ;;  %v2282_v43 = vmul.f32 1.442695, %v2235_v47  ;;  %2326 = vadd.xlane.f32.xlu1 %v2325_v11  ;;  %8184 = vpow2.f32 %v2280_v3 }
 0x4dd   : > { %v2416_v5 = vpack.c.bf16 %v8175_v49, %v8173_v59  ;;  %v2343_v34 = vsel %vm2123_vm0, %v8175_v49, 0.0 }
 0x4de   : > { %8186 = vpow2.f32 %v2282_v43  ;;  %2329 = vadd.xlane.f32.xlu0 %v2328_v60  ;;  %v8177_v46 = vpop.eup %8176 }
 0x4df   : > { %7612 = vmatprep.mubr.msk.bf16.mxu1 %vm2123_vm0, %v2416_v5 }
 0x4e0   : > { %v8179_v15 = vpop.eup %8178  ;;  %2332 = vadd.xlane.f32.xlu1 %v2331_v4 }
 0x4e1   : > { %v2417_v31 = vpack.c.bf16 %v8179_v15, %v8177_v46  ;;  %v2349_v54 = vsel %vm2123_vm0, %v8179_v15, 0.0 }
 0x4e2   : > { %2335 = vadd.xlane.f32.xlu0 %v2334_v32  ;;  %v8181_v0 = vpop.eup %8180 }
 0x4e3   : > { %7613 = vmatmul.mubr.msk.bf16.vlgmr.msra.gmra.mrb[80].mxu1 %vm2123_vm0, %v2417_v31  ;;  %v2352_v50 = vsel %vm2123_vm0, %v8181_v0, 0.0 }
 0x4e4   : > { %v8183_v9 = vpop.eup %8182  ;;  %7637 = vmatpush3.bf16.msra.mxu1 %v9461_v37  ;;  %2338 = vadd.xlane.f32.xlu1 %v2337_v17  ;;  %v2346_v37 = vsel %vm2123_vm0, %v8177_v46, 0.0 }
 0x4e5   : > { %7638 = vmatprep.subr.bf16.mxu1 %v9459_v23  ;;  %v2418_v55 = vpack.c.bf16 %v8183_v9, %v8181_v0 }
 0x4e6   : > { %2341 = vadd.xlane.f32.xlu0 %v2340_v24  ;;  %v8185_v51 = vpop.eup %8184 }
 0x4e7   : > { %7616 = vmatprep.mubr.msk.bf16.mxu1 %vm2123_vm0, %v2418_v55  ;;  %v2358_v33 = vsel %vm2123_vm0, %v8185_v51, 0.0 }
 0x4e8   : > { %v8187_v38 = vpop.eup %8186  ;;  %7639 = vmatpush3.bf16.msra.mxu1 %v9459_v23  ;;  %2344 = vadd.xlane.f32.xlu1 %v2343_v34  ;;  %v2355_v23 = vsel %vm2123_vm0, %v8183_v9, 0.0 }
 0x4e9   : > { %7640 = vmatprep.subr.bf16.mxu1 %v9471_v20  ;;  %v2419_v29 = vpack.c.bf16 %v8187_v38, %v8185_v51  ;;  %v2361_v45 = vsel %vm2123_vm0, %v8187_v38, 0.0 }
 0x4ea   : > { %2347 = vadd.xlane.f32.xlu0 %v2346_v37 }
 0x4eb   : > { %7617 = vmatmul.mubr.msk.bf16.gmra.mrb[84].mxu1 %vm2123_vm0, %v2419_v29 }
 0x4ec   : > { %7641 = vmatpush3.bf16.msra.mxu1 %v9471_v20  ;;  %2350 = vadd.xlane.f32.xlu1 %v2349_v54  ;;  %v7956_v20 = vld [vmem:[%s12037_s3] sm:$0xff]  }
 0x4ed   : > { %7642 = vmatprep.subr.bf16.mxu1 %v9469_v21  ;;  %7652 = vmatprep.subr.bf16.mxu0 %v7956_v20 }
 0x4ee   : > { %2353 = vadd.xlane.f32.xlu0 %v2352_v50  ;;  %v7957_v50 = vld [vmem:[%s12037_s3 + $0x8] sm:$0xff]  }
 0x4f0   : > { %7643 = vmatpush3.bf16.msra.mxu1 %v9469_v21  ;;  %2356 = vadd.xlane.f32.xlu1 %v2355_v23 }
 0x4f2   : > { %2359 = vadd.xlane.f32.xlu0 %v2358_v33 }
 0x4f4   : > { %2362 = vadd.xlane.f32.xlu1 %v2361_v45 }
 0x533   : > { %v2174_v41 = vpop.xlane.xlu0 %2173 }
 0x534   : > { %v2236_v3 = vsub.f32 %v9548_v52, %v2174_v41 }
 0x535   : > { %v2177_v47 = vpop.xlane.xlu1 %2176 }
 0x536   : > { %v2284_v59 = vmul.f32 1.442695, %v2236_v3  ;;  %v2237_v11 = vsub.f32 %v9554_v25, %v2177_v47  ;;  %v7958_v47 = vld [vmem:[%s12037_s3 + $0x10] sm:$0xff]  }
 0x537   : > { %v2180_v21 = vpop.xlane.xlu0 %2179 }
 0x538   : > { %8188 = vpow2.f32 %v2284_v59  ;;  %v2286_v49 = vmul.f32 1.442695, %v2237_v11  ;;  %v2238_v43 = vsub.f32 %v9546_v16, %v2180_v21 }
 0x539   : > { %v2183_v60 = vpop.xlane.xlu1 %2182 }
 0x53a   : > { %8190 = vpow2.f32 %v2286_v49  ;;  %v2288_v5 = vmul.f32 1.442695, %v2238_v43  ;;  %v2239_v46 = vsub.f32 %v9550_v26, %v2183_v60  ;;  %v7959_v43 = vld [vmem:[%s12037_s3 + $0x18] sm:$0xff]  }
 0x53b   : > { %v2186_v4 = vpop.xlane.xlu0 %2185 }
 0x53c   : > { %8192 = vpow2.f32 %v2288_v5  ;;  %v2290_v15 = vmul.f32 1.442695, %v2239_v46  ;;  %v2240_v31 = vsub.f32 %v9565_v57, %v2186_v4  ;;  %v7960_v4 = vld [vmem:[%s12037_s3 + $0x20] sm:$0xff]  }
 0x53d   : > { %v2189_v52 = vpop.xlane.xlu1 %2188 }
 0x53e   : > { %8194 = vpow2.f32 %v2290_v15  ;;  %v2292_v32 = vmul.f32 1.442695, %v2240_v31  ;;  %v2241_v25 = vsub.f32 %v9572_v61, %v2189_v52 }
 0x53f   : > { %v2192_v0 = vpop.xlane.xlu0 %2191 }
 0x540   : > { %8196 = vpow2.f32 %v2292_v32  ;;  %v2294_v17 = vmul.f32 1.442695, %v2241_v25  ;;  %v2242_v16 = vsub.f32 %v9560_v63, %v2192_v0 }
 0x541   : > { %v2195_v9 = vpop.xlane.xlu1 %2194 }
 0x542   : > { %v8189_v24 = vpop.eup %8188  ;;  %8198 = vpow2.f32 %v2294_v17  ;;  %v2296_v55 = vmul.f32 1.442695, %v2242_v16  ;;  %v2243_v26 = vsub.f32 %v9567_v13, %v2195_v9 }
 0x543   : > { %v2364_v51 = vsel %vm2123_vm0, %v8189_v24, 0.0 }
 0x544   : > { %v8191_v34 = vpop.eup %8190  ;;  %8200 = vpow2.f32 %v2296_v55  ;;  %v2298_v57 = vmul.f32 1.442695, %v2243_v26  ;;  %2365 = vadd.xlane.f32.xlu0 %v2364_v51 }
 0x545   : > { %v2367_v38 = vsel %vm2123_vm0, %v8191_v34, 0.0  ;;  %v2420_v61 = vpack.c.bf16 %v8191_v34, %v8189_v24 }
 0x546   : > { %v8193_v37 = vpop.eup %8192  ;;  %8202 = vpow2.f32 %v2298_v57  ;;  %2368 = vadd.xlane.f32.xlu1 %v2367_v38 }
 0x547   : > { %7628 = vmatprep.mubr.msk.bf16.mxu0 %vm2123_vm0, %v2420_v61  ;;  %v2370_v63 = vsel %vm2123_vm0, %v8193_v37, 0.0 }
 0x548   : > { %v8195_v29 = vpop.eup %8194  ;;  %2371 = vadd.xlane.f32.xlu0 %v2370_v63 }
 0x549   : > { %v2421_v54 = vpack.c.bf16 %v8195_v29, %v8193_v37  ;;  %v2373_v13 = vsel %vm2123_vm0, %v8195_v29, 0.0 }
 0x54a   : > { %v8197_v23 = vpop.eup %8196  ;;  %2374 = vadd.xlane.f32.xlu1 %v2373_v13 }
 0x54b   : > { %7629 = vmatmul.mubr.msk.bf16.vlgmr.msra.gmra.mrb[88].mxu0 %vm2123_vm0, %v2421_v54  ;;  %v2376_v33 = vsel %vm2123_vm0, %v8197_v23, 0.0 }
 0x54c   : > { %v8199_v45 = vpop.eup %8198  ;;  %2377 = vadd.xlane.f32.xlu0 %v2376_v33  ;;  %7653 = vmatpush3.bf16.msra.mxu0 %v7956_v20 }
 0x54d   : > { %v2379_v41 = vsel %vm2123_vm0, %v8199_v45, 0.0  ;;  %v2422_v3 = vpack.c.bf16 %v8199_v45, %v8197_v23  ;;  %7654 = vmatprep.subr.bf16.mxu0 %v7957_v50 }
 0x54e   : > { %v8201_v59 = vpop.eup %8200  ;;  %2380 = vadd.xlane.f32.xlu1 %v2379_v41 }
 0x54f   : > { %7632 = vmatprep.mubr.msk.bf16.mxu0 %vm2123_vm0, %v2422_v3  ;;  %v2382_v11 = vsel %vm2123_vm0, %v8201_v59, 0.0 }
 0x550   : > { %v8203_v21 = vpop.eup %8202  ;;  %2383 = vadd.xlane.f32.xlu0 %v2382_v11  ;;  %7655 = vmatpush3.bf16.msra.mxu0 %v7957_v50 }
 0x551   : > { %v2385_v49 = vsel %vm2123_vm0, %v8203_v21, 0.0  ;;  %v2423_v20 = vpack.c.bf16 %v8203_v21, %v8201_v59  ;;  %7656 = vmatprep.subr.bf16.mxu0 %v7958_v47 }
 0x552   : > { %2386 = vadd.xlane.f32.xlu1 %v2385_v49 }
 0x553   : > { %7633 = vmatmul.mubr.msk.bf16.gmra.mrb[92].mxu0 %vm2123_vm0, %v2423_v20  ;;  %v2198_v60 = vpop.xlane.xlu0 %2197 }
 0x554   : > { %v2244_v5 = vsub.f32 %v9607_v48, %v2198_v60  ;;  %7657 = vmatpush3.bf16.msra.mxu0 %v7958_v47  ;;  %v7961_v48 = vld [vmem:[%s12037_s3 + $0x28] sm:$0xff]  }
 0x555   : > { %v2201_v46 = vpop.xlane.xlu1 %2200  ;;  %7658 = vmatprep.subr.bf16.mxu0 %v7959_v43 }
 0x556   : > { %v2300_v15 = vmul.f32 1.442695, %v2244_v5  ;;  %v2245_v31 = vsub.f32 %v9616_v10, %v2201_v46  ;;  %v12136_v5 = vmov 0  }
 0x557   : > { %v2204_v52 = vpop.xlane.xlu0 %2203 }
 0x558   : > { %8204 = vpow2.f32 %v2300_v15  ;;  %v2302_v32 = vmul.f32 1.442695, %v2245_v31  ;;  %v2246_v25 = vsub.f32 %v9601_v30, %v2204_v52  ;;  %7659 = vmatpush3.bf16.msra.mxu0 %v7959_v43  ;;  %v7962_v30 = vld [vmem:[%s12037_s3 + $0x30] sm:$0xff]  }
 0x559   : > { %v2207_v0 = vpop.xlane.xlu1 %2206  ;;  %7660 = vmatprep.subr.bf16.mxu0 %v7960_v4 }
 0x55a   : > { %8206 = vpow2.f32 %v2302_v32  ;;  %v2304_v17 = vmul.f32 1.442695, %v2246_v25  ;;  %v2247_v16 = vsub.f32 %v9610_v39, %v2207_v0 }
 0x55b   : > { %v2210_v9 = vpop.xlane.xlu0 %2209 }
 0x55c   : > { %8208 = vpow2.f32 %v2304_v17  ;;  %v2306_v24 = vmul.f32 1.442695, %v2247_v16  ;;  %v2248_v10 = vsub.f32 %v9638_v22, %v2210_v9  ;;  %7661 = vmatpush3.bf16.msra.mxu0 %v7960_v4  ;;  %v7963_v22 = vld [vmem:[%s12037_s3 + $0x38] sm:$0xff]  }
 0x55d   : > { %v2213_v55 = vpop.xlane.xlu1 %2212  ;;  %7662 = vmatprep.subr.bf16.mxu0 %v7961_v48 }
 0x55e   : > { %8210 = vpow2.f32 %v2306_v24  ;;  %v2308_v26 = vmul.f32 1.442695, %v2248_v10  ;;  %v2249_v51 = vsub.f32 %v9646_v14, %v2213_v55 }
 0x55f   : > { %v2216_v34 = vpop.xlane.xlu0 %2215 }
 0x560   : > { %8212 = vpow2.f32 %v2308_v26  ;;  %v2310_v57 = vmul.f32 1.442695, %v2249_v51  ;;  %v2250_v39 = vsub.f32 %v9632_v56, %v2216_v34  ;;  %7663 = vmatpush3.bf16.msra.mxu0 %v7961_v48 }
 0x561   : > { %v2219_v38 = vpop.xlane.xlu1 %2218  ;;  %7664 = vmatprep.subr.bf16.mxu0 %v7962_v30 }
 0x562   : > { %v8205_v61 = vpop.eup %8204  ;;  %8214 = vpow2.f32 %v2310_v57  ;;  %v2312_v37 = vmul.f32 1.442695, %v2250_v39  ;;  %v2251_v63 = vsub.f32 %v9641_v53, %v2219_v38 }
 0x563   : > { %v2388_v29 = vsel %vm2123_vm0, %v8205_v61, 0.0  ;;  %v2318_v46 = vpop.xlane.xlu0 %2317 }
 0x564   : > { %v8207_v14 = vpop.eup %8206  ;;  %8216 = vpow2.f32 %v2312_v37  ;;  %v2314_v54 = vmul.f32 1.442695, %v2251_v63  ;;  %2389 = vadd.xlane.f32.xlu0 %v2388_v29  ;;  %7665 = vmatpush3.bf16.msra.mxu0 %v7962_v30 }
 0x565   : > { %v2391_v56 = vsel %vm2123_vm0, %v8207_v14, 0.0  ;;  %v2424_v13 = vpack.c.bf16 %v8207_v14, %v8205_v61  ;;  %7666 = vmatprep.subr.bf16.mxu0 %v7963_v22  ;;  %v2321_v4 = vpop.xlane.xlu1 %2320 }
 0x566   : > { %v8209_v50 = vpop.eup %8208  ;;  %8218 = vpow2.f32 %v2314_v54  ;;  %2392 = vadd.xlane.f32.xlu1 %v2391_v56 }
 0x567   : > { %7644 = vmatprep.mubr.msk.bf16.mxu1 %vm2123_vm0, %v2424_v13  ;;  %v2394_v23 = vsel %vm2123_vm0, %v8209_v50, 0.0  ;;  %v2324_v15 = vpop.xlane.xlu0 %2323  ;;  %8220 = vrcp.f32 %v2318_v46 }
 0x568   : > { %v8211_v33 = vpop.eup %8210  ;;  %2395 = vadd.xlane.f32.xlu0 %v2394_v23  ;;  %7667 = vmatpush3.bf16.msra.mxu0 %v7963_v22  ;;  %8222 = vrcp.f32 %v2324_v15 }
 0x569   : > { %v2425_v53 = vpack.c.bf16 %v8211_v33, %v8209_v50  ;;  %v2397_v45 = vsel %vm2123_vm0, %v8211_v33, 0.0  ;;  %v2327_v31 = vpop.xlane.xlu1 %2326 }
 0x56a   : > { %v8213_v41 = vpop.eup %8212  ;;  %2398 = vadd.xlane.f32.xlu1 %v2397_v45  ;;  %8224 = vrcp.f32 %v2327_v31 }
 0x56b   : > { %7645 = vmatmul.mubr.msk.bf16.vlgmr.msra.gmra.mrb[88].mxu1 %vm2123_vm0, %v2425_v53  ;;  %v2400_v3 = vsel %vm2123_vm0, %v8213_v41, 0.0  ;;  %v2330_v52 = vpop.xlane.xlu0 %2329  ;;  %8226 = vrcp.f32 %v2321_v4 }
 0x56c   : > { %v8215_v47 = vpop.eup %8214  ;;  %2401 = vadd.xlane.f32.xlu0 %v2400_v3  ;;  %8228 = vrcp.f32 %v2330_v52 }
 0x56d   : > { %v2403_v59 = vsel %vm2123_vm0, %v8215_v47, 0.0  ;;  %v2426_v11 = vpack.c.bf16 %v8215_v47, %v8213_v41  ;;  %v2333_v32 = vpop.xlane.xlu1 %2332 }
 0x56e   : > { %v8217_v21 = vpop.eup %8216  ;;  %2404 = vadd.xlane.f32.xlu1 %v2403_v59 }
 0x56f   : > { %7648 = vmatprep.mubr.msk.bf16.mxu1 %vm2123_vm0, %v2426_v11  ;;  %v2406_v49 = vsel %vm2123_vm0, %v8217_v21, 0.0  ;;  %v2336_v25 = vpop.xlane.xlu0 %2335 }
 0x570   : > { %v8219_v20 = vpop.eup %8218  ;;  %2407 = vadd.xlane.f32.xlu0 %v2406_v49  ;;  %8230 = vrcp.f32 %v2336_v25 }
 0x571   : > { %v2409_v43 = vsel %vm2123_vm0, %v8219_v20, 0.0  ;;  %v2427_v60 = vpack.c.bf16 %v8219_v20, %v8217_v21  ;;  %v2339_v0 = vpop.xlane.xlu1 %2338  ;;  %v8221_v48 = vpop.eup %8220 }
 0x572   : > { %2410 = vadd.xlane.f32.xlu1 %v2409_v43  ;;  %8232 = vrcp.f32 %v2339_v0  ;;  %v8223_v16 = vpop.eup %8222 }
 0x573   : > { %7649 = vmatmul.mubr.msk.bf16.gmra.mrb[92].mxu1 %vm2123_vm0, %v2427_v60  ;;  %8234 = vrcp.f32 %v2333_v32  ;;  %v2342_v14 = vpop.xlane.xlu0 %2341 }
 0x574   : > { %3660 = vmatprep.mubr.bf16.mxu1 %v12136_v5  ;;  %v8225_v24 = vpop.eup %8224  ;;  %8236 = vrcp.f32 %v2342_v14 }
 0x575   : > { %v8227_v55 = vpop.eup %8226  ;;  %v2345_v13 = vpop.xlane.xlu1 %2344 }
 0x576   : > { %v8229_v22 = vpop.eup %8228 }
 0x577   : > { %v2348_v47 = vpop.xlane.xlu0 %2347 }
 0x578   : > { %8238 = vrcp.f32 %v2348_v47 }
 0x579   : > { %v2351_v59 = vpop.xlane.xlu1 %2350 }
 0x57a   : > { %v8231_v37 = vpop.eup %8230  ;;  %8240 = vrcp.f32 %v2351_v59 }
 0x57b   : > { %v2354_v11 = vpop.xlane.xlu0 %2353  ;;  %8242 = vrcp.f32 %v2345_v13 }
 0x57c   : > { %v8233_v29 = vpop.eup %8232  ;;  %8244 = vrcp.f32 %v2354_v11 }
 0x57d   : > { %v8235_v56 = vpop.eup %8234  ;;  %v2357_v21 = vpop.xlane.xlu1 %2356 }
 0x57e   : > { %v8237_v43 = vpop.eup %8236 }
 0x57f   : > { %v2360_v49 = vpop.xlane.xlu0 %2359 }
 0x580   : > { %8246 = vrcp.f32 %v2360_v49 }
 0x581   : > { %v2363_v20 = vpop.xlane.xlu1 %2362 }
 0x582   : > { %8248 = vrcp.f32 %v2363_v20  ;;  %v8239_v46 = vpop.eup %8238 }
 0x583   : > { %8250 = vrcp.f32 %v2357_v21 }
 0x584   : > { %v8241_v15 = vpop.eup %8240 }
 0x585   : > { %v8243_v52 = vpop.eup %8242 }
 0x596   : > { %v7598_v17 = vpop.f32.mrb[80].mxu0 }
 0x597   : > { %v2474_v9 = vpop.f32.mrb[81].mxu0  ;;  %v2770_v30 = vmul.f32 %v8223_v16, %v7598_v17 }
 0x598   : > { %v7599_v10 = vpop.f32.mrb[82].mxu0  ;;  %v2768_v34 = vmul.f32 %v8221_v48, %v2474_v9 }
 0x599   : > { %v2771_v26 = vmul.f32 %v8225_v24, %v7599_v10  ;;  %v2477_v51 = vpop.f32.mrb[83].mxu0  ;;  %v8245_v24 = vpop.eup %8244 }
 0x59a   : > { %v2769_v57 = vmul.f32 %v8227_v55, %v2477_v51  ;;  %v8247_v55 = vpop.eup %8246 }
 0x59b   : > { %v2801_v39 = vpack.c.bf16 %v2771_v26, %v2770_v30  ;;  %v8249_v26 = vpop.eup %8248 }
 0x59c   : > { %v2800_v38 = vpack.c.bf16 %v2769_v57, %v2768_v34  ;;  %v8251_v34 = vpop.eup %8250 }
 0x59e   : > { %v7602_v61 = vpop.f32.mrb[84].mxu0  ;;  %7668 = vmatprep.mubr.bf16.mxu0 %v2800_v38 }
 0x59f   : > { %v2490_v63 = vpop.f32.mrb[85].mxu0  ;;  %7669 = vmatmul.mubr.bf16.vlgmr.msra.gmra.mrb[96].mxu0 %v2801_v39  ;;  %v2774_v50 = vmul.f32 %v8231_v37, %v7602_v61 }
 0x5a0   : > { %v7603_v54 = vpop.f32.mrb[86].mxu0  ;;  %v2772_v53 = vmul.f32 %v8229_v22, %v2490_v63 }
 0x5a1   : > { %v2775_v23 = vmul.f32 %v8233_v29, %v7603_v54  ;;  %v2493_v33 = vpop.f32.mrb[87].mxu0 }
 0x5a2   : > { %v2773_v45 = vmul.f32 %v8235_v56, %v2493_v33 }
 0x5a3   : > { %v2803_v41 = vpack.c.bf16 %v2775_v23, %v2774_v50 }
 0x5a4   : > { %v2802_v3 = vpack.c.bf16 %v2773_v45, %v2772_v53 }
 0x5a6   : > { %7672 = vmatprep.mubr.bf16.mxu0 %v2802_v3 }
 0x5a7   : > { %7673 = vmatmul.mubr.bf16.gmra.mrb[100].mxu0 %v2803_v41 }
 0x5b6   : > { %v7614_v60 = vpop.f32.mrb[80].mxu1 }
 0x5b7   : > { %v2551_v4 = vpop.f32.mrb[81].mxu1  ;;  %v2778_v32 = vmul.f32 %v8239_v46, %v7614_v60 }
 0x5b8   : > { %v7615_v31 = vpop.f32.mrb[82].mxu1  ;;  %v2776_v48 = vmul.f32 %v8237_v43, %v2551_v4 }
 0x5b9   : > { %v2779_v25 = vmul.f32 %v8241_v15, %v7615_v31  ;;  %v2554_v0 = vpop.f32.mrb[83].mxu1 }
 0x5ba   : > { %v2777_v17 = vmul.f32 %v8243_v52, %v2554_v0 }
 0x5bb   : > { %v2805_v16 = vpack.c.bf16 %v2779_v25, %v2778_v32 }
 0x5bc   : > { %v2804_v9 = vpack.c.bf16 %v2777_v17, %v2776_v48 }
 0x5be   : > { %v7618_v10 = vpop.f32.mrb[84].mxu1  ;;  %7676 = vmatprep.mubr.bf16.mxu0 %v2804_v9 }
 0x5bf   : > { %v2567_v30 = vpop.f32.mrb[85].mxu1  ;;  %7677 = vmatmul.mubr.bf16.gmra.mrb[104].mxu0 %v2805_v16  ;;  %v2782_v57 = vmul.f32 %v8247_v55, %v7618_v10 }
 0x5c0   : > { %v7619_v51 = vpop.f32.mrb[86].mxu1  ;;  %v2780_v22 = vmul.f32 %v8245_v24, %v2567_v30 }
 0x5c1   : > { %v2783_v39 = vmul.f32 %v8249_v26, %v7619_v51  ;;  %v2570_v38 = vpop.f32.mrb[87].mxu1 }
 0x5c2   : > { %v2781_v61 = vmul.f32 %v8251_v34, %v2570_v38 }
 0x5c3   : > { %v2807_v37 = vpack.c.bf16 %v2783_v39, %v2782_v57 }
 0x5c4   : > { %v2806_v63 = vpack.c.bf16 %v2781_v61, %v2780_v22 }
 0x5c6   : > { %7680 = vmatprep.mubr.bf16.mxu0 %v2806_v63 }
 0x5c7   : > { %7681 = vmatmul.mubr.bf16.gmra.mrb[108].mxu0 %v2807_v37 }
 0x5d1   : > { %v2366_v29 = vpop.xlane.xlu0 %2365 }
 0x5d2   : > { %8252 = vrcp.f32 %v2366_v29 }
 0x5d3   : > { %v2369_v14 = vpop.xlane.xlu1 %2368 }
 0x5d5   : > { %v2372_v54 = vpop.xlane.xlu0 %2371 }
 0x5d6   : > { %8254 = vrcp.f32 %v2372_v54 }
 0x5d7   : > { %v2375_v56 = vpop.xlane.xlu1 %2374 }
 0x5d8   : > { %8256 = vrcp.f32 %v2375_v56 }
 0x5d9   : > { %v2378_v13 = vpop.xlane.xlu0 %2377  ;;  %8258 = vrcp.f32 %v2369_v14 }
 0x5da   : > { %8260 = vrcp.f32 %v2378_v13 }
 0x5db   : > { %v2381_v50 = vpop.xlane.xlu1 %2380 }
 0x5dc   : > { %v8253_v53 = vpop.eup %8252 }
 0x5dd   : > { %v2384_v23 = vpop.xlane.xlu0 %2383 }
 0x5de   : > { %8262 = vrcp.f32 %v2384_v23 }
 0x5df   : > { %v2387_v33 = vpop.xlane.xlu1 %2386 }
 0x5e0   : > { %8264 = vrcp.f32 %v2387_v33  ;;  %v8255_v41 = vpop.eup %8254 }
 0x5e1   : > { %8266 = vrcp.f32 %v2381_v50 }
 0x5e2   : > { %v8257_v47 = vpop.eup %8256 }
 0x5e3   : > { %v8259_v11 = vpop.eup %8258 }
 0x5e4   : > { %v8261_v15 = vpop.eup %8260 }
 0x5e8   : > { %v8263_v52 = vpop.eup %8262 }
 0x5ea   : > { %v8265_v25 = vpop.eup %8264 }
 0x5eb   : > { %v8267_v17 = vpop.eup %8266 }
 0x5f1   : > { %v2390_v0 = vpop.xlane.xlu0 %2389 }
 0x5f2   : > { %8268 = vrcp.f32 %v2390_v0 }
 0x5f3   : > { %v2393_v16 = vpop.xlane.xlu1 %2392 }
 0x5f5   : > { %v2396_v34 = vpop.xlane.xlu0 %2395 }
 0x5f6   : > { %8270 = vrcp.f32 %v2396_v34 }
 0x5f7   : > { %v2399_v57 = vpop.xlane.xlu1 %2398 }
 0x5f8   : > { %8272 = vrcp.f32 %v2399_v57 }
 0x5f9   : > { %v2402_v39 = vpop.xlane.xlu0 %2401  ;;  %8274 = vrcp.f32 %v2393_v16 }
 0x5fa   : > { %8276 = vrcp.f32 %v2402_v39 }
 0x5fb   : > { %v2405_v38 = vpop.xlane.xlu1 %2404 }
 0x5fc   : > { %v8269_v37 = vpop.eup %8268 }
 0x5fd   : > { %v2408_v22 = vpop.xlane.xlu0 %2407 }
 0x5fe   : > { %8278 = vrcp.f32 %v2408_v22 }
 0x5ff   : > { %v2411_v61 = vpop.xlane.xlu1 %2410 }
 0x600   : > { %8280 = vrcp.f32 %v2411_v61  ;;  %v8271_v29 = vpop.eup %8270 }
 0x601   : > { %8282 = vrcp.f32 %v2405_v38 }
 0x602   : > { %v8273_v54 = vpop.eup %8272 }
 0x603   : > { %v8275_v13 = vpop.eup %8274 }
 0x61e   : > { %v7630_v45 = vpop.f32.mrb[88].mxu0 }
 0x61f   : > { %v2628_v3 = vpop.f32.mrb[89].mxu0  ;;  %v2786_v21 = vmul.f32 %v8255_v41, %v7630_v45 }
 0x620   : > { %v7631_v59 = vpop.f32.mrb[90].mxu0  ;;  %v2784_v43 = vmul.f32 %v8253_v53, %v2628_v3 }
 0x621   : > { %v2787_v49 = vmul.f32 %v8257_v47, %v7631_v59  ;;  %v2631_v20 = vpop.f32.mrb[91].mxu0  ;;  %v8277_v47 = vpop.eup %8276 }
 0x622   : > { %v2785_v60 = vmul.f32 %v8259_v11, %v2631_v20  ;;  %v8279_v11 = vpop.eup %8278 }
 0x623   : > { %v2809_v46 = vpack.c.bf16 %v2787_v49, %v2786_v21  ;;  %v8281_v49 = vpop.eup %8280 }
 0x624   : > { %v2808_v4 = vpack.c.bf16 %v2785_v60, %v2784_v43  ;;  %v8283_v43 = vpop.eup %8282 }
 0x626   : > { %v7634_v31 = vpop.f32.mrb[92].mxu0  ;;  %7684 = vmatprep.mubr.bf16.mxu0 %v2808_v4 }
 0x627   : > { %v2644_v32 = vpop.f32.mrb[93].mxu0  ;;  %7685 = vmatmul.mubr.bf16.gmra.mrb[112].mxu0 %v2809_v46  ;;  %v2790_v9 = vmul.f32 %v8263_v52, %v7634_v31 }
 0x628   : > { %v7635_v48 = vpop.f32.mrb[94].mxu0  ;;  %v2788_v55 = vmul.f32 %v8261_v15, %v2644_v32 }
 0x629   : > { %v2791_v24 = vmul.f32 %v8265_v25, %v7635_v48  ;;  %v2647_v10 = vpop.f32.mrb[95].mxu0 }
 0x62a   : > { %v2789_v30 = vmul.f32 %v8267_v17, %v2647_v10 }
 0x62b   : > { %v2811_v26 = vpack.c.bf16 %v2791_v24, %v2790_v9 }
 0x62c   : > { %v2810_v51 = vpack.c.bf16 %v2789_v30, %v2788_v55 }
 0x62e   : > { %7688 = vmatprep.mubr.bf16.mxu0 %v2810_v51 }
 0x62f   : > { %7689 = vmatmul.mubr.bf16.gmra.mrb[116].mxu0 %v2811_v26 }
 0x63e   : > { %v7646_v63 = vpop.f32.mrb[88].mxu1 }
 0x63f   : > { %v2705_v14 = vpop.f32.mrb[89].mxu1  ;;  %v2794_v50 = vmul.f32 %v8271_v29, %v7646_v63 }
 0x640   : > { %v7647_v56 = vpop.f32.mrb[90].mxu1  ;;  %v2792_v53 = vmul.f32 %v8269_v37, %v2705_v14 }
 0x641   : > { %v2795_v23 = vmul.f32 %v8273_v54, %v7647_v56  ;;  %v2708_v33 = vpop.f32.mrb[91].mxu1  ;;  %v12137_v56 = vld [vmem:[#allocation13_spill] sm:$0xff] }
 0x642   : > { %v2793_v45 = vmul.f32 %v8275_v13, %v2708_v33 }
 0x643   : > { %v2813_v41 = vpack.c.bf16 %v2795_v23, %v2794_v50 }
 0x644   : > { %v2812_v3 = vpack.c.bf16 %v2793_v45, %v2792_v53 }
 0x646   : > { %v7650_v59 = vpop.f32.mrb[92].mxu1  ;;  %7692 = vmatprep.mubr.bf16.mxu0 %v2812_v3 }
 0x647   : > { %v2721_v21 = vpop.f32.mrb[93].mxu1  ;;  %7693 = vmatmul.mubr.bf16.gmra.mrb[120].mxu0 %v2813_v41  ;;  %v2798_v60 = vmul.f32 %v8279_v11, %v7650_v59 }
 0x648   : > { %v7651_v20 = vpop.f32.mrb[94].mxu1  ;;  %v2796_v15 = vmul.f32 %v8277_v47, %v2721_v21 }
 0x649   : > { %v2799_v46 = vmul.f32 %v8281_v49, %v7651_v20  ;;  %v2724_v4 = vpop.f32.mrb[95].mxu1 }
 0x64a   : > { %v2797_v31 = vmul.f32 %v8283_v43, %v2724_v4 }
 0x64b   : > { %v2815_v52 = vpack.c.bf16 %v2799_v46, %v2798_v60 }
 0x64c   : > { %v2814_v32 = vpack.c.bf16 %v2797_v31, %v2796_v15  ;;  %v12140_v15 = vld [vmem:[#allocation16_spill] sm:$0xff] }
 0x64e   : > { %7696 = vmatprep.mubr.bf16.mxu0 %v2814_v32 }
 0x64f   : > { %7697 = vmatmul.mubr.bf16.gmra.mrb[124].mxu0 %v2815_v52 }
 0x672   : > { %v7670_v25 = vpop.f32.mrb[96].mxu0 }
 0x673   : > { %v2914_v0 = vpop.f32.mrb[97].mxu0  ;;  %v9769_v24 = vadd.f32 %v7670_v25, %v9216_v44  ;;  %v12141_v25 = vld [vmem:[#allocation17_spill] sm:$0xff] }
 0x674   : > { %v9762_v48 = vadd.f32 %v2914_v0, %v9193_v8  ;;  %v7671_v17 = vpop.f32.mrb[98].mxu0 }
 0x675   : > { %v2917_v16 = vpop.f32.mrb[99].mxu0  ;;  %v9773_v10 = vadd.f32 %v7671_v17, %v9219_v62 }
 0x676   : > { %v9765_v9 = vadd.f32 %v2917_v16, %v9196_v27  ;;  %3073 = vadd.xlane.f32.xlu0 %v9762_v48 }
 0x678   : > { %3075 = vadd.xlane.f32.xlu1 %v9765_v9 }
 0x67a   : > { %3077 = vadd.xlane.f32.xlu0 %v9769_v24  ;;  %v7674_v55 = vpop.f32.mrb[100].mxu0 }
 0x67b   : > { %v2930_v8 = vpop.f32.mrb[101].mxu0  ;;  %v9785_v44 = vadd.f32 %v7674_v55, %v9262_v12  ;;  %v7964_v55 = vld [vmem:[%s12038_s4] ss:$8 sps:$4 sm:$0xff]  }
 0x67c   : > { %v9777_v30 = vadd.f32 %v2930_v8, %v9239_v6  ;;  %3079 = vadd.xlane.f32.xlu1 %v9773_v10  ;;  %v7675_v27 = vpop.f32.mrb[102].mxu0 }
 0x67d   : > { %v2933_v26 = vpop.f32.mrb[103].mxu0  ;;  %v9789_v62 = vadd.f32 %v7675_v27, %v9265_v40  ;;  %v12142_v27 = vld [vmem:[#allocation18_spill] sm:$0xff] }
 0x67e   : > { %v9781_v51 = vadd.f32 %v2933_v26, %v9242_v28  ;;  %3081 = vadd.xlane.f32.xlu0 %v9777_v30 }
 0x680   : > { %3083 = vadd.xlane.f32.xlu1 %v9781_v51 }
 0x682   : > { %3085 = vadd.xlane.f32.xlu0 %v9785_v44 }
 0x684   : > { %3087 = vadd.xlane.f32.xlu1 %v9789_v62 }
 0x692   : > { %v7678_v6 = vpop.f32.mrb[104].mxu0 }
 0x693   : > { %v2946_v34 = vpop.f32.mrb[105].mxu0  ;;  %v9801_v12 = vadd.f32 %v7678_v6, %v9295_v1 }
 0x694   : > { %v9794_v57 = vadd.f32 %v2946_v34, %v9282_v35  ;;  %v7679_v28 = vpop.f32.mrb[106].mxu0  ;;  %v7967_v34 = vld [vmem:[%s12038_s4 + $0x10] ss:$8 sps:$4 sm:$0xff]  }
 0x695   : > { %v2949_v39 = vpop.f32.mrb[107].mxu0  ;;  %v9805_v40 = vadd.f32 %v7679_v28, %v9298_v36  ;;  %v7969_v28 = vld [vmem:[%s12038_s4 + $0x14] ss:$8 sps:$4 sm:$0xff]  }
 0x696   : > { %v9797_v38 = vadd.f32 %v2949_v39, %v9285_v58  ;;  %3089 = vadd.xlane.f32.xlu0 %v9794_v57 }
 0x698   : > { %3091 = vadd.xlane.f32.xlu1 %v9797_v38 }
 0x69a   : > { %3093 = vadd.xlane.f32.xlu0 %v9801_v12  ;;  %v7682_v22 = vpop.f32.mrb[108].mxu0 }
 0x69b   : > { %v2962_v35 = vpop.f32.mrb[109].mxu0  ;;  %v9817_v1 = vadd.f32 %v7682_v22, %v9321_v19  ;;  %v12138_v19 = vld [vmem:[#allocation14_spill] sm:$0xff]  ;;  %v12143_v22 = vld [vmem:[#allocation19_spill] sm:$0xff] }
 0x69c   : > { %v9809_v61 = vadd.f32 %v2962_v35, %v9310_v2  ;;  %3095 = vadd.xlane.f32.xlu1 %v9805_v40  ;;  %v7683_v58 = vpop.f32.mrb[110].mxu0 }
 0x69d   : > { %v2965_v37 = vpop.f32.mrb[111].mxu0  ;;  %v9821_v36 = vadd.f32 %v7683_v58, %v9324_v42  ;;  %v12139_v42 = vld [vmem:[#allocation15_spill] sm:$0xff] }
 0x69e   : > { %v9813_v63 = vadd.f32 %v2965_v37, %v9313_v18  ;;  %3097 = vadd.xlane.f32.xlu0 %v9809_v61 }
 0x6a0   : > { %3099 = vadd.xlane.f32.xlu1 %v9813_v63 }
 0x6a2   : > { %3101 = vadd.xlane.f32.xlu0 %v9817_v1 }
 0x6a4   : > { %3103 = vadd.xlane.f32.xlu1 %v9821_v36 }
 0x6fa   : > { %v7686_v2 = vpop.f32.mrb[112].mxu0 }
 0x6fb   : > { %v2978_v29 = vpop.f32.mrb[113].mxu0  ;;  %v9833_v50 = vadd.f32 %v7686_v2, %v12138_v19 }
 0x6fc   : > { %v9826_v14 = vadd.f32 %v2978_v29, %v9334_v7  ;;  %v7687_v18 = vpop.f32.mrb[114].mxu0  ;;  %v7972_v29 = vld [vmem:[%s12038_s4 + $0x24] ss:$8 sps:$4 sm:$0xff]  }
 0x6fd   : > { %v2981_v54 = vpop.f32.mrb[115].mxu0  ;;  %v9837_v23 = vadd.f32 %v7687_v18, %v12139_v42 }
 0x6fe   : > { %v9829_v13 = vadd.f32 %v2981_v54, %v12137_v56  ;;  %3105 = vadd.xlane.f32.xlu0 %v9826_v14 }
 0x700   : > { %3107 = vadd.xlane.f32.xlu1 %v9829_v13 }
 0x702   : > { %3109 = vadd.xlane.f32.xlu0 %v9833_v50  ;;  %v7690_v33 = vpop.f32.mrb[116].mxu0 }
 0x703   : > { %v3074_v7 = vpop.xlane.xlu0 %3073  ;;  %v2994_v53 = vpop.f32.mrb[117].mxu0  ;;  %v9876_v26 = vadd.f32 %v7690_v33, %v12142_v27  ;;  %v12144_v33 = vld [vmem:[#allocation20_spill] sm:$0xff] }
 0x704   : > { %v3137_v45 = vmul.f32 0.0078125, %v3074_v7  ;;  %3111 = vadd.xlane.f32.xlu1 %v9837_v23  ;;  %v7691_v41 = vpop.f32.mrb[118].mxu0  ;;  %v9852_v31 = vadd.f32 %v2994_v53, %v12140_v15  ;;  %v12146_v15 = vld [vmem:[#allocation22_spill] sm:$0xff] }
 0x705   : > { %v2997_v3 = vpop.f32.mrb[119].mxu0  ;;  %v3076_v47 = vpop.xlane.xlu1 %3075  ;;  %v9888_v35 = vadd.f32 %v7691_v41, %v12143_v22 }
 0x706   : > { %v9842_v59 = vsub.f32 %v9762_v48, %v3137_v45  ;;  %v3138_v11 = vmul.f32 0.0078125, %v3076_v47  ;;  %v9858_v0 = vadd.f32 %v2997_v3, %v12141_v25  ;;  %v7975_v45 = vld [vmem:[%s12038_s4 + $0x34] ss:$8 sps:$4 sm:$0xff]   ;;  %v7973_v3 = vld [vmem:[%s12038_s4 + $0x30] ss:$8 sps:$4 sm:$0xff]  }
 0x707   : > { %v3078_v21 = vpop.xlane.xlu0 %3077 }
 0x708   : > { %v9845_v49 = vsub.f32 %v9765_v9, %v3138_v11  ;;  %v3139_v20 = vmul.f32 0.0078125, %v3078_v21  ;;  %v3201_v43 = vmul.f32 %v9842_v59, %v9842_v59  ;;  %v12145_v11 = vld [vmem:[#allocation21_spill] sm:$0xff] }
 0x709   : > { %v3080_v60 = vpop.xlane.xlu1 %3079 }
 0x70a   : > { %v3140_v46 = vmul.f32 0.0078125, %v3080_v60  ;;  %3233 = vadd.xlane.f32.xlu0 %v3201_v43  ;;  %v3202_v4 = vmul.f32 %v9845_v49, %v9845_v49  ;;  %v9855_v52 = vsub.f32 %v9769_v24, %v3139_v20  ;;  %v7966_v24 = vld [vmem:[%s12038_s4 + $0x4] ss:$8 sps:$4 sm:$0xff]  }
 0x70b   : > { %v3082_v32 = vpop.xlane.xlu0 %3081  ;;  %3628 = vmatprep.subr.bf16.mxu1 %v7966_v24  ;;  %v7978_v20 = vld [vmem:[%s12038_s4 + $0x44] ss:$8 sps:$4 sm:$0xff]  }
 0x70c   : > { %3235 = vadd.xlane.f32.xlu1 %v3202_v4  ;;  %v9861_v48 = vsub.f32 %v9773_v10, %v3140_v46  ;;  %v3141_v16 = vmul.f32 0.0078125, %v3082_v32  ;;  %v3203_v9 = vmul.f32 %v9855_v52, %v9855_v52  ;;  %3629 = vmatpush1.bf16.msra.mxu1 %v7964_v55  ;;  %v7979_v55 = vld [vmem:[%s12038_s4 + $0x50] ss:$8 sps:$4 sm:$0xff]  }
 0x70d   : > { %v3084_v17 = vpop.xlane.xlu1 %3083  ;;  %3630 = vmatprep.subr.bf16.mxu1 %v7969_v28 }
 0x70e   : > { %3113 = vadd.xlane.f32.xlu0 %v9852_v31  ;;  %v3142_v8 = vmul.f32 0.0078125, %v3084_v17  ;;  %v3204_v10 = vmul.f32 %v9861_v48, %v9861_v48  ;;  %v9879_v6 = vsub.f32 %v9777_v30, %v3141_v16  ;;  %v7981_v16 = vld [vmem:[%s12038_s4 + $0x54] ss:$8 sps:$4 sm:$0xff]  }
 0x70f   : > { %v3086_v39 = vpop.xlane.xlu0 %3085 }
 0x710   : > { %3115 = vadd.xlane.f32.xlu1 %v9858_v0  ;;  %v9891_v58 = vsub.f32 %v9781_v51, %v3142_v8  ;;  %3631 = vmatpush1.bf16.msra.mxu1 %v7967_v34  ;;  %v3143_v37 = vmul.f32 0.0078125, %v3086_v39  ;;  %v3205_v2 = vmul.f32 %v9879_v6, %v9879_v6  ;;  %v7970_v51 = vld [vmem:[%s12038_s4 + $0x20] ss:$8 sps:$4 sm:$0xff]   ;;  %v12147_v8 = vld [vmem:[#allocation23_spill] sm:$0xff] }
 0x711   : > { %v3088_v30 = vpop.xlane.xlu1 %3087  ;;  %3632 = vmatprep.subr.bf16.mxu1 %v7972_v29 }
 0x712   : > { %3237 = vadd.xlane.f32.xlu0 %v3203_v9  ;;  %v3144_v18 = vmul.f32 0.0078125, %v3088_v30  ;;  %v3206_v56 = vmul.f32 %v9891_v58, %v9891_v58  ;;  %v9906_v42 = vsub.f32 %v9785_v44, %v3143_v37 }
 0x714   : > { %3239 = vadd.xlane.f32.xlu1 %v3204_v10  ;;  %3633 = vmatpush1.bf16.msra.mxu1 %v7970_v51  ;;  %v9918_v47 = vsub.f32 %v9789_v62, %v3144_v18  ;;  %v3207_v21 = vmul.f32 %v9906_v42, %v9906_v42  ;;  %v7976_v62 = vld [vmem:[%s12038_s4 + $0x40] ss:$8 sps:$4 sm:$0xff]   ;;  %v12148_v18 = vld [vmem:[#allocation24_spill] sm:$0xff] }
 0x715   : > { %3634 = vmatprep.subr.bf16.mxu1 %v7975_v45  ;;  %v12149_v45 = vld [vmem:[#allocation25_spill] sm:$0xff] }
 0x716   : > { %3117 = vadd.xlane.f32.xlu0 %v9876_v26  ;;  %v3208_v60 = vmul.f32 %v9918_v47, %v9918_v47 }
 0x718   : > { %3119 = vadd.xlane.f32.xlu1 %v9888_v35  ;;  %3635 = vmatpush1.bf16.msra.mxu1 %v7973_v3 }
 0x719   : > { %3636 = vmatprep.subr.bf16.mxu1 %v7978_v20 }
 0x71a   : > { %3241 = vadd.xlane.f32.xlu0 %v3205_v2  ;;  %v7694_v54 = vpop.f32.mrb[120].mxu0  ;;  %v7982_v2 = vld [vmem:[%s12038_s4 + $0x60] ss:$8 sps:$4 sm:$0xff]  }
 0x71b   : > { %v3010_v19 = vpop.f32.mrb[121].mxu0  ;;  %v9936_v32 = vadd.f32 %v7694_v54, %v12146_v15 }
 0x71c   : > { %v9909_v7 = vadd.f32 %v3010_v19, %v12144_v33  ;;  %v7695_v53 = vpop.f32.mrb[122].mxu0  ;;  %3243 = vadd.xlane.f32.xlu1 %v3206_v56  ;;  %3637 = vmatpush1.bf16.msra.mxu1 %v7976_v62  ;;  %v7987_v19 = vld [vmem:[%s12038_s4 + $0x74] ss:$8 sps:$4 sm:$0xff]  }
 0x71d   : > { %v3013_v41 = vpop.f32.mrb[123].mxu0  ;;  %v9945_v10 = vadd.f32 %v7695_v53, %v12147_v8  ;;  %3638 = vmatprep.subr.bf16.mxu1 %v7981_v16  ;;  %v7985_v53 = vld [vmem:[%s12038_s4 + $0x70] ss:$8 sps:$4 sm:$0xff]  }
 0x71e   : > { %v9921_v44 = vadd.f32 %v3013_v41, %v12145_v11  ;;  %3121 = vadd.xlane.f32.xlu0 %v9909_v7 }
 0x720   : > { %3123 = vadd.xlane.f32.xlu1 %v9921_v44  ;;  %3639 = vmatpush1.bf16.msra.mxu1 %v7979_v55 }
 0x722   : > { %3245 = vadd.xlane.f32.xlu0 %v3207_v21  ;;  %v7698_v43 = vpop.f32.mrb[124].mxu0 }
 0x723   : > { %v3090_v46 = vpop.xlane.xlu0 %3089  ;;  %v3026_v4 = vpop.f32.mrb[125].mxu0 }
 0x724   : > { %v3145_v25 = vmul.f32 0.0078125, %v3090_v46  ;;  %v7699_v17 = vpop.f32.mrb[126].mxu0  ;;  %3247 = vadd.xlane.f32.xlu1 %v3208_v60  ;;  %v9966_v54 = vadd.f32 %v3026_v4, %v12148_v18  ;;  %v12150_v46 = vld [vmem:[#allocation26_spill] sm:$0xff] }
 0x725   : > { %v3029_v9 = vpop.f32.mrb[127].mxu0  ;;  %v3092_v24 = vpop.xlane.xlu1 %3091 }
 0x726   : > { %v9948_v27 = vsub.f32 %v9794_v57, %v3145_v25  ;;  %v3146_v34 = vmul.f32 0.0078125, %v3092_v24  ;;  %3125 = vadd.xlane.f32.xlu0 %v9936_v32  ;;  %v7984_v57 = vld [vmem:[%s12038_s4 + $0x64] ss:$8 sps:$4 sm:$0xff]   ;;  %v9978_v41 = vadd.f32 %v3029_v9, %v12149_v45  ;;  %v12151_v25 = vld [vmem:[#allocation27_spill] sm:$0xff] }
 0x727   : > { %v3094_v28 = vpop.xlane.xlu0 %3093  ;;  %3640 = vmatprep.subr.bf16.mxu1 %v7984_v57  ;;  %v9996_v16 = vadd.f32 %v7699_v17, %v12151_v25 }
 0x728   : > { %v9952_v39 = vsub.f32 %v9797_v38, %v3146_v34  ;;  %v3147_v22 = vmul.f32 0.0078125, %v3094_v28  ;;  %3127 = vadd.xlane.f32.xlu1 %v9945_v10  ;;  %v3209_v30 = vmul.f32 %v9948_v27, %v9948_v27  ;;  %3641 = vmatpush1.bf16.msra.mxu1 %v7982_v2 }
 0x729   : > { %v3096_v37 = vpop.xlane.xlu1 %3095  ;;  %3642 = vmatprep.subr.bf16.mxu1 %v7987_v19 }
 0x72a   : > { %v3148_v29 = vmul.f32 0.0078125, %v3096_v37  ;;  %3249 = vadd.xlane.f32.xlu0 %v3209_v30  ;;  %v3210_v38 = vmul.f32 %v9952_v39, %v9952_v39  ;;  %v9969_v56 = vsub.f32 %v9801_v12, %v3147_v22 }
 0x72b   : > { %v3098_v51 = vpop.xlane.xlu0 %3097 }
 0x72c   : > { %3251 = vadd.xlane.f32.xlu1 %v3210_v38  ;;  %v9981_v3 = vsub.f32 %v9805_v40, %v3148_v29  ;;  %3643 = vmatpush1.bf16.msra.mxu1 %v7985_v53  ;;  %v3149_v12 = vmul.f32 0.0078125, %v3098_v51  ;;  %v3211_v11 = vmul.f32 %v9969_v56, %v9969_v56  ;;  %v9990_v40 = vadd.f32 %v7698_v43, %v12150_v46 }
 0x72d   : > { %v3100_v33 = vpop.xlane.xlu1 %3099 }
 0x72e   : > { %3129 = vadd.xlane.f32.xlu0 %v9966_v54  ;;  %v3150_v20 = vmul.f32 0.0078125, %v3100_v33  ;;  %v3212_v62 = vmul.f32 %v9981_v3, %v9981_v3  ;;  %v9993_v4 = vsub.f32 %v9809_v61, %v3149_v12 }
 0x72f   : > { %v3102_v21 = vpop.xlane.xlu0 %3101 }
 0x730   : > { %3131 = vadd.xlane.f32.xlu1 %v9978_v41  ;;  %v3151_v15 = vmul.f32 0.0078125, %v3102_v21  ;;  %v9999_v9 = vsub.f32 %v9813_v63, %v3150_v20  ;;  %v3213_v61 = vmul.f32 %v9993_v4, %v9993_v4 }
 0x731   : > { %v3104_v60 = vpop.xlane.xlu1 %3103 }
 0x732   : > { %3253 = vadd.xlane.f32.xlu0 %v3211_v11  ;;  %v3152_v24 = vmul.f32 0.0078125, %v3104_v60  ;;  %v10003_v55 = vsub.f32 %v9817_v1, %v3151_v15  ;;  %v3214_v17 = vmul.f32 %v9999_v9, %v9999_v9 }
 0x734   : > { %3255 = vadd.xlane.f32.xlu1 %v3212_v62  ;;  %v10009_v43 = vsub.f32 %v9821_v36, %v3152_v24  ;;  %v3215_v63 = vmul.f32 %v10003_v55, %v10003_v55 }
 0x736   : > { %3133 = vadd.xlane.f32.xlu0 %v9990_v40  ;;  %v3216_v1 = vmul.f32 %v10009_v43, %v10009_v43 }
 0x738   : > { %3135 = vadd.xlane.f32.xlu1 %v9996_v16 }
 0x73a   : > { %3257 = vadd.xlane.f32.xlu0 %v3213_v61  ;;  %v12152_v61 = vld [vmem:[#allocation9_spill] sm:$0xff] }
 0x73c   : > { %3259 = vadd.xlane.f32.xlu1 %v3214_v17  ;;  %v10046_v17 = vsub.s32 3, %v12152_v61 }
 0x73e   : > { %3261 = vadd.xlane.f32.xlu0 %v3215_v63  ;;  %12153 = vst [vmem:[#allocation13_spill] sm:$0xff] %v10046_v17 }
 0x740   : > { %3263 = vadd.xlane.f32.xlu1 %v3216_v1 }
 0x78b   : > { %v3106_v8 = vpop.xlane.xlu0 %3105 }
 0x78c   : > { %v3153_v34 = vmul.f32 0.0078125, %v3106_v8 }
 0x78d   : > { %v3108_v28 = vpop.xlane.xlu1 %3107 }
 0x78e   : > { %v10018_v22 = vsub.f32 %v9826_v14, %v3153_v34  ;;  %v3154_v36 = vmul.f32 0.0078125, %v3108_v28 }
 0x78f   : > { %v3110_v30 = vpop.xlane.xlu0 %3109 }
 0x790   : > { %v10021_v57 = vsub.f32 %v9829_v13, %v3154_v36  ;;  %v3155_v37 = vmul.f32 0.0078125, %v3110_v30  ;;  %v3217_v2 = vmul.f32 %v10018_v22, %v10018_v22 }
 0x791   : > { %v3112_v29 = vpop.xlane.xlu1 %3111 }
 0x792   : > { %v10026_v38 = vsub.f32 %v9833_v50, %v3155_v37  ;;  %v3156_v51 = vmul.f32 0.0078125, %v3112_v29  ;;  %3265 = vadd.xlane.f32.xlu0 %v3217_v2  ;;  %v3218_v18 = vmul.f32 %v10021_v57, %v10021_v57  ;;  %v12079_v2 = vsub.s32 4, %v12152_v61 }
 0x794   : > { %v10031_v14 = vsub.f32 %v9837_v23, %v3156_v51  ;;  %3267 = vadd.xlane.f32.xlu1 %v3218_v18  ;;  %v3219_v13 = vmul.f32 %v10026_v38, %v10026_v38 }
 0x796   : > { %3269 = vadd.xlane.f32.xlu0 %v3219_v13  ;;  %v3220_v19 = vmul.f32 %v10031_v14, %v10031_v14 }
 0x797   : > { %v3234_v33 = vpop.xlane.xlu0 %3233 }
 0x798   : > { %v3297_v53 = vmul.f32 0.0078125, %v3234_v33  ;;  %3271 = vadd.xlane.f32.xlu1 %v3220_v19 }
 0x799   : > { %v3236_v50 = vpop.xlane.xlu1 %3235 }
 0x79a   : > { %v3329_v45 = vadd.f32 1e-05, %v3297_v53  ;;  %v3298_v12 = vmul.f32 0.0078125, %v3236_v50 }
 0x79b   : > { %v3114_v11 = vpop.xlane.xlu0 %3113 }
 0x79c   : > { %8284 = vrsqrt.f32 %v3329_v45  ;;  %v3330_v21 = vadd.f32 1e-05, %v3298_v12  ;;  %v3157_v20 = vmul.f32 0.0078125, %v3114_v11 }
 0x79d   : > { %v3116_v23 = vpop.xlane.xlu1 %3115 }
 0x79e   : > { %8286 = vrsqrt.f32 %v3330_v21  ;;  %v10038_v62 = vsub.f32 %v9852_v31, %v3157_v20  ;;  %v3158_v60 = vmul.f32 0.0078125, %v3116_v23 }
 0x79f   : > { %v3238_v46 = vpop.xlane.xlu0 %3237 }
 0x7a0   : > { %v10041_v15 = vsub.f32 %v9858_v0, %v3158_v60  ;;  %v3299_v25 = vmul.f32 0.0078125, %v3238_v46  ;;  %v3221_v24 = vmul.f32 %v10038_v62, %v10038_v62  ;;  %v8588_v0 = vld [vmem:[%s12047_s13] sm:$0xff] }
 0x7a1   : > { %v3240_v63 = vpop.xlane.xlu1 %3239  ;;  %v10054_v30 = vrot.slane %v8588_v0, %v10046_v17 }
 0x7a2   : > { %v3331_v1 = vadd.f32 1e-05, %v3299_v25  ;;  %v3300_v8 = vmul.f32 0.0078125, %v3240_v63  ;;  %3273 = vadd.xlane.f32.xlu0 %v3221_v24  ;;  %v3222_v31 = vmul.f32 %v10041_v15, %v10041_v15 }
 0x7a3   : > { %v3118_v34 = vpop.xlane.xlu0 %3117 }
 0x7a4   : > { %8288 = vrsqrt.f32 %v3331_v1  ;;  %v3332_v28 = vadd.f32 1e-05, %v3300_v8  ;;  %v3159_v36 = vmul.f32 0.0078125, %v3118_v34  ;;  %3275 = vadd.xlane.f32.xlu1 %v3222_v31 }
 0x7a5   : > { %v3120_v37 = vpop.xlane.xlu1 %3119 }
 0x7a6   : > { %v8285_v29 = vpop.eup %8284  ;;  %8290 = vrsqrt.f32 %v3332_v28  ;;  %v10058_v51 = vsub.f32 %v9876_v26, %v3159_v36  ;;  %v3160_v18 = vmul.f32 0.0078125, %v3120_v37  ;;  %v10070_v26 = vrot.slane %v8588_v0, %v12079_v2 }
 0x7a7   : > { %v3393_v13 = vmul.f32 %v8285_v29, %v9842_v59  ;;  %v3242_v19 = vpop.xlane.xlu0 %3241 }
 0x7a8   : > { %v8287_v33 = vpop.eup %8286  ;;  %v10062_v53 = vsub.f32 %v9888_v35, %v3160_v18  ;;  %v3301_v50 = vmul.f32 0.0078125, %v3242_v19  ;;  %v3223_v45 = vmul.f32 %v10058_v51, %v10058_v51 }
 0x7a9   : > { %v3429_v12 = vmul.f32 %v10054_v30, %v3393_v13  ;;  %v3394_v11 = vmul.f32 %v8287_v33, %v9845_v49  ;;  %v3244_v21 = vpop.xlane.xlu1 %3243 }
 0x7aa   : > { %v3333_v20 = vadd.f32 1e-05, %v3301_v50  ;;  %v3302_v59 = vmul.f32 0.0078125, %v3244_v21  ;;  %3277 = vadd.xlane.f32.xlu0 %v3223_v45  ;;  %v3224_v35 = vmul.f32 %v10062_v53, %v10062_v53 }
 0x7ab   : > { %v3430_v23 = vmul.f32 %v10054_v30, %v3394_v11  ;;  %v3122_v60 = vpop.xlane.xlu0 %3121  ;;  %v10076_v49 = vadd.f32 %v10070_v26, %v3429_v12 }
 0x7ac   : > { %8292 = vrsqrt.f32 %v3333_v20  ;;  %v3334_v46 = vadd.f32 1e-05, %v3302_v59  ;;  %v3161_v25 = vmul.f32 0.0078125, %v3122_v60  ;;  %3279 = vadd.xlane.f32.xlu1 %v3224_v35 }
 0x7ad   : > { %v3124_v24 = vpop.xlane.xlu1 %3123  ;;  %v10079_v63 = vadd.f32 %v10070_v26, %v3430_v23 }
 0x7ae   : > { %v8289_v1 = vpop.eup %8288  ;;  %8294 = vrsqrt.f32 %v3334_v46  ;;  %v10082_v8 = vsub.f32 %v9909_v7, %v3161_v25  ;;  %v3162_v31 = vmul.f32 0.0078125, %v3124_v24 }
 0x7af   : > { %v3246_v34 = vpop.xlane.xlu0 %3245  ;;  %v3497_v28 = vpack.c.bf16 %v10079_v63, %v10076_v49  ;;  %v3395_v36 = vmul.f32 %v8289_v1, %v9855_v52 }
 0x7b0   : > { %v8291_v0 = vpop.eup %8290  ;;  %v10088_v37 = vsub.f32 %v9921_v44, %v3162_v31  ;;  %v3303_v29 = vmul.f32 0.0078125, %v3246_v34  ;;  %v3225_v18 = vmul.f32 %v10082_v8, %v10082_v8 }
 0x7b1   : > { %3661 = vmatmul.mubr.bf16.vlgmr.msra.gmra.mrb[96].mxu1 %v3497_v28  ;;  %v3248_v13 = vpop.xlane.xlu1 %3247  ;;  %v3396_v7 = vmul.f32 %v8291_v0, %v9861_v48  ;;  %v3431_v19 = vmul.f32 %v10054_v30, %v3395_v36 }
 0x7b2   : > { %v3335_v33 = vadd.f32 1e-05, %v3303_v29  ;;  %v3304_v50 = vmul.f32 0.0078125, %v3248_v13  ;;  %3281 = vadd.xlane.f32.xlu0 %v3225_v18  ;;  %v3226_v52 = vmul.f32 %v10088_v37, %v10088_v37  ;;  %3670 = vmatprep.mubr.bf16.mxu1 %v12136_v5 }
 0x7b3   : > { %v3126_v44 = vpop.xlane.xlu0 %3125  ;;  %v3432_v45 = vmul.f32 %v10054_v30, %v3396_v7  ;;  %v10099_v48 = vadd.f32 %v10070_v26, %v3431_v19 }
 0x7b4   : > { %8296 = vrsqrt.f32 %v3335_v33  ;;  %v3336_v12 = vadd.f32 1e-05, %v3304_v50  ;;  %v3163_v11 = vmul.f32 0.0078125, %v3126_v44  ;;  %3283 = vadd.xlane.f32.xlu1 %v3226_v52 }
 0x7b5   : > { %v3128_v21 = vpop.xlane.xlu1 %3127  ;;  %v10102_v20 = vadd.f32 %v10070_v26, %v3432_v45 }
 0x7b6   : > { %v8293_v59 = vpop.eup %8292  ;;  %8298 = vrsqrt.f32 %v3336_v12  ;;  %v10105_v35 = vsub.f32 %v9936_v32, %v3163_v11  ;;  %v3164_v23 = vmul.f32 0.0078125, %v3128_v21 }
 0x7b7   : > { %v3250_v60 = vpop.xlane.xlu0 %3249  ;;  %v3498_v46 = vpack.c.bf16 %v10102_v20, %v10099_v48  ;;  %v3397_v25 = vmul.f32 %v8293_v59, %v9879_v6 }
 0x7b8   : > { %v8295_v24 = vpop.eup %8294  ;;  %v10111_v1 = vsub.f32 %v9945_v10, %v3164_v23  ;;  %v3305_v31 = vmul.f32 0.0078125, %v3250_v60  ;;  %v3227_v34 = vmul.f32 %v10105_v35, %v10105_v35 }
 0x7b9   : > { %3671 = vmatmul.mubr.bf16.gmra.mrb[100].mxu1 %v3498_v46  ;;  %v3252_v28 = vpop.xlane.xlu1 %3251  ;;  %v3398_v32 = vmul.f32 %v8295_v24, %v9891_v58  ;;  %v3433_v36 = vmul.f32 %v10054_v30, %v3397_v25 }
 0x7ba   : > { %v3337_v0 = vadd.f32 1e-05, %v3305_v31  ;;  %v3306_v29 = vmul.f32 0.0078125, %v3252_v28  ;;  %3285 = vadd.xlane.f32.xlu0 %v3227_v34  ;;  %v3228_v6 = vmul.f32 %v10111_v1, %v10111_v1  ;;  %3680 = vmatprep.mubr.bf16.mxu1 %v12136_v5 }
 0x7bb   : > { %v3130_v10 = vpop.xlane.xlu0 %3129  ;;  %v3434_v18 = vmul.f32 %v10054_v30, %v3398_v32  ;;  %v10122_v58 = vadd.f32 %v10070_v26, %v3433_v36 }
 0x7bc   : > { %8300 = vrsqrt.f32 %v3337_v0  ;;  %v3338_v13 = vadd.f32 1e-05, %v3306_v29  ;;  %v3165_v7 = vmul.f32 0.0078125, %v3130_v10  ;;  %3287 = vadd.xlane.f32.xlu1 %v3228_v6 }
 0x7bd   : > { %v3132_v19 = vpop.xlane.xlu1 %3131  ;;  %v10125_v33 = vadd.f32 %v10070_v26, %v3434_v18 }
 0x7be   : > { %v8297_v50 = vpop.eup %8296  ;;  %8302 = vrsqrt.f32 %v3338_v13  ;;  %v10128_v52 = vsub.f32 %v9966_v54, %v3165_v7  ;;  %v3166_v44 = vmul.f32 0.0078125, %v3132_v19 }
 0x7bf   : > { %v3254_v45 = vpop.xlane.xlu0 %3253  ;;  %v3499_v12 = vpack.c.bf16 %v10125_v33, %v10122_v58  ;;  %v3399_v11 = vmul.f32 %v8297_v50, %v9906_v42 }
 0x7c0   : > { %v8299_v21 = vpop.eup %8298  ;;  %v10134_v59 = vsub.f32 %v9978_v41, %v3166_v44  ;;  %v3307_v23 = vmul.f32 0.0078125, %v3254_v45  ;;  %v3229_v60 = vmul.f32 %v10128_v52, %v10128_v52 }
 0x7c1   : > { %3681 = vmatmul.mubr.bf16.gmra.mrb[104].mxu1 %v3499_v12  ;;  %v3256_v46 = vpop.xlane.xlu1 %3255  ;;  %v3400_v54 = vmul.f32 %v8299_v21, %v9918_v47  ;;  %v3435_v25 = vmul.f32 %v10054_v30, %v3399_v11 }
 0x7c2   : > { %v3339_v24 = vadd.f32 1e-05, %v3307_v23  ;;  %v3308_v31 = vmul.f32 0.0078125, %v3256_v46  ;;  %3289 = vadd.xlane.f32.xlu0 %v3229_v60  ;;  %v3230_v42 = vmul.f32 %v10134_v59, %v10134_v59  ;;  %3690 = vmatprep.mubr.bf16.mxu1 %v12136_v5 }
 0x7c3   : > { %v3134_v41 = vpop.xlane.xlu0 %3133  ;;  %v3436_v34 = vmul.f32 %v10054_v30, %v3400_v54  ;;  %v10145_v47 = vadd.f32 %v10070_v26, %v3435_v25 }
 0x7c4   : > { %8304 = vrsqrt.f32 %v3339_v24  ;;  %v3340_v28 = vadd.f32 1e-05, %v3308_v31  ;;  %v3167_v32 = vmul.f32 0.0078125, %v3134_v41  ;;  %3291 = vadd.xlane.f32.xlu1 %v3230_v42 }
 0x7c5   : > { %v3136_v36 = vpop.xlane.xlu1 %3135  ;;  %v10148_v0 = vadd.f32 %v10070_v26, %v3436_v34 }
 0x7c6   : > { %v8301_v29 = vpop.eup %8300  ;;  %8306 = vrsqrt.f32 %v3340_v28  ;;  %v10151_v6 = vsub.f32 %v9990_v40, %v3167_v32  ;;  %v3168_v10 = vmul.f32 0.0078125, %v3136_v36 }
 0x7c7   : > { %12154 = vst [vmem:[#allocation14_spill] sm:$0xff] %v10148_v0  ;;  %v3258_v18 = vpop.xlane.xlu0 %3257  ;;  %v3500_v13 = vpack.c.bf16 %v10148_v0, %v10145_v47  ;;  %v3401_v7 = vmul.f32 %v8301_v29, %v9948_v27 }
 0x7c8   : > { %v8303_v19 = vpop.eup %8302  ;;  %v10157_v50 = vsub.f32 %v9996_v16, %v3168_v10  ;;  %v3309_v44 = vmul.f32 0.0078125, %v3258_v18  ;;  %v3231_v45 = vmul.f32 %v10151_v6, %v10151_v6 }
 0x7c9   : > { %3691 = vmatmul.mubr.bf16.gmra.mrb[108].mxu1 %v3500_v13  ;;  %v3260_v12 = vpop.xlane.xlu1 %3259  ;;  %v3402_v40 = vmul.f32 %v8303_v19, %v9952_v39  ;;  %v3437_v11 = vmul.f32 %v10054_v30, %v3401_v7 }
 0x7ca   : > { %v3341_v21 = vadd.f32 1e-05, %v3309_v44  ;;  %v3310_v23 = vmul.f32 0.0078125, %v3260_v12  ;;  %3293 = vadd.xlane.f32.xlu0 %v3231_v45  ;;  %v3232_v27 = vmul.f32 %v10157_v50, %v10157_v50  ;;  %3700 = vmatprep.mubr.bf16.mxu1 %v12136_v5 }
 0x7cb   : > { %v3262_v16 = vpop.xlane.xlu0 %3261  ;;  %v3438_v60 = vmul.f32 %v10054_v30, %v3402_v40  ;;  %v10168_v39 = vadd.f32 %v10070_v26, %v3437_v11 }
 0x7cc   : > { %8308 = vrsqrt.f32 %v3341_v21  ;;  %v3342_v46 = vadd.f32 1e-05, %v3310_v23  ;;  %v3311_v54 = vmul.f32 0.0078125, %v3262_v16  ;;  %3295 = vadd.xlane.f32.xlu1 %v3232_v27 }
 0x7cd   : > { %v3264_v25 = vpop.xlane.xlu1 %3263  ;;  %12155 = vst [vmem:[#allocation15_spill] sm:$0xff] %v10168_v39  ;;  %v10171_v24 = vadd.f32 %v10070_v26, %v3438_v60 }
 0x7ce   : > { %v8305_v31 = vpop.eup %8304  ;;  %8310 = vrsqrt.f32 %v3342_v46  ;;  %v3343_v42 = vadd.f32 1e-05, %v3311_v54  ;;  %v3312_v41 = vmul.f32 0.0078125, %v3264_v25 }
 0x7cf   : > { %12156 = vst [vmem:[#allocation16_spill] sm:$0xff] %v10171_v24  ;;  %v3501_v34 = vpack.c.bf16 %v10171_v24, %v10168_v39  ;;  %v3403_v28 = vmul.f32 %v8305_v31, %v9969_v56  ;;  %v7989_v31 = vld [vmem:[%s12039_s5] sm:$0xff]  }
 0x7d0   : > { %v8307_v32 = vpop.eup %8306  ;;  %8312 = vrsqrt.f32 %v3343_v42  ;;  %v3344_v36 = vadd.f32 1e-05, %v3312_v41  ;;  %v7990_v42 = vld [vmem:[%s12039_s5 + $0x48] sm:$0xff]  }
 0x7d1   : > { %3701 = vmatmul.mubr.bf16.gmra.mrb[112].mxu1 %v3501_v34  ;;  %v3404_v29 = vmul.f32 %v8307_v32, %v9981_v3  ;;  %v3439_v10 = vmul.f32 %v10054_v30, %v3403_v28  ;;  %v7991_v41 = vld [vmem:[%s12039_s5 + $0x8] sm:$0xff]   ;;  %v7992_v34 = vld [vmem:[%s12039_s5 + $0x50] sm:$0xff]   ;;  %v7994_v32 = vld [vmem:[%s12039_s5 + $0x58] sm:$0xff]  }
 0x7d2   : > { %8314 = vrsqrt.f32 %v3344_v36  ;;  %3710 = vmatprep.mubr.bf16.mxu1 %v12136_v5  ;;  %v7993_v28 = vld [vmem:[%s12039_s5 + $0x10] sm:$0xff]   ;;  %v7995_v36 = vld [vmem:[%s12039_s5 + $0x18] sm:$0xff]  }
 0x7d3   : > { %v3440_v18 = vmul.f32 %v10054_v30, %v3404_v29  ;;  %v10181_v13 = vadd.f32 %v10070_v26, %v3439_v10  ;;  %v7996_v29 = vld [vmem:[%s12039_s5 + $0x60] sm:$0xff]  }
 0x7d4   : > { %v7997_v10 = vld [vmem:[%s12039_s5 + $0x20] sm:$0xff]  }
 0x7d5   : > { %12157 = vst [vmem:[#allocation17_spill] sm:$0xff] %v10181_v13  ;;  %v10184_v7 = vadd.f32 %v10070_v26, %v3440_v18  ;;  %v7998_v18 = vld [vmem:[%s12039_s5 + $0x68] sm:$0xff]  }
 0x7d6   : > { %v8309_v56 = vpop.eup %8308 }
 0x7d7   : > { %12158 = vst [vmem:[#allocation18_spill] sm:$0xff] %v10184_v7  ;;  %v3502_v19 = vpack.c.bf16 %v10184_v7, %v10181_v13  ;;  %v3405_v44 = vmul.f32 %v8309_v56, %v9993_v4  ;;  %v7999_v56 = vld [vmem:[%s12039_s5 + $0x28] sm:$0xff]  }
 0x7d8   : > { %v8311_v3 = vpop.eup %8310 }
 0x7d9   : > { %3711 = vmatmul.mubr.bf16.gmra.mrb[116].mxu1 %v3502_v19  ;;  %v3406_v45 = vmul.f32 %v8311_v3, %v9999_v9  ;;  %v3441_v12 = vmul.f32 %v10054_v30, %v3405_v44 }
 0x7da   : > { %v8313_v40 = vpop.eup %8312  ;;  %3720 = vmatprep.mubr.bf16.mxu1 %v12136_v5 }
 0x7db   : > { %v3442_v11 = vmul.f32 %v10054_v30, %v3406_v45  ;;  %v10194_v23 = vadd.f32 %v10070_v26, %v3441_v12  ;;  %v3407_v4 = vmul.f32 %v8313_v40, %v10003_v55  ;;  %v8000_v45 = vld [vmem:[%s12039_s5 + $0x70] sm:$0xff]  }
 0x7dc   : > { %v8315_v21 = vpop.eup %8314 }
 0x7dd   : > { %12159 = vst [vmem:[#allocation19_spill] sm:$0xff] %v10194_v23  ;;  %v10197_v27 = vadd.f32 %v10070_v26, %v3442_v11  ;;  %v3408_v16 = vmul.f32 %v8315_v21, %v10009_v43  ;;  %v3443_v46 = vmul.f32 %v10054_v30, %v3407_v4  ;;  %v7988_v43 = vld [vmem:[%s12039_s5 + $0x40] sm:$0xff]   ;;  %v8001_v11 = vld [vmem:[%s12039_s5 + $0x30] sm:$0xff]  }
 0x7de   : > { %7219 = vmatprep.subr.bf16.mxu0 %v7988_v43  ;;  %v8003_v43 = vld [vmem:[%s12039_s5 + $0x38] sm:$0xff]  }
 0x7df   : > { %12160 = vst [vmem:[#allocation20_spill] sm:$0xff] %v10197_v27  ;;  %v3503_v9 = vpack.c.bf16 %v10197_v27, %v10194_v23  ;;  %v3444_v60 = vmul.f32 %v10054_v30, %v3408_v16  ;;  %v10210_v25 = vadd.f32 %v10070_v26, %v3443_v46  ;;  %7220 = vmatpush3.bf16.msra.mxu0 %v7989_v31 }
 0x7e0   : > { %7221 = vmatprep.subr.bf16.mxu0 %v7990_v42 }
 0x7e1   : > { %3721 = vmatmul.mubr.bf16.gmra.mrb[120].mxu1 %v3503_v9  ;;  %v10207_v54 = vadd.f32 %v10070_v26, %v3444_v60  ;;  %12162 = vst [vmem:[#allocation22_spill] sm:$0xff] %v10210_v25  ;;  %v8002_v60 = vld [vmem:[%s12039_s5 + $0x78] sm:$0xff]  }
 0x7e2   : > { %3730 = vmatprep.mubr.bf16.mxu1 %v12136_v5 }
 0x7e3   : > { %12161 = vst [vmem:[#allocation21_spill] sm:$0xff] %v10207_v54  ;;  %v3504_v55 = vpack.c.bf16 %v10207_v54, %v10210_v25  ;;  %7222 = vmatpush3.bf16.msra.mxu0 %v7991_v41 }
 0x7e4   : > { %7223 = vmatprep.subr.bf16.mxu0 %v7992_v34 }
 0x7e7   : > { %7224 = vmatpush3.bf16.msra.mxu0 %v7993_v28 }
 0x7e8   : > { %7225 = vmatprep.subr.bf16.mxu0 %v7994_v32 }
 0x7e9   : > { %3731 = vmatmul.mubr.bf16.gmra.mrb[124].mxu1 %v3504_v55 }
 0x7ea   : > { %3740 = vmatprep.mubr.bf16.mxu1 %v12136_v5 }
 0x7eb   : > { %7226 = vmatpush3.bf16.msra.mxu0 %v7995_v36 }
 0x7ec   : > { %7227 = vmatprep.subr.bf16.mxu0 %v7996_v29 }
 0x7ef   : > { %7228 = vmatpush3.bf16.msra.mxu0 %v7997_v10 }
 0x7f0   : > { %7229 = vmatprep.subr.bf16.mxu0 %v7998_v18 }
 0x7f3   : > { %7230 = vmatpush3.bf16.msra.mxu0 %v7999_v56 }
 0x7f4   : > { %7231 = vmatprep.subr.bf16.mxu0 %v8000_v45 }
 0x7f7   : > { %7232 = vmatpush3.bf16.msra.mxu0 %v8001_v11 }
 0x7f8   : > { %7233 = vmatprep.subr.bf16.mxu0 %v8002_v60 }
 0x7fb   : > { %7234 = vmatpush3.bf16.msra.mxu0 %v8003_v43 }
 0x81f   : > { %v3266_v19 = vpop.xlane.xlu0 %3265 }
 0x820   : > { %v3313_v44 = vmul.f32 0.0078125, %v3266_v19 }
 0x821   : > { %v3268_v3 = vpop.xlane.xlu1 %3267 }
 0x822   : > { %v3345_v12 = vadd.f32 1e-05, %v3313_v44  ;;  %v3314_v40 = vmul.f32 0.0078125, %v3268_v3 }
 0x823   : > { %v3270_v21 = vpop.xlane.xlu0 %3269 }
 0x824   : > { %8316 = vrsqrt.f32 %v3345_v12  ;;  %v3346_v4 = vadd.f32 1e-05, %v3314_v40  ;;  %v3315_v16 = vmul.f32 0.0078125, %v3270_v21 }
 0x825   : > { %v3272_v9 = vpop.xlane.xlu1 %3271 }
 0x826   : > { %8318 = vrsqrt.f32 %v3346_v4  ;;  %v3347_v46 = vadd.f32 1e-05, %v3315_v16  ;;  %v3316_v55 = vmul.f32 0.0078125, %v3272_v9 }
 0x828   : > { %8320 = vrsqrt.f32 %v3347_v46  ;;  %v3348_v31 = vadd.f32 1e-05, %v3316_v55 }
 0x82a   : > { %8322 = vrsqrt.f32 %v3348_v31 }
 0x82e   : > { %v8317_v42 = vpop.eup %8316 }
 0x82f   : > { %v3274_v41 = vpop.xlane.xlu0 %3273  ;;  %v3409_v34 = vmul.f32 %v8317_v42, %v10018_v22 }
 0x830   : > { %v8319_v28 = vpop.eup %8318  ;;  %v3317_v32 = vmul.f32 0.0078125, %v3274_v41 }
 0x831   : > { %v3276_v36 = vpop.xlane.xlu1 %3275  ;;  %v3410_v29 = vmul.f32 %v8319_v28, %v10021_v57  ;;  %v3445_v10 = vmul.f32 %v10054_v30, %v3409_v34 }
 0x832   : > { %v8321_v18 = vpop.eup %8320  ;;  %v3349_v56 = vadd.f32 1e-05, %v3317_v32  ;;  %v3318_v19 = vmul.f32 0.0078125, %v3276_v36 }
 0x833   : > { %v3446_v44 = vmul.f32 %v10054_v30, %v3410_v29  ;;  %v10268_v12 = vadd.f32 %v10070_v26, %v3445_v10  ;;  %v3411_v40 = vmul.f32 %v8321_v18, %v10026_v38 }
 0x834   : > { %v8323_v3 = vpop.eup %8322  ;;  %8324 = vrsqrt.f32 %v3349_v56  ;;  %v3350_v45 = vadd.f32 1e-05, %v3318_v19 }
 0x835   : > { %12163 = vst [vmem:[#allocation23_spill] sm:$0xff] %v10268_v12  ;;  %v10271_v22 = vadd.f32 %v10070_v26, %v3446_v44  ;;  %v3412_v57 = vmul.f32 %v8323_v3, %v10031_v14  ;;  %v3447_v60 = vmul.f32 %v10054_v30, %v3411_v40 }
 0x836   : > { %8326 = vrsqrt.f32 %v3350_v45 }
 0x837   : > { %12164 = vst [vmem:[#allocation24_spill] sm:$0xff] %v10271_v22  ;;  %v3278_v11 = vpop.xlane.xlu0 %3277  ;;  %v3505_v21 = vpack.c.bf16 %v10271_v22, %v10268_v12  ;;  %v3448_v4 = vmul.f32 %v10054_v30, %v3412_v57  ;;  %v10284_v43 = vadd.f32 %v10070_v26, %v3447_v60 }
 0x838   : > { %v3319_v16 = vmul.f32 0.0078125, %v3278_v11 }
 0x839   : > { %3741 = vmatmul.mubr.bf16.gmra.mrb[128].mxu1 %v3505_v21  ;;  %v3280_v9 = vpop.xlane.xlu1 %3279  ;;  %v10281_v38 = vadd.f32 %v10070_v26, %v3448_v4  ;;  %12166 = vst [vmem:[#allocation26_spill] sm:$0xff] %v10284_v43 }
 0x83a   : > { %v3351_v46 = vadd.f32 1e-05, %v3319_v16  ;;  %v3320_v55 = vmul.f32 0.0078125, %v3280_v9  ;;  %3750 = vmatprep.mubr.bf16.mxu1 %v12136_v5 }
 0x83b   : > { %12165 = vst [vmem:[#allocation25_spill] sm:$0xff] %v10281_v38  ;;  %v3506_v41 = vpack.c.bf16 %v10281_v38, %v10284_v43 }
 0x83c   : > { %8328 = vrsqrt.f32 %v3351_v46  ;;  %v3352_v14 = vadd.f32 1e-05, %v3320_v55 }
 0x83e   : > { %v8325_v31 = vpop.eup %8324  ;;  %8330 = vrsqrt.f32 %v3352_v14 }
 0x83f   : > { %v3282_v42 = vpop.xlane.xlu0 %3281  ;;  %v3413_v34 = vmul.f32 %v8325_v31, %v10038_v62 }
 0x840   : > { %v8327_v28 = vpop.eup %8326  ;;  %v3321_v32 = vmul.f32 0.0078125, %v3282_v42 }
 0x841   : > { %3751 = vmatmul.mubr.bf16.gmra.mrb[132].mxu1 %v3506_v41  ;;  %v3284_v36 = vpop.xlane.xlu1 %3283  ;;  %v3414_v29 = vmul.f32 %v8327_v28, %v10041_v15  ;;  %v3449_v10 = vmul.f32 %v10054_v30, %v3413_v34 }
 0x842   : > { %v3353_v18 = vadd.f32 1e-05, %v3321_v32  ;;  %v3322_v56 = vmul.f32 0.0078125, %v3284_v36  ;;  %3760 = vmatprep.mubr.bf16.mxu1 %v12136_v5 }
 0x843   : > { %v3450_v19 = vmul.f32 %v10054_v30, %v3414_v29  ;;  %v10294_v3 = vadd.f32 %v10070_v26, %v3449_v10 }
 0x844   : > { %8332 = vrsqrt.f32 %v3353_v18  ;;  %v3354_v44 = vadd.f32 1e-05, %v3322_v56 }
 0x845   : > { %12167 = vst [vmem:[#allocation27_spill] sm:$0xff] %v10294_v3  ;;  %v10297_v62 = vadd.f32 %v10070_v26, %v3450_v19 }
 0x846   : > { %v8329_v45 = vpop.eup %8328  ;;  %8334 = vrsqrt.f32 %v3354_v44 }
 0x847   : > { %12168 = vst [vmem:[#allocation9_spill] sm:$0xff] %v10297_v62  ;;  %v3286_v40 = vpop.xlane.xlu0 %3285  ;;  %v3507_v15 = vpack.c.bf16 %v10297_v62, %v10294_v3  ;;  %v3415_v57 = vmul.f32 %v8329_v45, %v10058_v51 }
 0x848   : > { %v8331_v11 = vpop.eup %8330  ;;  %v3323_v21 = vmul.f32 0.0078125, %v3286_v40 }
 0x849   : > { %3761 = vmatmul.mubr.bf16.gmra.mrb[136].mxu1 %v3507_v15  ;;  %v3288_v4 = vpop.xlane.xlu1 %3287  ;;  %v3416_v16 = vmul.f32 %v8331_v11, %v10062_v53  ;;  %v3451_v9 = vmul.f32 %v10054_v30, %v3415_v57 }
 0x84a   : > { %v3355_v60 = vadd.f32 1e-05, %v3323_v21  ;;  %v3324_v46 = vmul.f32 0.0078125, %v3288_v4  ;;  %3770 = vmatprep.mubr.bf16.mxu1 %v12136_v5 }
 0x84b   : > { %v3452_v55 = vmul.f32 %v10054_v30, %v3416_v16  ;;  %v10307_v31 = vadd.f32 %v10070_v26, %v3451_v9 }
 0x84c   : > { %8336 = vrsqrt.f32 %v3355_v60  ;;  %v3356_v14 = vadd.f32 1e-05, %v3324_v46 }
 0x84d   : > { %12169 = vst [vmem:[#allocation28_spill] sm:$0xff] %v10307_v31  ;;  %v10310_v51 = vadd.f32 %v10070_v26, %v3452_v55 }
 0x84e   : > { %v8333_v42 = vpop.eup %8332  ;;  %8338 = vrsqrt.f32 %v3356_v14 }
 0x84f   : > { %12170 = vst [vmem:[#allocation29_spill] sm:$0xff] %v10310_v51  ;;  %v3290_v41 = vpop.xlane.xlu0 %3289  ;;  %v3508_v53 = vpack.c.bf16 %v10310_v51, %v10307_v31  ;;  %v3417_v34 = vmul.f32 %v8333_v42, %v10082_v8 }
 0x850   : > { %v8335_v28 = vpop.eup %8334  ;;  %v3325_v32 = vmul.f32 0.0078125, %v3290_v41 }
 0x851   : > { %3771 = vmatmul.mubr.bf16.gmra.mrb[140].mxu1 %v3508_v53  ;;  %v3292_v36 = vpop.xlane.xlu1 %3291  ;;  %v3418_v29 = vmul.f32 %v8335_v28, %v10088_v37  ;;  %v3453_v10 = vmul.f32 %v10054_v30, %v3417_v34 }
 0x852   : > { %v3357_v18 = vadd.f32 1e-05, %v3325_v32  ;;  %v3326_v56 = vmul.f32 0.0078125, %v3292_v36  ;;  %3780 = vmatprep.mubr.bf16.mxu1 %v12136_v5 }
 0x853   : > { %v3454_v19 = vmul.f32 %v10054_v30, %v3418_v29  ;;  %v10320_v45 = vadd.f32 %v10070_v26, %v3453_v10 }
 0x854   : > { %8340 = vrsqrt.f32 %v3357_v18  ;;  %v3358_v44 = vadd.f32 1e-05, %v3326_v56 }
 0x855   : > { %12171 = vst [vmem:[#allocation30_spill] sm:$0xff] %v10320_v45  ;;  %v10323_v8 = vadd.f32 %v10070_v26, %v3454_v19 }
 0x856   : > { %v8337_v40 = vpop.eup %8336  ;;  %8342 = vrsqrt.f32 %v3358_v44 }
 0x857   : > { %12172 = vst [vmem:[#allocation31_spill] sm:$0xff] %v10323_v8  ;;  %v3294_v15 = vpop.xlane.xlu0 %3293  ;;  %v3509_v37 = vpack.c.bf16 %v10323_v8, %v10320_v45  ;;  %v3419_v57 = vmul.f32 %v8337_v40, %v10105_v35 }
 0x858   : > { %v8339_v11 = vpop.eup %8338  ;;  %v3327_v21 = vmul.f32 0.0078125, %v3294_v15 }
 0x859   : > { %3781 = vmatmul.mubr.bf16.gmra.mrb[144].mxu1 %v3509_v37  ;;  %v3296_v4 = vpop.xlane.xlu1 %3295  ;;  %v3420_v16 = vmul.f32 %v8339_v11, %v10111_v1  ;;  %v3455_v9 = vmul.f32 %v10054_v30, %v3419_v57 }
 0x85a   : > { %v3359_v60 = vadd.f32 1e-05, %v3327_v21  ;;  %v3328_v46 = vmul.f32 0.0078125, %v3296_v4  ;;  %3790 = vmatprep.mubr.bf16.mxu1 %v12136_v5  ;;  %v12180_v21 = vld [vmem:[#allocation12_spill] sm:$0xff] }
 0x85b   : > { %v3456_v55 = vmul.f32 %v10054_v30, %v3420_v16  ;;  %v10333_v42 = vadd.f32 %v10070_v26, %v3455_v9 }
 0x85c   : > { %8344 = vrsqrt.f32 %v3359_v60  ;;  %v3360_v14 = vadd.f32 1e-05, %v3328_v46 }
 0x85d   : > { %12173 = vst [vmem:[#allocation32_spill] sm:$0xff] %v10333_v42  ;;  %v10336_v35 = vadd.f32 %v10070_v26, %v3456_v55 }
 0x85e   : > { %v8341_v41 = vpop.eup %8340  ;;  %8346 = vrsqrt.f32 %v3360_v14 }
 0x85f   : > { %12174 = vst [vmem:[#allocation33_spill] sm:$0xff] %v10336_v35  ;;  %v3510_v1 = vpack.c.bf16 %v10336_v35, %v10333_v42  ;;  %v3421_v53 = vmul.f32 %v8341_v41, %v10128_v52 }
 0x860   : > { %v8343_v34 = vpop.eup %8342 }
 0x861   : > { %3791 = vmatmul.mubr.bf16.gmra.mrb[148].mxu1 %v3510_v1  ;;  %v3422_v28 = vmul.f32 %v8343_v34, %v10134_v59  ;;  %v3457_v32 = vmul.f32 %v10054_v30, %v3421_v53 }
 0x862   : > { %3800 = vmatprep.mubr.bf16.mxu1 %v12136_v5 }
 0x863   : > { %v3458_v36 = vmul.f32 %v10054_v30, %v3422_v28  ;;  %v10346_v29 = vadd.f32 %v10070_v26, %v3457_v32 }
 0x865   : > { %12175 = vst [vmem:[#allocation34_spill] sm:$0xff] %v10346_v29  ;;  %v10349_v10 = vadd.f32 %v10070_v26, %v3458_v36 }
 0x866   : > { %v8345_v18 = vpop.eup %8344 }
 0x867   : > { %12176 = vst [vmem:[#allocation35_spill] sm:$0xff] %v10349_v10  ;;  %v3511_v52 = vpack.c.bf16 %v10349_v10, %v10346_v29  ;;  %v3423_v56 = vmul.f32 %v8345_v18, %v10151_v6  ;;  %v502_v6 = vld [vmem:[%s12048_s14] sm:$0xf] }
 0x868   : > { %v8347_v19 = vpop.eup %8346  ;;  %v3537_v4 = vrot.slane %v502_v6, %v12180_v21 }
 0x869   : > { %3801 = vmatmul.mubr.bf16.gmra.mrb[152].mxu1 %v3511_v52  ;;  %v3424_v59 = vmul.f32 %v8347_v19, %v10157_v50  ;;  %v3459_v44 = vmul.f32 %v10054_v30, %v3423_v56  ;;  %v12179_v50 = vld [vmem:[#allocation10_spill] sm:$0xff] }
 0x86a   : > { %3810 = vmatprep.mubr.bf16.mxu1 %v12136_v5  ;;  %v3533_v11 = vrot.slane %v502_v6, %v12179_v50  ;;  %v10375_v16 = vrot.slane %v3537_v4, %v12179_v50 }
 0x86b   : > { %v3460_v40 = vmul.f32 %v10054_v30, %v3424_v59  ;;  %v10359_v15 = vadd.f32 %v10070_v26, %v3459_v44 }
 0x86c   : > { %v10372_v30 = vrot.slane %v3533_v11, %v12179_v50 }
 0x86d   : > { %12177 = vst [vmem:[#allocation36_spill] sm:$0xff] %v10359_v15  ;;  %v10362_v37 = vadd.f32 %v10070_v26, %v3460_v40 }
 0x86f   : > { %12178 = vst [vmem:[#allocation37_spill] sm:$0xff] %v10362_v37  ;;  %v3512_v57 = vpack.c.bf16 %v10362_v37, %v10359_v15 }
 0x871   : > { %3811 = vmatmul.mubr.bf16.gmra.mrb[156].mxu1 %v3512_v57 }
 0x884   : > { %v3662_v26 = vpop.f32.mrb[96].mxu1 }
 0x885   : > { %v10378_v9 = vadd.f32 %v3662_v26, %v10372_v30  ;;  %v3664_v60 = vpop.f32.mrb[97].mxu1 }
 0x886   : > { %v10381_v46 = vadd.f32 %v3664_v60, %v10375_v16  ;;  %v3666_v55 = vpop.f32.mrb[98].mxu1 }
 0x887   : > { %v3821_v14 = vmul.f32 %v10378_v9, %v10378_v9  ;;  %v10386_v41 = vadd.f32 %v3666_v55, %v10372_v30  ;;  %v3668_v1 = vpop.f32.mrb[99].mxu1 }
 0x888   : > { %v3822_v53 = vmul.f32 %v10381_v46, %v10381_v46  ;;  %v10391_v34 = vadd.f32 %v3668_v1, %v10375_v16 }
 0x889   : > { %v3885_v28 = vmul.f32 %v3821_v14, %v10378_v9  ;;  %v3823_v32 = vmul.f32 %v10386_v41, %v10386_v41 }
 0x88a   : > { %v3886_v36 = vmul.f32 %v3822_v53, %v10381_v46  ;;  %v3824_v18 = vmul.f32 %v10391_v34, %v10391_v34 }
 0x88b   : > { %v3949_v52 = vmul.f32 0.044715, %v3885_v28  ;;  %v3887_v56 = vmul.f32 %v3823_v32, %v10386_v41 }
 0x88c   : > { %v3950_v19 = vmul.f32 0.044715, %v3886_v36  ;;  %v3888_v59 = vmul.f32 %v3824_v18, %v10391_v34  ;;  %v3672_v44 = vpop.f32.mrb[100].mxu1 }
 0x88d   : > { %v4013_v40 = vadd.f32 %v3949_v52, %v10378_v9  ;;  %v3951_v57 = vmul.f32 0.044715, %v3887_v56  ;;  %v10403_v6 = vadd.f32 %v3672_v44, %v10372_v30  ;;  %v3674_v11 = vpop.f32.mrb[101].mxu1 }
 0x88e   : > { %v4014_v4 = vadd.f32 %v3950_v19, %v10381_v46  ;;  %v3952_v26 = vmul.f32 0.044715, %v3888_v59  ;;  %v10407_v60 = vadd.f32 %v3674_v11, %v10375_v16  ;;  %v3676_v55 = vpop.f32.mrb[102].mxu1 }
 0x88f   : > { %v4077_v14 = vmul.f32 0.7978846, %v4013_v40  ;;  %v4015_v1 = vadd.f32 %v3951_v57, %v10386_v41  ;;  %v3825_v53 = vmul.f32 %v10403_v6, %v10403_v6  ;;  %v10413_v28 = vadd.f32 %v3676_v55, %v10372_v30  ;;  %v3678_v32 = vpop.f32.mrb[103].mxu1 }
 0x890   : > { %v4078_v36 = vmul.f32 0.7978846, %v4014_v4  ;;  %v4016_v18 = vadd.f32 %v3952_v26, %v10391_v34  ;;  %v3826_v52 = vmul.f32 %v10407_v60, %v10407_v60  ;;  %v10419_v56 = vadd.f32 %v3678_v32, %v10375_v16 }
 0x891   : > { %8348 = vtanh.f32 %v4077_v14  ;;  %v4079_v19 = vmul.f32 0.7978846, %v4015_v1  ;;  %v3889_v59 = vmul.f32 %v3825_v53, %v10403_v6  ;;  %v3827_v44 = vmul.f32 %v10413_v28, %v10413_v28 }
 0x892   : > { %8350 = vtanh.f32 %v4078_v36  ;;  %v4080_v40 = vmul.f32 0.7978846, %v4016_v18  ;;  %v3890_v57 = vmul.f32 %v3826_v52, %v10407_v60  ;;  %v3828_v11 = vmul.f32 %v10419_v56, %v10419_v56 }
 0x893   : > { %8352 = vtanh.f32 %v4079_v19  ;;  %v3953_v4 = vmul.f32 0.044715, %v3889_v59  ;;  %v3891_v26 = vmul.f32 %v3827_v44, %v10413_v28 }
 0x894   : > { %v3954_v55 = vmul.f32 0.044715, %v3890_v57  ;;  %v3892_v14 = vmul.f32 %v3828_v11, %v10419_v56  ;;  %v3682_v1 = vpop.f32.mrb[104].mxu1  ;;  %8354 = vtanh.f32 %v4080_v40 }
 0x895   : > { %v4017_v53 = vadd.f32 %v3953_v4, %v10403_v6  ;;  %v3955_v32 = vmul.f32 0.044715, %v3891_v26  ;;  %v10431_v2 = vadd.f32 %v3682_v1, %v10372_v30  ;;  %v3684_v36 = vpop.f32.mrb[105].mxu1 }
 0x896   : > { %v4018_v18 = vadd.f32 %v3954_v55, %v10407_v60  ;;  %v3956_v52 = vmul.f32 0.044715, %v3892_v14  ;;  %v10435_v19 = vadd.f32 %v3684_v36, %v10375_v16  ;;  %v3686_v59 = vpop.f32.mrb[106].mxu1 }
 0x897   : > { %v4081_v44 = vmul.f32 0.7978846, %v4017_v53  ;;  %v4019_v57 = vadd.f32 %v3955_v32, %v10413_v28  ;;  %v3829_v11 = vmul.f32 %v10431_v2, %v10431_v2  ;;  %v10441_v4 = vadd.f32 %v3686_v59, %v10372_v30  ;;  %v3688_v26 = vpop.f32.mrb[107].mxu1 }
 0x898   : > { %v4082_v1 = vmul.f32 0.7978846, %v4018_v18  ;;  %v4020_v40 = vadd.f32 %v3956_v52, %v10419_v56  ;;  %v3830_v55 = vmul.f32 %v10435_v19, %v10435_v19  ;;  %v10447_v14 = vadd.f32 %v3688_v26, %v10375_v16 }
 0x899   : > { %8356 = vtanh.f32 %v4081_v44  ;;  %v4083_v53 = vmul.f32 0.7978846, %v4019_v57  ;;  %v3893_v32 = vmul.f32 %v3829_v11, %v10431_v2  ;;  %v3831_v36 = vmul.f32 %v10441_v4, %v10441_v4 }
 0x89a   : > { %8358 = vtanh.f32 %v4082_v1  ;;  %v4084_v59 = vmul.f32 0.7978846, %v4020_v40  ;;  %v3894_v21 = vmul.f32 %v3830_v55, %v10435_v19  ;;  %v3832_v18 = vmul.f32 %v10447_v14, %v10447_v14 }
 0x89b   : > { %v8349_v52 = vpop.eup %8348  ;;  %8360 = vtanh.f32 %v4083_v53  ;;  %v3957_v17 = vmul.f32 0.044715, %v3893_v32  ;;  %v3895_v26 = vmul.f32 %v3831_v36, %v10441_v4 }
 0x89c   : > { %v8351_v50 = vpop.eup %8350  ;;  %v4205_v44 = vadd.f32 1.0, %v8349_v52  ;;  %8362 = vtanh.f32 %v4084_v59  ;;  %v3958_v57 = vmul.f32 0.044715, %v3894_v21  ;;  %v3896_v11 = vmul.f32 %v3832_v18, %v10447_v14  ;;  %v3692_v37 = vpop.f32.mrb[108].mxu1 }
 0x89d   : > { %v8353_v15 = vpop.eup %8352  ;;  %v4021_v1 = vadd.f32 %v3957_v17, %v10431_v2  ;;  %v3959_v40 = vmul.f32 0.044715, %v3895_v26  ;;  %v10459_v55 = vadd.f32 %v3692_v37, %v10372_v30  ;;  %v3694_v10 = vpop.f32.mrb[109].mxu1  ;;  %v4206_v29 = vadd.f32 1.0, %v8351_v50 }
 0x89e   : > { %v4269_v53 = vmul.f32 0.5, %v4205_v44  ;;  %v4207_v32 = vadd.f32 1.0, %v8353_v15  ;;  %v4022_v36 = vadd.f32 %v3958_v57, %v10435_v19  ;;  %v3960_v35 = vmul.f32 0.044715, %v3896_v11  ;;  %v3696_v52 = vpop.f32.mrb[110].mxu1  ;;  %v8355_v37 = vpop.eup %8354 }
 0x89f   : > { %v4085_v59 = vmul.f32 0.7978846, %v4021_v1  ;;  %v4023_v21 = vadd.f32 %v3959_v40, %v10441_v4  ;;  %v3833_v18 = vmul.f32 %v10459_v55, %v10459_v55  ;;  %v10466_v17 = vadd.f32 %v3694_v10, %v10375_v16  ;;  %v3698_v26 = vpop.f32.mrb[111].mxu1 }
 0x8a0   : > { %v10469_v42 = vmul.f32 %v4269_v53, %v10378_v9  ;;  %v4271_v50 = vmul.f32 0.5, %v4207_v32  ;;  %v4086_v15 = vmul.f32 0.7978846, %v4022_v36  ;;  %v4024_v44 = vadd.f32 %v3960_v35, %v10447_v14 }
 0x8a1   : > { %8364 = vtanh.f32 %v4085_v59  ;;  %v4087_v57 = vmul.f32 0.7978846, %v4023_v21  ;;  %v3897_v11 = vmul.f32 %v3833_v18, %v10459_v55  ;;  %v3834_v1 = vmul.f32 %v10466_v17, %v10466_v17 }
 0x8a2   : > { %v10476_v40 = vmul.f32 %v4271_v50, %v10386_v41  ;;  %8366 = vtanh.f32 %v4086_v15  ;;  %v4088_v10 = vmul.f32 0.7978846, %v4024_v44  ;;  %v10479_v8 = vadd.f32 %v3696_v52, %v10372_v30 }
 0x8a3   : > { %v10481_v9 = vpop.eup %8356  ;;  %8368 = vtanh.f32 %v4087_v57  ;;  %v3961_v53 = vmul.f32 0.044715, %v3897_v11  ;;  %v3898_v35 = vmul.f32 %v3834_v1, %v10466_v17  ;;  %v10485_v32 = vadd.f32 %v3698_v26, %v10375_v16 }
 0x8a4   : > { %v10487_v36 = vpop.eup %8358  ;;  %8370 = vtanh.f32 %v4088_v10  ;;  %v3835_v59 = vmul.f32 %v10479_v8, %v10479_v8  ;;  %v3702_v52 = vpop.f32.mrb[112].mxu1  ;;  %v4208_v21 = vadd.f32 1.0, %v8355_v37  ;;  %v4270_v41 = vmul.f32 0.5, %v4206_v29 }
 0x8a5   : > { %v10493_v18 = vpop.eup %8360  ;;  %v4025_v50 = vadd.f32 %v3961_v53, %v10459_v55  ;;  %v3962_v15 = vmul.f32 0.044715, %v3898_v35  ;;  %v3836_v26 = vmul.f32 %v10485_v32, %v10485_v32  ;;  %v10499_v44 = vadd.f32 %v3702_v52, %v10372_v30  ;;  %v3704_v57 = vpop.f32.mrb[113].mxu1 }
 0x8a6   : > { %v10501_v11 = vpop.eup %8362  ;;  %v3899_v1 = vmul.f32 %v3835_v59, %v10479_v8  ;;  %v10505_v10 = vadd.f32 %v3704_v57, %v10375_v16  ;;  %v3706_v37 = vpop.f32.mrb[114].mxu1  ;;  %v4272_v45 = vmul.f32 0.5, %v4208_v21 }
 0x8a7   : > { %v4089_v51 = vmul.f32 0.7978846, %v4025_v50  ;;  %v4026_v53 = vadd.f32 %v3962_v15, %v10466_v17  ;;  %v3900_v35 = vmul.f32 %v3836_v26, %v10485_v32  ;;  %v3837_v52 = vmul.f32 %v10499_v44, %v10499_v44  ;;  %v3708_v31 = vpop.f32.mrb[115].mxu1 }
 0x8a8   : > { %v3963_v5 = vmul.f32 0.044715, %v3899_v1  ;;  %v3838_v62 = vmul.f32 %v10505_v10, %v10505_v10  ;;  %v10514_v59 = vadd.f32 %v3706_v37, %v10372_v30  ;;  %v10517_v57 = vadd.f32 %v3708_v31, %v10375_v16 }
 0x8a9   : > { %8372 = vtanh.f32 %v4089_v51  ;;  %v4090_v29 = vmul.f32 0.7978846, %v4026_v53  ;;  %v3964_v21 = vmul.f32 0.044715, %v3900_v35  ;;  %v3901_v50 = vmul.f32 %v3837_v52, %v10499_v44 }
 0x8aa   : > { %v4027_v15 = vadd.f32 %v3963_v5, %v10479_v8  ;;  %v3902_v26 = vmul.f32 %v3838_v62, %v10505_v10  ;;  %v3839_v1 = vmul.f32 %v10514_v59, %v10514_v59  ;;  %v3840_v3 = vmul.f32 %v10517_v57, %v10517_v57 }
 0x8ab   : > { %v10526_v37 = vpop.eup %8364  ;;  %8374 = vtanh.f32 %v4090_v29  ;;  %v4028_v31 = vadd.f32 %v3964_v21, %v10485_v32  ;;  %v3965_v51 = vmul.f32 0.044715, %v3901_v50  ;;  %v4334_v53 = vmul.f32 %v4270_v41, %v10381_v46 }
 0x8ac   : > { %v10530_v35 = vpop.eup %8366  ;;  %v4091_v52 = vmul.f32 0.7978846, %v4027_v15  ;;  %v3966_v5 = vmul.f32 0.044715, %v3902_v26  ;;  %v3903_v62 = vmul.f32 %v3839_v1, %v10514_v59  ;;  %v3904_v38 = vmul.f32 %v3840_v3, %v10517_v57  ;;  %v3712_v43 = vpop.f32.mrb[116].mxu1 }
 0x8ad   : > { %v10534_v22 = vpop.eup %8368  ;;  %v4092_v12 = vmul.f32 0.7978846, %v4028_v31  ;;  %v4029_v54 = vadd.f32 %v3965_v51, %v10499_v44  ;;  %v4336_v29 = vmul.f32 %v4272_v45, %v10391_v34  ;;  %v10539_v21 = vadd.f32 %v3712_v43, %v10372_v30  ;;  %v3714_v46 = vpop.f32.mrb[117].mxu1 }
 0x8ae   : > { %v10541_v41 = vpop.eup %8370  ;;  %8376 = vtanh.f32 %v4091_v52  ;;  %v4030_v50 = vadd.f32 %v3966_v5, %v10505_v10  ;;  %v3967_v15 = vmul.f32 0.044715, %v3903_v62  ;;  %v3968_v26 = vmul.f32 0.044715, %v3904_v38  ;;  %v3716_v3 = vpop.f32.mrb[118].mxu1 }
 0x8af   : > { %8378 = vtanh.f32 %v4092_v12  ;;  %v4093_v1 = vmul.f32 0.7978846, %v4029_v54  ;;  %v4398_v25 = vpack.c.bf16 %v4336_v29, %v4334_v53  ;;  %v3841_v31 = vmul.f32 %v10539_v21, %v10539_v21  ;;  %v3718_v51 = vpop.f32.mrb[119].mxu1 }
 0x8b0   : > { %v4094_v45 = vmul.f32 0.7978846, %v4030_v50  ;;  %v4031_v43 = vadd.f32 %v3967_v15, %v10514_v59  ;;  %v4032_v34 = vadd.f32 %v3968_v26, %v10517_v57  ;;  %v10549_v27 = vadd.f32 %v3714_v46, %v10375_v16 }
 0x8b1   : > { %8380 = vtanh.f32 %v4093_v1  ;;  %4593 = vmatprep.mubr.bf16.mxu0 %v4398_v25  ;;  %v3905_v38 = vmul.f32 %v3841_v31, %v10539_v21  ;;  %v10553_v12 = vadd.f32 %v3716_v3, %v10372_v30  ;;  %v10556_v54 = vadd.f32 %v3718_v51, %v10375_v16 }
 0x8b2   : > { %8382 = vtanh.f32 %v4094_v45  ;;  %v4095_v53 = vmul.f32 0.7978846, %v4031_v43  ;;  %v4096_v52 = vmul.f32 0.7978846, %v4032_v34  ;;  %v12181_v5 = vpack.c.bf16 %v10476_v40, %v10469_v42 }
 0x8b3   : > { %v3842_v62 = vmul.f32 %v10549_v27, %v10549_v27  ;;  %v10563_v29 = vpop.eup %8372  ;;  %v3969_v25 = vmul.f32 0.044715, %v3905_v38  ;;  %v3843_v46 = vmul.f32 %v10553_v12, %v10553_v12  ;;  %v3844_v50 = vmul.f32 %v10556_v54, %v10556_v54 }
 0x8b4   : > { %4594 = vmatmul.mubr.bf16.vlgmr.msra.gmra.mrb[128].mxu0 %v12181_v5  ;;  %v4210_v15 = vadd.f32 1.0, %v10487_v36  ;;  %8384 = vtanh.f32 %v4095_v53  ;;  %v4212_v42 = vadd.f32 1.0, %v10501_v11  ;;  %v4209_v40 = vadd.f32 1.0, %v10481_v9  ;;  %v3722_v3 = vpop.f32.mrb[120].mxu1 }
 0x8b5   : > { %v3906_v26 = vmul.f32 %v3842_v62, %v10549_v27  ;;  %v10573_v1 = vpop.eup %8374  ;;  %8386 = vtanh.f32 %v4096_v52  ;;  %v4033_v31 = vadd.f32 %v3969_v25, %v10539_v21  ;;  %v3907_v51 = vmul.f32 %v3843_v46, %v10553_v12  ;;  %v3724_v43 = vpop.f32.mrb[121].mxu1 }
 0x8b6   : > { %v3908_v45 = vmul.f32 %v3844_v50, %v10556_v54  ;;  %v4274_v36 = vmul.f32 0.5, %v4210_v15  ;;  %v4276_v38 = vmul.f32 0.5, %v4212_v42  ;;  %v4211_v53 = vadd.f32 1.0, %v10493_v18  ;;  %v3726_v5 = vpop.f32.mrb[122].mxu1 }
 0x8b7   : > { %v3970_v34 = vmul.f32 0.044715, %v3906_v26  ;;  %v4097_v11 = vmul.f32 0.7978846, %v4033_v31  ;;  %v3971_v62 = vmul.f32 0.044715, %v3907_v51  ;;  %v10580_v23 = vadd.f32 %v3722_v3, %v10372_v30 }
 0x8b8   : > { %v3972_v9 = vmul.f32 0.044715, %v3908_v45  ;;  %v10582_v52 = vpop.eup %8376  ;;  %v4338_v46 = vmul.f32 %v4274_v36, %v10407_v60  ;;  %v4340_v50 = vmul.f32 %v4276_v38, %v10419_v56  ;;  %v4273_v26 = vmul.f32 0.5, %v4209_v40  ;;  %v3728_v15 = vpop.f32.mrb[123].mxu1 }
 0x8b9   : > { %v4034_v25 = vadd.f32 %v3970_v34, %v10549_v27  ;;  %v10587_v42 = vpop.eup %8378  ;;  %8388 = vtanh.f32 %v4097_v11  ;;  %v4035_v18 = vadd.f32 %v3971_v62, %v10553_v12  ;;  %v4275_v51 = vmul.f32 0.5, %v4211_v53 }
 0x8ba   : > { %v4036_v31 = vadd.f32 %v3972_v9, %v10556_v54  ;;  %v4400_v45 = vpack.c.bf16 %v4340_v50, %v4338_v46  ;;  %v4337_v7 = vmul.f32 %v4273_v26, %v10403_v6  ;;  %v3845_v34 = vmul.f32 %v10580_v23, %v10580_v23 }
 0x8bb   : > { %v4098_v3 = vmul.f32 0.7978846, %v4034_v25  ;;  %v10594_v60 = vpop.eup %8380  ;;  %v4099_v56 = vmul.f32 0.7978846, %v4035_v18  ;;  %v4339_v36 = vmul.f32 %v4275_v51, %v10413_v28  ;;  %v10598_v38 = vadd.f32 %v3724_v43, %v10375_v16 }
 0x8bc   : > { %v4100_v40 = vmul.f32 0.7978846, %v4036_v31  ;;  %v10600_v11 = vpop.eup %8382  ;;  %4601 = vmatprep.mubr.bf16.mxu0 %v4400_v45  ;;  %v3909_v53 = vmul.f32 %v3845_v34, %v10580_v23  ;;  %v10604_v6 = vadd.f32 %v3726_v5, %v10372_v30  ;;  %v10607_v62 = vadd.f32 %v3728_v15, %v10375_v16  ;;  %v3732_v9 = vpop.f32.mrb[124].mxu1 }
 0x8bd   : > { %8390 = vtanh.f32 %v4098_v3  ;;  %v4399_v25 = vpack.c.bf16 %v4339_v36, %v4337_v7  ;;  %v3846_v28 = vmul.f32 %v10598_v38, %v10598_v38  ;;  %v4214_v43 = vadd.f32 1.0, %v10530_v35  ;;  %v3734_v46 = vpop.f32.mrb[125].mxu1 }
 0x8be   : > { %8392 = vtanh.f32 %v4099_v56  ;;  %v10612_v50 = vpop.eup %8384  ;;  %v3973_v26 = vmul.f32 0.044715, %v3909_v53  ;;  %v3847_v5 = vmul.f32 %v10604_v6, %v10604_v6  ;;  %v3848_v15 = vmul.f32 %v10607_v62, %v10607_v62  ;;  %v3736_v18 = vpop.f32.mrb[126].mxu1 }
 0x8bf   : > { %8394 = vtanh.f32 %v4100_v40  ;;  %v10618_v31 = vpop.eup %8386  ;;  %4602 = vmatmul.mubr.bf16.gmra.mrb[132].mxu0 %v4399_v25  ;;  %v3910_v7 = vmul.f32 %v3846_v28, %v10598_v38  ;;  %v4216_v51 = vadd.f32 1.0, %v10541_v41  ;;  %v4278_v35 = vmul.f32 0.5, %v4214_v43  ;;  %v3738_v45 = vpop.f32.mrb[127].mxu1 }
 0x8c0   : > { %v4213_v3 = vadd.f32 1.0, %v10526_v37  ;;  %v4037_v34 = vadd.f32 %v3973_v26, %v10580_v23  ;;  %v3911_v56 = vmul.f32 %v3847_v5, %v10604_v6  ;;  %v3912_v40 = vmul.f32 %v3848_v15, %v10607_v62 }
 0x8c1   : > { %v4215_v36 = vadd.f32 1.0, %v10534_v22  ;;  %v3974_v53 = vmul.f32 0.044715, %v3910_v7  ;;  %v4280_v13 = vmul.f32 0.5, %v4216_v51  ;;  %v4342_v25 = vmul.f32 %v4278_v35, %v10435_v19 }
 0x8c2   : > { %v4277_v24 = vmul.f32 0.5, %v4213_v3  ;;  %v4101_v28 = vmul.f32 0.7978846, %v4037_v34  ;;  %v3975_v39 = vmul.f32 0.044715, %v3911_v56  ;;  %v10629_v43 = vadd.f32 %v3732_v9, %v10372_v30 }
 0x8c3   : > { %v3976_v41 = vmul.f32 0.044715, %v3912_v40  ;;  %v10631_v37 = vpop.eup %8388  ;;  %v4038_v26 = vadd.f32 %v3974_v53, %v10598_v38  ;;  %v4344_v5 = vmul.f32 %v4280_v13, %v10447_v14  ;;  %v4279_v15 = vmul.f32 0.5, %v4215_v36 }
 0x8c4   : > { %v4341_v22 = vmul.f32 %v4277_v24, %v10431_v2  ;;  %8396 = vtanh.f32 %v4101_v28  ;;  %v4039_v7 = vadd.f32 %v3975_v39, %v10604_v6  ;;  %v3849_v51 = vmul.f32 %v10629_v43, %v10629_v43 }
 0x8c5   : > { %v4040_v19 = vadd.f32 %v3976_v41, %v10607_v62  ;;  %v4102_v35 = vmul.f32 0.7978846, %v4038_v26  ;;  %v4402_v9 = vpack.c.bf16 %v4344_v5, %v4342_v25  ;;  %v4343_v3 = vmul.f32 %v4279_v15, %v10441_v4 }
 0x8c6   : > { %v10642_v34 = vadd.f32 %v3734_v46, %v10375_v16  ;;  %v4103_v13 = vmul.f32 0.7978846, %v4039_v7  ;;  %v3913_v2 = vmul.f32 %v3849_v51, %v10629_v43  ;;  %v10648_v39 = vadd.f32 %v3736_v18, %v10372_v30 }
 0x8c7   : > { %v10644_v56 = vpop.eup %8390  ;;  %v4104_v14 = vmul.f32 0.7978846, %v4040_v19  ;;  %8398 = vtanh.f32 %v4102_v35  ;;  %4609 = vmatprep.mubr.bf16.mxu0 %v4402_v9  ;;  %v4401_v40 = vpack.c.bf16 %v4343_v3, %v4341_v22  ;;  %v10655_v46 = vadd.f32 %v3738_v45, %v10375_v16 }
 0x8c8   : > { %v10650_v24 = vpop.eup %8392  ;;  %v3850_v4 = vmul.f32 %v10642_v34, %v10642_v34  ;;  %8400 = vtanh.f32 %v4103_v13  ;;  %v3977_v53 = vmul.f32 0.044715, %v3913_v2  ;;  %v3851_v25 = vmul.f32 %v10648_v39, %v10648_v39 }
 0x8c9   : > { %v8395_v36 = vpop.eup %8394  ;;  %v4218_v18 = vadd.f32 1.0, %v10573_v1  ;;  %8402 = vtanh.f32 %v4104_v14  ;;  %4610 = vmatmul.mubr.bf16.gmra.mrb[136].mxu0 %v4401_v40  ;;  %v3852_v41 = vmul.f32 %v10655_v46, %v10655_v46  ;;  %v4220_v26 = vadd.f32 1.0, %v10587_v42 }
 0x8ca   : > { %v3914_v28 = vmul.f32 %v3850_v4, %v10642_v34  ;;  %v4041_v45 = vadd.f32 %v3977_v53, %v10629_v43  ;;  %v3915_v5 = vmul.f32 %v3851_v25, %v10648_v39  ;;  %v4217_v22 = vadd.f32 1.0, %v10563_v29 }
 0x8cb   : > { %v4282_v15 = vmul.f32 0.5, %v4218_v18  ;;  %v3916_v19 = vmul.f32 %v3852_v41, %v10655_v46  ;;  %v4284_v1 = vmul.f32 0.5, %v4220_v26  ;;  %v4219_v51 = vadd.f32 1.0, %v10582_v52 }
 0x8cc   : > { %v3978_v7 = vmul.f32 0.044715, %v3914_v28  ;;  %v4105_v35 = vmul.f32 0.7978846, %v4041_v45  ;;  %v3979_v9 = vmul.f32 0.044715, %v3915_v5 }
 0x8cd   : > { %v4346_v3 = vmul.f32 %v4282_v15, %v10466_v17  ;;  %v4281_v13 = vmul.f32 0.5, %v4217_v22  ;;  %v3980_v14 = vmul.f32 0.044715, %v3916_v19  ;;  %v4348_v2 = vmul.f32 %v4284_v1, %v10485_v32 }
 0x8ce   : > { %v4042_v42 = vadd.f32 %v3978_v7, %v10642_v34  ;;  %v4283_v40 = vmul.f32 0.5, %v4219_v51  ;;  %v8397_v4 = vpop.eup %8396  ;;  %8404 = vtanh.f32 %v4105_v35  ;;  %v4043_v29 = vadd.f32 %v3979_v9, %v10648_v39 }
 0x8cf   : > { %v4345_v53 = vmul.f32 %v4281_v13, %v10459_v55  ;;  %v4222_v25 = vadd.f32 1.0, %v10600_v11  ;;  %v4044_v18 = vadd.f32 %v3980_v14, %v10655_v46  ;;  %v4404_v28 = vpack.c.bf16 %v4348_v2, %v4346_v3 }
 0x8d0   : > { %v4106_v52 = vmul.f32 0.7978846, %v4042_v42  ;;  %v4347_v17 = vmul.f32 %v4283_v40, %v10479_v8  ;;  %v4107_v41 = vmul.f32 0.7978846, %v4043_v29  ;;  %v4224_v26 = vadd.f32 1.0, %v10618_v31 }
 0x8d1   : > { %v4286_v45 = vmul.f32 0.5, %v4222_v25  ;;  %v4221_v32 = vadd.f32 1.0, %v10594_v60  ;;  %v8399_v5 = vpop.eup %8398  ;;  %v4108_v15 = vmul.f32 0.7978846, %v4044_v18  ;;  %4617 = vmatprep.mubr.bf16.mxu0 %v4404_v28  ;;  %v4223_v55 = vadd.f32 1.0, %v10612_v50 }
 0x8d2   : > { %8406 = vtanh.f32 %v4106_v52  ;;  %v4403_v22 = vpack.c.bf16 %v4347_v17, %v4345_v53  ;;  %v8401_v11 = vpop.eup %8400  ;;  %v4288_v7 = vmul.f32 0.5, %v4224_v26  ;;  %v4226_v51 = vadd.f32 1.0, %v10644_v56 }
 0x8d3   : > { %8408 = vtanh.f32 %v4107_v41  ;;  %v4350_v19 = vmul.f32 %v4286_v45, %v10505_v10  ;;  %v4285_v1 = vmul.f32 0.5, %v4221_v32  ;;  %v8403_v8 = vpop.eup %8402  ;;  %v4287_v31 = vmul.f32 0.5, %v4223_v55 }
 0x8d4   : > { %8410 = vtanh.f32 %v4108_v15  ;;  %4618 = vmatmul.mubr.bf16.gmra.mrb[140].mxu0 %v4403_v22  ;;  %v4228_v60 = vadd.f32 1.0, %v8395_v36  ;;  %v4352_v35 = vmul.f32 %v4288_v7, %v10517_v57  ;;  %v4225_v3 = vadd.f32 1.0, %v10631_v37 }
 0x8d5   : > { %v4349_v9 = vmul.f32 %v4285_v1, %v10499_v44  ;;  %v4227_v50 = vadd.f32 1.0, %v10650_v24  ;;  %v4351_v13 = vmul.f32 %v4287_v31, %v10514_v59  ;;  %v4290_v42 = vmul.f32 0.5, %v4226_v51 }
 0x8d6   : > { %v4292_v10 = vmul.f32 0.5, %v4228_v60  ;;  %v4230_v14 = vadd.f32 1.0, %v8399_v5  ;;  %v4406_v2 = vpack.c.bf16 %v4352_v35, %v4350_v19  ;;  %v4289_v40 = vmul.f32 0.5, %v4225_v3 }
 0x8d7   : > { %v4291_v29 = vmul.f32 0.5, %v4227_v50  ;;  %v4232_v53 = vadd.f32 1.0, %v8403_v8  ;;  %v4405_v25 = vpack.c.bf16 %v4351_v13, %v4349_v9  ;;  %v4354_v56 = vmul.f32 %v4290_v42, %v10549_v27 }
 0x8d8   : > { %v4356_v57 = vmul.f32 %v4292_v10, %v10556_v54  ;;  %v4294_v36 = vmul.f32 0.5, %v4230_v14  ;;  %v8405_v44 = vpop.eup %8404  ;;  %4625 = vmatprep.mubr.bf16.mxu0 %v4406_v2  ;;  %v4353_v37 = vmul.f32 %v4289_v40, %v10539_v21  ;;  %v4229_v52 = vadd.f32 1.0, %v8397_v4 }
 0x8d9   : > { %v4355_v24 = vmul.f32 %v4291_v29, %v10553_v12  ;;  %v4296_v59 = vmul.f32 0.5, %v4232_v53  ;;  %v4231_v28 = vadd.f32 1.0, %v8401_v11  ;;  %v4233_v17 = vadd.f32 1.0, %v8405_v44 }
 0x8da   : > { %v4408_v18 = vpack.c.bf16 %v4356_v57, %v4354_v56  ;;  %v4358_v26 = vmul.f32 %v4294_v36, %v10598_v38  ;;  %v4293_v27 = vmul.f32 0.5, %v4229_v52 }
 0x8db   : > { %v4407_v41 = vpack.c.bf16 %v4355_v24, %v4353_v37  ;;  %v4360_v45 = vmul.f32 %v4296_v59, %v10607_v62  ;;  %v4295_v54 = vmul.f32 0.5, %v4231_v28  ;;  %v4297_v11 = vmul.f32 0.5, %v4233_v17 }
 0x8dc   : > { %v8407_v32 = vpop.eup %8406  ;;  %4626 = vmatmul.mubr.bf16.gmra.mrb[144].mxu0 %v4405_v25  ;;  %v4357_v12 = vmul.f32 %v4293_v27, %v10580_v23 }
 0x8dd   : > { %v8409_v5 = vpop.eup %8408  ;;  %4633 = vmatprep.mubr.bf16.mxu0 %v4408_v18  ;;  %v4410_v15 = vpack.c.bf16 %v4360_v45, %v4358_v26  ;;  %v4234_v21 = vadd.f32 1.0, %v8407_v32  ;;  %v4359_v4 = vmul.f32 %v4295_v54, %v10604_v6  ;;  %v4361_v8 = vmul.f32 %v4297_v11, %v10629_v43 }
 0x8de   : > { %v8411_v22 = vpop.eup %8410  ;;  %v4235_v55 = vadd.f32 1.0, %v8409_v5 }
 0x8df   : > { %v4236_v7 = vadd.f32 1.0, %v8411_v22  ;;  %v4298_v19 = vmul.f32 0.5, %v4234_v21  ;;  %v4409_v38 = vpack.c.bf16 %v4359_v4, %v4357_v12 }
 0x8e0   : > { %v4299_v1 = vmul.f32 0.5, %v4235_v55 }
 0x8e1   : > { %v4300_v62 = vmul.f32 0.5, %v4236_v7  ;;  %v4362_v51 = vmul.f32 %v4298_v19, %v10642_v34 }
 0x8e2   : > { %v4363_v31 = vmul.f32 %v4299_v1, %v10648_v39 }
 0x8e3   : > { %v4364_v60 = vmul.f32 %v4300_v62, %v10655_v46 }
 0x8e4   : > { %4634 = vmatmul.mubr.bf16.gmra.mrb[148].mxu0 %v4407_v41  ;;  %v4411_v35 = vpack.c.bf16 %v4363_v31, %v4361_v8 }
 0x8e5   : > { %4641 = vmatprep.mubr.bf16.mxu0 %v4410_v15  ;;  %v4412_v23 = vpack.c.bf16 %v4364_v60, %v4362_v51 }
 0x8ec   : > { %4642 = vmatmul.mubr.bf16.gmra.mrb[152].mxu0 %v4409_v38 }
 0x8ed   : > { %4649 = vmatprep.mubr.bf16.mxu0 %v4412_v23 }
 0x8f4   : > { %4650 = vmatmul.mubr.bf16.gmra.mrb[156].mxu0 %v4411_v35 }
 0x90c   : > { %v3742_v6 = vpop.f32.mrb[128].mxu1 }
 0x90d   : > { %v10700_v9 = vadd.f32 %v3742_v6, %v10372_v30  ;;  %v3744_v3 = vpop.f32.mrb[129].mxu1 }
 0x90e   : > { %v10703_v43 = vadd.f32 %v3744_v3, %v10375_v16  ;;  %v3746_v39 = vpop.f32.mrb[130].mxu1 }
 0x90f   : > { %v3853_v34 = vmul.f32 %v10700_v9, %v10700_v9  ;;  %v10708_v46 = vadd.f32 %v3746_v39, %v10372_v30  ;;  %v3748_v50 = vpop.f32.mrb[131].mxu1 }
 0x910   : > { %v3854_v13 = vmul.f32 %v10703_v43, %v10703_v43  ;;  %v10713_v42 = vadd.f32 %v3748_v50, %v10375_v16 }
 0x911   : > { %v3917_v10 = vmul.f32 %v3853_v34, %v10700_v9  ;;  %v3855_v14 = vmul.f32 %v10708_v46, %v10708_v46 }
 0x912   : > { %v3918_v2 = vmul.f32 %v3854_v13, %v10703_v43  ;;  %v3856_v40 = vmul.f32 %v10713_v42, %v10713_v42 }
 0x913   : > { %v3981_v29 = vmul.f32 0.044715, %v3917_v10  ;;  %v3919_v53 = vmul.f32 %v3855_v14, %v10708_v46 }
 0x914   : > { %v3982_v25 = vmul.f32 0.044715, %v3918_v2  ;;  %v3920_v56 = vmul.f32 %v3856_v40, %v10713_v42  ;;  %v3752_v57 = vpop.f32.mrb[132].mxu1 }
 0x915   : > { %v4045_v36 = vadd.f32 %v3981_v29, %v10700_v9  ;;  %v3983_v44 = vmul.f32 0.044715, %v3919_v53  ;;  %v10725_v37 = vadd.f32 %v3752_v57, %v10372_v30  ;;  %v3754_v24 = vpop.f32.mrb[133].mxu1 }
 0x916   : > { %v4046_v59 = vadd.f32 %v3982_v25, %v10703_v43  ;;  %v3984_v52 = vmul.f32 0.044715, %v3920_v56  ;;  %v10729_v18 = vadd.f32 %v3754_v24, %v10375_v16  ;;  %v3756_v28 = vpop.f32.mrb[134].mxu1 }
 0x917   : > { %v4109_v17 = vmul.f32 0.7978846, %v4045_v36  ;;  %v4047_v41 = vadd.f32 %v3983_v44, %v10708_v46  ;;  %v3857_v26 = vmul.f32 %v10725_v37, %v10725_v37  ;;  %v10735_v45 = vadd.f32 %v3756_v28, %v10372_v30  ;;  %v3758_v27 = vpop.f32.mrb[135].mxu1 }
 0x918   : > { %v4110_v32 = vmul.f32 0.7978846, %v4046_v59  ;;  %v4048_v54 = vadd.f32 %v3984_v52, %v10713_v42  ;;  %v3858_v5 = vmul.f32 %v10729_v18, %v10729_v18  ;;  %v10741_v15 = vadd.f32 %v3758_v27, %v10375_v16 }
 0x919   : > { %8412 = vtanh.f32 %v4109_v17  ;;  %v4111_v21 = vmul.f32 0.7978846, %v4047_v41  ;;  %v3921_v22 = vmul.f32 %v3857_v26, %v10725_v37  ;;  %v3859_v12 = vmul.f32 %v10735_v45, %v10735_v45 }
 0x91a   : > { %8414 = vtanh.f32 %v4110_v32  ;;  %v4112_v4 = vmul.f32 0.7978846, %v4048_v54  ;;  %v3922_v55 = vmul.f32 %v3858_v5, %v10729_v18  ;;  %v3860_v11 = vmul.f32 %v10741_v15, %v10741_v15 }
 0x91b   : > { %8416 = vtanh.f32 %v4111_v21  ;;  %v3985_v7 = vmul.f32 0.044715, %v3921_v22  ;;  %v3923_v19 = vmul.f32 %v3859_v12, %v10735_v45 }
 0x91c   : > { %v3986_v38 = vmul.f32 0.044715, %v3922_v55  ;;  %v3924_v1 = vmul.f32 %v3860_v11, %v10741_v15  ;;  %v3762_v62 = vpop.f32.mrb[136].mxu1  ;;  %8418 = vtanh.f32 %v4112_v4 }
 0x91d   : > { %v4049_v8 = vadd.f32 %v3985_v7, %v10725_v37  ;;  %v3987_v31 = vmul.f32 0.044715, %v3923_v19  ;;  %v10753_v51 = vadd.f32 %v3762_v62, %v10372_v30  ;;  %v3764_v60 = vpop.f32.mrb[137].mxu1 }
 0x91e   : > { %v4050_v35 = vadd.f32 %v3986_v38, %v10729_v18  ;;  %v3988_v23 = vmul.f32 0.044715, %v3924_v1  ;;  %v10757_v6 = vadd.f32 %v3764_v60, %v10375_v16  ;;  %v3766_v3 = vpop.f32.mrb[138].mxu1 }
 0x91f   : > { %v4113_v39 = vmul.f32 0.7978846, %v4049_v8  ;;  %v4051_v34 = vadd.f32 %v3987_v31, %v10735_v45  ;;  %v3861_v50 = vmul.f32 %v10753_v51, %v10753_v51  ;;  %v10763_v13 = vadd.f32 %v3766_v3, %v10372_v30  ;;  %v3768_v10 = vpop.f32.mrb[139].mxu1 }
 0x920   : > { %v4114_v14 = vmul.f32 0.7978846, %v4050_v35  ;;  %v4052_v2 = vadd.f32 %v3988_v23, %v10741_v15  ;;  %v3862_v40 = vmul.f32 %v10757_v6, %v10757_v6  ;;  %v10769_v29 = vadd.f32 %v3768_v10, %v10375_v16 }
 0x921   : > { %8420 = vtanh.f32 %v4113_v39  ;;  %v4115_v53 = vmul.f32 0.7978846, %v4051_v34  ;;  %v3925_v25 = vmul.f32 %v3861_v50, %v10753_v51  ;;  %v3863_v56 = vmul.f32 %v10763_v13, %v10763_v13 }
 0x922   : > { %8422 = vtanh.f32 %v4114_v14  ;;  %v4116_v57 = vmul.f32 0.7978846, %v4052_v2  ;;  %v3926_v36 = vmul.f32 %v3862_v40, %v10757_v6  ;;  %v3864_v44 = vmul.f32 %v10769_v29, %v10769_v29 }
 0x923   : > { %v8413_v24 = vpop.eup %8412  ;;  %8424 = vtanh.f32 %v4115_v53  ;;  %v3989_v59 = vmul.f32 0.044715, %v3925_v25  ;;  %v3927_v52 = vmul.f32 %v3863_v56, %v10763_v13 }
 0x924   : > { %v8415_v28 = vpop.eup %8414  ;;  %8426 = vtanh.f32 %v4116_v57  ;;  %v3990_v17 = vmul.f32 0.044715, %v3926_v36  ;;  %v3928_v41 = vmul.f32 %v3864_v44, %v10769_v29  ;;  %v3772_v26 = vpop.f32.mrb[140].mxu1  ;;  %v10779_v27 = vadd.f32 1.0, %v8413_v24 }
 0x925   : > { %v8417_v32 = vpop.eup %8416  ;;  %v4053_v54 = vadd.f32 %v3989_v59, %v10753_v51  ;;  %v3991_v5 = vmul.f32 0.044715, %v3927_v52  ;;  %v10783_v21 = vadd.f32 %v3772_v26, %v10372_v30  ;;  %v3774_v22 = vpop.f32.mrb[141].mxu1  ;;  %v4238_v12 = vadd.f32 1.0, %v8415_v28 }
 0x926   : > { %v4054_v4 = vadd.f32 %v3990_v17, %v10757_v6  ;;  %v3992_v55 = vmul.f32 0.044715, %v3928_v41  ;;  %v10787_v11 = vadd.f32 %v3774_v22, %v10375_v16  ;;  %v3776_v7 = vpop.f32.mrb[142].mxu1  ;;  %v10789_v19 = vadd.f32 1.0, %v8417_v32  ;;  %v8419_v60 = vpop.eup %8418 }
 0x927   : > { %v4117_v38 = vmul.f32 0.7978846, %v4053_v54  ;;  %v4055_v1 = vadd.f32 %v3991_v5, %v10763_v13  ;;  %v3865_v62 = vmul.f32 %v10783_v21, %v10783_v21  ;;  %v10795_v8 = vadd.f32 %v3776_v7, %v10372_v30  ;;  %v3778_v31 = vpop.f32.mrb[143].mxu1 }
 0x928   : > { %v4118_v35 = vmul.f32 0.7978846, %v4054_v4  ;;  %v4056_v23 = vadd.f32 %v3992_v55, %v10769_v29  ;;  %v3866_v3 = vmul.f32 %v10787_v11, %v10787_v11  ;;  %v10801_v39 = vadd.f32 %v3778_v31, %v10375_v16 }
 0x929   : > { %8428 = vtanh.f32 %v4117_v38  ;;  %v4119_v34 = vmul.f32 0.7978846, %v4055_v1  ;;  %v3929_v50 = vmul.f32 %v3865_v62, %v10783_v21  ;;  %v3867_v10 = vmul.f32 %v10795_v8, %v10795_v8 }
 0x92a   : > { %8430 = vtanh.f32 %v4118_v35  ;;  %v4120_v14 = vmul.f32 0.7978846, %v4056_v23  ;;  %v3930_v2 = vmul.f32 %v3866_v3, %v10787_v11  ;;  %v3868_v40 = vmul.f32 %v10801_v39, %v10801_v39 }
 0x92b   : > { %v10809_v53 = vpop.eup %8420  ;;  %8432 = vtanh.f32 %v4119_v34  ;;  %v3993_v25 = vmul.f32 0.044715, %v3929_v50  ;;  %v3931_v56 = vmul.f32 %v3867_v10, %v10795_v8  ;;  %v4240_v57 = vadd.f32 1.0, %v8419_v60 }
 0x92c   : > { %v10812_v36 = vpop.eup %8422  ;;  %8434 = vtanh.f32 %v4120_v14  ;;  %v3994_v44 = vmul.f32 0.044715, %v3930_v2  ;;  %v3932_v24 = vmul.f32 %v3868_v40, %v10801_v39  ;;  %v3782_v59 = vpop.f32.mrb[144].mxu1  ;;  %v4302_v52 = vmul.f32 0.5, %v4238_v12 }
 0x92d   : > { %v10815_v28 = vpop.eup %8424  ;;  %v4057_v17 = vadd.f32 %v3993_v25, %v10783_v21  ;;  %v3995_v41 = vmul.f32 0.044715, %v3931_v56  ;;  %v10819_v26 = vadd.f32 %v3782_v59, %v10372_v30  ;;  %v3784_v32 = vpop.f32.mrb[145].mxu1  ;;  %v4304_v54 = vmul.f32 0.5, %v4240_v57 }
 0x92e   : > { %v10821_v5 = vpop.eup %8426  ;;  %v4058_v22 = vadd.f32 %v3994_v44, %v10787_v11  ;;  %v3996_v4 = vmul.f32 0.044715, %v3932_v24  ;;  %v10825_v55 = vadd.f32 %v3784_v32, %v10375_v16  ;;  %v3786_v7 = vpop.f32.mrb[146].mxu1  ;;  %v4366_v12 = vmul.f32 %v4302_v52, %v10703_v43 }
 0x92f   : > { %v4121_v38 = vmul.f32 0.7978846, %v4057_v17  ;;  %v4059_v1 = vadd.f32 %v3995_v41, %v10795_v8  ;;  %v3869_v62 = vmul.f32 %v10819_v26, %v10819_v26  ;;  %v10832_v31 = vadd.f32 %v3786_v7, %v10372_v30  ;;  %v3788_v60 = vpop.f32.mrb[147].mxu1 }
 0x930   : > { %v4122_v35 = vmul.f32 0.7978846, %v4058_v22  ;;  %v4060_v23 = vadd.f32 %v3996_v4, %v10801_v39  ;;  %v3870_v3 = vmul.f32 %v10825_v55, %v10825_v55  ;;  %v10838_v34 = vadd.f32 %v3788_v60, %v10375_v16 }
 0x931   : > { %8436 = vtanh.f32 %v4121_v38  ;;  %v4123_v43 = vmul.f32 0.7978846, %v4059_v1  ;;  %v3933_v50 = vmul.f32 %v3869_v62, %v10819_v26  ;;  %v3871_v10 = vmul.f32 %v10832_v31, %v10832_v31 }
 0x932   : > { %8438 = vtanh.f32 %v4122_v35  ;;  %v4124_v14 = vmul.f32 0.7978846, %v4060_v23  ;;  %v3934_v2 = vmul.f32 %v3870_v3, %v10825_v55  ;;  %v3872_v40 = vmul.f32 %v10838_v34, %v10838_v34 }
 0x933   : > { %v10846_v25 = vpop.eup %8428  ;;  %8440 = vtanh.f32 %v4123_v43  ;;  %v3997_v56 = vmul.f32 0.044715, %v3933_v50  ;;  %v3935_v57 = vmul.f32 %v3871_v10, %v10832_v31  ;;  %v4368_v44 = vmul.f32 %v4304_v54, %v10713_v42 }
 0x934   : > { %v10850_v24 = vpop.eup %8430  ;;  %8442 = vtanh.f32 %v4124_v14  ;;  %v3998_v59 = vmul.f32 0.044715, %v3934_v2  ;;  %v3936_v52 = vmul.f32 %v3872_v40, %v10838_v34  ;;  %v4301_v17 = vmul.f32 0.5, %v10779_v27  ;;  %v3792_v41 = vpop.f32.mrb[148].mxu1 }
 0x935   : > { %v10854_v32 = vpop.eup %8432  ;;  %v4061_v22 = vadd.f32 %v3997_v56, %v10819_v26  ;;  %v3999_v4 = vmul.f32 0.044715, %v3935_v57  ;;  %v4414_v7 = vpack.c.bf16 %v4368_v44, %v4366_v12  ;;  %v4303_v38 = vmul.f32 0.5, %v10789_v19  ;;  %v3794_v1 = vpop.f32.mrb[149].mxu1 }
 0x936   : > { %v10858_v62 = vpop.eup %8434  ;;  %v4062_v42 = vadd.f32 %v3998_v59, %v10825_v55  ;;  %v4000_v54 = vmul.f32 0.044715, %v3936_v52  ;;  %v4365_v60 = vmul.f32 %v4301_v17, %v10700_v9  ;;  %v10863_v35 = vadd.f32 %v3792_v41, %v10372_v30  ;;  %v3796_v27 = vpop.f32.mrb[150].mxu1 }
 0x937   : > { %v4125_v23 = vmul.f32 0.7978846, %v4061_v22  ;;  %v4063_v3 = vadd.f32 %v3999_v4, %v10832_v31  ;;  %4657 = vmatprep.mubr.bf16.mxu0 %v4414_v7  ;;  %v4367_v12 = vmul.f32 %v4303_v38, %v10708_v46  ;;  %v10868_v19 = vadd.f32 %v3794_v1, %v10375_v16  ;;  %v3798_v43 = vpop.f32.mrb[151].mxu1 }
 0x938   : > { %v4126_v50 = vmul.f32 0.7978846, %v4062_v42  ;;  %v4064_v10 = vadd.f32 %v4000_v54, %v10838_v34  ;;  %v3873_v9 = vmul.f32 %v10863_v35, %v10863_v35  ;;  %v10874_v14 = vadd.f32 %v3796_v27, %v10372_v30 }
 0x939   : > { %8444 = vtanh.f32 %v4125_v23  ;;  %v4127_v2 = vmul.f32 0.7978846, %v4063_v3  ;;  %v4413_v40 = vpack.c.bf16 %v4367_v12, %v4365_v60  ;;  %v3874_v56 = vmul.f32 %v10868_v19, %v10868_v19 }
 0x93a   : > { %8446 = vtanh.f32 %v4126_v50  ;;  %v4128_v46 = vmul.f32 0.7978846, %v4064_v10  ;;  %v3937_v57 = vmul.f32 %v3873_v9, %v10863_v35  ;;  %v3875_v44 = vmul.f32 %v10874_v14, %v10874_v14 }
 0x93b   : > { %v10881_v59 = vpop.eup %8436  ;;  %8448 = vtanh.f32 %v4127_v2  ;;  %4658 = vmatmul.mubr.bf16.gmra.mrb[160].mxu0 %v4413_v40  ;;  %v3938_v52 = vmul.f32 %v3874_v56, %v10868_v19  ;;  %v10885_v17 = vadd.f32 %v3798_v43, %v10375_v16  ;;  %v4242_v41 = vadd.f32 1.0, %v10812_v36 }
 0x93c   : > { %v10888_v22 = vpop.eup %8438  ;;  %8450 = vtanh.f32 %v4128_v46  ;;  %v4001_v4 = vmul.f32 0.044715, %v3937_v57  ;;  %v3939_v7 = vmul.f32 %v3875_v44, %v10874_v14  ;;  %v4244_v38 = vadd.f32 1.0, %v10821_v5  ;;  %v3802_v1 = vpop.f32.mrb[152].mxu1 }
 0x93d   : > { %v10892_v42 = vpop.eup %8440  ;;  %v4002_v54 = vmul.f32 0.044715, %v3938_v52  ;;  %v3876_v60 = vmul.f32 %v10885_v17, %v10885_v17  ;;  %v4306_v27 = vmul.f32 0.5, %v4242_v41  ;;  %v4241_v23 = vadd.f32 1.0, %v10809_v53  ;;  %v3804_v3 = vpop.f32.mrb[153].mxu1 }
 0x93e   : > { %v10897_v36 = vpop.eup %8442  ;;  %v4065_v12 = vadd.f32 %v4001_v4, %v10863_v35  ;;  %v4003_v43 = vmul.f32 0.044715, %v3939_v7  ;;  %v4308_v50 = vmul.f32 0.5, %v4244_v38  ;;  %v4243_v10 = vadd.f32 1.0, %v10815_v28  ;;  %v3806_v5 = vpop.f32.mrb[154].mxu1 }
 0x93f   : > { %v4066_v9 = vadd.f32 %v4002_v54, %v10868_v19  ;;  %v3940_v2 = vmul.f32 %v3876_v60, %v10885_v17  ;;  %v4370_v40 = vmul.f32 %v4306_v27, %v10729_v18  ;;  %v4305_v56 = vmul.f32 0.5, %v4241_v23  ;;  %v3808_v46 = vpop.f32.mrb[155].mxu1 }
 0x940   : > { %v4129_v57 = vmul.f32 0.7978846, %v4065_v12  ;;  %v4067_v53 = vadd.f32 %v4003_v43, %v10874_v14  ;;  %v4372_v44 = vmul.f32 %v4308_v50, %v10741_v15  ;;  %v4307_v52 = vmul.f32 0.5, %v4243_v10 }
 0x941   : > { %v4130_v41 = vmul.f32 0.7978846, %v4066_v9  ;;  %v4004_v4 = vmul.f32 0.044715, %v3940_v2  ;;  %v4369_v7 = vmul.f32 %v4305_v56, %v10725_v37  ;;  %v10908_v28 = vadd.f32 %v3802_v1, %v10372_v30 }
 0x942   : > { %8452 = vtanh.f32 %v4129_v57  ;;  %v4131_v38 = vmul.f32 0.7978846, %v4067_v53  ;;  %v4416_v54 = vpack.c.bf16 %v4372_v44, %v4370_v40  ;;  %v4371_v18 = vmul.f32 %v4307_v52, %v10735_v45 }
 0x943   : > { %v10911_v60 = vpop.eup %8444  ;;  %8454 = vtanh.f32 %v4130_v41  ;;  %v4068_v27 = vadd.f32 %v4004_v4, %v10885_v17  ;;  %v3877_v15 = vmul.f32 %v10908_v28, %v10908_v28  ;;  %v10917_v23 = vadd.f32 %v3804_v3, %v10375_v16 }
 0x944   : > { %v10919_v37 = vpop.eup %8446  ;;  %8456 = vtanh.f32 %v4131_v38  ;;  %4665 = vmatprep.mubr.bf16.mxu0 %v4416_v54  ;;  %v4415_v1 = vpack.c.bf16 %v4371_v18, %v4369_v7  ;;  %v10922_v12 = vadd.f32 %v3806_v5, %v10372_v30  ;;  %v10925_v45 = vadd.f32 %v3808_v46, %v10375_v16  ;;  %v3812_v43 = vpop.f32.mrb[156].mxu1 }
 0x945   : > { %v10927_v50 = vpop.eup %8448  ;;  %v4132_v10 = vmul.f32 0.7978846, %v4068_v27  ;;  %v3941_v9 = vmul.f32 %v3877_v15, %v10908_v28  ;;  %v3878_v3 = vmul.f32 %v10917_v23, %v10917_v23  ;;  %v4246_v2 = vadd.f32 1.0, %v10850_v24  ;;  %v3814_v40 = vpop.f32.mrb[157].mxu1 }
 0x946   : > { %v10933_v56 = vpop.eup %8450  ;;  %4666 = vmatmul.mubr.bf16.gmra.mrb[164].mxu0 %v4415_v1  ;;  %v3879_v5 = vmul.f32 %v10922_v12, %v10922_v12  ;;  %v3880_v46 = vmul.f32 %v10925_v45, %v10925_v45  ;;  %v4248_v57 = vadd.f32 1.0, %v10858_v62  ;;  %v4245_v53 = vadd.f32 1.0, %v10846_v25  ;;  %v3816_v44 = vpop.f32.mrb[158].mxu1 }
 0x947   : > { %8458 = vtanh.f32 %v4132_v10  ;;  %v4005_v52 = vmul.f32 0.044715, %v3941_v9  ;;  %v3942_v41 = vmul.f32 %v3878_v3, %v10917_v23  ;;  %v4310_v24 = vmul.f32 0.5, %v4246_v2  ;;  %v3818_v4 = vpop.f32.mrb[159].mxu1 }
 0x948   : > { %v3943_v7 = vmul.f32 %v3879_v5, %v10922_v12  ;;  %v3944_v38 = vmul.f32 %v3880_v46, %v10925_v45  ;;  %v4312_v54 = vmul.f32 0.5, %v4248_v57  ;;  %v4247_v18 = vadd.f32 1.0, %v10854_v32 }
 0x949   : > { %v4069_v27 = vadd.f32 %v4005_v52, %v10908_v28  ;;  %v4006_v15 = vmul.f32 0.044715, %v3942_v41  ;;  %v4374_v62 = vmul.f32 %v4310_v24, %v10757_v6  ;;  %v4309_v25 = vmul.f32 0.5, %v4245_v53 }
 0x94a   : > { %v4007_v1 = vmul.f32 0.044715, %v3943_v7  ;;  %v4008_v10 = vmul.f32 0.044715, %v3944_v38  ;;  %v4376_v9 = vmul.f32 %v4312_v54, %v10769_v29  ;;  %v4311_v3 = vmul.f32 0.5, %v4247_v18 }
 0x94b   : > { %v4133_v2 = vmul.f32 0.7978846, %v4069_v27  ;;  %v4070_v0 = vadd.f32 %v4006_v15, %v10917_v23  ;;  %v4373_v5 = vmul.f32 %v4309_v25, %v10753_v51  ;;  %v10951_v46 = vadd.f32 %v3812_v43, %v10372_v30 }
 0x94c   : > { %v10953_v32 = vpop.eup %8452  ;;  %v4071_v57 = vadd.f32 %v4007_v1, %v10922_v12  ;;  %v4072_v6 = vadd.f32 %v4008_v10, %v10925_v45  ;;  %v4418_v53 = vpack.c.bf16 %v4376_v9, %v4374_v62  ;;  %v4375_v52 = vmul.f32 %v4311_v3, %v10763_v13 }
 0x94d   : > { %v10958_v41 = vpop.eup %8454  ;;  %8460 = vtanh.f32 %v4133_v2  ;;  %v4134_v29 = vmul.f32 0.7978846, %v4070_v0  ;;  %v3881_v24 = vmul.f32 %v10951_v46, %v10951_v46  ;;  %v10963_v51 = vadd.f32 %v3814_v40, %v10375_v16 }
 0x94e   : > { %v10965_v43 = vpop.eup %8456  ;;  %v4135_v7 = vmul.f32 0.7978846, %v4071_v57  ;;  %v4136_v38 = vmul.f32 0.7978846, %v4072_v6  ;;  %4673 = vmatprep.mubr.bf16.mxu0 %v4418_v53  ;;  %v4417_v54 = vpack.c.bf16 %v4375_v52, %v4373_v5  ;;  %v10968_v18 = vadd.f32 %v3816_v44, %v10372_v30 }
 0x94f   : > { %8462 = vtanh.f32 %v4134_v29  ;;  %v3945_v13 = vmul.f32 %v3881_v24, %v10951_v46  ;;  %v3882_v0 = vmul.f32 %v10963_v51, %v10963_v51  ;;  %v10974_v27 = vadd.f32 %v3818_v4, %v10375_v16 }
 0x950   : > { %8464 = vtanh.f32 %v4135_v7  ;;  %4674 = vmatmul.mubr.bf16.gmra.mrb[168].mxu0 %v4417_v54  ;;  %v3883_v40 = vmul.f32 %v10968_v18, %v10968_v18  ;;  %v4250_v15 = vadd.f32 1.0, %v10888_v22  ;;  %v4252_v62 = vadd.f32 1.0, %v10897_v36 }
 0x951   : > { %v8459_v30 = vpop.eup %8458  ;;  %8466 = vtanh.f32 %v4136_v38  ;;  %v4009_v44 = vmul.f32 0.044715, %v3945_v13  ;;  %v3946_v25 = vmul.f32 %v3882_v0, %v10963_v51  ;;  %v3884_v1 = vmul.f32 %v10974_v27, %v10974_v27 }
 0x952   : > { %v3947_v16 = vmul.f32 %v3883_v40, %v10968_v18  ;;  %v4314_v4 = vmul.f32 0.5, %v4250_v15  ;;  %v4316_v10 = vmul.f32 0.5, %v4252_v62  ;;  %v4249_v9 = vadd.f32 1.0, %v10881_v59 }
 0x953   : > { %v4073_v3 = vadd.f32 %v4009_v44, %v10951_v46  ;;  %v4010_v2 = vmul.f32 0.044715, %v3946_v25  ;;  %v3948_v22 = vmul.f32 %v3884_v1, %v10974_v27  ;;  %v4251_v36 = vadd.f32 1.0, %v10892_v42 }
 0x954   : > { %v4011_v5 = vmul.f32 0.044715, %v3947_v16  ;;  %v4378_v57 = vmul.f32 %v4314_v4, %v10787_v11  ;;  %v4380_v6 = vmul.f32 %v4316_v10, %v10801_v39  ;;  %v4313_v53 = vmul.f32 0.5, %v4249_v9 }
 0x955   : > { %v4137_v52 = vmul.f32 0.7978846, %v4073_v3  ;;  %v4074_v29 = vadd.f32 %v4010_v2, %v10963_v51  ;;  %v4012_v24 = vmul.f32 0.044715, %v3948_v22  ;;  %v4315_v7 = vmul.f32 0.5, %v4251_v36 }
 0x956   : > { %v4075_v59 = vadd.f32 %v4011_v5, %v10968_v18  ;;  %v4420_v38 = vpack.c.bf16 %v4380_v6, %v4378_v57  ;;  %v4377_v54 = vmul.f32 %v4313_v53, %v10783_v21  ;;  %v4254_v13 = vadd.f32 1.0, %v10919_v37 }
 0x957   : > { %v8461_v0 = vpop.eup %8460  ;;  %8468 = vtanh.f32 %v4137_v52  ;;  %v4138_v42 = vmul.f32 0.7978846, %v4074_v29  ;;  %v4076_v11 = vadd.f32 %v4012_v24, %v10974_v27  ;;  %v4379_v39 = vmul.f32 %v4315_v7, %v10795_v8 }
 0x958   : > { %v4139_v40 = vmul.f32 0.7978846, %v4075_v59  ;;  %4681 = vmatprep.mubr.bf16.mxu0 %v4420_v38  ;;  %v4256_v15 = vadd.f32 1.0, %v10933_v56  ;;  %v4318_v62 = vmul.f32 0.5, %v4254_v13  ;;  %v4253_v44 = vadd.f32 1.0, %v10911_v60 }
 0x959   : > { %v8463_v25 = vpop.eup %8462  ;;  %8470 = vtanh.f32 %v4138_v42  ;;  %v4140_v1 = vmul.f32 0.7978846, %v4076_v11  ;;  %v4419_v21 = vpack.c.bf16 %v4379_v39, %v4377_v54  ;;  %v4255_v37 = vadd.f32 1.0, %v10927_v50 }
 0x95a   : > { %v8465_v16 = vpop.eup %8464  ;;  %8472 = vtanh.f32 %v4139_v40  ;;  %v4320_v4 = vmul.f32 0.5, %v4256_v15  ;;  %v4382_v10 = vmul.f32 %v4318_v62, %v10825_v55  ;;  %v4317_v9 = vmul.f32 0.5, %v4253_v44 }
 0x95b   : > { %v8467_v8 = vpop.eup %8466  ;;  %8474 = vtanh.f32 %v4140_v1  ;;  %4682 = vmatmul.mubr.bf16.gmra.mrb[172].mxu0 %v4419_v21  ;;  %v4319_v3 = vmul.f32 0.5, %v4255_v37  ;;  %v4258_v56 = vadd.f32 1.0, %v10958_v41  ;;  %v4260_v2 = vadd.f32 1.0, %v8459_v30 }
 0x95c   : > { %v4384_v60 = vmul.f32 %v4320_v4, %v10838_v34  ;;  %v4381_v22 = vmul.f32 %v4317_v9, %v10819_v26  ;;  %v4257_v36 = vadd.f32 1.0, %v10953_v32  ;;  %v4259_v50 = vadd.f32 1.0, %v10965_v43 }
 0x95d   : > { %v4383_v5 = vmul.f32 %v4319_v3, %v10832_v31  ;;  %v4322_v57 = vmul.f32 0.5, %v4258_v56  ;;  %v4324_v55 = vmul.f32 0.5, %v4260_v2  ;;  %v4262_v6 = vadd.f32 1.0, %v8463_v25 }
 0x95e   : > { %v4422_v53 = vpack.c.bf16 %v4384_v60, %v4382_v10  ;;  %v4321_v52 = vmul.f32 0.5, %v4257_v36  ;;  %v4323_v29 = vmul.f32 0.5, %v4259_v50  ;;  %v4264_v24 = vadd.f32 1.0, %v8467_v8 }
 0x95f   : > { %v4421_v7 = vpack.c.bf16 %v4383_v5, %v4381_v22  ;;  %v4386_v41 = vmul.f32 %v4322_v57, %v10868_v19  ;;  %v4388_v34 = vmul.f32 %v4324_v55, %v10885_v17  ;;  %v4326_v30 = vmul.f32 0.5, %v4262_v6 }
 0x960   : > { %4689 = vmatprep.mubr.bf16.mxu0 %v4422_v53  ;;  %v4385_v26 = vmul.f32 %v4321_v52, %v10863_v35  ;;  %v4387_v32 = vmul.f32 %v4323_v29, %v10874_v14  ;;  %v4328_v43 = vmul.f32 0.5, %v4264_v24  ;;  %v4261_v31 = vadd.f32 1.0, %v8461_v0 }
 0x961   : > { %v8469_v59 = vpop.eup %8468  ;;  %v4424_v38 = vpack.c.bf16 %v4388_v34, %v4386_v41  ;;  %v4390_v54 = vmul.f32 %v4326_v30, %v10917_v23  ;;  %v4263_v13 = vadd.f32 1.0, %v8465_v16 }
 0x962   : > { %v4423_v42 = vpack.c.bf16 %v4387_v32, %v4385_v26  ;;  %v4392_v11 = vmul.f32 %v4328_v43, %v10925_v45  ;;  %v4325_v39 = vmul.f32 0.5, %v4261_v31  ;;  %v4265_v19 = vadd.f32 1.0, %v8469_v59 }
 0x963   : > { %v8471_v40 = vpop.eup %8470  ;;  %4690 = vmatmul.mubr.bf16.gmra.mrb[176].mxu0 %v4421_v7  ;;  %v4327_v17 = vmul.f32 0.5, %v4263_v13 }
 0x964   : > { %v8473_v15 = vpop.eup %8472  ;;  %4697 = vmatprep.mubr.bf16.mxu0 %v4424_v38  ;;  %v4426_v35 = vpack.c.bf16 %v4392_v11, %v4390_v54  ;;  %v4266_v62 = vadd.f32 1.0, %v8471_v40  ;;  %v4389_v0 = vmul.f32 %v4325_v39, %v10908_v28  ;;  %v4329_v23 = vmul.f32 0.5, %v4265_v19 }
 0x965   : > { %v8475_v14 = vpop.eup %8474  ;;  %v4391_v44 = vmul.f32 %v4327_v17, %v10922_v12  ;;  %v4267_v25 = vadd.f32 1.0, %v8473_v15  ;;  %v4463_v12 = vsub.s32 5, %v12152_v61 }
 0x966   : > { %v4268_v1 = vadd.f32 1.0, %v8475_v14  ;;  %v4330_v21 = vmul.f32 0.5, %v4266_v62  ;;  %v4393_v4 = vmul.f32 %v4329_v23, %v10951_v46  ;;  %v11022_v46 = vld [vmem:[%s12047_s13] sm:$0xff] }
 0x967   : > { %v4425_v37 = vpack.c.bf16 %v4391_v44, %v4389_v0  ;;  %v4331_v45 = vmul.f32 0.5, %v4267_v25 }
 0x968   : > { %v4332_v16 = vmul.f32 0.5, %v4268_v1  ;;  %v4394_v9 = vmul.f32 %v4330_v21, %v10963_v51  ;;  %v11027_v51 = vrot.slane %v11022_v46, %v4463_v12  ;;  %v12183_v21 = vld [vmem:[#allocation15_spill] sm:$0xff] }
 0x969   : > { %v4395_v10 = vmul.f32 %v4331_v45, %v10968_v18  ;;  %v12184_v45 = vld [vmem:[#allocation16_spill] sm:$0xff] }
 0x96a   : > { %v4396_v8 = vmul.f32 %v4332_v16, %v10974_v27 }
 0x96b   : > { %4698 = vmatmul.mubr.bf16.gmra.mrb[180].mxu0 %v4423_v42  ;;  %v4427_v3 = vpack.c.bf16 %v4395_v10, %v4393_v4 }
 0x96c   : > { %4705 = vmatprep.mubr.bf16.mxu0 %v4426_v35  ;;  %v4428_v28 = vpack.c.bf16 %v4396_v8, %v4394_v9 }
 0x973   : > { %4706 = vmatmul.mubr.bf16.gmra.mrb[184].mxu0 %v4425_v37 }
 0x974   : > { %4713 = vmatprep.mubr.bf16.mxu0 %v4428_v28 }
 0x97b   : > { %4714 = vmatmul.mubr.bf16.gmra.mrb[188].mxu0 %v4427_v3 }
 0x987   : > { %v7235_v56 = vpop.f32.mrb[128].mxu0 }
 0x988   : > { %v7236_v18 = vpop.f32.mrb[129].mxu0 }
 0x989   : > { %v7237_v27 = vadd.f32 %v7236_v18, %v7235_v56  ;;  %v7238_v2 = vpop.f32.mrb[130].mxu0  ;;  %v12185_v18 = vld [vmem:[#allocation17_spill] sm:$0xff] }
 0x98a   : > { %v7239_v60 = vpop.f32.mrb[131].mxu0 }
 0x98b   : > { %v4596_v22 = vadd.f32 %v7237_v27, %v11027_v51  ;;  %v7240_v36 = vadd.f32 %v7239_v60, %v7238_v2  ;;  %v12186_v60 = vld [vmem:[#allocation18_spill] sm:$0xff] }
 0x98d   : > { %v4599_v50 = vadd.f32 %v7240_v36, %v11027_v51  ;;  %v11032_v5 = vadd.f32 %v4596_v22, %v10076_v49 }
 0x98f   : > { %4754 = vadd.xlane.f32.xlu0 %v11032_v5  ;;  %v11036_v57 = vadd.f32 %v4599_v50, %v10079_v63 }
 0x991   : > { %4756 = vadd.xlane.f32.xlu1 %v11036_v57 }
 0x992   : > { %v7241_v55 = vpop.f32.mrb[132].mxu0 }
 0x993   : > { %v7242_v6 = vpop.f32.mrb[133].mxu0 }
 0x994   : > { %v7243_v53 = vadd.f32 %v7242_v6, %v7241_v55  ;;  %v7244_v52 = vpop.f32.mrb[134].mxu0 }
 0x995   : > { %v7245_v29 = vpop.f32.mrb[135].mxu0 }
 0x996   : > { %v4604_v24 = vadd.f32 %v7243_v53, %v11027_v51  ;;  %v7246_v7 = vadd.f32 %v7245_v29, %v7244_v52 }
 0x998   : > { %v4607_v41 = vadd.f32 %v7246_v7, %v11027_v51  ;;  %v11042_v49 = vadd.f32 %v4604_v24, %v10099_v48  ;;  %v12187_v24 = vld [vmem:[#allocation19_spill] sm:$0xff] }
 0x99a   : > { %4758 = vadd.xlane.f32.xlu0 %v11042_v49  ;;  %v11046_v63 = vadd.f32 %v4607_v41, %v10102_v20 }
 0x99c   : > { %v7247_v34 = vpop.f32.mrb[136].mxu0  ;;  %4760 = vadd.xlane.f32.xlu1 %v11046_v63 }
 0x99d   : > { %v7248_v30 = vpop.f32.mrb[137].mxu0 }
 0x99e   : > { %v7249_v26 = vadd.f32 %v7248_v30, %v7247_v34  ;;  %v7250_v32 = vpop.f32.mrb[138].mxu0  ;;  %v12188_v34 = vld [vmem:[#allocation20_spill] sm:$0xff] }
 0x99f   : > { %v7251_v43 = vpop.f32.mrb[139].mxu0 }
 0x9a0   : > { %v4612_v31 = vadd.f32 %v7249_v26, %v11027_v51  ;;  %v7252_v59 = vadd.f32 %v7251_v43, %v7250_v32 }
 0x9a2   : > { %v4615_v38 = vadd.f32 %v7252_v59, %v11027_v51  ;;  %v11052_v48 = vadd.f32 %v4612_v31, %v10122_v58 }
 0x9a4   : > { %4762 = vadd.xlane.f32.xlu0 %v11052_v48  ;;  %v11056_v20 = vadd.f32 %v4615_v38, %v10125_v33  ;;  %v12182_v33 = vld [vmem:[#allocation14_spill] sm:$0xff] }
 0x9a6   : > { %4764 = vadd.xlane.f32.xlu1 %v11056_v20 }
 0x9a7   : > { %v7253_v54 = vpop.f32.mrb[140].mxu0 }
 0x9a8   : > { %v7254_v13 = vpop.f32.mrb[141].mxu0 }
 0x9a9   : > { %v7255_v42 = vadd.f32 %v7254_v13, %v7253_v54  ;;  %v7256_v11 = vpop.f32.mrb[142].mxu0  ;;  %v12189_v13 = vld [vmem:[#allocation22_spill] sm:$0xff] }
 0x9aa   : > { %v7257_v39 = vpop.f32.mrb[143].mxu0 }
 0x9ab   : > { %v4620_v19 = vadd.f32 %v7255_v42, %v11027_v51  ;;  %v7258_v40 = vadd.f32 %v7257_v39, %v7256_v11  ;;  %v12190_v11 = vld [vmem:[#allocation21_spill] sm:$0xff] }
 0x9ad   : > { %v4623_v17 = vadd.f32 %v7258_v40, %v11027_v51  ;;  %v11062_v58 = vadd.f32 %v4620_v19, %v10145_v47  ;;  %v8004_v19 = vld [vmem:[%s12041_s7] sm:$0xff]   ;;  %v8657_v40 = vmov 0.0  }
 0x9ae   : > { %7700 = vmatprep.subr.bf16.mxu1 %v8657_v40  ;;  %7720 = vmatprep.subr.bf16.mxu0 %v8657_v40 }
 0x9af   : > { %4766 = vadd.xlane.f32.xlu0 %v11062_v58  ;;  %v7259_v15 = vpop.f32.mrb[144].mxu0  ;;  %v11066_v35 = vadd.f32 %v4623_v17, %v12182_v33  ;;  %7701 = vmatpush3.bf16.msra.mxu1 %v8004_v19  ;;  %v8005_v17 = vld [vmem:[%s12041_s7 + $0x8] sm:$0xff]   ;;  %v8007_v33 = vld [vmem:[%s12041_s7 + $0x18] sm:$0xff]  }
 0x9b0   : > { %v7260_v62 = vpop.f32.mrb[145].mxu0  ;;  %7702 = vmatprep.subr.bf16.mxu1 %v8657_v40  ;;  %7716 = vmatprep.mubr.msk.bf16.mxu1 %vm8658_vm1, %v8657_v40 }
 0x9b1   : > { %v7261_v14 = vadd.f32 %v7260_v62, %v7259_v15  ;;  %v7262_v0 = vpop.f32.mrb[146].mxu0  ;;  %4768 = vadd.xlane.f32.xlu1 %v11066_v35  ;;  %v8006_v15 = vld [vmem:[%s12041_s7 + $0x10] sm:$0xff]   ;;  %v8008_v62 = vld [vmem:[%s12041_s7 + $0x20] sm:$0xff]   ;;  %7728 = vmatprep.mubr.msk.bf16.mxu0 %vm8658_vm1, %v8657_v40 }
 0x9b2   : > { %v7263_v44 = vpop.f32.mrb[147].mxu0 }
 0x9b3   : > { %v4628_v25 = vadd.f32 %v7261_v14, %v11027_v51  ;;  %v7264_v23 = vadd.f32 %v7263_v44, %v7262_v0  ;;  %7703 = vmatpush3.bf16.msra.mxu1 %v8005_v17  ;;  %v8009_v14 = vld [vmem:[%s12041_s7 + $0x28] sm:$0xff]   ;;  %v8010_v0 = vld [vmem:[%s12041_s7 + $0x30] sm:$0xff]  }
 0x9b4   : > { %7704 = vmatprep.subr.bf16.mxu1 %v8657_v40 }
 0x9b5   : > { %v4631_v1 = vadd.f32 %v7264_v23, %v11027_v51  ;;  %v11072_v47 = vadd.f32 %v4628_v25, %v12183_v21 }
 0x9b7   : > { %4770 = vadd.xlane.f32.xlu0 %v11072_v47  ;;  %v7265_v37 = vpop.f32.mrb[148].mxu0  ;;  %v11076_v16 = vadd.f32 %v4631_v1, %v12184_v45  ;;  %7705 = vmatpush3.bf16.msra.mxu1 %v8006_v15 }
 0x9b8   : > { %v7266_v4 = vpop.f32.mrb[149].mxu0  ;;  %7706 = vmatprep.subr.bf16.mxu1 %v8657_v40 }
 0x9b9   : > { %v7267_v10 = vadd.f32 %v7266_v4, %v7265_v37  ;;  %v7268_v9 = vpop.f32.mrb[150].mxu0  ;;  %4772 = vadd.xlane.f32.xlu1 %v11076_v16 }
 0x9ba   : > { %v7269_v8 = vpop.f32.mrb[151].mxu0 }
 0x9bb   : > { %v4636_v3 = vadd.f32 %v7267_v10, %v11027_v51  ;;  %v7270_v28 = vadd.f32 %v7269_v8, %v7268_v9  ;;  %7707 = vmatpush3.bf16.msra.mxu1 %v8007_v33  ;;  %v12191_v10 = vld [vmem:[#allocation23_spill] sm:$0xff]  ;;  %v12192_v8 = vld [vmem:[#allocation24_spill] sm:$0xff] }
 0x9bc   : > { %7708 = vmatprep.subr.bf16.mxu1 %v8657_v40  ;;  %v8011_v33 = vld [vmem:[%s12041_s7 + $0x38] sm:$0xff]  }
 0x9bd   : > { %v4639_v56 = vadd.f32 %v7270_v28, %v11027_v51  ;;  %v11082_v27 = vadd.f32 %v4636_v3, %v12185_v18 }
 0x9bf   : > { %4774 = vadd.xlane.f32.xlu0 %v11082_v27  ;;  %v7271_v2 = vpop.f32.mrb[152].mxu0  ;;  %v11086_v22 = vadd.f32 %v4639_v56, %v12186_v60  ;;  %7709 = vmatpush3.bf16.msra.mxu1 %v8008_v62  ;;  %v5178_v62 = vld [vmem:[%s12040_s6] sm:$0xff] }
 0x9c0   : > { %v7272_v36 = vpop.f32.mrb[153].mxu0  ;;  %7710 = vmatprep.subr.bf16.mxu1 %v8657_v40 }
 0x9c1   : > { %v7273_v50 = vadd.f32 %v7272_v36, %v7271_v2  ;;  %4776 = vadd.xlane.f32.xlu1 %v11086_v22  ;;  %v7274_v55 = vpop.f32.mrb[154].mxu0 }
 0x9c2   : > { %v7275_v6 = vpop.f32.mrb[155].mxu0 }
 0x9c3   : > { %v4644_v53 = vadd.f32 %v7273_v50, %v11027_v51  ;;  %v7276_v52 = vadd.f32 %v7275_v6, %v7274_v55  ;;  %7711 = vmatpush3.bf16.msra.mxu1 %v8009_v14 }
 0x9c4   : > { %7712 = vmatprep.subr.bf16.mxu1 %v8657_v40 }
 0x9c5   : > { %v4647_v29 = vadd.f32 %v7276_v52, %v11027_v51  ;;  %v11092_v7 = vadd.f32 %v4644_v53, %v12187_v24 }
 0x9c7   : > { %4778 = vadd.xlane.f32.xlu0 %v11092_v7  ;;  %v7277_v41 = vpop.f32.mrb[156].mxu0  ;;  %v11096_v30 = vadd.f32 %v4647_v29, %v12188_v34  ;;  %7713 = vmatpush3.bf16.msra.mxu1 %v8010_v0  ;;  %v12193_v34 = vld [vmem:[#allocation26_spill] sm:$0xff] }
 0x9c8   : > { %v7278_v26 = vpop.f32.mrb[157].mxu0  ;;  %7714 = vmatprep.subr.bf16.mxu1 %v8657_v40 }
 0x9c9   : > { %v7279_v32 = vadd.f32 %v7278_v26, %v7277_v41  ;;  %4780 = vadd.xlane.f32.xlu1 %v11096_v30  ;;  %v7280_v43 = vpop.f32.mrb[158].mxu0 }
 0x9ca   : > { %v7281_v31 = vpop.f32.mrb[159].mxu0 }
 0x9cb   : > { %v4652_v59 = vadd.f32 %v7279_v32, %v11027_v51  ;;  %v7282_v38 = vadd.f32 %v7281_v31, %v7280_v43  ;;  %v12194_v32 = vld [vmem:[#allocation25_spill] sm:$0xff]  ;;  %7715 = vmatpush3.bf16.msra.mxu1 %v8011_v33 }
 0x9cd   : > { %v4655_v54 = vadd.f32 %v7282_v38, %v11027_v51  ;;  %v11102_v42 = vadd.f32 %v4652_v59, %v12189_v13 }
 0x9cf   : > { %4782 = vadd.xlane.f32.xlu0 %v11102_v42  ;;  %v11106_v39 = vadd.f32 %v4655_v54, %v12190_v11 }
 0x9d1   : > { %4784 = vadd.xlane.f32.xlu1 %v11106_v39 }
 0xa0e   : > { %v7283_v44 = vpop.f32.mrb[160].mxu0 }
 0xa0f   : > { %v7284_v25 = vpop.f32.mrb[161].mxu0 }
 0xa10   : > { %v7285_v23 = vadd.f32 %v7284_v25, %v7283_v44  ;;  %v7286_v1 = vpop.f32.mrb[162].mxu0  ;;  %v12195_v44 = vld [vmem:[#allocation27_spill] sm:$0xff] }
 0xa11   : > { %v7287_v21 = vpop.f32.mrb[163].mxu0 }
 0xa12   : > { %v4660_v37 = vadd.f32 %v7285_v23, %v11027_v51  ;;  %v7288_v45 = vadd.f32 %v7287_v21, %v7286_v1  ;;  %v8014_v23 = vld [vmem:[%s12042_s8 + $0x4] ss:$8 sps:$4 sm:$0xff]   ;;  %v5179_v1 = vpack.c.bf16 %v5178_v62, %v5178_v62 }
 0xa13   : > { %5397 = vmatprep.subr.bf16.mxu1 %v8014_v23  ;;  %v8018_v23 = vld [vmem:[%s12042_s8 + $0x20] ss:$8 sps:$4 sm:$0xff]  }
 0xa14   : > { %v4663_v4 = vadd.f32 %v7288_v45, %v11027_v51  ;;  %v11142_v9 = vadd.f32 %v4660_v37, %v12191_v10  ;;  %v8012_v45 = vld [vmem:[%s12042_s8] ss:$8 sps:$4 sm:$0xff]   ;;  %7717 = vmatmul.mubr.bf16.vlgmr.msra.gmra.mrb[160].mxu1 %v5179_v1 }
 0xa15   : > { %5398 = vmatpush1.bf16.msra.mxu1 %v8012_v45  ;;  %v12200_v45 = vld [vmem:[#allocation30_spill] sm:$0xff] }
 0xa16   : > { %4786 = vadd.xlane.f32.xlu0 %v11142_v9  ;;  %v11146_v3 = vadd.f32 %v4663_v4, %v12192_v8  ;;  %v12196_v4 = vld [vmem:[#allocation9_spill] sm:$0xff] }
 0xa18   : > { %4788 = vadd.xlane.f32.xlu1 %v11146_v3 }
 0xa19   : > { %v7289_v28 = vpop.f32.mrb[164].mxu0 }
 0xa1a   : > { %v7290_v56 = vpop.f32.mrb[165].mxu0 }
 0xa1b   : > { %v7291_v2 = vadd.f32 %v7290_v56, %v7289_v28  ;;  %v7292_v60 = vpop.f32.mrb[166].mxu0 }
 0xa1c   : > { %v4755_v18 = vpop.xlane.xlu0 %4754  ;;  %v7293_v50 = vpop.f32.mrb[167].mxu0 }
 0xa1d   : > { %v4818_v36 = vmul.f32 0.0078125, %v4755_v18  ;;  %v4668_v6 = vadd.f32 %v7291_v2, %v11027_v51  ;;  %v7294_v53 = vadd.f32 %v7293_v50, %v7292_v60  ;;  %v12197_v18 = vmov 0  }
 0xa1e   : > { %v4757_v55 = vpop.xlane.xlu1 %4756  ;;  %5429 = vmatprep.mubr.bf16.mxu1 %v12197_v18 }
 0xa1f   : > { %v11151_v52 = vsub.f32 %v11032_v5, %v4818_v36  ;;  %v4819_v29 = vmul.f32 0.0078125, %v4757_v55  ;;  %v4671_v24 = vadd.f32 %v7294_v53, %v11027_v51  ;;  %v11158_v26 = vadd.f32 %v4668_v6, %v12193_v34  ;;  %v8015_v55 = vld [vmem:[%s12042_s8 + $0x10] ss:$8 sps:$4 sm:$0xff]   ;;  %v8017_v6 = vld [vmem:[%s12042_s8 + $0x14] ss:$8 sps:$4 sm:$0xff]  }
 0xa20   : > { %5399 = vmatprep.subr.bf16.mxu1 %v8017_v6 }
 0xa21   : > { %v11155_v41 = vsub.f32 %v11036_v57, %v4819_v29  ;;  %4790 = vadd.xlane.f32.xlu0 %v11158_v26  ;;  %v11162_v43 = vadd.f32 %v4671_v24, %v12194_v32  ;;  %v4882_v31 = vmul.f32 %v11151_v52, %v11151_v52  ;;  %5400 = vmatpush1.bf16.msra.mxu1 %v8015_v55  ;;  %v8021_v55 = vld [vmem:[%s12042_s8 + $0x30] ss:$8 sps:$4 sm:$0xff]  }
 0xa23   : > { %v7295_v59 = vpop.f32.mrb[168].mxu0  ;;  %4792 = vadd.xlane.f32.xlu1 %v11162_v43  ;;  %v4883_v5 = vmul.f32 %v11155_v41, %v11155_v41 }
 0xa24   : > { %v7296_v38 = vpop.f32.mrb[169].mxu0 }
 0xa25   : > { %v7297_v57 = vadd.f32 %v7296_v38, %v7295_v59  ;;  %v7298_v54 = vpop.f32.mrb[170].mxu0  ;;  %4914 = vadd.xlane.f32.xlu0 %v4882_v31 }
 0xa26   : > { %v7299_v13 = vpop.f32.mrb[171].mxu0 }
 0xa27   : > { %v4676_v11 = vadd.f32 %v7297_v57, %v11027_v51  ;;  %v7300_v19 = vadd.f32 %v7299_v13, %v7298_v54  ;;  %v4759_v17 = vpop.xlane.xlu0 %4758  ;;  %4916 = vadd.xlane.f32.xlu1 %v4883_v5  ;;  %v12198_v5 = vld [vmem:[#allocation28_spill] sm:$0xff]  ;;  %v12199_v13 = vld [vmem:[#allocation29_spill] sm:$0xff] }
 0xa28   : > { %v4820_v15 = vmul.f32 0.0078125, %v4759_v17 }
 0xa29   : > { %v4679_v14 = vadd.f32 %v7300_v19, %v11027_v51  ;;  %v4761_v0 = vpop.xlane.xlu1 %4760  ;;  %v11178_v25 = vadd.f32 %v4676_v11, %v12195_v44 }
 0xa2a   : > { %v11188_v21 = vsub.f32 %v11042_v49, %v4820_v15  ;;  %v4821_v37 = vmul.f32 0.0078125, %v4761_v0  ;;  %v8020_v0 = vld [vmem:[%s12042_s8 + $0x24] ss:$8 sps:$4 sm:$0xff]  }
 0xa2b   : > { %4794 = vadd.xlane.f32.xlu0 %v11178_v25  ;;  %v11195_v10 = vadd.f32 %v4679_v14, %v12196_v4  ;;  %5401 = vmatprep.subr.bf16.mxu1 %v8020_v0 }
 0xa2c   : > { %v11198_v8 = vsub.f32 %v11046_v63, %v4821_v37  ;;  %v4884_v28 = vmul.f32 %v11188_v21, %v11188_v21  ;;  %5402 = vmatpush1.bf16.msra.mxu1 %v8018_v23  ;;  %v8029_v23 = vld [vmem:[%s12042_s8 + $0x54] ss:$8 sps:$4 sm:$0xff]  }
 0xa2d   : > { %4796 = vadd.xlane.f32.xlu1 %v11195_v10 }
 0xa2e   : > { %v7301_v49 = vpop.f32.mrb[172].mxu0  ;;  %v4885_v56 = vmul.f32 %v11198_v8, %v11198_v8 }
 0xa2f   : > { %v7302_v2 = vpop.f32.mrb[173].mxu0  ;;  %4918 = vadd.xlane.f32.xlu0 %v4884_v28 }
 0xa30   : > { %v7303_v60 = vadd.f32 %v7302_v2, %v7301_v49  ;;  %v7304_v36 = vpop.f32.mrb[174].mxu0 }
 0xa31   : > { %v7305_v50 = vpop.f32.mrb[175].mxu0  ;;  %v4763_v63 = vpop.xlane.xlu0 %4762  ;;  %4920 = vadd.xlane.f32.xlu1 %v4885_v56 }
 0xa32   : > { %v4684_v53 = vadd.f32 %v7303_v60, %v11027_v51  ;;  %v7306_v29 = vadd.f32 %v7305_v50, %v7304_v36  ;;  %v4822_v24 = vmul.f32 0.0078125, %v4763_v63  ;;  %v12201_v60 = vld [vmem:[#allocation31_spill] sm:$0xff] }
 0xa33   : > { %v4765_v34 = vpop.xlane.xlu1 %4764  ;;  %v8023_v50 = vld [vmem:[%s12042_s8 + $0x34] ss:$8 sps:$4 sm:$0xff]  }
 0xa34   : > { %v4687_v32 = vadd.f32 %v7306_v29, %v11027_v51  ;;  %v11215_v31 = vsub.f32 %v11052_v48, %v4822_v24  ;;  %v4823_v59 = vmul.f32 0.0078125, %v4765_v34  ;;  %v11218_v38 = vadd.f32 %v4684_v53, %v12198_v5  ;;  %5403 = vmatprep.subr.bf16.mxu1 %v8023_v50 }
 0xa35   : > { %5404 = vmatpush1.bf16.msra.mxu1 %v8021_v55  ;;  %v8030_v55 = vld [vmem:[%s12042_s8 + $0x60] ss:$8 sps:$4 sm:$0xff]  }
 0xa36   : > { %v11221_v57 = vsub.f32 %v11056_v20, %v4823_v59  ;;  %4798 = vadd.xlane.f32.xlu0 %v11218_v38  ;;  %v7307_v54 = vpop.f32.mrb[176].mxu0  ;;  %v11225_v11 = vadd.f32 %v4687_v32, %v12199_v13  ;;  %v4886_v19 = vmul.f32 %v11215_v31, %v11215_v31 }
 0xa37   : > { %v7308_v17 = vpop.f32.mrb[177].mxu0 }
 0xa38   : > { %v7309_v48 = vadd.f32 %v7308_v17, %v7307_v54  ;;  %v7310_v15 = vpop.f32.mrb[178].mxu0  ;;  %4800 = vadd.xlane.f32.xlu1 %v11225_v11  ;;  %v4887_v33 = vmul.f32 %v11221_v57, %v11221_v57  ;;  %v8024_v54 = vld [vmem:[%s12042_s8 + $0x40] ss:$8 sps:$4 sm:$0xff]   ;;  %v12202_v17 = vld [vmem:[#allocation32_spill] sm:$0xff] }
 0xa39   : > { %v7311_v62 = vpop.f32.mrb[179].mxu0 }
 0xa3a   : > { %v4692_v20 = vadd.f32 %v7309_v48, %v11027_v51  ;;  %v7312_v14 = vadd.f32 %v7311_v62, %v7310_v15  ;;  %4922 = vadd.xlane.f32.xlu0 %v4886_v19 }
 0xa3c   : > { %v4767_v44 = vpop.xlane.xlu0 %4766  ;;  %v4695_v1 = vadd.f32 %v7312_v14, %v11027_v51  ;;  %4924 = vadd.xlane.f32.xlu1 %v4887_v33  ;;  %v11241_v4 = vadd.f32 %v4692_v20, %v12200_v45  ;;  %v12203_v14 = vld [vmem:[#allocation33_spill] sm:$0xff] }
 0xa3d   : > { %v4824_v37 = vmul.f32 0.0078125, %v4767_v44  ;;  %v8027_v44 = vld [vmem:[%s12042_s8 + $0x50] ss:$8 sps:$4 sm:$0xff]  }
 0xa3e   : > { %v4769_v28 = vpop.xlane.xlu1 %4768  ;;  %4802 = vadd.xlane.f32.xlu0 %v11241_v4  ;;  %v7313_v2 = vpop.f32.mrb[180].mxu0  ;;  %v11248_v36 = vadd.f32 %v4695_v1, %v12201_v60 }
 0xa3f   : > { %v11244_v49 = vsub.f32 %v11062_v58, %v4824_v37  ;;  %v4825_v56 = vmul.f32 0.0078125, %v4769_v28  ;;  %v7314_v63 = vpop.f32.mrb[181].mxu0 }
 0xa40   : > { %v7315_v58 = vadd.f32 %v7314_v63, %v7313_v2  ;;  %v7316_v53 = vpop.f32.mrb[182].mxu0  ;;  %4804 = vadd.xlane.f32.xlu1 %v11248_v36 }
 0xa41   : > { %v11257_v6 = vsub.f32 %v11066_v35, %v4825_v56  ;;  %v4888_v29 = vmul.f32 %v11244_v49, %v11244_v49  ;;  %v7317_v24 = vpop.f32.mrb[183].mxu0  ;;  %v8026_v35 = vld [vmem:[%s12042_s8 + $0x44] ss:$8 sps:$4 sm:$0xff]  }
 0xa42   : > { %v4700_v34 = vadd.f32 %v7315_v58, %v11027_v51  ;;  %v7318_v32 = vadd.f32 %v7317_v24, %v7316_v53  ;;  %5405 = vmatprep.subr.bf16.mxu1 %v8026_v35 }
 0xa43   : > { %4926 = vadd.xlane.f32.xlu0 %v4888_v29  ;;  %v4889_v59 = vmul.f32 %v11257_v6, %v11257_v6  ;;  %5406 = vmatpush1.bf16.msra.mxu1 %v8024_v54  ;;  %v12204_v29 = vld [vmem:[#allocation34_spill] sm:$0xff] }
 0xa44   : > { %v4771_v5 = vpop.xlane.xlu0 %4770  ;;  %v4703_v13 = vadd.f32 %v7318_v32, %v11027_v51  ;;  %v11273_v48 = vadd.f32 %v4700_v34, %v12202_v17  ;;  %5407 = vmatprep.subr.bf16.mxu1 %v8029_v23 }
 0xa45   : > { %v4826_v19 = vmul.f32 0.0078125, %v4771_v5  ;;  %4928 = vadd.xlane.f32.xlu1 %v4889_v59  ;;  %v12205_v5 = vld [vmem:[#allocation35_spill] sm:$0xff] }
 0xa46   : > { %v4773_v15 = vpop.xlane.xlu1 %4772  ;;  %v7319_v20 = vpop.f32.mrb[184].mxu0  ;;  %v11280_v0 = vadd.f32 %v4703_v13, %v12203_v14  ;;  %v8033_v13 = vld [vmem:[%s12042_s8 + $0x70] ss:$8 sps:$4 sm:$0xff]  }
 0xa47   : > { %v11276_v33 = vsub.f32 %v11072_v47, %v4826_v19  ;;  %v4827_v62 = vmul.f32 0.0078125, %v4773_v15  ;;  %4806 = vadd.xlane.f32.xlu0 %v11273_v48  ;;  %v7320_v1 = vpop.f32.mrb[185].mxu0  ;;  %5408 = vmatpush1.bf16.msra.mxu1 %v8027_v44  ;;  %v8035_v19 = vld [vmem:[%s12042_s8 + $0x74] ss:$8 sps:$4 sm:$0xff]  }
 0xa48   : > { %v7321_v47 = vadd.f32 %v7320_v1, %v7319_v20  ;;  %v7322_v45 = vpop.f32.mrb[186].mxu0 }
 0xa49   : > { %v11289_v37 = vsub.f32 %v11076_v16, %v4827_v62  ;;  %4808 = vadd.xlane.f32.xlu1 %v11280_v0  ;;  %v4890_v28 = vmul.f32 %v11276_v33, %v11276_v33  ;;  %v7323_v56 = vpop.f32.mrb[187].mxu0  ;;  %v8032_v16 = vld [vmem:[%s12042_s8 + $0x64] ss:$8 sps:$4 sm:$0xff]  }
 0xa4a   : > { %v4708_v2 = vadd.f32 %v7321_v47, %v11027_v51  ;;  %v7324_v60 = vadd.f32 %v7323_v56, %v7322_v45  ;;  %5409 = vmatprep.subr.bf16.mxu1 %v8032_v16  ;;  %v12207_v16 = vld [vmem:[#allocation37_spill] sm:$0xff] }
 0xa4b   : > { %4930 = vadd.xlane.f32.xlu0 %v4890_v28  ;;  %v4891_v50 = vmul.f32 %v11289_v37, %v11289_v37  ;;  %5410 = vmatpush1.bf16.msra.mxu1 %v8030_v55  ;;  %v12206_v28 = vld [vmem:[#allocation36_spill] sm:$0xff] }
 0xa4c   : > { %v4775_v63 = vpop.xlane.xlu0 %4774  ;;  %v4711_v58 = vadd.f32 %v7324_v60, %v11027_v51  ;;  %v11305_v24 = vadd.f32 %v4708_v2, %v12204_v29  ;;  %5411 = vmatprep.subr.bf16.mxu1 %v8035_v19 }
 0xa4d   : > { %v4828_v53 = vmul.f32 0.0078125, %v4775_v63  ;;  %4932 = vadd.xlane.f32.xlu1 %v4891_v50 }
 0xa4e   : > { %v4777_v34 = vpop.xlane.xlu1 %4776  ;;  %v7325_v35 = vpop.f32.mrb[188].mxu0  ;;  %v11312_v54 = vadd.f32 %v4711_v58, %v12205_v5 }
 0xa4f   : > { %v11308_v32 = vsub.f32 %v11082_v27, %v4828_v53  ;;  %v4829_v59 = vmul.f32 0.0078125, %v4777_v34  ;;  %4810 = vadd.xlane.f32.xlu0 %v11305_v24  ;;  %v7326_v17 = vpop.f32.mrb[189].mxu0  ;;  %5412 = vmatpush1.bf16.msra.mxu1 %v8033_v13 }
 0xa50   : > { %v7327_v27 = vadd.f32 %v7326_v17, %v7325_v35  ;;  %v7328_v62 = vpop.f32.mrb[190].mxu0  ;;  %7768 = vmatprep.subr.bf16.mxu1 %v8657_v40 }
 0xa51   : > { %v11321_v15 = vsub.f32 %v11086_v22, %v4829_v59  ;;  %4812 = vadd.xlane.f32.xlu1 %v11312_v54  ;;  %v4892_v20 = vmul.f32 %v11308_v32, %v11308_v32  ;;  %v7329_v14 = vpop.f32.mrb[191].mxu0 }
 0xa52   : > { %v4716_v44 = vadd.f32 %v7327_v27, %v11027_v51  ;;  %v7330_v23 = vadd.f32 %v7329_v14, %v7328_v62 }
 0xa53   : > { %4934 = vadd.xlane.f32.xlu0 %v4892_v20  ;;  %v4893_v1 = vmul.f32 %v11321_v15, %v11321_v15 }
 0xa54   : > { %v4779_v22 = vpop.xlane.xlu0 %4778  ;;  %v4719_v47 = vadd.f32 %v7330_v23, %v11027_v51  ;;  %v11332_v56 = vadd.f32 %v4716_v44, %v12206_v28 }
 0xa55   : > { %v4830_v45 = vmul.f32 0.0078125, %v4779_v22  ;;  %4936 = vadd.xlane.f32.xlu1 %v4893_v1 }
 0xa56   : > { %v4781_v2 = vpop.xlane.xlu1 %4780  ;;  %v11339_v63 = vadd.f32 %v4719_v47, %v12207_v16 }
 0xa57   : > { %v11335_v60 = vsub.f32 %v11092_v7, %v4830_v45  ;;  %v4831_v50 = vmul.f32 0.0078125, %v4781_v2  ;;  %4814 = vadd.xlane.f32.xlu0 %v11332_v56 }
 0xa59   : > { %v11342_v55 = vsub.f32 %v11096_v30, %v4831_v50  ;;  %4816 = vadd.xlane.f32.xlu1 %v11339_v63  ;;  %v4894_v51 = vmul.f32 %v11335_v60, %v11335_v60 }
 0xa5b   : > { %4938 = vadd.xlane.f32.xlu0 %v4894_v51  ;;  %v4895_v58 = vmul.f32 %v11342_v55, %v11342_v55 }
 0xa5c   : > { %v4783_v7 = vpop.xlane.xlu0 %4782 }
 0xa5d   : > { %v4832_v53 = vmul.f32 0.0078125, %v4783_v7  ;;  %4940 = vadd.xlane.f32.xlu1 %v4895_v58 }
 0xa5e   : > { %v4785_v29 = vpop.xlane.xlu1 %4784 }
 0xa5f   : > { %v11350_v34 = vsub.f32 %v11102_v42, %v4832_v53  ;;  %v4833_v59 = vmul.f32 0.0078125, %v4785_v29 }
 0xa61   : > { %v11353_v30 = vsub.f32 %v11106_v39, %v4833_v59  ;;  %v4896_v35 = vmul.f32 %v11350_v34, %v11350_v34  ;;  %v5108_v59 = vsub.s32 6, %v12152_v61 }
 0xa63   : > { %4942 = vadd.xlane.f32.xlu0 %v4896_v35  ;;  %v4897_v5 = vmul.f32 %v11353_v30, %v11353_v30 }
 0xa65   : > { %4944 = vadd.xlane.f32.xlu1 %v4897_v5 }
 0xaa3   : > { %v4787_v13 = vpop.xlane.xlu0 %4786 }
 0xaa4   : > { %v4834_v19 = vmul.f32 0.0078125, %v4787_v13 }
 0xaa5   : > { %v4789_v17 = vpop.xlane.xlu1 %4788 }
 0xaa6   : > { %v11360_v27 = vsub.f32 %v11142_v9, %v4834_v19  ;;  %v4835_v42 = vmul.f32 0.0078125, %v4789_v17 }
 0xaa8   : > { %v11363_v62 = vsub.f32 %v11146_v3, %v4835_v42  ;;  %v4898_v39 = vmul.f32 %v11360_v27, %v11360_v27 }
 0xaaa   : > { %4946 = vadd.xlane.f32.xlu0 %v4898_v39  ;;  %v4899_v20 = vmul.f32 %v11363_v62, %v11363_v62 }
 0xaac   : > { %4948 = vadd.xlane.f32.xlu1 %v4899_v20  ;;  %v11392_v20 = vrot.slane %v11022_v46, %v5108_v59 }
 0xaae   : > { %v4791_v14 = vpop.xlane.xlu0 %4790 }
 0xaaf   : > { %v4836_v44 = vmul.f32 0.0078125, %v4791_v14 }
 0xab0   : > { %v4793_v23 = vpop.xlane.xlu1 %4792 }
 0xab1   : > { %v11370_v1 = vsub.f32 %v11158_v26, %v4836_v44  ;;  %v4837_v9 = vmul.f32 0.0078125, %v4793_v23 }
 0xab2   : > { %v4915_v22 = vpop.xlane.xlu0 %4914 }
 0xab3   : > { %v11373_v47 = vsub.f32 %v11162_v43, %v4837_v9  ;;  %v4978_v3 = vmul.f32 0.0078125, %v4915_v22  ;;  %v4900_v45 = vmul.f32 %v11370_v1, %v11370_v1 }
 0xab4   : > { %v4917_v28 = vpop.xlane.xlu1 %4916 }
 0xab5   : > { %v5010_v2 = vadd.f32 1e-05, %v4978_v3  ;;  %v4979_v50 = vmul.f32 0.0078125, %v4917_v28  ;;  %4950 = vadd.xlane.f32.xlu0 %v4900_v45  ;;  %v4901_v16 = vmul.f32 %v11373_v47, %v11373_v47 }
 0xab7   : > { %8476 = vrsqrt.f32 %v5010_v2  ;;  %v5011_v51 = vadd.f32 1e-05, %v4979_v50  ;;  %4952 = vadd.xlane.f32.xlu1 %v4901_v16 }
 0xab8   : > { %v4795_v26 = vpop.xlane.xlu0 %4794 }
 0xab9   : > { %8478 = vrsqrt.f32 %v5011_v51  ;;  %v4838_v58 = vmul.f32 0.0078125, %v4795_v26 }
 0xaba   : > { %v4797_v7 = vpop.xlane.xlu1 %4796 }
 0xabb   : > { %v11380_v43 = vsub.f32 %v11178_v25, %v4838_v58  ;;  %v4839_v53 = vmul.f32 0.0078125, %v4797_v7  ;;  %v5144_v25 = vsub.s32 7, %v12152_v61 }
 0xabc   : > { %v4919_v29 = vpop.xlane.xlu0 %4918 }
 0xabd   : > { %v11384_v35 = vsub.f32 %v11195_v10, %v4839_v53  ;;  %v4980_v5 = vmul.f32 0.0078125, %v4919_v29  ;;  %v4902_v13 = vmul.f32 %v11380_v43, %v11380_v43  ;;  %v11396_v22 = vrot.slane %v11022_v46, %v5144_v25 }
 0xabe   : > { %v4921_v19 = vpop.xlane.xlu1 %4920 }
 0xabf   : > { %v5012_v17 = vadd.f32 1e-05, %v4980_v5  ;;  %v4981_v42 = vmul.f32 0.0078125, %v4921_v19  ;;  %4954 = vadd.xlane.f32.xlu0 %v4902_v13  ;;  %v4903_v39 = vmul.f32 %v11384_v35, %v11384_v35 }
 0xac1   : > { %v8477_v14 = vpop.eup %8476  ;;  %8480 = vrsqrt.f32 %v5012_v17  ;;  %v5013_v10 = vadd.f32 1e-05, %v4981_v42  ;;  %4956 = vadd.xlane.f32.xlu1 %v4903_v39 }
 0xac2   : > { %v5074_v44 = vmul.f32 %v8477_v14, %v11151_v52 }
 0xac3   : > { %v8479_v23 = vpop.eup %8478  ;;  %8482 = vrsqrt.f32 %v5013_v10  ;;  %v4799_v9 = vpop.xlane.xlu0 %4798 }
 0xac4   : > { %v5075_v3 = vmul.f32 %v8479_v23, %v11155_v41  ;;  %v4840_v45 = vmul.f32 0.0078125, %v4799_v9  ;;  %v5110_v28 = vmul.f32 %v11392_v20, %v5074_v44 }
 0xac5   : > { %v4801_v2 = vpop.xlane.xlu1 %4800 }
 0xac6   : > { %v11401_v50 = vsub.f32 %v11218_v38, %v4840_v45  ;;  %v4841_v16 = vmul.f32 0.0078125, %v4801_v2  ;;  %v5111_v51 = vmul.f32 %v11392_v20, %v5075_v3  ;;  %v5146_v52 = vadd.f32 %v11396_v22, %v5110_v28 }
 0xac7   : > { %v4923_v26 = vpop.xlane.xlu0 %4922 }
 0xac8   : > { %v11406_v58 = vsub.f32 %v11225_v11, %v4841_v16  ;;  %v4982_v46 = vmul.f32 0.0078125, %v4923_v26  ;;  %v4904_v41 = vmul.f32 %v11401_v50, %v11401_v50  ;;  %v5147_v7 = vadd.f32 %v11396_v22, %v5111_v51 }
 0xac9   : > { %v4925_v53 = vpop.xlane.xlu1 %4924 }
 0xaca   : > { %v5014_v29 = vadd.f32 1e-05, %v4982_v46  ;;  %v4983_v59 = vmul.f32 0.0078125, %v4925_v53  ;;  %4958 = vadd.xlane.f32.xlu0 %v4904_v41  ;;  %v4905_v38 = vmul.f32 %v11406_v58, %v11406_v58  ;;  %v5285_v5 = vpack.c.bf16 %v5147_v7, %v5146_v52 }
 0xacb   : > { %v8481_v13 = vpop.eup %8480  ;;  %v4803_v19 = vpop.xlane.xlu0 %4802 }
 0xacc   : > { %8484 = vrsqrt.f32 %v5014_v29  ;;  %v5015_v17 = vadd.f32 1e-05, %v4983_v59  ;;  %v4842_v11 = vmul.f32 0.0078125, %v4803_v19  ;;  %4960 = vadd.xlane.f32.xlu1 %v4905_v38  ;;  %5430 = vmatmul.mubr.bf16.vlgmr.msra.gmra.mrb[164].mxu1 %v5285_v5  ;;  %v5076_v42 = vmul.f32 %v8481_v13, %v11188_v21 }
 0xacd   : > { %v8483_v39 = vpop.eup %8482  ;;  %v4805_v25 = vpop.xlane.xlu1 %4804  ;;  %5439 = vmatprep.mubr.bf16.mxu1 %v12197_v18 }
 0xace   : > { %8486 = vrsqrt.f32 %v5015_v17  ;;  %v11416_v14 = vsub.f32 %v11241_v4, %v4842_v11  ;;  %v4843_v10 = vmul.f32 0.0078125, %v4805_v25  ;;  %v5077_v44 = vmul.f32 %v8483_v39, %v11198_v8 }
 0xacf   : > { %v5112_v9 = vmul.f32 %v11392_v20, %v5076_v42 }
 0xad0   : > { %v4927_v23 = vpop.xlane.xlu0 %4926  ;;  %v11421_v3 = vsub.f32 %v11248_v36, %v4843_v10  ;;  %v4906_v21 = vmul.f32 %v11416_v14, %v11416_v14  ;;  %v5113_v28 = vmul.f32 %v11392_v20, %v5077_v44 }
 0xad1   : > { %v4984_v45 = vmul.f32 0.0078125, %v4927_v23  ;;  %v5148_v16 = vadd.f32 %v11396_v22, %v5112_v9 }
 0xad2   : > { %v4929_v2 = vpop.xlane.xlu1 %4928  ;;  %4962 = vadd.xlane.f32.xlu0 %v4906_v21  ;;  %v4907_v8 = vmul.f32 %v11421_v3, %v11421_v3  ;;  %v5149_v26 = vadd.f32 %v11396_v22, %v5113_v28 }
 0xad3   : > { %v5016_v4 = vadd.f32 1e-05, %v4984_v45  ;;  %v4985_v51 = vmul.f32 0.0078125, %v4929_v2 }
 0xad4   : > { %v4807_v52 = vpop.xlane.xlu0 %4806  ;;  %4964 = vadd.xlane.f32.xlu1 %v4907_v8  ;;  %v5286_v41 = vpack.c.bf16 %v5149_v26, %v5148_v16 }
 0xad5   : > { %8488 = vrsqrt.f32 %v5016_v4  ;;  %v5017_v36 = vadd.f32 1e-05, %v4985_v51  ;;  %v4844_v46 = vmul.f32 0.0078125, %v4807_v52 }
 0xad6   : > { %v4809_v7 = vpop.xlane.xlu1 %4808  ;;  %v8485_v53 = vpop.eup %8484  ;;  %5440 = vmatmul.mubr.bf16.gmra.mrb[168].mxu1 %v5286_v41 }
 0xad7   : > { %8490 = vrsqrt.f32 %v5017_v36  ;;  %v11431_v29 = vsub.f32 %v11273_v48, %v4844_v46  ;;  %v4845_v59 = vmul.f32 0.0078125, %v4809_v7  ;;  %5449 = vmatprep.mubr.bf16.mxu1 %v12197_v18  ;;  %v5078_v5 = vmul.f32 %v8485_v53, %v11215_v31 }
 0xad8   : > { %v4931_v38 = vpop.xlane.xlu0 %4930  ;;  %v8487_v13 = vpop.eup %8486 }
 0xad9   : > { %v11436_v19 = vsub.f32 %v11280_v0, %v4845_v59  ;;  %v4986_v17 = vmul.f32 0.0078125, %v4931_v38  ;;  %v4908_v11 = vmul.f32 %v11431_v29, %v11431_v29  ;;  %v5079_v39 = vmul.f32 %v8487_v13, %v11221_v57 }
 0xada   : > { %v4933_v42 = vpop.xlane.xlu1 %4932  ;;  %v5114_v48 = vmul.f32 %v11392_v20, %v5078_v5 }
 0xadb   : > { %v5018_v25 = vadd.f32 1e-05, %v4986_v17  ;;  %v4987_v10 = vmul.f32 0.0078125, %v4933_v42  ;;  %4966 = vadd.xlane.f32.xlu0 %v4908_v11  ;;  %v4909_v44 = vmul.f32 %v11436_v19, %v11436_v19  ;;  %v5115_v23 = vmul.f32 %v11392_v20, %v5079_v39 }
 0xadc   : > { %v4811_v31 = vpop.xlane.xlu0 %4810  ;;  %v5150_v21 = vadd.f32 %v11396_v22, %v5114_v48 }
 0xadd   : > { %8492 = vrsqrt.f32 %v5018_v25  ;;  %v5019_v0 = vadd.f32 1e-05, %v4987_v10  ;;  %v4846_v9 = vmul.f32 0.0078125, %v4811_v31  ;;  %4968 = vadd.xlane.f32.xlu1 %v4909_v44  ;;  %v5151_v57 = vadd.f32 %v11396_v22, %v5115_v23 }
 0xade   : > { %v4813_v45 = vpop.xlane.xlu1 %4812 }
 0xadf   : > { %v8489_v28 = vpop.eup %8488  ;;  %8494 = vrsqrt.f32 %v5019_v0  ;;  %v11448_v2 = vsub.f32 %v11305_v24, %v4846_v9  ;;  %v4847_v16 = vmul.f32 0.0078125, %v4813_v45  ;;  %v5287_v51 = vpack.c.bf16 %v5151_v57, %v5150_v21 }
 0xae0   : > { %v4935_v4 = vpop.xlane.xlu0 %4934  ;;  %v5080_v8 = vmul.f32 %v8489_v28, %v11244_v49 }
 0xae1   : > { %v8491_v26 = vpop.eup %8490  ;;  %v11452_v52 = vsub.f32 %v11312_v54, %v4847_v16  ;;  %v4988_v36 = vmul.f32 0.0078125, %v4935_v4  ;;  %v4910_v46 = vmul.f32 %v11448_v2, %v11448_v2  ;;  %5450 = vmatmul.mubr.bf16.gmra.mrb[172].mxu1 %v5287_v51 }
 0xae2   : > { %v4937_v41 = vpop.xlane.xlu1 %4936  ;;  %v5081_v7 = vmul.f32 %v8491_v26, %v11257_v6  ;;  %v5116_v24 = vmul.f32 %v11392_v20, %v5080_v8  ;;  %5459 = vmatprep.mubr.bf16.mxu1 %v12197_v18 }
 0xae3   : > { %v5020_v53 = vadd.f32 1e-05, %v4988_v36  ;;  %v4989_v59 = vmul.f32 0.0078125, %v4937_v41  ;;  %4970 = vadd.xlane.f32.xlu0 %v4910_v46  ;;  %v4911_v49 = vmul.f32 %v11452_v52, %v11452_v52 }
 0xae4   : > { %v4815_v54 = vpop.xlane.xlu0 %4814  ;;  %v5117_v38 = vmul.f32 %v11392_v20, %v5081_v7  ;;  %v5152_v6 = vadd.f32 %v11396_v22, %v5116_v24 }
 0xae5   : > { %8496 = vrsqrt.f32 %v5020_v53  ;;  %v5021_v5 = vadd.f32 1e-05, %v4989_v59  ;;  %v4848_v13 = vmul.f32 0.0078125, %v4815_v54  ;;  %4972 = vadd.xlane.f32.xlu1 %v4911_v49 }
 0xae6   : > { %v4817_v17 = vpop.xlane.xlu1 %4816  ;;  %v5153_v11 = vadd.f32 %v11396_v22, %v5117_v38 }
 0xae7   : > { %v8493_v42 = vpop.eup %8492  ;;  %8498 = vrsqrt.f32 %v5021_v5  ;;  %v11465_v39 = vsub.f32 %v11332_v56, %v4848_v13  ;;  %v4849_v48 = vmul.f32 0.0078125, %v4817_v17 }
 0xae8   : > { %v4939_v25 = vpop.xlane.xlu0 %4938  ;;  %v5288_v10 = vpack.c.bf16 %v5153_v11, %v5152_v6  ;;  %v5082_v44 = vmul.f32 %v8493_v42, %v11276_v33 }
 0xae9   : > { %v8495_v31 = vpop.eup %8494  ;;  %v11469_v23 = vsub.f32 %v11339_v63, %v4849_v48  ;;  %v4990_v0 = vmul.f32 0.0078125, %v4939_v25  ;;  %v4912_v9 = vmul.f32 %v11465_v39, %v11465_v39 }
 0xaea   : > { %5460 = vmatmul.mubr.bf16.gmra.mrb[176].mxu1 %v5288_v10  ;;  %v4941_v45 = vpop.xlane.xlu1 %4940  ;;  %v5083_v21 = vmul.f32 %v8495_v31, %v11289_v37  ;;  %v5118_v56 = vmul.f32 %v11392_v20, %v5082_v44 }
 0xaeb   : > { %v5022_v57 = vadd.f32 1e-05, %v4990_v0  ;;  %v4991_v28 = vmul.f32 0.0078125, %v4941_v45  ;;  %4974 = vadd.xlane.f32.xlu0 %v4912_v9  ;;  %v4913_v33 = vmul.f32 %v11469_v23, %v11469_v23  ;;  %5469 = vmatprep.mubr.bf16.mxu1 %v12197_v18 }
 0xaec   : > { %v5119_v63 = vmul.f32 %v11392_v20, %v5083_v21  ;;  %v5154_v4 = vadd.f32 %v11396_v22, %v5118_v56 }
 0xaed   : > { %8500 = vrsqrt.f32 %v5022_v57  ;;  %v5023_v16 = vadd.f32 1e-05, %v4991_v28  ;;  %4976 = vadd.xlane.f32.xlu1 %v4913_v33  ;;  %v11503_v28 = vpop.f32.mrb[160].mxu1 }
 0xaee   : > { %v5155_v51 = vadd.f32 %v11396_v22, %v5119_v63 }
 0xaef   : > { %v8497_v37 = vpop.eup %8496  ;;  %8502 = vrsqrt.f32 %v5023_v16 }
 0xaf0   : > { %v4943_v8 = vpop.xlane.xlu0 %4942  ;;  %v5289_v26 = vpack.c.bf16 %v5155_v51, %v5154_v4  ;;  %v5084_v36 = vmul.f32 %v8497_v37, %v11308_v32 }
 0xaf1   : > { %v8499_v46 = vpop.eup %8498  ;;  %v4992_v41 = vmul.f32 0.0078125, %v4943_v8 }
 0xaf2   : > { %5470 = vmatmul.mubr.bf16.gmra.mrb[180].mxu1 %v5289_v26  ;;  %v4945_v7 = vpop.xlane.xlu1 %4944  ;;  %v5085_v24 = vmul.f32 %v8499_v46, %v11321_v15  ;;  %v5120_v53 = vmul.f32 %v11392_v20, %v5084_v36 }
 0xaf3   : > { %v5024_v59 = vadd.f32 1e-05, %v4992_v41  ;;  %v4993_v49 = vmul.f32 0.0078125, %v4945_v7  ;;  %5479 = vmatprep.mubr.bf16.mxu1 %v12197_v18 }
 0xaf4   : > { %v5121_v54 = vmul.f32 %v11392_v20, %v5085_v24  ;;  %v5156_v5 = vadd.f32 %v11396_v22, %v5120_v53 }
 0xaf5   : > { %8504 = vrsqrt.f32 %v5024_v59  ;;  %v5025_v38 = vadd.f32 1e-05, %v4993_v49 }
 0xaf6   : > { %v5157_v32 = vadd.f32 %v11396_v22, %v5121_v54 }
 0xaf7   : > { %v8501_v13 = vpop.eup %8500  ;;  %8506 = vrsqrt.f32 %v5025_v38 }
 0xaf8   : > { %v5290_v17 = vpack.c.bf16 %v5157_v32, %v5156_v5  ;;  %v5086_v6 = vmul.f32 %v8501_v13, %v11335_v60 }
 0xaf9   : > { %v8503_v15 = vpop.eup %8502 }
 0xafa   : > { %5480 = vmatmul.mubr.bf16.gmra.mrb[184].mxu1 %v5290_v17  ;;  %v5087_v11 = vmul.f32 %v8503_v15, %v11342_v55  ;;  %v5122_v42 = vmul.f32 %v11392_v20, %v5086_v6 }
 0xafb   : > { %5489 = vmatprep.mubr.bf16.mxu1 %v12197_v18 }
 0xafc   : > { %v5123_v48 = vmul.f32 %v11392_v20, %v5087_v11  ;;  %v5158_v25 = vadd.f32 %v11396_v22, %v5122_v42 }
 0xafe   : > { %v5159_v10 = vadd.f32 %v11396_v22, %v5123_v48 }
 0xaff   : > { %v8505_v44 = vpop.eup %8504 }
 0xb00   : > { %v5291_v31 = vpack.c.bf16 %v5159_v10, %v5158_v25  ;;  %v5088_v0 = vmul.f32 %v8505_v44, %v11350_v34  ;;  %v7718_v34 = vpop.f32.mrb[161].mxu1 }
 0xb01   : > { %v8507_v9 = vpop.eup %8506  ;;  %v5281_v33 = vpop.f32.mrb[162].mxu1 }
 0xb02   : > { %5490 = vmatmul.mubr.bf16.gmra.mrb[188].mxu1 %v5291_v31  ;;  %v5089_v60 = vmul.f32 %v8507_v9, %v11353_v30  ;;  %v5124_v55 = vmul.f32 %v11392_v20, %v5088_v0  ;;  %v7719_v63 = vpop.f32.mrb[163].mxu1 }
 0xb03   : > { %5499 = vmatprep.mubr.bf16.mxu1 %v12197_v18 }
 0xb04   : > { %v5125_v45 = vmul.f32 %v11392_v20, %v5089_v60  ;;  %v5160_v21 = vadd.f32 %v11396_v22, %v5124_v55 }
 0xb06   : > { %v5161_v56 = vadd.f32 %v11396_v22, %v5125_v45 }
 0xb08   : > { %v5292_v57 = vpack.c.bf16 %v5161_v56, %v5160_v21 }
 0xb0a   : > { %5500 = vmatmul.mubr.bf16.gmra.mrb[192].mxu1 %v5292_v57 }
 0xb0b   : > { %5509 = vmatprep.mubr.bf16.mxu1 %v12197_v18 }
 0xb37   : > { %v4947_v30 = vpop.xlane.xlu0 %4946 }
 0xb38   : > { %v4994_v16 = vmul.f32 0.0078125, %v4947_v30 }
 0xb39   : > { %v4949_v4 = vpop.xlane.xlu1 %4948 }
 0xb3a   : > { %v5026_v51 = vadd.f32 1e-05, %v4994_v16  ;;  %v4995_v37 = vmul.f32 0.0078125, %v4949_v4 }
 0xb3c   : > { %8508 = vrsqrt.f32 %v5026_v51  ;;  %v5027_v8 = vadd.f32 1e-05, %v4995_v37 }
 0xb3e   : > { %8510 = vrsqrt.f32 %v5027_v8 }
 0xb42   : > { %v4951_v26 = vpop.xlane.xlu0 %4950 }
 0xb43   : > { %v4996_v36 = vmul.f32 0.0078125, %v4951_v26 }
 0xb44   : > { %v4953_v46 = vpop.xlane.xlu1 %4952 }
 0xb45   : > { %v5028_v41 = vadd.f32 1e-05, %v4996_v36  ;;  %v4997_v7 = vmul.f32 0.0078125, %v4953_v46 }
 0xb46   : > { %v8509_v24 = vpop.eup %8508 }
 0xb47   : > { %8512 = vrsqrt.f32 %v5028_v41  ;;  %v5029_v53 = vadd.f32 1e-05, %v4997_v7  ;;  %v5090_v59 = vmul.f32 %v8509_v24, %v11360_v27 }
 0xb48   : > { %v8511_v49 = vpop.eup %8510 }
 0xb49   : > { %8514 = vrsqrt.f32 %v5029_v53  ;;  %v5091_v54 = vmul.f32 %v8511_v49, %v11363_v62  ;;  %v5126_v38 = vmul.f32 %v11392_v20, %v5090_v59 }
 0xb4b   : > { %v5127_v5 = vmul.f32 %v11392_v20, %v5091_v54  ;;  %v5162_v17 = vadd.f32 %v11396_v22, %v5126_v38 }
 0xb4c   : > { %v4955_v32 = vpop.xlane.xlu0 %4954 }
 0xb4d   : > { %v4998_v13 = vmul.f32 0.0078125, %v4955_v32  ;;  %v5163_v6 = vadd.f32 %v11396_v22, %v5127_v5 }
 0xb4e   : > { %v4957_v15 = vpop.xlane.xlu1 %4956 }
 0xb4f   : > { %v5030_v11 = vadd.f32 1e-05, %v4998_v13  ;;  %v4999_v42 = vmul.f32 0.0078125, %v4957_v15  ;;  %v5293_v48 = vpack.c.bf16 %v5163_v6, %v5162_v17 }
 0xb51   : > { %v8513_v25 = vpop.eup %8512  ;;  %8516 = vrsqrt.f32 %v5030_v11  ;;  %v5031_v27 = vadd.f32 1e-05, %v4999_v42  ;;  %5510 = vmatmul.mubr.bf16.gmra.mrb[196].mxu1 %v5293_v48 }
 0xb52   : > { %5519 = vmatprep.mubr.bf16.mxu1 %v12197_v18  ;;  %v5092_v62 = vmul.f32 %v8513_v25, %v11370_v1 }
 0xb53   : > { %v8515_v10 = vpop.eup %8514  ;;  %8518 = vrsqrt.f32 %v5031_v27 }
 0xb54   : > { %v5093_v44 = vmul.f32 %v8515_v10, %v11373_v47  ;;  %v5128_v31 = vmul.f32 %v11392_v20, %v5092_v62 }
 0xb56   : > { %v5129_v0 = vmul.f32 %v11392_v20, %v5093_v44  ;;  %v5164_v55 = vadd.f32 %v11396_v22, %v5128_v31 }
 0xb57   : > { %v4959_v9 = vpop.xlane.xlu0 %4958 }
 0xb58   : > { %v5000_v60 = vmul.f32 0.0078125, %v4959_v9  ;;  %v5165_v45 = vadd.f32 %v11396_v22, %v5129_v0 }
 0xb59   : > { %v4961_v21 = vpop.xlane.xlu1 %4960 }
 0xb5a   : > { %v5032_v56 = vadd.f32 1e-05, %v5000_v60  ;;  %v5001_v57 = vmul.f32 0.0078125, %v4961_v21  ;;  %v5294_v34 = vpack.c.bf16 %v5165_v45, %v5164_v55 }
 0xb5b   : > { %v8517_v33 = vpop.eup %8516 }
 0xb5c   : > { %8520 = vrsqrt.f32 %v5032_v56  ;;  %v5033_v1 = vadd.f32 1e-05, %v5001_v57  ;;  %5520 = vmatmul.mubr.bf16.gmra.mrb[200].mxu1 %v5294_v34  ;;  %v5094_v47 = vmul.f32 %v8517_v33, %v11380_v43 }
 0xb5d   : > { %v8519_v63 = vpop.eup %8518  ;;  %5529 = vmatprep.mubr.bf16.mxu1 %v12197_v18 }
 0xb5e   : > { %8522 = vrsqrt.f32 %v5033_v1  ;;  %v5095_v30 = vmul.f32 %v8519_v63, %v11384_v35  ;;  %v5130_v16 = vmul.f32 %v11392_v20, %v5094_v47 }
 0xb5f   : > { %v4963_v4 = vpop.xlane.xlu0 %4962 }
 0xb60   : > { %v5002_v51 = vmul.f32 0.0078125, %v4963_v4  ;;  %v5131_v37 = vmul.f32 %v11392_v20, %v5095_v30  ;;  %v5166_v46 = vadd.f32 %v11396_v22, %v5130_v16 }
 0xb61   : > { %v4965_v8 = vpop.xlane.xlu1 %4964 }
 0xb62   : > { %v5034_v26 = vadd.f32 1e-05, %v5002_v51  ;;  %v5003_v36 = vmul.f32 0.0078125, %v4965_v8  ;;  %v5167_v41 = vadd.f32 %v11396_v22, %v5131_v37 }
 0xb64   : > { %8524 = vrsqrt.f32 %v5034_v26  ;;  %v5035_v43 = vadd.f32 1e-05, %v5003_v36  ;;  %v5295_v7 = vpack.c.bf16 %v5167_v41, %v5166_v46 }
 0xb66   : > { %v8521_v24 = vpop.eup %8520  ;;  %8526 = vrsqrt.f32 %v5035_v43  ;;  %5530 = vmatmul.mubr.bf16.gmra.mrb[204].mxu1 %v5295_v7 }
 0xb67   : > { %5539 = vmatprep.mubr.bf16.mxu1 %v12197_v18  ;;  %v5096_v53 = vmul.f32 %v8521_v24, %v11401_v50 }
 0xb68   : > { %v4967_v35 = vpop.xlane.xlu0 %4966  ;;  %v8523_v59 = vpop.eup %8522 }
 0xb69   : > { %v5004_v49 = vmul.f32 0.0078125, %v4967_v35  ;;  %v5097_v38 = vmul.f32 %v8523_v59, %v11406_v58  ;;  %v5132_v5 = vmul.f32 %v11392_v20, %v5096_v53 }
 0xb6a   : > { %v4969_v54 = vpop.xlane.xlu1 %4968 }
 0xb6b   : > { %v5036_v32 = vadd.f32 1e-05, %v5004_v49  ;;  %v5005_v13 = vmul.f32 0.0078125, %v4969_v54  ;;  %v5133_v17 = vmul.f32 %v11392_v20, %v5097_v38  ;;  %v5168_v15 = vadd.f32 %v11396_v22, %v5132_v5 }
 0xb6d   : > { %8528 = vrsqrt.f32 %v5036_v32  ;;  %v5037_v6 = vadd.f32 1e-05, %v5005_v13  ;;  %v5169_v11 = vadd.f32 %v11396_v22, %v5133_v17 }
 0xb6e   : > { %v8525_v42 = vpop.eup %8524 }
 0xb6f   : > { %8530 = vrsqrt.f32 %v5037_v6  ;;  %v5296_v48 = vpack.c.bf16 %v5169_v11, %v5168_v15  ;;  %v5098_v25 = vmul.f32 %v8525_v42, %v11416_v14 }
 0xb70   : > { %v4971_v50 = vpop.xlane.xlu0 %4970  ;;  %v8527_v27 = vpop.eup %8526 }
 0xb71   : > { %v5006_v58 = vmul.f32 0.0078125, %v4971_v50  ;;  %5540 = vmatmul.mubr.bf16.gmra.mrb[208].mxu1 %v5296_v48  ;;  %v5099_v10 = vmul.f32 %v8527_v27, %v11421_v3  ;;  %v5134_v44 = vmul.f32 %v11392_v20, %v5098_v25 }
 0xb72   : > { %v4973_v62 = vpop.xlane.xlu1 %4972  ;;  %5549 = vmatprep.mubr.bf16.mxu1 %v12197_v18 }
 0xb73   : > { %v5038_v31 = vadd.f32 1e-05, %v5006_v58  ;;  %v5007_v0 = vmul.f32 0.0078125, %v4973_v62  ;;  %v5135_v9 = vmul.f32 %v11392_v20, %v5099_v10  ;;  %v5170_v55 = vadd.f32 %v11396_v22, %v5134_v44 }
 0xb75   : > { %8532 = vrsqrt.f32 %v5038_v31  ;;  %v5039_v60 = vadd.f32 1e-05, %v5007_v0  ;;  %v5171_v14 = vadd.f32 %v11396_v22, %v5135_v9 }
 0xb77   : > { %v8529_v45 = vpop.eup %8528  ;;  %8534 = vrsqrt.f32 %v5039_v60  ;;  %v5297_v56 = vpack.c.bf16 %v5171_v14, %v5170_v55  ;;  %v11572_v14 = vpack.c.bf16 %v11503_v28, %v11503_v28 }
 0xb78   : > { %v4975_v21 = vpop.xlane.xlu0 %4974  ;;  %v5100_v3 = vmul.f32 %v8529_v45, %v11431_v29 }
 0xb79   : > { %v8531_v57 = vpop.eup %8530  ;;  %v5008_v34 = vmul.f32 0.0078125, %v4975_v21  ;;  %5550 = vmatmul.mubr.bf16.gmra.mrb[212].mxu1 %v5297_v56 }
 0xb7a   : > { %v4977_v33 = vpop.xlane.xlu1 %4976  ;;  %v5101_v1 = vmul.f32 %v8531_v57, %v11436_v19  ;;  %v5136_v47 = vmul.f32 %v11392_v20, %v5100_v3  ;;  %5559 = vmatprep.mubr.bf16.mxu1 %v12197_v18 }
 0xb7b   : > { %v5040_v63 = vadd.f32 1e-05, %v5008_v34  ;;  %v5009_v30 = vmul.f32 0.0078125, %v4977_v33 }
 0xb7c   : > { %v5137_v16 = vmul.f32 %v11392_v20, %v5101_v1  ;;  %v5172_v51 = vadd.f32 %v11396_v22, %v5136_v47 }
 0xb7d   : > { %8536 = vrsqrt.f32 %v5040_v63  ;;  %v5041_v4 = vadd.f32 1e-05, %v5009_v30 }
 0xb7e   : > { %v5173_v29 = vadd.f32 %v11396_v22, %v5137_v16 }
 0xb7f   : > { %v8533_v37 = vpop.eup %8532  ;;  %8538 = vrsqrt.f32 %v5041_v4 }
 0xb80   : > { %v5298_v8 = vpack.c.bf16 %v5173_v29, %v5172_v51  ;;  %v5102_v26 = vmul.f32 %v8533_v37, %v11448_v2 }
 0xb81   : > { %v8535_v19 = vpop.eup %8534 }
 0xb82   : > { %5560 = vmatmul.mubr.bf16.gmra.mrb[216].mxu1 %v5298_v8  ;;  %v5103_v36 = vmul.f32 %v8535_v19, %v11452_v52  ;;  %v5138_v46 = vmul.f32 %v11392_v20, %v5102_v26 }
 0xb83   : > { %5569 = vmatprep.mubr.bf16.mxu1 %v12197_v18 }
 0xb84   : > { %v5139_v41 = vmul.f32 %v11392_v20, %v5103_v36  ;;  %v5174_v43 = vadd.f32 %v11396_v22, %v5138_v46 }
 0xb86   : > { %v5175_v7 = vadd.f32 %v11396_v22, %v5139_v41 }
 0xb87   : > { %v8537_v24 = vpop.eup %8536 }
 0xb88   : > { %v5299_v35 = vpack.c.bf16 %v5175_v7, %v5174_v43  ;;  %v5104_v53 = vmul.f32 %v8537_v24, %v11465_v39 }
 0xb89   : > { %v8539_v59 = vpop.eup %8538 }
 0xb8a   : > { %5570 = vmatmul.mubr.bf16.gmra.mrb[220].mxu1 %v5299_v35  ;;  %v5105_v2 = vmul.f32 %v8539_v59, %v11469_v23  ;;  %v5140_v52 = vmul.f32 %v11392_v20, %v5104_v53 }
 0xb8b   : > { %5579 = vmatprep.mubr.bf16.mxu1 %v12197_v18 }
 0xb8c   : > { %v5141_v49 = vmul.f32 %v11392_v20, %v5105_v2  ;;  %v5176_v54 = vadd.f32 %v11396_v22, %v5140_v52 }
 0xb8e   : > { %v5177_v38 = vadd.f32 %v11396_v22, %v5141_v49 }
 0xb90   : > { %v5300_v5 = vpack.c.bf16 %v5177_v38, %v5176_v54 }
 0xb92   : > { %5580 = vmatmul.mubr.bf16.gmra.mrb[224].mxu1 %v5300_v5 }
 0xb93   : > { %7776 = vmatprep.mubr.msk.bf16.mxu1 %vm8658_vm1, %v8657_v40 }
 0xb9f   : > { %v5431_v39 = vpop.f32.mrb[164].mxu1 }
 0xba0   : > { %v5433_v32 = vpop.f32.mrb[165].mxu1 }
 0xba1   : > { %v5435_v13 = vpop.f32.mrb[166].mxu1 }
 0xba2   : > { %v5590_v17 = vpack.c.bf16 %v5435_v13, %v5431_v39  ;;  %v5437_v23 = vpop.f32.mrb[167].mxu1 }
 0xba3   : > { %v5591_v6 = vpack.c.bf16 %v5437_v23, %v5433_v32 }
 0xba4   : > { %7721 = vmatpush3.bf16.xpose.msra.mxu0 %v5590_v17 }
 0xba5   : > { %7769 = vmatpush3.bf16.msra.mxu1 %v5591_v6  ;;  %7722 = vmatprep.subr.bf16.mxu0 %v8657_v40 }
 0xba6   : > { %7770 = vmatprep.subr.bf16.mxu1 %v8657_v40 }
 0xba9   : > { %v5441_v20 = vpop.f32.mrb[168].mxu1 }
 0xbaa   : > { %v5443_v15 = vpop.f32.mrb[169].mxu1 }
 0xbab   : > { %v5445_v22 = vpop.f32.mrb[170].mxu1 }
 0xbac   : > { %v5592_v11 = vpack.c.bf16 %v5445_v22, %v5441_v20  ;;  %v5447_v42 = vpop.f32.mrb[171].mxu1 }
 0xbad   : > { %v5593_v50 = vpack.c.bf16 %v5447_v42, %v5443_v15 }
 0xbae   : > { %7723 = vmatpush3.bf16.xpose.msra.mxu0 %v5592_v11 }
 0xbaf   : > { %7771 = vmatpush3.bf16.msra.mxu1 %v5593_v50  ;;  %7724 = vmatprep.subr.bf16.mxu0 %v8657_v40 }
 0xbb0   : > { %7772 = vmatprep.subr.bf16.mxu1 %v8657_v40 }
 0xbb4   : > { %v5451_v48 = vpop.f32.mrb[172].mxu1 }
 0xbb5   : > { %v5453_v25 = vpop.f32.mrb[173].mxu1 }
 0xbb6   : > { %v5455_v27 = vpop.f32.mrb[174].mxu1 }
 0xbb7   : > { %v5594_v58 = vpack.c.bf16 %v5455_v27, %v5451_v48  ;;  %v5457_v62 = vpop.f32.mrb[175].mxu1 }
 0xbb8   : > { %v5595_v10 = vpack.c.bf16 %v5457_v62, %v5453_v25 }
 0xbb9   : > { %7725 = vmatpush3.bf16.xpose.msra.mxu0 %v5594_v58 }
 0xbba   : > { %7773 = vmatpush3.bf16.msra.mxu1 %v5595_v10  ;;  %7726 = vmatprep.subr.bf16.mxu0 %v8657_v40 }
 0xbbb   : > { %7774 = vmatprep.subr.bf16.mxu1 %v8657_v40 }
 0xbbd   : > { %v5461_v44 = vpop.f32.mrb[176].mxu1 }
 0xbbe   : > { %v5463_v31 = vpop.f32.mrb[177].mxu1 }
 0xbbf   : > { %v5465_v0 = vpop.f32.mrb[178].mxu1 }
 0xbc0   : > { %v5596_v9 = vpack.c.bf16 %v5465_v0, %v5461_v44  ;;  %v5467_v60 = vpop.f32.mrb[179].mxu1 }
 0xbc1   : > { %v5597_v55 = vpack.c.bf16 %v5467_v60, %v5463_v31 }
 0xbc2   : > { %7727 = vmatpush3.bf16.xpose.msra.mxu0 %v5596_v9 }
 0xbc3   : > { %7775 = vmatpush3.bf16.msra.mxu1 %v5597_v55  ;;  %7732 = vmatprep.subr.bf16.mxu0 %v8657_v40 }
 0xbc4   : > { %7792 = vmatprep.subr.bf16.mxu1 %v8657_v40 }
 0xbc5   : > { %v5471_v45 = vpop.f32.mrb[180].mxu1 }
 0xbc6   : > { %v11574_v21 = vpop.f32.mrb[181].mxu1 }
 0xbc7   : > { %v5475_v56 = vpop.f32.mrb[182].mxu1 }
 0xbc8   : > { %v5598_v3 = vpack.c.bf16 %v5475_v56, %v5471_v45  ;;  %v11576_v57 = vpop.f32.mrb[183].mxu1 }
 0xbc9   : > { %v5599_v34 = vpack.c.bf16 %v11576_v57, %v11574_v21  ;;  %7729 = vmatmul.mubr.bf16.vlgmr.msra.gmra.mrb[192].mxu0 %v11572_v14 }
 0xbca   : > { %7733 = vmatpush3.bf16.xpose.msra.mxu0 %v5598_v3  ;;  %7740 = vmatprep.mubr.msk.bf16.mxu0 %vm8658_vm1, %v8657_v40 }
 0xbcb   : > { %7734 = vmatprep.subr.bf16.mxu0 %v8657_v40 }
 0xbcd   : > { %v5481_v28 = vpop.f32.mrb[184].mxu1 }
 0xbce   : > { %v11584_v33 = vpop.f32.mrb[185].mxu1 }
 0xbcf   : > { %v5485_v1 = vpop.f32.mrb[186].mxu1 }
 0xbd0   : > { %v5600_v47 = vpack.c.bf16 %v5485_v1, %v5481_v28  ;;  %v11586_v63 = vpop.f32.mrb[187].mxu1 }
 0xbd1   : > { %v5601_v30 = vpack.c.bf16 %v11586_v63, %v11584_v33 }
 0xbd2   : > { %7735 = vmatpush3.bf16.xpose.msra.mxu0 %v5600_v47 }
 0xbd3   : > { %7736 = vmatprep.subr.bf16.mxu0 %v8657_v40 }
 0xbd5   : > { %v5491_v16 = vpop.f32.mrb[188].mxu1 }
 0xbd6   : > { %v11591_v4 = vpop.f32.mrb[189].mxu1 }
 0xbd7   : > { %v5495_v51 = vpop.f32.mrb[190].mxu1 }
 0xbd8   : > { %v5602_v29 = vpack.c.bf16 %v5495_v51, %v5491_v16  ;;  %v11593_v37 = vpop.f32.mrb[191].mxu1 }
 0xbd9   : > { %v5603_v8 = vpack.c.bf16 %v11593_v37, %v11591_v4 }
 0xbda   : > { %7737 = vmatpush3.bf16.xpose.msra.mxu0 %v5602_v29 }
 0xbdb   : > { %7738 = vmatprep.subr.bf16.mxu0 %v8657_v40 }
 0xbdd   : > { %v5501_v26 = vpop.f32.mrb[192].mxu1 }
 0xbde   : > { %v11598_v19 = vpop.f32.mrb[193].mxu1 }
 0xbdf   : > { %v5505_v36 = vpop.f32.mrb[194].mxu1 }
 0xbe0   : > { %v5604_v46 = vpack.c.bf16 %v5505_v36, %v5501_v26  ;;  %v11600_v41 = vpop.f32.mrb[195].mxu1 }
 0xbe1   : > { %v5605_v43 = vpack.c.bf16 %v11600_v41, %v11598_v19 }
 0xbe2   : > { %7739 = vmatpush3.bf16.xpose.msra.mxu0 %v5604_v46 }
 0xbe3   : > { %7744 = vmatprep.subr.bf16.mxu0 %v8657_v40 }
 0xbe9   : > { %7741 = vmatmul.mubr.bf16.vlgmr.msra.gmra.mrb[196].mxu0 %v11572_v14 }
 0xbea   : > { %7752 = vmatprep.mubr.msk.bf16.mxu0 %vm8658_vm1, %v8657_v40 }
 0xc24   : > { %v5511_v7 = vpop.f32.mrb[196].mxu1 }
 0xc25   : > { %v11608_v24 = vpop.f32.mrb[197].mxu1 }
 0xc26   : > { %v5515_v35 = vpop.f32.mrb[198].mxu1 }
 0xc27   : > { %v5606_v53 = vpack.c.bf16 %v5515_v35, %v5511_v7  ;;  %v11610_v59 = vpop.f32.mrb[199].mxu1 }
 0xc28   : > { %v5607_v2 = vpack.c.bf16 %v11610_v59, %v11608_v24 }
 0xc29   : > { %7745 = vmatpush3.bf16.xpose.msra.mxu0 %v5606_v53 }
 0xc2a   : > { %7746 = vmatprep.subr.bf16.mxu0 %v8657_v40 }
 0xc2f   : > { %v5521_v52 = vpop.f32.mrb[200].mxu1 }
 0xc30   : > { %v11615_v49 = vpop.f32.mrb[201].mxu1 }
 0xc31   : > { %v5525_v54 = vpop.f32.mrb[202].mxu1 }
 0xc32   : > { %v5608_v38 = vpack.c.bf16 %v5525_v54, %v5521_v52  ;;  %v11617_v5 = vpop.f32.mrb[203].mxu1 }
 0xc33   : > { %v5609_v39 = vpack.c.bf16 %v11617_v5, %v11615_v49 }
 0xc34   : > { %7747 = vmatpush3.bf16.xpose.msra.mxu0 %v5608_v38 }
 0xc35   : > { %7748 = vmatprep.subr.bf16.mxu0 %v8657_v40 }
 0xc39   : > { %v5531_v32 = vpop.f32.mrb[204].mxu1 }
 0xc3a   : > { %v11622_v13 = vpop.f32.mrb[205].mxu1 }
 0xc3b   : > { %v5535_v17 = vpop.f32.mrb[206].mxu1 }
 0xc3c   : > { %v5610_v23 = vpack.c.bf16 %v5535_v17, %v5531_v32  ;;  %v11624_v6 = vpop.f32.mrb[207].mxu1 }
 0xc3d   : > { %v5611_v20 = vpack.c.bf16 %v11624_v6, %v11622_v13 }
 0xc3e   : > { %7749 = vmatpush3.bf16.xpose.msra.mxu0 %v5610_v23 }
 0xc3f   : > { %7750 = vmatprep.subr.bf16.mxu0 %v8657_v40 }
 0xc44   : > { %v5541_v15 = vpop.f32.mrb[208].mxu1 }
 0xc45   : > { %v11629_v22 = vpop.f32.mrb[209].mxu1 }
 0xc46   : > { %v5545_v11 = vpop.f32.mrb[210].mxu1 }
 0xc47   : > { %v5612_v42 = vpack.c.bf16 %v5545_v11, %v5541_v15  ;;  %v11631_v50 = vpop.f32.mrb[211].mxu1 }
 0xc48   : > { %v5613_v48 = vpack.c.bf16 %v11631_v50, %v11629_v22 }
 0xc49   : > { %7751 = vmatpush3.bf16.xpose.msra.mxu0 %v5612_v42 }
 0xc4a   : > { %7756 = vmatprep.subr.bf16.mxu0 %v8657_v40 }
 0xc4c   : > { %v5551_v25 = vpop.f32.mrb[212].mxu1 }
 0xc4d   : > { %v11636_v27 = vpop.f32.mrb[213].mxu1 }
 0xc4e   : > { %v5555_v58 = vpop.f32.mrb[214].mxu1 }
 0xc4f   : > { %v5614_v62 = vpack.c.bf16 %v5555_v58, %v5551_v25  ;;  %v11638_v10 = vpop.f32.mrb[215].mxu1 }
 0xc50   : > { %v5615_v44 = vpack.c.bf16 %v11638_v10, %v11636_v27  ;;  %7753 = vmatmul.mubr.bf16.vlgmr.msra.gmra.mrb[200].mxu0 %v11572_v14 }
 0xc51   : > { %7757 = vmatpush3.bf16.xpose.msra.mxu0 %v5614_v62  ;;  %7764 = vmatprep.mubr.msk.bf16.mxu0 %vm8658_vm1, %v8657_v40 }
 0xc52   : > { %7758 = vmatprep.subr.bf16.mxu0 %v8657_v40 }
 0xc55   : > { %v5561_v31 = vpop.f32.mrb[216].mxu1 }
 0xc56   : > { %v11646_v0 = vpop.f32.mrb[217].mxu1 }
 0xc57   : > { %v5565_v9 = vpop.f32.mrb[218].mxu1 }
 0xc58   : > { %v5616_v60 = vpack.c.bf16 %v5565_v9, %v5561_v31  ;;  %v11648_v55 = vpop.f32.mrb[219].mxu1 }
 0xc59   : > { %v5617_v45 = vpack.c.bf16 %v11648_v55, %v11646_v0 }
 0xc5a   : > { %7759 = vmatpush3.bf16.xpose.msra.mxu0 %v5616_v60 }
 0xc5b   : > { %7760 = vmatprep.subr.bf16.mxu0 %v8657_v40 }
 0xc5d   : > { %v5571_v56 = vpop.f32.mrb[220].mxu1 }
 0xc5e   : > { %v11653_v3 = vpop.f32.mrb[221].mxu1 }
 0xc5f   : > { %v5575_v28 = vpop.f32.mrb[222].mxu1 }
 0xc60   : > { %v5618_v1 = vpack.c.bf16 %v5575_v28, %v5571_v56  ;;  %v11655_v47 = vpop.f32.mrb[223].mxu1  ;;  %v8037_v56 = vld [vmem:[%s12043_s9 + $0x8] sm:$0xff]  }
 0xc61   : > { %v5619_v16 = vpack.c.bf16 %v11655_v47, %v11653_v3  ;;  %v8038_v3 = vld [vmem:[%s12043_s9 + $0x10] sm:$0xff]   ;;  %v8039_v47 = vld [vmem:[%s12043_s9 + $0x18] sm:$0xff]  }
 0xc62   : > { %7761 = vmatpush3.bf16.xpose.msra.mxu0 %v5618_v1 }
 0xc63   : > { %7762 = vmatprep.subr.bf16.mxu0 %v8657_v40 }
 0xc65   : > { %v5581_v51 = vpop.f32.mrb[224].mxu1 }
 0xc66   : > { %v11660_v29 = vpop.f32.mrb[225].mxu1 }
 0xc67   : > { %v5585_v26 = vpop.f32.mrb[226].mxu1 }
 0xc68   : > { %v5620_v36 = vpack.c.bf16 %v5585_v26, %v5581_v51  ;;  %v11662_v46 = vpop.f32.mrb[227].mxu1  ;;  %v8041_v51 = vld [vmem:[%s12043_s9 + $0x28] sm:$0xff]   ;;  %v8042_v26 = vld [vmem:[%s12043_s9 + $0x30] sm:$0xff]  }
 0xc69   : > { %v5621_v7 = vpack.c.bf16 %v11662_v46, %v11660_v29 }
 0xc6a   : > { %7763 = vmatpush3.bf16.xpose.msra.mxu0 %v5620_v36 }
 0xc6b   : > { %7780 = vmatprep.subr.bf16.mxu0 %v8657_v40 }
 0xc71   : > { %7765 = vmatmul.mubr.bf16.vlgmr.msra.gmra.mrb[204].mxu0 %v11572_v14 }
 0xc72   : > { %7781 = vmatpush3.bf16.msra.mxu0 %v5599_v34  ;;  %7788 = vmatprep.mubr.msk.bf16.mxu0 %vm8658_vm1, %v8657_v40 }
 0xc73   : > { %7782 = vmatprep.subr.bf16.mxu0 %v8657_v40 }
 0xc76   : > { %7783 = vmatpush3.bf16.msra.mxu0 %v5601_v30 }
 0xc77   : > { %7784 = vmatprep.subr.bf16.mxu0 %v8657_v40 }
 0xc7a   : > { %7785 = vmatpush3.bf16.msra.mxu0 %v5603_v8 }
 0xc7b   : > { %7786 = vmatprep.subr.bf16.mxu0 %v8657_v40 }
 0xc7e   : > { %7787 = vmatpush3.bf16.msra.mxu0 %v5605_v43 }
 0xc7f   : > { %7804 = vmatprep.subr.bf16.mxu0 %v8657_v40 }
 0xc9c   : > { %v5656_v14 = vpop.f32.mrb[192].mxu0 }
 0xc9d   : > { %v5782_v21 = vsel %vm2123_vm0, %v5656_v14, -inf  ;;  %v7730_v57 = vpop.f32.mrb[193].mxu0 }
 0xc9e   : > { %5783 = vmax.xlane.f32.xlu0 %v5782_v21  ;;  %v5659_v34 = vpop.f32.mrb[194].mxu0 }
 0xc9f   : > { %v7731_v33 = vpop.f32.mrb[195].mxu0 }
 0xcbc   : > { %v5696_v63 = vpop.f32.mrb[196].mxu0 }
 0xcbd   : > { %v7742_v30 = vpop.f32.mrb[197].mxu0  ;;  %v5785_v4 = vsel %vm2123_vm0, %v5696_v63, -inf }
 0xcbe   : > { %5786 = vmax.xlane.f32.xlu1 %v5785_v4  ;;  %v5699_v37 = vpop.f32.mrb[198].mxu0 }
 0xcbf   : > { %v7743_v8 = vpop.f32.mrb[199].mxu0 }
 0xd23   : > { %v5736_v35 = vpop.f32.mrb[200].mxu0 }
 0xd24   : > { %v7754_v53 = vpop.f32.mrb[201].mxu0  ;;  %v5788_v19 = vsel %vm2123_vm0, %v5736_v35, -inf }
 0xd25   : > { %5789 = vmax.xlane.f32.xlu0 %v5788_v19  ;;  %v5739_v41 = vpop.f32.mrb[202].mxu0 }
 0xd26   : > { %v7755_v43 = vpop.f32.mrb[203].mxu0 }
 0xd2b   : > { %v5784_v52 = vpop.xlane.xlu0 %5783 }
 0xd2c   : > { %v5794_v54 = vsub.f32 %v5656_v14, %v5784_v52 }
 0xd2e   : > { %v5798_v38 = vmul.f32 1.442695, %v5794_v54 }
 0xd30   : > { %8540 = vpow2.f32 %v5798_v38 }
 0xd3a   : > { %v8541_v32 = vpop.eup %8540 }
 0xd3b   : > { %v5818_v17 = vpack.c.bf16 %v8541_v32, %v8541_v32  ;;  %v5806_v23 = vsel %vm2123_vm0, %v8541_v32, 0.0 }
 0xd3c   : > { %5807 = vadd.xlane.f32.xlu0 %v5806_v23 }
 0xd3d   : > { %7777 = vmatmul.mubr.msk.bf16.vlgmr.msra.gmra.mrb[228].mxu1 %vm2123_vm0, %v5818_v17 }
 0xd3e   : > { %7793 = vmatpush3.bf16.msra.mxu1 %v5607_v2  ;;  %7800 = vmatprep.mubr.msk.bf16.mxu1 %vm8658_vm1, %v8657_v40 }
 0xd3f   : > { %7794 = vmatprep.subr.bf16.mxu1 %v8657_v40 }
 0xd42   : > { %7795 = vmatpush3.bf16.msra.mxu1 %v5609_v39 }
 0xd43   : > { %7796 = vmatprep.subr.bf16.mxu1 %v8657_v40 }
 0xd44   : > { %v5776_v15 = vpop.f32.mrb[204].mxu0 }
 0xd45   : > { %v7766_v11 = vpop.f32.mrb[205].mxu0  ;;  %v5791_v42 = vsel %vm2123_vm0, %v5776_v15, -inf }
 0xd46   : > { %7797 = vmatpush3.bf16.msra.mxu1 %v5611_v20  ;;  %5792 = vmax.xlane.f32.xlu1 %v5791_v42  ;;  %v5779_v24 = vpop.f32.mrb[206].mxu0  ;;  %v8590_v42 = vld [vmem:[%s12040_s6] sm:$0xff] }
 0xd47   : > { %v7767_v59 = vpop.f32.mrb[207].mxu0  ;;  %7798 = vmatprep.subr.bf16.mxu1 %v8657_v40 }
 0xd4a   : > { %7799 = vmatpush3.bf16.msra.mxu1 %v5613_v48 }
 0xd4b   : > { %v5787_v2 = vpop.xlane.xlu1 %5786 }
 0xd4c   : > { %v5795_v49 = vsub.f32 %v5696_v63, %v5787_v2  ;;  %v8043_v63 = vld [vmem:[%s12043_s9 + $0x38] sm:$0xff]  }
 0xd4e   : > { %v5800_v5 = vmul.f32 1.442695, %v5795_v49 }
 0xd50   : > { %8542 = vpow2.f32 %v5800_v5 }
 0xd5a   : > { %v8543_v39 = vpop.eup %8542 }
 0xd5b   : > { %v5809_v25 = vsel %vm2123_vm0, %v8543_v39, 0.0  ;;  %v5819_v58 = vpack.c.bf16 %v8543_v39, %v8543_v39 }
 0xd5c   : > { %5810 = vadd.xlane.f32.xlu1 %v5809_v25  ;;  %v8044_v25 = vld [vmem:[%s12044_s10] ss:$8 sps:$4 sm:$0xff]  }
 0xd5d   : > { %7789 = vmatmul.mubr.msk.bf16.vlgmr.msra.gmra.mrb[208].mxu0 %vm2123_vm0, %v5819_v58  ;;  %v8046_v58 = vld [vmem:[%s12044_s10 + $0x4] ss:$8 sps:$4 sm:$0xff]  }
 0xd5e   : > { %7805 = vmatpush3.bf16.msra.mxu0 %v5615_v44  ;;  %7812 = vmatprep.mubr.msk.bf16.mxu0 %vm8658_vm1, %v8657_v40 }
 0xd5f   : > { %7806 = vmatprep.subr.bf16.mxu0 %v8657_v40 }
 0xd62   : > { %7807 = vmatpush3.bf16.msra.mxu0 %v5617_v45  ;;  %v8036_v45 = vld [vmem:[%s12043_s9] sm:$0xff]  }
 0xd63   : > { %7808 = vmatprep.subr.bf16.mxu0 %v8657_v40  ;;  %7816 = vmatprep.subr.bf16.mxu1 %v8036_v45 }
 0xd66   : > { %7809 = vmatpush3.bf16.msra.mxu0 %v5619_v16  ;;  %v8040_v16 = vld [vmem:[%s12043_s9 + $0x20] sm:$0xff]  }
 0xd67   : > { %7810 = vmatprep.subr.bf16.mxu0 %v8657_v40 }
 0xd6a   : > { %7811 = vmatpush3.bf16.msra.mxu0 %v5621_v7 }
 0xd6b   : > { %6311 = vmatprep.subr.bf16.mxu0 %v8046_v58 }
 0xdb2   : > { %v5790_v13 = vpop.xlane.xlu0 %5789 }
 0xdb3   : > { %v5796_v6 = vsub.f32 %v5736_v35, %v5790_v13  ;;  %v8049_v13 = vld [vmem:[%s12044_s10 + $0x14] ss:$8 sps:$4 sm:$0xff]  }
 0xdb5   : > { %v5802_v20 = vmul.f32 1.442695, %v5796_v6  ;;  %v8047_v6 = vld [vmem:[%s12044_s10 + $0x10] ss:$8 sps:$4 sm:$0xff]  }
 0xdb7   : > { %8544 = vpow2.f32 %v5802_v20 }
 0xdc1   : > { %v8545_v22 = vpop.eup %8544 }
 0xdc2   : > { %v5812_v50 = vsel %vm2123_vm0, %v8545_v22, 0.0  ;;  %v5820_v48 = vpack.c.bf16 %v8545_v22, %v8545_v22 }
 0xdc3   : > { %5813 = vadd.xlane.f32.xlu0 %v5812_v50 }
 0xdc4   : > { %7801 = vmatmul.mubr.msk.bf16.vlgmr.msra.gmra.mrb[232].mxu1 %vm2123_vm0, %v5820_v48 }
 0xdc5   : > { %7817 = vmatpush3.bf16.msra.mxu1 %v8036_v45 }
 0xdc6   : > { %7818 = vmatprep.subr.bf16.mxu1 %v8037_v56 }
 0xdc9   : > { %v5808_v28 = vpop.xlane.xlu0 %5807  ;;  %7819 = vmatpush3.bf16.msra.mxu1 %v8037_v56 }
 0xdca   : > { %7820 = vmatprep.subr.bf16.mxu1 %v8038_v3 }
 0xdcd   : > { %7821 = vmatpush3.bf16.msra.mxu1 %v8038_v3  ;;  %v8052_v3 = vld [vmem:[%s12044_s10 + $0x24] ss:$8 sps:$4 sm:$0xff]  }
 0xdce   : > { %7822 = vmatprep.subr.bf16.mxu1 %v8039_v47 }
 0xdd1   : > { %7823 = vmatpush3.bf16.msra.mxu1 %v8039_v47  ;;  %v8053_v47 = vld [vmem:[%s12044_s10 + $0x30] ss:$8 sps:$4 sm:$0xff]  }
 0xdd2   : > { %7824 = vmatprep.subr.bf16.mxu1 %v8040_v16 }
 0xdd3   : > { %v5793_v27 = vpop.xlane.xlu1 %5792 }
 0xdd4   : > { %v5797_v62 = vsub.f32 %v5776_v15, %v5793_v27 }
 0xdd5   : > { %7825 = vmatpush3.bf16.msra.mxu1 %v8040_v16  ;;  %v8058_v16 = vld [vmem:[%s12044_s10 + $0x44] ss:$8 sps:$4 sm:$0xff]  }
 0xdd6   : > { %v5804_v10 = vmul.f32 1.442695, %v5797_v62  ;;  %7826 = vmatprep.subr.bf16.mxu1 %v8041_v51 }
 0xdd8   : > { %8546 = vpow2.f32 %v5804_v10 }
 0xdd9   : > { %8548 = vrcp.f32 %v5808_v28  ;;  %7827 = vmatpush3.bf16.msra.mxu1 %v8041_v51  ;;  %v8050_v28 = vld [vmem:[%s12044_s10 + $0x20] ss:$8 sps:$4 sm:$0xff]  }
 0xdda   : > { %7828 = vmatprep.subr.bf16.mxu1 %v8042_v26  ;;  %v8056_v51 = vld [vmem:[%s12044_s10 + $0x40] ss:$8 sps:$4 sm:$0xff]  }
 0xddd   : > { %7829 = vmatpush3.bf16.msra.mxu1 %v8042_v26  ;;  %v8059_v26 = vld [vmem:[%s12044_s10 + $0x50] ss:$8 sps:$4 sm:$0xff]  }
 0xdde   : > { %7830 = vmatprep.subr.bf16.mxu1 %v8043_v63 }
 0xde1   : > { %7831 = vmatpush3.bf16.msra.mxu1 %v8043_v63 }
 0xde2   : > { %v8547_v40 = vpop.eup %8546 }
 0xde3   : > { %v5815_v44 = vsel %vm2123_vm0, %v8547_v40, 0.0  ;;  %v5821_v31 = vpack.c.bf16 %v8547_v40, %v8547_v40  ;;  %v8549_v29 = vpop.eup %8548 }
 0xde4   : > { %5816 = vadd.xlane.f32.xlu1 %v5815_v44 }
 0xde5   : > { %7813 = vmatmul.mubr.msk.bf16.vlgmr.msra.gmra.mrb[212].mxu0 %vm2123_vm0, %v5821_v31 }
 0xde6   : > { %6343 = vmatprep.mubr.bf16.mxu0 %v12197_v18  ;;  %6312 = vmatpush1.bf16.msra.mxu0 %v8044_v25 }
 0xde7   : > { %6313 = vmatprep.subr.bf16.mxu0 %v8049_v13 }
 0xde9   : > { %v5811_v1 = vpop.xlane.xlu1 %5810 }
 0xdea   : > { %8550 = vrcp.f32 %v5811_v1  ;;  %6314 = vmatpush1.bf16.msra.mxu0 %v8047_v6  ;;  %v8055_v1 = vld [vmem:[%s12044_s10 + $0x34] ss:$8 sps:$4 sm:$0xff]  }
 0xdeb   : > { %6315 = vmatprep.subr.bf16.mxu0 %v8052_v3  ;;  %v8083_v3 = vld [vmem:[%s12045_s11 + $0x38] sm:$0xff]  }
 0xdee   : > { %6316 = vmatpush1.bf16.msra.mxu0 %v8050_v28  ;;  %v8591_v28 = vld [vmem:[%s12048_s14] sm:$0xf] }
 0xdef   : > { %6317 = vmatprep.subr.bf16.mxu0 %v8055_v1 }
 0xdf2   : > { %6318 = vmatpush1.bf16.msra.mxu0 %v8053_v47  ;;  %v12210_v47 = vld [vmem:[#allocation13_spill] sm:$0xff] }
 0xdf3   : > { %6319 = vmatprep.subr.bf16.mxu0 %v8058_v16  ;;  %v6220_v16 = vrot.slane %v8591_v28, %v12210_v47 }
 0xdf4   : > { %v8551_v36 = vpop.eup %8550 }
 0xdf6   : > { %6320 = vmatpush1.bf16.msra.mxu0 %v8056_v51 }
 0xe10   : > { %v5859_v0 = vpop.f32.mrb[228].mxu1 }
 0xe11   : > { %v7778_v9 = vpop.f32.mrb[229].mxu1  ;;  %v5998_v7 = vmul.f32 %v8549_v29, %v5859_v0  ;;  %v8061_v29 = vld [vmem:[%s12044_s10 + $0x54] ss:$8 sps:$4 sm:$0xff]  }
 0xe12   : > { %v5862_v60 = vpop.f32.mrb[230].mxu1  ;;  %6321 = vmatprep.subr.bf16.mxu0 %v8061_v29 }
 0xe13   : > { %v7779_v55 = vpop.f32.mrb[231].mxu1  ;;  %6322 = vmatpush1.bf16.msra.mxu0 %v8059_v26 }
 0xe30   : > { %v5902_v46 = vpop.f32.mrb[208].mxu0 }
 0xe31   : > { %v5999_v14 = vmul.f32 %v8551_v36, %v5902_v46  ;;  %v7790_v21 = vpop.f32.mrb[209].mxu0  ;;  %v8062_v36 = vld [vmem:[%s12044_s10 + $0x60] ss:$8 sps:$4 sm:$0xff]   ;;  %v8064_v46 = vld [vmem:[%s12044_s10 + $0x64] ss:$8 sps:$4 sm:$0xff]  }
 0xe32   : > { %v5905_v57 = vpop.f32.mrb[210].mxu0  ;;  %6323 = vmatprep.subr.bf16.mxu0 %v8064_v46 }
 0xe33   : > { %v7080_v34 = vpack.c.bf16 %v5999_v14, %v5998_v7  ;;  %v7791_v33 = vpop.f32.mrb[211].mxu0  ;;  %v8067_v7 = vld [vmem:[%s12044_s10 + $0x74] ss:$8 sps:$4 sm:$0xff]   ;;  %6324 = vmatpush1.bf16.msra.mxu0 %v8062_v36  ;;  %v8065_v14 = vld [vmem:[%s12044_s10 + $0x70] ss:$8 sps:$4 sm:$0xff]  }
 0xe34   : > { %6325 = vmatprep.subr.bf16.mxu0 %v8067_v7 }
 0xe35   : > { %7832 = vmatprep.mubr.bf16.mxu1 %v7080_v34 }
 0xe37   : > { %6326 = vmatpush1.bf16.msra.mxu0 %v8065_v14 }
 0xe50   : > { %v5814_v35 = vpop.xlane.xlu0 %5813 }
 0xe51   : > { %8552 = vrcp.f32 %v5814_v35 }
 0xe5b   : > { %v8553_v19 = vpop.eup %8552 }
 0xe71   : > { %v5817_v53 = vpop.xlane.xlu1 %5816 }
 0xe72   : > { %8554 = vrcp.f32 %v5817_v53 }
 0xe7c   : > { %v8555_v41 = vpop.eup %8554 }
 0xe97   : > { %v5945_v30 = vpop.f32.mrb[232].mxu1 }
 0xe98   : > { %v7802_v4 = vpop.f32.mrb[233].mxu1  ;;  %v6000_v52 = vmul.f32 %v8553_v19, %v5945_v30 }
 0xe99   : > { %v5948_v37 = vpop.f32.mrb[234].mxu1 }
 0xe9a   : > { %v7803_v8 = vpop.f32.mrb[235].mxu1 }
 0xeb8   : > { %v5988_v43 = vpop.f32.mrb[212].mxu0 }
 0xeb9   : > { %v6001_v54 = vmul.f32 %v8555_v41, %v5988_v43  ;;  %v7814_v38 = vpop.f32.mrb[213].mxu0  ;;  %v11815_v41 = vld [vmem:[%s12047_s13 + $0x8] sm:$0xff] }
 0xeba   : > { %v5991_v32 = vpop.f32.mrb[214].mxu0  ;;  %v12208_v43 = vld [vmem:[#allocation10_spill] sm:$0xff] }
 0xebb   : > { %v7081_v17 = vpack.c.bf16 %v6001_v54, %v6000_v52  ;;  %v7815_v23 = vpop.f32.mrb[215].mxu0  ;;  %v6182_v52 = vrot.slane %v11815_v41, %v12208_v43 }
 0xebd   : > { %7833 = vmatmul.mubr.bf16.vlgmr.msra.gmra.mrb[236].mxu1 %v7081_v17 }
 0xf90   : > { %v7834_v15 = vpop.f32.mrb[236].mxu1 }
 0xf91   : > { %v6116_v11 = vpop.f32.mrb[237].mxu1  ;;  %v6133_v5 = vadd.f32 %v8590_v42, %v7834_v15  ;;  %v12209_v15 = vld [vmem:[#allocation11_spill] sm:$0xff] }
 0xf92   : > { %v6131_v24 = vadd.f32 %v8590_v42, %v6116_v11  ;;  %v7835_v59 = vpop.f32.mrb[238].mxu1  ;;  %v6190_v11 = vrot.slane %v11815_v41, %v12209_v15  ;;  %v6216_v1 = vrot.slane %v8591_v28, %v12209_v15  ;;  %v6230_v29 = vrot.slane %v6220_v16, %v12209_v15 }
 0xf93   : > { %v6119_v2 = vpop.f32.mrb[239].mxu1  ;;  %v6134_v39 = vadd.f32 %v8590_v42, %v7835_v59 }
 0xf94   : > { %v6132_v49 = vadd.f32 %v8590_v42, %v6119_v2  ;;  %6135 = vadd.xlane.f32.xlu0 %v6131_v24  ;;  %v6226_v51 = vrot.slane %v6216_v1, %v12209_v15 }
 0xf96   : > { %6137 = vadd.xlane.f32.xlu1 %v6132_v49 }
 0xf98   : > { %6139 = vadd.xlane.f32.xlu0 %v6133_v5 }
 0xf9a   : > { %6141 = vadd.xlane.f32.xlu1 %v6134_v39 }
0x1021   : > { %v6136_v20 = vpop.xlane.xlu0 %6135 }
0x1022   : > { %v6143_v22 = vmul.f32 0.0078125, %v6136_v20 }
0x1023   : > { %v6138_v50 = vpop.xlane.xlu1 %6137 }
0x1024   : > { %v6147_v48 = vsub.f32 %v6131_v24, %v6143_v22  ;;  %v6144_v27 = vmul.f32 0.0078125, %v6138_v50  ;;  %v8068_v50 = vld [vmem:[%s12045_s11 + $0x40] sm:$0xff]  }
0x1025   : > { %v6140_v62 = vpop.xlane.xlu0 %6139  ;;  %7390 = vmatprep.subr.bf16.mxu1 %v8068_v50 }
0x1026   : > { %v6148_v10 = vsub.f32 %v6132_v49, %v6144_v27  ;;  %v6145_v40 = vmul.f32 0.0078125, %v6140_v62  ;;  %v6151_v44 = vmul.f32 %v6147_v48, %v6147_v48  ;;  %v8071_v27 = vld [vmem:[%s12045_s11 + $0x8] sm:$0xff]   ;;  %v8072_v62 = vld [vmem:[%s12045_s11 + $0x50] sm:$0xff]  }
0x1027   : > { %v6142_v31 = vpop.xlane.xlu1 %6141 }
0x1028   : > { %v11772_v0 = vsub.f32 %v6133_v5, %v6145_v40  ;;  %v6146_v9 = vmul.f32 0.0078125, %v6142_v31  ;;  %6155 = vadd.xlane.f32.xlu0 %v6151_v44  ;;  %v6152_v60 = vmul.f32 %v6148_v10, %v6148_v10  ;;  %v8074_v40 = vld [vmem:[%s12045_s11 + $0x58] sm:$0xff]   ;;  %v8076_v31 = vld [vmem:[%s12045_s11 + $0x60] sm:$0xff]  }
0x1029   : > { %v8075_v44 = vld [vmem:[%s12045_s11 + $0x18] sm:$0xff]  }
0x102a   : > { %v6150_v55 = vsub.f32 %v6134_v39, %v6146_v9  ;;  %6157 = vadd.xlane.f32.xlu1 %v6152_v60  ;;  %v6153_v45 = vmul.f32 %v11772_v0, %v11772_v0  ;;  %v8078_v9 = vld [vmem:[%s12045_s11 + $0x68] sm:$0xff]  }
0x102b   : > { %v8079_v60 = vld [vmem:[%s12045_s11 + $0x28] sm:$0xff]  }
0x102c   : > { %6159 = vadd.xlane.f32.xlu0 %v6153_v45  ;;  %v6154_v56 = vmul.f32 %v6150_v55, %v6150_v55  ;;  %v8081_v45 = vld [vmem:[%s12045_s11 + $0x30] sm:$0xff]  }
0x102e   : > { %6161 = vadd.xlane.f32.xlu1 %v6154_v56  ;;  %v8082_v56 = vld [vmem:[%s12045_s11 + $0x78] sm:$0xff]  }
0x10b5   : > { %v6156_v21 = vpop.xlane.xlu0 %6155 }
0x10b6   : > { %v6163_v57 = vmul.f32 0.0078125, %v6156_v21 }
0x10b7   : > { %v6158_v34 = vpop.xlane.xlu1 %6157 }
0x10b8   : > { %v6167_v33 = vadd.f32 1e-05, %v6163_v57  ;;  %v6164_v63 = vmul.f32 0.0078125, %v6158_v34 }
0x10b9   : > { %v6160_v30 = vpop.xlane.xlu0 %6159 }
0x10ba   : > { %8556 = vrsqrt.f32 %v6167_v33  ;;  %v6168_v4 = vadd.f32 1e-05, %v6164_v63  ;;  %v6165_v37 = vmul.f32 0.0078125, %v6160_v30 }
0x10bb   : > { %v6162_v8 = vpop.xlane.xlu1 %6161 }
0x10bc   : > { %8558 = vrsqrt.f32 %v6168_v4  ;;  %v6169_v35 = vadd.f32 1e-05, %v6165_v37  ;;  %v6166_v53 = vmul.f32 0.0078125, %v6162_v8 }
0x10be   : > { %8560 = vrsqrt.f32 %v6169_v35  ;;  %v6170_v19 = vadd.f32 1e-05, %v6166_v53 }
0x10c0   : > { %8562 = vrsqrt.f32 %v6170_v19 }
0x10c4   : > { %v8557_v54 = vpop.eup %8556 }
0x10c5   : > { %v6175_v38 = vmul.f32 %v8557_v54, %v6147_v48  ;;  %v8069_v48 = vld [vmem:[%s12045_s11] sm:$0xff]  }
0x10c6   : > { %v8559_v32 = vpop.eup %8558  ;;  %7391 = vmatpush3.bf16.msra.mxu1 %v8069_v48 }
0x10c7   : > { %v6176_v17 = vmul.f32 %v8559_v32, %v6148_v10  ;;  %v6183_v23 = vmul.f32 %v6182_v52, %v6175_v38  ;;  %v8073_v10 = vld [vmem:[%s12045_s11 + $0x10] sm:$0xff]  }
0x10c8   : > { %v8561_v42 = vpop.eup %8560 }
0x10c9   : > { %v6184_v24 = vmul.f32 %v6182_v52, %v6176_v17  ;;  %v11821_v2 = vadd.f32 %v6190_v11, %v6183_v23  ;;  %v6177_v5 = vmul.f32 %v8561_v42, %v11772_v0  ;;  %v8077_v0 = vld [vmem:[%s12045_s11 + $0x20] sm:$0xff]  }
0x10ca   : > { %v8563_v59 = vpop.eup %8562 }
0x10cb   : > { %v11823_v49 = vadd.f32 %v6190_v11, %v6184_v24  ;;  %v6178_v39 = vmul.f32 %v8563_v59, %v6150_v55  ;;  %v6185_v13 = vmul.f32 %v6182_v52, %v6177_v5  ;;  %v8080_v55 = vld [vmem:[%s12045_s11 + $0x70] sm:$0xff]  }
0x10cd   : > { %v6195_v25 = vpack.c.bf16 %v11823_v49, %v11821_v2  ;;  %v6186_v58 = vmul.f32 %v6182_v52, %v6178_v39  ;;  %v11831_v20 = vadd.f32 %v6190_v11, %v6185_v13 }
0x10cf   : > { %6344 = vmatmul.mubr.bf16.vlgmr.msra.gmra.mrb[216].mxu0 %v6195_v25  ;;  %v11829_v6 = vadd.f32 %v6190_v11, %v6186_v58 }
0x10d0   : > { %6353 = vmatprep.mubr.bf16.mxu0 %v12197_v18  ;;  %v8070_v18 = vld [vmem:[%s12045_s11 + $0x48] sm:$0xff]  }
0x10d1   : > { %v6196_v22 = vpack.c.bf16 %v11829_v6, %v11831_v20  ;;  %7392 = vmatprep.subr.bf16.mxu1 %v8070_v18 }
0x10d2   : > { %7393 = vmatpush3.bf16.msra.mxu1 %v8071_v27 }
0x10d3   : > { %7394 = vmatprep.subr.bf16.mxu1 %v8072_v62 }
0x10d6   : > { %7395 = vmatpush3.bf16.msra.mxu1 %v8073_v10 }
0x10d7   : > { %6354 = vmatmul.mubr.bf16.gmra.mrb[220].mxu0 %v6196_v22  ;;  %7396 = vmatprep.subr.bf16.mxu1 %v8074_v40 }
0x10da   : > { %7397 = vmatpush3.bf16.msra.mxu1 %v8075_v44 }
0x10db   : > { %7398 = vmatprep.subr.bf16.mxu1 %v8076_v31 }
0x10de   : > { %7399 = vmatpush3.bf16.msra.mxu1 %v8077_v0 }
0x10df   : > { %7400 = vmatprep.subr.bf16.mxu1 %v8078_v9 }
0x10e2   : > { %7401 = vmatpush3.bf16.msra.mxu1 %v8079_v60 }
0x10e3   : > { %7402 = vmatprep.subr.bf16.mxu1 %v8080_v55 }
0x10e6   : > { %7403 = vmatpush3.bf16.msra.mxu1 %v8081_v45 }
0x10e7   : > { %7404 = vmatprep.subr.bf16.mxu1 %v8082_v56 }
0x10ea   : > { %7405 = vmatpush3.bf16.msra.mxu1 %v8083_v3 }
0x11a2   : > { %v6345_v26 = vpop.f32.mrb[216].mxu0 }
0x11a3   : > { %v11890_v36 = vadd.f32 %v6345_v26, %v6226_v51  ;;  %v6347_v46 = vpop.f32.mrb[217].mxu0 }
0x11a4   : > { %v11892_v7 = vadd.f32 %v6347_v46, %v6230_v29  ;;  %v6349_v14 = vpop.f32.mrb[218].mxu0 }
0x11a5   : > { %v6364_v21 = vmul.f32 %v11890_v36, %v11890_v36  ;;  %v11896_v57 = vadd.f32 %v6349_v14, %v6226_v51  ;;  %v6351_v34 = vpop.f32.mrb[219].mxu0 }
0x11a6   : > { %v6365_v33 = vmul.f32 %v11892_v7, %v11892_v7  ;;  %v11900_v63 = vadd.f32 %v6351_v34, %v6230_v29 }
0x11a7   : > { %v6372_v30 = vmul.f32 %v6364_v21, %v11890_v36  ;;  %v6366_v4 = vmul.f32 %v11896_v57, %v11896_v57 }
0x11a8   : > { %v6373_v37 = vmul.f32 %v6365_v33, %v11892_v7  ;;  %v6367_v8 = vmul.f32 %v11900_v63, %v11900_v63 }
0x11a9   : > { %v6380_v35 = vmul.f32 0.044715, %v6372_v30  ;;  %v6374_v53 = vmul.f32 %v6366_v4, %v11896_v57 }
0x11aa   : > { %v6381_v19 = vmul.f32 0.044715, %v6373_v37  ;;  %v6375_v43 = vmul.f32 %v6367_v8, %v11900_v63  ;;  %v6355_v52 = vpop.f32.mrb[220].mxu0 }
0x11ab   : > { %v6388_v54 = vadd.f32 %v6380_v35, %v11890_v36  ;;  %v6382_v38 = vmul.f32 0.044715, %v6374_v53  ;;  %v11911_v32 = vadd.f32 %v6355_v52, %v6226_v51  ;;  %v6357_v17 = vpop.f32.mrb[221].mxu0 }
0x11ac   : > { %v6389_v23 = vadd.f32 %v6381_v19, %v11892_v7  ;;  %v6383_v15 = vmul.f32 0.044715, %v6375_v43  ;;  %v11914_v11 = vadd.f32 %v6357_v17, %v6230_v29  ;;  %v6359_v42 = vpop.f32.mrb[222].mxu0 }
0x11ad   : > { %v6396_v24 = vmul.f32 0.7978846, %v6388_v54  ;;  %v6390_v59 = vadd.f32 %v6382_v38, %v11896_v57  ;;  %v6368_v5 = vmul.f32 %v11911_v32, %v11911_v32  ;;  %v11919_v39 = vadd.f32 %v6359_v42, %v6226_v51  ;;  %v6361_v25 = vpop.f32.mrb[223].mxu0 }
0x11ae   : > { %v6397_v58 = vmul.f32 0.7978846, %v6389_v23  ;;  %v6391_v13 = vadd.f32 %v6383_v15, %v11900_v63  ;;  %v6369_v22 = vmul.f32 %v11914_v11, %v11914_v11  ;;  %v11924_v50 = vadd.f32 %v6361_v25, %v6230_v29 }
0x11af   : > { %8564 = vtanh.f32 %v6396_v24  ;;  %v6398_v48 = vmul.f32 0.7978846, %v6390_v59  ;;  %v6376_v18 = vmul.f32 %v6368_v5, %v11911_v32  ;;  %v6370_v27 = vmul.f32 %v11919_v39, %v11919_v39 }
0x11b0   : > { %8566 = vtanh.f32 %v6397_v58  ;;  %v6399_v62 = vmul.f32 0.7978846, %v6391_v13  ;;  %v6377_v10 = vmul.f32 %v6369_v22, %v11914_v11  ;;  %v6371_v40 = vmul.f32 %v11924_v50, %v11924_v50 }
0x11b1   : > { %8568 = vtanh.f32 %v6398_v48  ;;  %v6384_v44 = vmul.f32 0.044715, %v6376_v18  ;;  %v6378_v31 = vmul.f32 %v6370_v27, %v11919_v39 }
0x11b2   : > { %8570 = vtanh.f32 %v6399_v62  ;;  %v6385_v0 = vmul.f32 0.044715, %v6377_v10  ;;  %v6379_v9 = vmul.f32 %v6371_v40, %v11924_v50  ;;  %v12211_v40 = vld [vmem:[#allocation12_spill] sm:$0xff] }
0x11b3   : > { %v6392_v60 = vadd.f32 %v6384_v44, %v11911_v32  ;;  %v6386_v55 = vmul.f32 0.044715, %v6378_v31  ;;  %v6475_v44 = vrot.slane %v11815_v41, %v12211_v40 }
0x11b4   : > { %v6393_v45 = vadd.f32 %v6385_v0, %v11914_v11  ;;  %v6387_v56 = vmul.f32 0.044715, %v6379_v9 }
0x11b5   : > { %v6400_v3 = vmul.f32 0.7978846, %v6392_v60  ;;  %v6394_v28 = vadd.f32 %v6386_v55, %v11919_v39 }
0x11b6   : > { %v6401_v1 = vmul.f32 0.7978846, %v6393_v45  ;;  %v6395_v16 = vadd.f32 %v6387_v56, %v11924_v50 }
0x11b7   : > { %8572 = vtanh.f32 %v6400_v3  ;;  %v6402_v51 = vmul.f32 0.7978846, %v6394_v28 }
0x11b8   : > { %8574 = vtanh.f32 %v6401_v1  ;;  %v6403_v29 = vmul.f32 0.7978846, %v6395_v16 }
0x11b9   : > { %v8565_v26 = vpop.eup %8564  ;;  %8576 = vtanh.f32 %v6402_v51 }
0x11ba   : > { %v8567_v46 = vpop.eup %8566  ;;  %v6412_v14 = vadd.f32 1.0, %v8565_v26  ;;  %8578 = vtanh.f32 %v6403_v29 }
0x11bb   : > { %v8569_v21 = vpop.eup %8568  ;;  %v6413_v34 = vadd.f32 1.0, %v8567_v46 }
0x11bc   : > { %v8571_v33 = vpop.eup %8570  ;;  %v6420_v30 = vmul.f32 0.5, %v6412_v14  ;;  %v6414_v4 = vadd.f32 1.0, %v8569_v21 }
0x11bd   : > { %v6415_v37 = vadd.f32 1.0, %v8571_v33  ;;  %v6421_v8 = vmul.f32 0.5, %v6413_v34 }
0x11be   : > { %v6422_v35 = vmul.f32 0.5, %v6414_v4  ;;  %v6428_v19 = vmul.f32 %v6420_v30, %v11890_v36 }
0x11bf   : > { %v6423_v53 = vmul.f32 0.5, %v6415_v37  ;;  %v6429_v54 = vmul.f32 %v6421_v8, %v11892_v7 }
0x11c0   : > { %v6430_v43 = vmul.f32 %v6422_v35, %v11896_v57 }
0x11c1   : > { %v8573_v52 = vpop.eup %8572  ;;  %v6431_v38 = vmul.f32 %v6423_v53, %v11900_v63 }
0x11c2   : > { %v8575_v17 = vpop.eup %8574  ;;  %v6436_v23 = vpack.c.bf16 %v6430_v43, %v6428_v19  ;;  %v6416_v15 = vadd.f32 1.0, %v8573_v52  ;;  %v8084_v52 = vld [vmem:[%s12046_s12] sm:$0xff]  }
0x11c3   : > { %v8577_v42 = vpop.eup %8576  ;;  %v6437_v24 = vpack.c.bf16 %v6431_v38, %v6429_v54  ;;  %v6417_v59 = vadd.f32 1.0, %v8575_v17  ;;  %7836 = vmatprep.subr.bf16.mxu0 %v8084_v52  ;;  %v8085_v54 = vld [vmem:[%s12046_s12 + $0x8] sm:$0xff]   ;;  %v8086_v38 = vld [vmem:[%s12046_s12 + $0x10] sm:$0xff]   ;;  %v8087_v17 = vld [vmem:[%s12046_s12 + $0x18] sm:$0xff]  }
0x11c4   : > { %v8579_v5 = vpop.eup %8578  ;;  %v6418_v25 = vadd.f32 1.0, %v8577_v42  ;;  %v6424_v58 = vmul.f32 0.5, %v6416_v15  ;;  %7837 = vmatpush3.bf16.msra.mxu0 %v8084_v52  ;;  %v8089_v15 = vld [vmem:[%s12046_s12 + $0x28] sm:$0xff]   ;;  %v8090_v42 = vld [vmem:[%s12046_s12 + $0x30] sm:$0xff]  }
0x11c5   : > { %6604 = vmatprep.mubr.bf16.mxu1 %v6437_v24  ;;  %v6419_v13 = vadd.f32 1.0, %v8579_v5  ;;  %v6425_v22 = vmul.f32 0.5, %v6417_v59  ;;  %7838 = vmatprep.subr.bf16.mxu0 %v8085_v54  ;;  %v8091_v24 = vld [vmem:[%s12046_s12 + $0x38] sm:$0xff]  }
0x11c6   : > { %6605 = vmatmul.mubr.bf16.vlgmr.msra.gmra.mrb[240].mxu1 %v6436_v23  ;;  %v6426_v36 = vmul.f32 0.5, %v6418_v25  ;;  %v6432_v48 = vmul.f32 %v6424_v58, %v11911_v32  ;;  %v8088_v23 = vld [vmem:[%s12046_s12 + $0x20] sm:$0xff]  }
0x11c7   : > { %v6427_v57 = vmul.f32 0.5, %v6419_v13  ;;  %v6433_v63 = vmul.f32 %v6425_v22, %v11914_v11 }
0x11c8   : > { %v6434_v7 = vmul.f32 %v6426_v36, %v11919_v39  ;;  %7839 = vmatpush3.bf16.msra.mxu0 %v8085_v54 }
0x11c9   : > { %v6435_v18 = vmul.f32 %v6427_v57, %v11924_v50  ;;  %7840 = vmatprep.subr.bf16.mxu0 %v8086_v38 }
0x11ca   : > { %v6438_v27 = vpack.c.bf16 %v6434_v7, %v6432_v48 }
0x11cb   : > { %v6439_v62 = vpack.c.bf16 %v6435_v18, %v6433_v63 }
0x11cc   : > { %7841 = vmatpush3.bf16.msra.mxu0 %v8086_v38 }
0x11cd   : > { %6612 = vmatprep.mubr.bf16.mxu1 %v6439_v62  ;;  %7842 = vmatprep.subr.bf16.mxu0 %v8087_v17 }
0x11ce   : > { %6613 = vmatmul.mubr.bf16.gmra.mrb[244].mxu1 %v6438_v27  ;;  %v6672_v27 = vrot.slane %v11815_v41, %v12210_v47 }
0x11d0   : > { %7843 = vmatpush3.bf16.msra.mxu0 %v8087_v17 }
0x11d1   : > { %7844 = vmatprep.subr.bf16.mxu0 %v8088_v23 }
0x11d4   : > { %7845 = vmatpush3.bf16.msra.mxu0 %v8088_v23 }
0x11d5   : > { %7846 = vmatprep.subr.bf16.mxu0 %v8089_v15 }
0x11d8   : > { %7847 = vmatpush3.bf16.msra.mxu0 %v8089_v15 }
0x11d9   : > { %7848 = vmatprep.subr.bf16.mxu0 %v8090_v42 }
0x11dc   : > { %7849 = vmatpush3.bf16.msra.mxu0 %v8090_v42 }
0x11dd   : > { %7850 = vmatprep.subr.bf16.mxu0 %v8091_v24 }
0x11e0   : > { %7851 = vmatpush3.bf16.msra.mxu0 %v8091_v24 }
0x1299   : > { %v7406_v10 = vpop.f32.mrb[240].mxu1 }
0x129a   : > { %v7407_v31 = vpop.f32.mrb[241].mxu1 }
0x129b   : > { %v7408_v0 = vadd.f32 %v7407_v31, %v7406_v10  ;;  %v7409_v9 = vpop.f32.mrb[242].mxu1 }
0x129c   : > { %v7410_v60 = vpop.f32.mrb[243].mxu1 }
0x129d   : > { %v6607_v55 = vadd.f32 %v7408_v0, %v6475_v44  ;;  %v7411_v32 = vadd.f32 %v7410_v60, %v7409_v9  ;;  %v12212_v0 = vsub.s32 4, %v12152_v61 }
0x129f   : > { %v6610_v45 = vadd.f32 %v7411_v32, %v6475_v44  ;;  %v6621_v39 = vadd.f32 %v6607_v55, %v11821_v2  ;;  %v6680_v9 = vrot.slane %v11815_v41, %v12212_v0 }
0x12a1   : > { %6625 = vadd.xlane.f32.xlu0 %v6621_v39  ;;  %v7412_v11 = vpop.f32.mrb[244].mxu1  ;;  %v6622_v50 = vadd.f32 %v6610_v45, %v11823_v49 }
0x12a2   : > { %v7413_v56 = vpop.f32.mrb[245].mxu1 }
0x12a3   : > { %v7414_v3 = vadd.f32 %v7413_v56, %v7412_v11  ;;  %6627 = vadd.xlane.f32.xlu1 %v6622_v50  ;;  %v7415_v28 = vpop.f32.mrb[246].mxu1 }
0x12a4   : > { %v7416_v1 = vpop.f32.mrb[247].mxu1 }
0x12a5   : > { %v6615_v16 = vadd.f32 %v7414_v3, %v6475_v44  ;;  %v7417_v51 = vadd.f32 %v7416_v1, %v7415_v28 }
0x12a7   : > { %v6618_v29 = vadd.f32 %v7417_v51, %v6475_v44  ;;  %v6623_v26 = vadd.f32 %v6615_v16, %v11831_v20  ;;  %v6706_v51 = vrot.slane %v11815_v41, %v4463_v12 }
0x12a9   : > { %6629 = vadd.xlane.f32.xlu0 %v6623_v26  ;;  %v6624_v46 = vadd.f32 %v6618_v29, %v11829_v6 }
0x12ab   : > { %6631 = vadd.xlane.f32.xlu1 %v6624_v46 }
0x132e   : > { %v6626_v14 = vpop.xlane.xlu0 %6625 }
0x132f   : > { %v6633_v2 = vmul.f32 0.0078125, %v6626_v14 }
0x1330   : > { %v6628_v21 = vpop.xlane.xlu1 %6627 }
0x1331   : > { %v6637_v34 = vsub.f32 %v6621_v39, %v6633_v2  ;;  %v6634_v33 = vmul.f32 0.0078125, %v6628_v21 }
0x1333   : > { %v6638_v49 = vsub.f32 %v6622_v50, %v6634_v33  ;;  %v6641_v30 = vmul.f32 %v6637_v34, %v6637_v34 }
0x1335   : > { %6645 = vadd.xlane.f32.xlu0 %v6641_v30  ;;  %v6642_v4 = vmul.f32 %v6638_v49, %v6638_v49 }
0x1336   : > { %v6630_v37 = vpop.xlane.xlu0 %6629 }
0x1337   : > { %v6635_v8 = vmul.f32 0.0078125, %v6630_v37  ;;  %6647 = vadd.xlane.f32.xlu1 %v6642_v4 }
0x1338   : > { %v6632_v35 = vpop.xlane.xlu1 %6631 }
0x1339   : > { %v6639_v53 = vsub.f32 %v6623_v26, %v6635_v8  ;;  %v6636_v19 = vmul.f32 0.0078125, %v6632_v35 }
0x133b   : > { %v6640_v20 = vsub.f32 %v6624_v46, %v6636_v19  ;;  %v6643_v43 = vmul.f32 %v6639_v53, %v6639_v53 }
0x133d   : > { %6649 = vadd.xlane.f32.xlu0 %v6643_v43  ;;  %v6644_v6 = vmul.f32 %v6640_v20, %v6640_v20 }
0x133f   : > { %6651 = vadd.xlane.f32.xlu1 %v6644_v6 }
0x13c2   : > { %v6646_v59 = vpop.xlane.xlu0 %6645 }
0x13c3   : > { %v6653_v5 = vmul.f32 0.0078125, %v6646_v59 }
0x13c4   : > { %v6648_v25 = vpop.xlane.xlu1 %6647 }
0x13c5   : > { %v6657_v58 = vadd.f32 1e-05, %v6653_v5  ;;  %v6654_v13 = vmul.f32 0.0078125, %v6648_v25 }
0x13c7   : > { %8580 = vrsqrt.f32 %v6657_v58  ;;  %v6658_v22 = vadd.f32 1e-05, %v6654_v13 }
0x13c9   : > { %8582 = vrsqrt.f32 %v6658_v22 }
0x13ca   : > { %v6650_v36 = vpop.xlane.xlu0 %6649 }
0x13cb   : > { %v6655_v57 = vmul.f32 0.0078125, %v6650_v36 }
0x13cc   : > { %v6652_v48 = vpop.xlane.xlu1 %6651 }
0x13cd   : > { %v6659_v7 = vadd.f32 1e-05, %v6655_v57  ;;  %v6656_v63 = vmul.f32 0.0078125, %v6652_v48 }
0x13cf   : > { %8584 = vrsqrt.f32 %v6659_v7  ;;  %v6660_v18 = vadd.f32 1e-05, %v6656_v63 }
0x13d1   : > { %v8581_v62 = vpop.eup %8580  ;;  %8586 = vrsqrt.f32 %v6660_v18 }
0x13d2   : > { %v6665_v10 = vmul.f32 %v8581_v62, %v6637_v34 }
0x13d3   : > { %v8583_v40 = vpop.eup %8582 }
0x13d4   : > { %v6666_v44 = vmul.f32 %v8583_v40, %v6638_v49  ;;  %v6673_v31 = vmul.f32 %v6672_v27, %v6665_v10 }
0x13d6   : > { %v6674_v60 = vmul.f32 %v6672_v27, %v6666_v44  ;;  %v6681_v55 = vadd.f32 %v6680_v9, %v6673_v31 }
0x13d8   : > { %v6682_v32 = vadd.f32 %v6680_v9, %v6674_v60 }
0x13d9   : > { %v8585_v45 = vpop.eup %8584 }
0x13da   : > { %v6667_v39 = vmul.f32 %v8585_v45, %v6639_v53  ;;  %v6685_v11 = vpack.c.bf16 %v6682_v32, %v6681_v55 }
0x13db   : > { %v8587_v50 = vpop.eup %8586 }
0x13dc   : > { %v6675_v56 = vmul.f32 %v6672_v27, %v6667_v39  ;;  %v6668_v47 = vmul.f32 %v8587_v50, %v6640_v20  ;;  %7852 = vmatprep.mubr.bf16.mxu0 %v6685_v11 }
0x13de   : > { %v6676_v3 = vmul.f32 %v6672_v27, %v6668_v47  ;;  %v6683_v28 = vadd.f32 %v6680_v9, %v6675_v56 }
0x13e0   : > { %v6684_v1 = vadd.f32 %v6680_v9, %v6676_v3 }
0x13e2   : > { %v6686_v16 = vpack.c.bf16 %v6684_v1, %v6683_v28 }
0x13e4   : > { %7853 = vmatmul.mubr.bf16.vlgmr.msra.gmra.mrb[224].mxu0 %v6686_v16 }
0x14b7   : > { %v7854_v29 = vpop.f32.mrb[224].mxu0 }
0x14b8   : > { %v6798_v26 = vadd.f32 %v7854_v29, %v6706_v51  ;;  %v6789_v46 = vpop.f32.mrb[225].mxu0 }
0x14b9   : > { %v6790_v14 = vadd.f32 %v6789_v46, %v6706_v51  ;;  %v7855_v2 = vpop.f32.mrb[226].mxu0 }
0x14ba   : > { %6806 = vst [vmem:[%s490_s23 + $0x10] sm:$0xff] %v6798_v26  ;;  %v6801_v21 = vadd.f32 %v7855_v2, %v6706_v51  ;;  %v6792_v34 = vpop.f32.mrb[227].mxu0 }
0x14bb   : > { %6804 = vst [vmem:[%s490_s23] sm:$0xff] %v6790_v14  ;;  %v6793_v61 = vadd.f32 %v6792_v34, %v6706_v51 }
0x14bc   : > { %6807 = vst [vmem:[%s490_s23 + $0x18] sm:$0xff] %v6801_v21 }
0x14bd   : > { %6805 = vst [vmem:[%s490_s23 + $0x8] sm:$0xff] %v6793_v61 }
0x14be   : > { %8605 = shalt.err (!%p8602_p3)
}
0x14bf   : > { %s8606_s26 = scalar_lea.hbm %s11991_s24, 512  ;;  %s8610_s17 = scalar_lea.hbm %s12049_s15, 1024 }
0x14c0   : > { %p8607_p4 = scmp.ne.s32.totalorder %s11991_s24, %s8606_s26  ;;  %p8611_p9 = scmp.lt.u32.totalorder %s11991_s24, %s12049_s15 }
0x14c1   : > { %p8612_p10 = scmp.lt.u32.totalorder %s8610_s17, %s8606_s26  ;;  %p8614_p12 = scmp.lt.u32.totalorder %s8606_s26, %s11991_s24 }
0x14c2   : > { %p8608_p7 = pnand %p8607_p4, %p8780_p5 }
0x14c3   : > { %p8613_p11 = por %p8612_p10, %p8611_p9 }
0x14c4   : > { %p8609_p8 = pneg %p8608_p7 }
0x14c5   : > { %p8615_p13 = por %p8614_p12, %p8613_p11 }
0x14c7   : > { %p8616_p0 = pnand %p8615_p13, %p8609_p8 }
0x14c9   : > { %8619 = shalt.err (!%p8616_p0)
}
0x14ca   : > { %s8660_s0 = smov 128   ;;  %s8661_s29 = smov 8  }
0x14cb   : > { %7856 = dma.vmem_to_hbm [thread:$0]  (%p8780_p5), %s11986_s27, 512, %s11991_s24, %s11993_s22, %s8660_s0, %s8660_s0, %s8661_s29  }
0x14cc PF: > { %p7862_p1 = scmp.ge.s32.totalorder %s8654_s21, 2  ;;  %s6837_s23 = sand.u32 1, %s8642_s18  }
0x14cd   : > { %s6838_s26 = scalar_lea.sflag [#allocation3], %s6837_s23 }
0x14ce   : > { %p7859_p2 = pnand %p7862_p1, %p8784_p6 }
0x14d0   : > { %8637 = dma.done.wait (!%p7859_p2), %s6838_s26, 512  }
0x14d1   : > { %8639 = vsyncadd (!%p7859_p2), %s6838_s26, 4294966784  ;;  %s12214_s21 = sld [smem:[#allocation6_spill]]  ;;  %s12215_s30 = sld [smem:[#allocation5_spill]] }
0x14d2   : > { %s12216_s20 = sld [smem:[#allocation7_spill]]  ;;  %s12217_s18 = smov %s8646_s19 }
0x14d7   : > { %p25_p3 = scmp.ge.s32.totalorder %s12214_s21, 4   ;;  %s12218_s19 = smov %s12215_s30 }
0x14d9   :  { %27 = sbr.rel (!%p25_p3) target bundleno = 5 (0x5), region = 115 }
0x14e0   :  { %6843 = vsyncpa [#allocation3], 1 }
0x14e1   :  { %6845 = vsyncpa [#allocation3 + $0x1], 1 }

</bundles_post_ra>
